<compile_context>
chip_gen: v7x
topology: tpu7x:2x2x1
jax: 0.10.0
libtpu: 0.0.40
codegen_flags: <defaults>
</compile_context>

<pallas_src>
import jax
import jax.numpy as jnp
from jax.experimental import pallas as pl
from jax.experimental.pallas import tpu as pltpu


# --------------------------------------------------------------------------- helpers
def _round_up(x, m):
    return (x + m - 1) // m * m


def _pick_tm(m, cap=1024):
    """Return (padded_rows, row_tile). row_tile divides padded_rows; pads are rare/tiny."""
    mp = _round_up(m, 8)
    if mp <= cap:
        return mp, mp
    for t in range(cap, 7, -8):
        if mp % t == 0:
            if t >= 128:
                return mp, t
            break
    mp = _round_up(mp, 256)          # awkward factorization: pad a little, use 256-row tiles
    return mp, 256


def _pick_tn(n, m_tiles):
    """Output-channel tile: large (<=512) but keep >=2 parallel grid tiles when possible."""
    if n <= 128:
        return n                      # full dim (64 / fc width); no padding, no slicing
    tn = n
    for t in range(min(n, 512), 127, -128):
        if n % t == 0:
            tn = t
            break
    while m_tiles * (n // tn) < 2 and tn % 256 == 0:
        tn //= 2                      # v7x: 2 TensorCores -> want >=2 parallel output tiles
    return tn


def _pick_tk(k, cap=1024):
    """K tile: full K when it fits, else the largest 128-multiple divisor."""
    if k <= cap:
        return k
    for t in range(cap, 127, -128):
        if k % t == 0:
            return t
    return k


# ------------------------------------------------------------------- fused matmul kernel
def _mm_kernel(relu, has_residual):
    # out = maybe_relu(A @ W + shift [+ residual]); A/W/residual bf16, accumulate in f32.
    def kernel(*refs):
        if has_residual:
            a_ref, w_ref, b_ref, r_ref, o_ref, acc_ref = refs
        else:
            a_ref, w_ref, b_ref, o_ref, acc_ref = refs
            r_ref = None

        @pl.when(pl.program_id(2) == 0)
        def _():
            acc_ref[...] = jnp.zeros_like(acc_ref)

        acc_ref[...] += jnp.dot(a_ref[...], w_ref[...],
                                preferred_element_type=jnp.float32)

        @pl.when(pl.program_id(2) == pl.num_programs(2) - 1)
        def _():
            y = acc_ref[...] + b_ref[...]
            if has_residual:
                y = y + r_ref[...].astype(jnp.float32)
            if relu:
                y = jnp.maximum(y, 0.0)
            o_ref[...] = y.astype(o_ref.dtype)

    return kernel


def matmul_bias_act(a, w, shift, residual=None, relu=True, out_dtype=jnp.bfloat16):
    """maybe_relu(a @ w + shift [+ residual]); a/w/residual bf16, f32 accumulation/epilogue."""
    m, k = a.shape
    kw_, n = w.shape
    assert kw_ == k and k % 128 == 0, (k, kw_)
    mp, tm = _pick_tm(m)
    tn = _pick_tn(n, mp // tm)
    tk = _pick_tk(k)

    if mp != m:                       # rare: only when the row count is not 8-aligned/divisible
        a = jnp.pad(a, ((0, mp - m), (0, 0)))
        if residual is not None:
            residual = jnp.pad(residual, ((0, mp - m), (0, 0)))

    b = shift.astype(jnp.float32).reshape(1, n)

    in_specs = [
        pl.BlockSpec((tm, tk), lambda i, j, kk: (i, kk)),
        pl.BlockSpec((tk, tn), lambda i, j, kk: (kk, j)),
        pl.BlockSpec((1, tn), lambda i, j, kk: (0, j)),
    ]
    args = [a, w, b]
    if residual is not None:
        in_specs.append(pl.BlockSpec((tm, tn), lambda i, j, kk: (i, j)))
        args.append(residual)

    out = pl.pallas_call(
        _mm_kernel(relu, residual is not None),
        out_shape=jax.ShapeDtypeStruct((mp, n), out_dtype),
        grid_spec=pltpu.PrefetchScalarGridSpec(
            num_scalar_prefetch=0,
            grid=(mp // tm, n // tn, k // tk),
            in_specs=in_specs,
            out_specs=pl.BlockSpec((tm, tn), lambda i, j, kk: (i, j)),
            scratch_shapes=[pltpu.VMEM((tm, tn), jnp.float32)],
        ),
        compiler_params=pltpu.CompilerParams(
            dimension_semantics=("parallel", "parallel", "arbitrary"),
            vmem_limit_bytes=48 * 1024 * 1024),
    )(*args)
    return out if mp == m else out[:m]


# ------------------------------------------------------------------- conv = im2col + matmul
def _im2col(x, kh, kw, stride, pad, k_extra):
    """Concatenate the kh*kw shifted taps along channels (+ optional zero K-padding block)."""
    n, h, w, c = x.shape
    if pad > 0:
        x = jnp.pad(x, ((0, 0), (pad, pad), (pad, pad), (0, 0)))
    ho = (h + 2 * pad - kh) // stride + 1
    wo = (w + 2 * pad - kw) // stride + 1
    parts = []
    for i in range(kh):
        for j in range(kw):
            parts.append(jax.lax.slice(
                x, (0, i, j, 0),
                (n, i + (ho - 1) * stride + 1, j + (wo - 1) * stride + 1, c),
                (1, stride, stride, 1)))
    if k_extra > 0:
        parts.append(jnp.zeros((n, ho, wo, k_extra), x.dtype))
    cols = parts[0] if len(parts) == 1 else jnp.concatenate(parts, axis=-1)
    return cols, ho, wo


def conv_bn_act(x, cv, stride, pad, relu=True, residual=None):
    """Fused conv + folded-BN + optional residual add + optional ReLU. x is NHWC bf16."""
    n = x.shape[0]
    cols, ho, wo = _im2col(x, cv['kh'], cv['kw'], stride, pad, cv['kp'] - cv['k'])
    a = cols.reshape(n * ho * wo, cv['kp'])
    out = matmul_bias_act(a, cv['wm'], cv['shift'], residual=residual, relu=relu,
                          out_dtype=jnp.bfloat16)
    return out.reshape(n, ho, wo, cv['wm'].shape[1])


# ------------------------------------------------------------------- pooling
def maxpool2d_3x3_s2_p1(x):
    # 3x3 / stride-2 / pad-1 max-pool as a fused jnp.maximum tree over the 9 strided window
    # slices (per perf review: XLA fuses this; the previous 9x stacked HBM copy is gone).
    n, h, w, c = x.shape
    neg = float(jnp.finfo(x.dtype).min)
    xp = jnp.pad(x, ((0, 0), (1, 1), (1, 1), (0, 0)), constant_values=neg)
    ho = (h + 2 - 3) // 2 + 1
    wo = (w + 2 - 3) // 2 + 1
    out = None
    for i in range(3):
        for j in range(3):
            s = jax.lax.slice(
                xp, (0, i, j, 0),
                (n, i + (ho - 1) * 2 + 1, j + (wo - 1) * 2 + 1, c),
                (1, 2, 2, 1))
            out = s if out is None else jnp.maximum(out, s)
    return out


def _gap_kernel(x_ref, o_ref):
    o_ref[...] = jnp.mean(x_ref[...].astype(jnp.float32), axis=1)


def global_avgpool(x):
    n, h, w, c = x.shape
    xs = x.reshape(n, h * w, c)            # bf16 in, f32 mean out
    return pl.pallas_call(
        _gap_kernel,
        out_shape=jax.ShapeDtypeStruct((n, c), jnp.float32),
        grid=(1,),
        in_specs=[pl.BlockSpec((n, h * w, c), lambda i: (0, 0, 0))],
        out_specs=pl.BlockSpec((n, c), lambda i: (0, 0)),
    )(xs)


# ------------------------------------------------------------------- parameter init / folding
def _init_conv(key, cout, cin, k):
    fan_in = cin * k * k
    return jax.random.normal(key, (cout, cin, k, k), jnp.float32) * (2.0 / fan_in) ** 0.5


def _init_bn(key, c, eps=1e-5):
    k1, k2, k3, k4 = jax.random.split(key, 4)
    gamma = 1.0 + 0.1 * jax.random.normal(k1, (c,), jnp.float32)
    beta = 0.1 * jax.random.normal(k2, (c,), jnp.float32)
    rmean = 0.1 * jax.random.normal(k3, (c,), jnp.float32)
    rvar = 1.0 + 0.5 * jax.random.uniform(k4, (c,), jnp.float32)
    scale = gamma / jnp.sqrt(rvar + eps)
    shift = beta - rmean * scale
    return scale, shift


def init_resnet34_params(key, num_classes=2):
    keys = iter(jax.random.split(key, 256))
    p = {'conv1_w': _init_conv(next(keys), 64, 3, 7), 'bn1': _init_bn(next(keys), 64)}
    layer_cfg = [(64, 3, 1), (128, 4, 2), (256, 6, 2), (512, 3, 2)]
    in_c, layers = 64, []
    for out_c, nblocks, first_stride in layer_cfg:
        blocks = []
        for b in range(nblocks):
            stride = first_stride if b == 0 else 1
            blk = {
                'stride': stride,
                'w1': _init_conv(next(keys), out_c, in_c, 3),
                'bn1': _init_bn(next(keys), out_c),
                'w2': _init_conv(next(keys), out_c, out_c, 3),
                'bn2': _init_bn(next(keys), out_c),
            }
            if stride != 1 or in_c != out_c:
                blk['down_w'] = _init_conv(next(keys), out_c, in_c, 1)
                blk['down_bn'] = _init_bn(next(keys), out_c)
            blocks.append(blk)
            in_c = out_c
        layers.append(blocks)
    p['layers'] = layers
    p['fc_w'] = jax.random.normal(next(keys), (512, num_classes), jnp.float32) * (1.0 / 512.0) ** 0.5
    p['fc_b'] = 0.01 * jax.random.normal(next(keys), (num_classes,), jnp.float32)
    return p


def _fold_conv(w, bn_scale, bn_shift):
    """Fold BN scale into the conv weight, reshape to (K, Cout), zero-pad K to 128, cast bf16."""
    cout, cin, kh, kw = w.shape
    k = kh * kw * cin
    kp = _round_up(k, 128)
    wm = jnp.transpose(w, (2, 3, 1, 0)).reshape(k, cout) * bn_scale[None, :]
    if kp != k:
        wm = jnp.concatenate([wm, jnp.zeros((kp - k, cout), wm.dtype)], axis=0)
    return {'wm': wm.astype(jnp.bfloat16), 'shift': bn_shift.astype(jnp.float32),
            'kh': kh, 'kw': kw, 'k': k, 'kp': kp}


def fold_resnet34_params(p):
    """One-time (outside the forward) weight prep: BN fold + transpose + zero-pad + bf16 cast."""
    fp = {'conv1': _fold_conv(p['conv1_w'], *p['bn1']), 'layers': []}
    for blocks in p['layers']:
        fblocks = []
        for blk in blocks:
            fb = {'stride': blk['stride'],
                  'conv1': _fold_conv(blk['w1'], *blk['bn1']),
                  'conv2': _fold_conv(blk['w2'], *blk['bn2'])}
            if 'down_w' in blk:
                fb['down'] = _fold_conv(blk['down_w'], *blk['down_bn'])
            fblocks.append(fb)
        fp['layers'].append(fblocks)
    # fc: pad tiny class counts up to one full lane tile (free; logits are sliced back).
    nc = p['fc_w'].shape[1]
    ncp = _round_up(nc, 128)
    fc_w, fc_b = p['fc_w'], p['fc_b']
    if ncp != nc:
        fc_w = jnp.concatenate([fc_w, jnp.zeros((fc_w.shape[0], ncp - nc), fc_w.dtype)], axis=1)
        fc_b = jnp.concatenate([fc_b, jnp.zeros((ncp - nc,), fc_b.dtype)])
    fp['fc_w'] = fc_w.astype(jnp.bfloat16)
    fp['fc_b'] = fc_b.astype(jnp.float32)
    fp['num_classes'] = nc
    return fp


# ------------------------------------------------------------------- forward
def basic_block(x, blk):
    stride = blk['stride']
    if 'down' in blk:
        identity = conv_bn_act(x, blk['down'], stride=stride, pad=0, relu=False)
    else:
        identity = x
    out = conv_bn_act(x, blk['conv1'], stride=stride, pad=1, relu=True)
    res = identity.reshape(-1, identity.shape[-1])   # bf16; added in f32 inside the epilogue
    out = conv_bn_act(out, blk['conv2'], stride=1, pad=1, relu=True, residual=res)
    return out


def resnet34_forward(fp, x_nchw, norm=False):
    x = jnp.transpose(x_nchw, (0, 2, 3, 1)).astype(jnp.bfloat16)   # NCHW -> NHWC, bf16 once
    x = conv_bn_act(x, fp['conv1'], stride=2, pad=3, relu=True)
    x = maxpool2d_3x3_s2_p1(x)
    for blocks in fp['layers']:
        for blk in blocks:
            x = basic_block(x, blk)
    feat = global_avgpool(x)                 # == extractor(x).squeeze(-1).squeeze(-1), f32
    if norm:
        nrm = jnp.sqrt(jnp.sum(feat * feat, axis=1, keepdims=True))
        feat = feat / jnp.maximum(nrm, 1e-12)
    logits = matmul_bias_act(feat.astype(jnp.bfloat16), fp['fc_w'], fp['fc_b'],
                             relu=False, out_dtype=jnp.float32)
    logits = logits[:, :fp['num_classes']]
    return logits, feat


# ------------------------------------------------------------------- main
if __name__ == "__main__":
    key = jax.random.PRNGKey(0)
    pkey, xkey = jax.random.split(key)
    raw_params = init_resnet34_params(pkey, num_classes=2)
    params = fold_resnet34_params(raw_params)   # hoisted weight prep (outside the forward)

    # Small deterministic input, NCHW like PyTorch: batch=2, channels=3, 16x16 spatial.
    x = jax.random.normal(xkey, (2, 3, 16, 16), jnp.float32)

    fwd = jax.jit(lambda inp: resnet34_forward(params, inp))
    logits, feat = fwd(x)
    jax.block_until_ready((logits, feat))

    assert logits.shape == (2, 2), logits.shape
    assert feat.shape == (2, 512), feat.shape
    assert bool(jnp.all(jnp.isfinite(logits))) and bool(jnp.all(jnp.isfinite(feat)))
    print("KERNEL_OK")
</pallas_src>

<mosaic_0001>
module attributes {stable_mosaic.version = 11 : i64} {
  func.func @kernel(%arg0: i32, %arg1: i32, %arg2: i32, %arg3: memref<128x256xbf16, #tpu.memory_space<vmem>>, %arg4: memref<256x64xbf16, #tpu.memory_space<vmem>>, %arg5: memref<1x64xf32, #tpu.memory_space<vmem>>, %arg6: memref<128x64xbf16, #tpu.memory_space<vmem>>, %arg7: memref<128x64xf32, #tpu.memory_space<vmem>>) attributes {dimension_semantics = [#tpu.dimension_semantics<parallel>, #tpu.dimension_semantics<parallel>, #tpu.dimension_semantics<arbitrary>], iteration_bounds = array<i64: 1, 1, 1>, scalar_prefetch = 0 : i64, scratch_operands = 1 : i64, tpu.core_type = #tpu.core_type<tc>, window_params = [{transform_indices = @transform_0, window_bounds = array<i64: 128, 256>}, {transform_indices = @transform_1, window_bounds = array<i64: 256, 64>}, {transform_indices = @transform_2, window_bounds = array<i64: 1, 64>}, {transform_indices = @transform_3, window_bounds = array<i64: 128, 64>}]} {
    %c0_i32 = arith.constant 0 : i32
    %0 = arith.cmpi eq, %arg2, %c0_i32 : i32
    %1 = arith.extui %0 : i1 to i32
    %c0_i32_0 = arith.constant 0 : i32
    %2 = arith.cmpi ne, %1, %c0_i32_0 : i32
    scf.if %2 {
      %cst_10 = arith.constant 0.000000e+00 : f32
      %12 = vector.broadcast %cst_10 : f32 to vector<128x64xf32>
      %c0_11 = arith.constant 0 : index
      %c0_12 = arith.constant 0 : index
      %13 = vector.load %arg7[%c0_11, %c0_12] : memref<128x64xf32, #tpu.memory_space<vmem>>, vector<128x64xf32>
      tpu.vector_store %arg7[%c0_11, %c0_12], %12 {strides = array<i32>} : memref<128x64xf32, #tpu.memory_space<vmem>>, vector<128x64xf32>,
    } else {
    }
    %c0 = arith.constant 0 : index
    %c0_1 = arith.constant 0 : index
    %3 = vector.load %arg7[%c0, %c0_1] : memref<128x64xf32, #tpu.memory_space<vmem>>, vector<128x64xf32>
    %c0_2 = arith.constant 0 : index
    %c0_3 = arith.constant 0 : index
    %4 = vector.load %arg3[%c0_2, %c0_3] : memref<128x256xbf16, #tpu.memory_space<vmem>>, vector<128x256xbf16>
    %c0_4 = arith.constant 0 : index
    %c0_5 = arith.constant 0 : index
    %5 = vector.load %arg4[%c0_4, %c0_5] : memref<256x64xbf16, #tpu.memory_space<vmem>>, vector<256x64xbf16>
    %cst = arith.constant dense<0.000000e+00> : vector<128x64xf32>
    %6 = tpu.matmul %4, %5, %cst {dimension_numbers = #tpu.dot_dimension_numbers<[1], [0], [0], [1], [0, 0, 1, 1], [], []>} : vector<128x256xbf16>, vector<256x64xbf16>, vector<128x64xf32> -> vector<128x64xf32>
    %7 = arith.addf %3, %6 : vector<128x64xf32>
    %c0_6 = arith.constant 0 : index
    %c0_7 = arith.constant 0 : index
    %8 = vector.load %arg7[%c0_6, %c0_7] : memref<128x64xf32, #tpu.memory_space<vmem>>, vector<128x64xf32>
    tpu.vector_store %arg7[%c0_6, %c0_7], %7 {strides = array<i32>} : memref<128x64xf32, #tpu.memory_space<vmem>>, vector<128x64xf32>,
    %c0_i32_8 = arith.constant 0 : i32
    %9 = arith.cmpi eq, %arg2, %c0_i32_8 : i32
    %10 = arith.extui %9 : i1 to i32
    %c0_i32_9 = arith.constant 0 : i32
    %11 = arith.cmpi ne, %10, %c0_i32_9 : i32
    scf.if %11 {
      %c0_10 = arith.constant 0 : index
      %c0_11 = arith.constant 0 : index
      %12 = vector.load %arg7[%c0_10, %c0_11] : memref<128x64xf32, #tpu.memory_space<vmem>>, vector<128x64xf32>
      %c0_12 = arith.constant 0 : index
      %c0_13 = arith.constant 0 : index
      %13 = vector.load %arg5[%c0_12, %c0_13] : memref<1x64xf32, #tpu.memory_space<vmem>>, vector<1x64xf32>
      %14 = vector.broadcast %13 : vector<1x64xf32> to vector<128x64xf32>
      %15 = arith.addf %12, %14 : vector<128x64xf32>
      %cst_14 = arith.constant 0.000000e+00 : f32
      %16 = vector.broadcast %cst_14 : f32 to vector<128x64xf32>
      %17 = arith.maximumf %15, %16 : vector<128x64xf32>
      %18 = arith.truncf %17 : vector<128x64xf32> to vector<128x64xbf16>
      %c0_15 = arith.constant 0 : index
      %c0_16 = arith.constant 0 : index
      %19 = vector.load %arg6[%c0_15, %c0_16] : memref<128x64xbf16, #tpu.memory_space<vmem>>, vector<128x64xbf16>
      tpu.vector_store %arg6[%c0_15, %c0_16], %18 {strides = array<i32>} : memref<128x64xbf16, #tpu.memory_space<vmem>>, vector<128x64xbf16>,
    } else {
    }
    return
  }
  func.func @transform_0(%arg0: i32, %arg1: i32, %arg2: i32) -> (i32, i32) {
    %c0_i32 = arith.constant 0 : i32
    return %arg0, %arg2 : i32, i32
  }
  func.func @transform_1(%arg0: i32, %arg1: i32, %arg2: i32) -> (i32, i32) {
    %c0_i32 = arith.constant 0 : i32
    return %arg2, %arg1 : i32, i32
  }
  func.func @transform_2(%arg0: i32, %arg1: i32, %arg2: i32) -> (i32, i32) {
    %c0_i32 = arith.constant 0 : i32
    %c0_i32_0 = arith.constant 0 : i32
    return %c0_i32, %arg1 : i32, i32
  }
  func.func @transform_3(%arg0: i32, %arg1: i32, %arg2: i32) -> (i32, i32) {
    %c0_i32 = arith.constant 0 : i32
    return %arg0, %arg1 : i32, i32
  }
}

module attributes {stable_mosaic.version = 11 : i64} {
  func.func @kernel(%arg0: i32, %arg1: i32, %arg2: i32, %arg3: memref<32x640xbf16, #tpu.memory_space<vmem>>, %arg4: memref<640x64xbf16, #tpu.memory_space<vmem>>, %arg5: memref<1x64xf32, #tpu.memory_space<vmem>>, %arg6: memref<32x64xbf16, #tpu.memory_space<vmem>>, %arg7: memref<32x64xf32, #tpu.memory_space<vmem>>) attributes {dimension_semantics = [#tpu.dimension_semantics<parallel>, #tpu.dimension_semantics<parallel>, #tpu.dimension_semantics<arbitrary>], iteration_bounds = array<i64: 1, 1, 1>, scalar_prefetch = 0 : i64, scratch_operands = 1 : i64, tpu.core_type = #tpu.core_type<tc>, window_params = [{transform_indices = @transform_0, window_bounds = array<i64: 32, 640>}, {transform_indices = @transform_1, window_bounds = array<i64: 640, 64>}, {transform_indices = @transform_2, window_bounds = array<i64: 1, 64>}, {transform_indices = @transform_3, window_bounds = array<i64: 32, 64>}]} {
    %c0_i32 = arith.constant 0 : i32
    %0 = arith.cmpi eq, %arg2, %c0_i32 : i32
    %1 = arith.extui %0 : i1 to i32
    %c0_i32_0 = arith.constant 0 : i32
    %2 = arith.cmpi ne, %1, %c0_i32_0 : i32
    scf.if %2 {
      %cst_10 = arith.constant 0.000000e+00 : f32
      %12 = vector.broadcast %cst_10 : f32 to vector<32x64xf32>
      %c0_11 = arith.constant 0 : index
      %c0_12 = arith.constant 0 : index
      %13 = vector.load %arg7[%c0_11, %c0_12] : memref<32x64xf32, #tpu.memory_space<vmem>>, vector<32x64xf32>
      tpu.vector_store %arg7[%c0_11, %c0_12], %12 {strides = array<i32>} : memref<32x64xf32, #tpu.memory_space<vmem>>, vector<32x64xf32>,
    } else {
    }
    %c0 = arith.constant 0 : index
    %c0_1 = arith.constant 0 : index
    %3 = vector.load %arg7[%c0, %c0_1] : memref<32x64xf32, #tpu.memory_space<vmem>>, vector<32x64xf32>
    %c0_2 = arith.constant 0 : index
    %c0_3 = arith.constant 0 : index
    %4 = vector.load %arg3[%c0_2, %c0_3] : memref<32x640xbf16, #tpu.memory_space<vmem>>, vector<32x640xbf16>
    %c0_4 = arith.constant 0 : index
    %c0_5 = arith.constant 0 : index
    %5 = vector.load %arg4[%c0_4, %c0_5] : memref<640x64xbf16, #tpu.memory_space<vmem>>, vector<640x64xbf16>
    %cst = arith.constant dense<0.000000e+00> : vector<32x64xf32>
    %6 = tpu.matmul %4, %5, %cst {dimension_numbers = #tpu.dot_dimension_numbers<[1], [0], [0], [1], [0, 0, 1, 1], [], []>} : vector<32x640xbf16>, vector<640x64xbf16>, vector<32x64xf32> -> vector<32x64xf32>
    %7 = arith.addf %3, %6 : vector<32x64xf32>
    %c0_6 = arith.constant 0 : index
    %c0_7 = arith.constant 0 : index
    %8 = vector.load %arg7[%c0_6, %c0_7] : memref<32x64xf32, #tpu.memory_space<vmem>>, vector<32x64xf32>
    tpu.vector_store %arg7[%c0_6, %c0_7], %7 {strides = array<i32>} : memref<32x64xf32, #tpu.memory_space<vmem>>, vector<32x64xf32>,
    %c0_i32_8 = arith.constant 0 : i32
    %9 = arith.cmpi eq, %arg2, %c0_i32_8 : i32
    %10 = arith.extui %9 : i1 to i32
    %c0_i32_9 = arith.constant 0 : i32
    %11 = arith.cmpi ne, %10, %c0_i32_9 : i32
    scf.if %11 {
      %c0_10 = arith.constant 0 : index
      %c0_11 = arith.constant 0 : index
      %12 = vector.load %arg7[%c0_10, %c0_11] : memref<32x64xf32, #tpu.memory_space<vmem>>, vector<32x64xf32>
      %c0_12 = arith.constant 0 : index
      %c0_13 = arith.constant 0 : index
      %13 = vector.load %arg5[%c0_12, %c0_13] : memref<1x64xf32, #tpu.memory_space<vmem>>, vector<1x64xf32>
      %14 = vector.broadcast %13 : vector<1x64xf32> to vector<32x64xf32>
      %15 = arith.addf %12, %14 : vector<32x64xf32>
      %cst_14 = arith.constant 0.000000e+00 : f32
      %16 = vector.broadcast %cst_14 : f32 to vector<32x64xf32>
      %17 = arith.maximumf %15, %16 : vector<32x64xf32>
      %18 = arith.truncf %17 : vector<32x64xf32> to vector<32x64xbf16>
      %c0_15 = arith.constant 0 : index
      %c0_16 = arith.constant 0 : index
      %19 = vector.load %arg6[%c0_15, %c0_16] : memref<32x64xbf16, #tpu.memory_space<vmem>>, vector<32x64xbf16>
      tpu.vector_store %arg6[%c0_15, %c0_16], %18 {strides = array<i32>} : memref<32x64xbf16, #tpu.memory_space<vmem>>, vector<32x64xbf16>,
    } else {
    }
    return
  }
  func.func @transform_0(%arg0: i32, %arg1: i32, %arg2: i32) -> (i32, i32) {
    %c0_i32 = arith.constant 0 : i32
    return %arg0, %arg2 : i32, i32
  }
  func.func @transform_1(%arg0: i32, %arg1: i32, %arg2: i32) -> (i32, i32) {
    %c0_i32 = arith.constant 0 : i32
    return %arg2, %arg1 : i32, i32
  }
  func.func @transform_2(%arg0: i32, %arg1: i32, %arg2: i32) -> (i32, i32) {
    %c0_i32 = arith.constant 0 : i32
    %c0_i32_0 = arith.constant 0 : i32
    return %c0_i32, %arg1 : i32, i32
  }
  func.func @transform_3(%arg0: i32, %arg1: i32, %arg2: i32) -> (i32, i32) {
    %c0_i32 = arith.constant 0 : i32
    return %arg0, %arg1 : i32, i32
  }
}

module attributes {stable_mosaic.version = 11 : i64} {
  func.func @kernel(%arg0: i32, %arg1: i32, %arg2: i32, %arg3: memref<32x640xbf16, #tpu.memory_space<vmem>>, %arg4: memref<640x64xbf16, #tpu.memory_space<vmem>>, %arg5: memref<1x64xf32, #tpu.memory_space<vmem>>, %arg6: memref<32x64xbf16, #tpu.memory_space<vmem>>, %arg7: memref<32x64xbf16, #tpu.memory_space<vmem>>, %arg8: memref<32x64xf32, #tpu.memory_space<vmem>>) attributes {dimension_semantics = [#tpu.dimension_semantics<parallel>, #tpu.dimension_semantics<parallel>, #tpu.dimension_semantics<arbitrary>], iteration_bounds = array<i64: 1, 1, 1>, scalar_prefetch = 0 : i64, scratch_operands = 1 : i64, tpu.core_type = #tpu.core_type<tc>, window_params = [{transform_indices = @transform_0, window_bounds = array<i64: 32, 640>}, {transform_indices = @transform_1, window_bounds = array<i64: 640, 64>}, {transform_indices = @transform_2, window_bounds = array<i64: 1, 64>}, {transform_indices = @transform_3, window_bounds = array<i64: 32, 64>}, {transform_indices = @transform_4, window_bounds = array<i64: 32, 64>}]} {
    %c0_i32 = arith.constant 0 : i32
    %0 = arith.cmpi eq, %arg2, %c0_i32 : i32
    %1 = arith.extui %0 : i1 to i32
    %c0_i32_0 = arith.constant 0 : i32
    %2 = arith.cmpi ne, %1, %c0_i32_0 : i32
    scf.if %2 {
      %cst_10 = arith.constant 0.000000e+00 : f32
      %12 = vector.broadcast %cst_10 : f32 to vector<32x64xf32>
      %c0_11 = arith.constant 0 : index
      %c0_12 = arith.constant 0 : index
      %13 = vector.load %arg8[%c0_11, %c0_12] : memref<32x64xf32, #tpu.memory_space<vmem>>, vector<32x64xf32>
      tpu.vector_store %arg8[%c0_11, %c0_12], %12 {strides = array<i32>} : memref<32x64xf32, #tpu.memory_space<vmem>>, vector<32x64xf32>,
    } else {
    }
    %c0 = arith.constant 0 : index
    %c0_1 = arith.constant 0 : index
    %3 = vector.load %arg8[%c0, %c0_1] : memref<32x64xf32, #tpu.memory_space<vmem>>, vector<32x64xf32>
    %c0_2 = arith.constant 0 : index
    %c0_3 = arith.constant 0 : index
    %4 = vector.load %arg3[%c0_2, %c0_3] : memref<32x640xbf16, #tpu.memory_space<vmem>>, vector<32x640xbf16>
    %c0_4 = arith.constant 0 : index
    %c0_5 = arith.constant 0 : index
    %5 = vector.load %arg4[%c0_4, %c0_5] : memref<640x64xbf16, #tpu.memory_space<vmem>>, vector<640x64xbf16>
    %cst = arith.constant dense<0.000000e+00> : vector<32x64xf32>
    %6 = tpu.matmul %4, %5, %cst {dimension_numbers = #tpu.dot_dimension_numbers<[1], [0], [0], [1], [0, 0, 1, 1], [], []>} : vector<32x640xbf16>, vector<640x64xbf16>, vector<32x64xf32> -> vector<32x64xf32>
    %7 = arith.addf %3, %6 : vector<32x64xf32>
    %c0_6 = arith.constant 0 : index
    %c0_7 = arith.constant 0 : index
    %8 = vector.load %arg8[%c0_6, %c0_7] : memref<32x64xf32, #tpu.memory_space<vmem>>, vector<32x64xf32>
    tpu.vector_store %arg8[%c0_6, %c0_7], %7 {strides = array<i32>} : memref<32x64xf32, #tpu.memory_space<vmem>>, vector<32x64xf32>,
    %c0_i32_8 = arith.constant 0 : i32
    %9 = arith.cmpi eq, %arg2, %c0_i32_8 : i32
    %10 = arith.extui %9 : i1 to i32
    %c0_i32_9 = arith.constant 0 : i32
    %11 = arith.cmpi ne, %10, %c0_i32_9 : i32
    scf.if %11 {
      %c0_10 = arith.constant 0 : index
      %c0_11 = arith.constant 0 : index
      %12 = vector.load %arg8[%c0_10, %c0_11] : memref<32x64xf32, #tpu.memory_space<vmem>>, vector<32x64xf32>
      %c0_12 = arith.constant 0 : index
      %c0_13 = arith.constant 0 : index
      %13 = vector.load %arg5[%c0_12, %c0_13] : memref<1x64xf32, #tpu.memory_space<vmem>>, vector<1x64xf32>
      %14 = vector.broadcast %13 : vector<1x64xf32> to vector<32x64xf32>
      %15 = arith.addf %12, %14 : vector<32x64xf32>
      %c0_14 = arith.constant 0 : index
      %c0_15 = arith.constant 0 : index
      %16 = vector.load %arg6[%c0_14, %c0_15] : memref<32x64xbf16, #tpu.memory_space<vmem>>, vector<32x64xbf16>
      %17 = arith.extf %16 : vector<32x64xbf16> to vector<32x64xf32>
      %18 = arith.addf %15, %17 : vector<32x64xf32>
      %cst_16 = arith.constant 0.000000e+00 : f32
      %19 = vector.broadcast %cst_16 : f32 to vector<32x64xf32>
      %20 = arith.maximumf %18, %19 : vector<32x64xf32>
      %21 = arith.truncf %20 : vector<32x64xf32> to vector<32x64xbf16>
      %c0_17 = arith.constant 0 : index
      %c0_18 = arith.constant 0 : index
      %22 = vector.load %arg7[%c0_17, %c0_18] : memref<32x64xbf16, #tpu.memory_space<vmem>>, vector<32x64xbf16>
      tpu.vector_store %arg7[%c0_17, %c0_18], %21 {strides = array<i32>} : memref<32x64xbf16, #tpu.memory_space<vmem>>, vector<32x64xbf16>,
    } else {
    }
    return
  }
  func.func @transform_0(%arg0: i32, %arg1: i32, %arg2: i32) -> (i32, i32) {
    %c0_i32 = arith.constant 0 : i32
    return %arg0, %arg2 : i32, i32
  }
  func.func @transform_1(%arg0: i32, %arg1: i32, %arg2: i32) -> (i32, i32) {
    %c0_i32 = arith.constant 0 : i32
    return %arg2, %arg1 : i32, i32
  }
  func.func @transform_2(%arg0: i32, %arg1: i32, %arg2: i32) -> (i32, i32) {
    %c0_i32 = arith.constant 0 : i32
    %c0_i32_0 = arith.constant 0 : i32
    return %c0_i32, %arg1 : i32, i32
  }
  func.func @transform_3(%arg0: i32, %arg1: i32, %arg2: i32) -> (i32, i32) {
    %c0_i32 = arith.constant 0 : i32
    return %arg0, %arg1 : i32, i32
  }
  func.func @transform_4(%arg0: i32, %arg1: i32, %arg2: i32) -> (i32, i32) {
    %c0_i32 = arith.constant 0 : i32
    return %arg0, %arg1 : i32, i32
  }
}

module attributes {stable_mosaic.version = 11 : i64} {
  func.func @kernel(%arg0: i32, %arg1: i32, %arg2: i32, %arg3: memref<8x640xbf16, #tpu.memory_space<vmem>>, %arg4: memref<640x128xbf16, #tpu.memory_space<vmem>>, %arg5: memref<1x128xf32, #tpu.memory_space<vmem>>, %arg6: memref<8x128xbf16, #tpu.memory_space<vmem>>, %arg7: memref<8x128xf32, #tpu.memory_space<vmem>>) attributes {dimension_semantics = [#tpu.dimension_semantics<parallel>, #tpu.dimension_semantics<parallel>, #tpu.dimension_semantics<arbitrary>], iteration_bounds = array<i64: 1, 1, 1>, scalar_prefetch = 0 : i64, scratch_operands = 1 : i64, tpu.core_type = #tpu.core_type<tc>, window_params = [{transform_indices = @transform_0, window_bounds = array<i64: 8, 640>}, {transform_indices = @transform_1, window_bounds = array<i64: 640, 128>}, {transform_indices = @transform_2, window_bounds = array<i64: 1, 128>}, {transform_indices = @transform_3, window_bounds = array<i64: 8, 128>}]} {
    %c0_i32 = arith.constant 0 : i32
    %0 = arith.cmpi eq, %arg2, %c0_i32 : i32
    %1 = arith.extui %0 : i1 to i32
    %c0_i32_0 = arith.constant 0 : i32
    %2 = arith.cmpi ne, %1, %c0_i32_0 : i32
    scf.if %2 {
      %cst_10 = arith.constant 0.000000e+00 : f32
      %12 = vector.broadcast %cst_10 : f32 to vector<8x128xf32>
      %c0_11 = arith.constant 0 : index
      %c0_12 = arith.constant 0 : index
      %13 = vector.load %arg7[%c0_11, %c0_12] : memref<8x128xf32, #tpu.memory_space<vmem>>, vector<8x128xf32>
      tpu.vector_store %arg7[%c0_11, %c0_12], %12 {strides = array<i32>} : memref<8x128xf32, #tpu.memory_space<vmem>>, vector<8x128xf32>,
    } else {
    }
    %c0 = arith.constant 0 : index
    %c0_1 = arith.constant 0 : index
    %3 = vector.load %arg7[%c0, %c0_1] : memref<8x128xf32, #tpu.memory_space<vmem>>, vector<8x128xf32>
    %c0_2 = arith.constant 0 : index
    %c0_3 = arith.constant 0 : index
    %4 = vector.load %arg3[%c0_2, %c0_3] : memref<8x640xbf16, #tpu.memory_space<vmem>>, vector<8x640xbf16>
    %c0_4 = arith.constant 0 : index
    %c0_5 = arith.constant 0 : index
    %5 = vector.load %arg4[%c0_4, %c0_5] : memref<640x128xbf16, #tpu.memory_space<vmem>>, vector<640x128xbf16>
    %cst = arith.constant dense<0.000000e+00> : vector<8x128xf32>
    %6 = tpu.matmul %4, %5, %cst {dimension_numbers = #tpu.dot_dimension_numbers<[1], [0], [0], [1], [0, 0, 1, 1], [], []>} : vector<8x640xbf16>, vector<640x128xbf16>, vector<8x128xf32> -> vector<8x128xf32>
    %7 = arith.addf %3, %6 : vector<8x128xf32>
    %c0_6 = arith.constant 0 : index
    %c0_7 = arith.constant 0 : index
    %8 = vector.load %arg7[%c0_6, %c0_7] : memref<8x128xf32, #tpu.memory_space<vmem>>, vector<8x128xf32>
    tpu.vector_store %arg7[%c0_6, %c0_7], %7 {strides = array<i32>} : memref<8x128xf32, #tpu.memory_space<vmem>>, vector<8x128xf32>,
    %c0_i32_8 = arith.constant 0 : i32
    %9 = arith.cmpi eq, %arg2, %c0_i32_8 : i32
    %10 = arith.extui %9 : i1 to i32
    %c0_i32_9 = arith.constant 0 : i32
    %11 = arith.cmpi ne, %10, %c0_i32_9 : i32
    scf.if %11 {
      %c0_10 = arith.constant 0 : index
      %c0_11 = arith.constant 0 : index
      %12 = vector.load %arg7[%c0_10, %c0_11] : memref<8x128xf32, #tpu.memory_space<vmem>>, vector<8x128xf32>
      %c0_12 = arith.constant 0 : index
      %c0_13 = arith.constant 0 : index
      %13 = vector.load %arg5[%c0_12, %c0_13] : memref<1x128xf32, #tpu.memory_space<vmem>>, vector<1x128xf32>
      %14 = vector.broadcast %13 : vector<1x128xf32> to vector<8x128xf32>
      %15 = arith.addf %12, %14 : vector<8x128xf32>
      %cst_14 = arith.constant 0.000000e+00 : f32
      %16 = vector.broadcast %cst_14 : f32 to vector<8x128xf32>
      %17 = arith.maximumf %15, %16 : vector<8x128xf32>
      %18 = arith.truncf %17 : vector<8x128xf32> to vector<8x128xbf16>
      %c0_15 = arith.constant 0 : index
      %c0_16 = arith.constant 0 : index
      %19 = vector.load %arg6[%c0_15, %c0_16] : memref<8x128xbf16, #tpu.memory_space<vmem>>, vector<8x128xbf16>
      tpu.vector_store %arg6[%c0_15, %c0_16], %18 {strides = array<i32>} : memref<8x128xbf16, #tpu.memory_space<vmem>>, vector<8x128xbf16>,
    } else {
    }
    return
  }
  func.func @transform_0(%arg0: i32, %arg1: i32, %arg2: i32) -> (i32, i32) {
    %c0_i32 = arith.constant 0 : i32
    return %arg0, %arg2 : i32, i32
  }
  func.func @transform_1(%arg0: i32, %arg1: i32, %arg2: i32) -> (i32, i32) {
    %c0_i32 = arith.constant 0 : i32
    return %arg2, %arg1 : i32, i32
  }
  func.func @transform_2(%arg0: i32, %arg1: i32, %arg2: i32) -> (i32, i32) {
    %c0_i32 = arith.constant 0 : i32
    %c0_i32_0 = arith.constant 0 : i32
    return %c0_i32, %arg1 : i32, i32
  }
  func.func @transform_3(%arg0: i32, %arg1: i32, %arg2: i32) -> (i32, i32) {
    %c0_i32 = arith.constant 0 : i32
    return %arg0, %arg1 : i32, i32
  }
}

module attributes {stable_mosaic.version = 11 : i64} {
  func.func @kernel(%arg0: i32, %arg1: i32, %arg2: i32, %arg3: memref<8x128xbf16, #tpu.memory_space<vmem>>, %arg4: memref<128x128xbf16, #tpu.memory_space<vmem>>, %arg5: memref<1x128xf32, #tpu.memory_space<vmem>>, %arg6: memref<8x128xbf16, #tpu.memory_space<vmem>>, %arg7: memref<8x128xf32, #tpu.memory_space<vmem>>) attributes {dimension_semantics = [#tpu.dimension_semantics<parallel>, #tpu.dimension_semantics<parallel>, #tpu.dimension_semantics<arbitrary>], iteration_bounds = array<i64: 1, 1, 1>, scalar_prefetch = 0 : i64, scratch_operands = 1 : i64, tpu.core_type = #tpu.core_type<tc>, window_params = [{transform_indices = @transform_0, window_bounds = array<i64: 8, 128>}, {transform_indices = @transform_1, window_bounds = array<i64: 128, 128>}, {transform_indices = @transform_2, window_bounds = array<i64: 1, 128>}, {transform_indices = @transform_3, window_bounds = array<i64: 8, 128>}]} {
    %c0_i32 = arith.constant 0 : i32
    %0 = arith.cmpi eq, %arg2, %c0_i32 : i32
    %1 = arith.extui %0 : i1 to i32
    %c0_i32_0 = arith.constant 0 : i32
    %2 = arith.cmpi ne, %1, %c0_i32_0 : i32
    scf.if %2 {
      %cst_10 = arith.constant 0.000000e+00 : f32
      %12 = vector.broadcast %cst_10 : f32 to vector<8x128xf32>
      %c0_11 = arith.constant 0 : index
      %c0_12 = arith.constant 0 : index
      %13 = vector.load %arg7[%c0_11, %c0_12] : memref<8x128xf32, #tpu.memory_space<vmem>>, vector<8x128xf32>
      tpu.vector_store %arg7[%c0_11, %c0_12], %12 {strides = array<i32>} : memref<8x128xf32, #tpu.memory_space<vmem>>, vector<8x128xf32>,
    } else {
    }
    %c0 = arith.constant 0 : index
    %c0_1 = arith.constant 0 : index
    %3 = vector.load %arg7[%c0, %c0_1] : memref<8x128xf32, #tpu.memory_space<vmem>>, vector<8x128xf32>
    %c0_2 = arith.constant 0 : index
    %c0_3 = arith.constant 0 : index
    %4 = vector.load %arg3[%c0_2, %c0_3] : memref<8x128xbf16, #tpu.memory_space<vmem>>, vector<8x128xbf16>
    %c0_4 = arith.constant 0 : index
    %c0_5 = arith.constant 0 : index
    %5 = vector.load %arg4[%c0_4, %c0_5] : memref<128x128xbf16, #tpu.memory_space<vmem>>, vector<128x128xbf16>
    %cst = arith.constant dense<0.000000e+00> : vector<8x128xf32>
    %6 = tpu.matmul %4, %5, %cst {dimension_numbers = #tpu.dot_dimension_numbers<[1], [0], [0], [1], [0, 0, 1, 1], [], []>} : vector<8x128xbf16>, vector<128x128xbf16>, vector<8x128xf32> -> vector<8x128xf32>
    %7 = arith.addf %3, %6 : vector<8x128xf32>
    %c0_6 = arith.constant 0 : index
    %c0_7 = arith.constant 0 : index
    %8 = vector.load %arg7[%c0_6, %c0_7] : memref<8x128xf32, #tpu.memory_space<vmem>>, vector<8x128xf32>
    tpu.vector_store %arg7[%c0_6, %c0_7], %7 {strides = array<i32>} : memref<8x128xf32, #tpu.memory_space<vmem>>, vector<8x128xf32>,
    %c0_i32_8 = arith.constant 0 : i32
    %9 = arith.cmpi eq, %arg2, %c0_i32_8 : i32
    %10 = arith.extui %9 : i1 to i32
    %c0_i32_9 = arith.constant 0 : i32
    %11 = arith.cmpi ne, %10, %c0_i32_9 : i32
    scf.if %11 {
      %c0_10 = arith.constant 0 : index
      %c0_11 = arith.constant 0 : index
      %12 = vector.load %arg7[%c0_10, %c0_11] : memref<8x128xf32, #tpu.memory_space<vmem>>, vector<8x128xf32>
      %c0_12 = arith.constant 0 : index
      %c0_13 = arith.constant 0 : index
      %13 = vector.load %arg5[%c0_12, %c0_13] : memref<1x128xf32, #tpu.memory_space<vmem>>, vector<1x128xf32>
      %14 = vector.broadcast %13 : vector<1x128xf32> to vector<8x128xf32>
      %15 = arith.addf %12, %14 : vector<8x128xf32>
      %16 = arith.truncf %15 : vector<8x128xf32> to vector<8x128xbf16>
      %c0_14 = arith.constant 0 : index
      %c0_15 = arith.constant 0 : index
      %17 = vector.load %arg6[%c0_14, %c0_15] : memref<8x128xbf16, #tpu.memory_space<vmem>>, vector<8x128xbf16>
      tpu.vector_store %arg6[%c0_14, %c0_15], %16 {strides = array<i32>} : memref<8x128xbf16, #tpu.memory_space<vmem>>, vector<8x128xbf16>,
    } else {
    }
    return
  }
  func.func @transform_0(%arg0: i32, %arg1: i32, %arg2: i32) -> (i32, i32) {
    %c0_i32 = arith.constant 0 : i32
    return %arg0, %arg2 : i32, i32
  }
  func.func @transform_1(%arg0: i32, %arg1: i32, %arg2: i32) -> (i32, i32) {
    %c0_i32 = arith.constant 0 : i32
    return %arg2, %arg1 : i32, i32
  }
  func.func @transform_2(%arg0: i32, %arg1: i32, %arg2: i32) -> (i32, i32) {
    %c0_i32 = arith.constant 0 : i32
    %c0_i32_0 = arith.constant 0 : i32
    return %c0_i32, %arg1 : i32, i32
  }
  func.func @transform_3(%arg0: i32, %arg1: i32, %arg2: i32) -> (i32, i32) {
    %c0_i32 = arith.constant 0 : i32
    return %arg0, %arg1 : i32, i32
  }
}

module attributes {stable_mosaic.version = 11 : i64} {
  func.func @kernel(%arg0: i32, %arg1: i32, %arg2: i32, %arg3: memref<8x384xbf16, #tpu.memory_space<vmem>>, %arg4: memref<384x128xbf16, #tpu.memory_space<vmem>>, %arg5: memref<1x128xf32, #tpu.memory_space<vmem>>, %arg6: memref<8x128xbf16, #tpu.memory_space<vmem>>, %arg7: memref<8x128xf32, #tpu.memory_space<vmem>>) attributes {dimension_semantics = [#tpu.dimension_semantics<parallel>, #tpu.dimension_semantics<parallel>, #tpu.dimension_semantics<arbitrary>], iteration_bounds = array<i64: 1, 1, 3>, scalar_prefetch = 0 : i64, scratch_operands = 1 : i64, tpu.core_type = #tpu.core_type<tc>, window_params = [{transform_indices = @transform_0, window_bounds = array<i64: 8, 384>}, {transform_indices = @transform_1, window_bounds = array<i64: 384, 128>}, {transform_indices = @transform_2, window_bounds = array<i64: 1, 128>}, {transform_indices = @transform_3, window_bounds = array<i64: 8, 128>}]} {
    %c0_i32 = arith.constant 0 : i32
    %0 = arith.cmpi eq, %arg2, %c0_i32 : i32
    %1 = arith.extui %0 : i1 to i32
    %c0_i32_0 = arith.constant 0 : i32
    %2 = arith.cmpi ne, %1, %c0_i32_0 : i32
    scf.if %2 {
      %cst_9 = arith.constant 0.000000e+00 : f32
      %12 = vector.broadcast %cst_9 : f32 to vector<8x128xf32>
      %c0_10 = arith.constant 0 : index
      %c0_11 = arith.constant 0 : index
      %13 = vector.load %arg7[%c0_10, %c0_11] : memref<8x128xf32, #tpu.memory_space<vmem>>, vector<8x128xf32>
      tpu.vector_store %arg7[%c0_10, %c0_11], %12 {strides = array<i32>} : memref<8x128xf32, #tpu.memory_space<vmem>>, vector<8x128xf32>,
    } else {
    }
    %c0 = arith.constant 0 : index
    %c0_1 = arith.constant 0 : index
    %3 = vector.load %arg7[%c0, %c0_1] : memref<8x128xf32, #tpu.memory_space<vmem>>, vector<8x128xf32>
    %c0_2 = arith.constant 0 : index
    %c0_3 = arith.constant 0 : index
    %4 = vector.load %arg3[%c0_2, %c0_3] : memref<8x384xbf16, #tpu.memory_space<vmem>>, vector<8x384xbf16>
    %c0_4 = arith.constant 0 : index
    %c0_5 = arith.constant 0 : index
    %5 = vector.load %arg4[%c0_4, %c0_5] : memref<384x128xbf16, #tpu.memory_space<vmem>>, vector<384x128xbf16>
    %cst = arith.constant dense<0.000000e+00> : vector<8x128xf32>
    %6 = tpu.matmul %4, %5, %cst {dimension_numbers = #tpu.dot_dimension_numbers<[1], [0], [0], [1], [0, 0, 1, 1], [], []>} : vector<8x384xbf16>, vector<384x128xbf16>, vector<8x128xf32> -> vector<8x128xf32>
    %7 = arith.addf %3, %6 : vector<8x128xf32>
    %c0_6 = arith.constant 0 : index
    %c0_7 = arith.constant 0 : index
    %8 = vector.load %arg7[%c0_6, %c0_7] : memref<8x128xf32, #tpu.memory_space<vmem>>, vector<8x128xf32>
    tpu.vector_store %arg7[%c0_6, %c0_7], %7 {strides = array<i32>} : memref<8x128xf32, #tpu.memory_space<vmem>>, vector<8x128xf32>,
    %c2_i32 = arith.constant 2 : i32
    %9 = arith.cmpi eq, %arg2, %c2_i32 : i32
    %10 = arith.extui %9 : i1 to i32
    %c0_i32_8 = arith.constant 0 : i32
    %11 = arith.cmpi ne, %10, %c0_i32_8 : i32
    scf.if %11 {
      %c0_9 = arith.constant 0 : index
      %c0_10 = arith.constant 0 : index
      %12 = vector.load %arg7[%c0_9, %c0_10] : memref<8x128xf32, #tpu.memory_space<vmem>>, vector<8x128xf32>
      %c0_11 = arith.constant 0 : index
      %c0_12 = arith.constant 0 : index
      %13 = vector.load %arg5[%c0_11, %c0_12] : memref<1x128xf32, #tpu.memory_space<vmem>>, vector<1x128xf32>
      %14 = vector.broadcast %13 : vector<1x128xf32> to vector<8x128xf32>
      %15 = arith.addf %12, %14 : vector<8x128xf32>
      %cst_13 = arith.constant 0.000000e+00 : f32
      %16 = vector.broadcast %cst_13 : f32 to vector<8x128xf32>
      %17 = arith.maximumf %15, %16 : vector<8x128xf32>
      %18 = arith.truncf %17 : vector<8x128xf32> to vector<8x128xbf16>
      %c0_14 = arith.constant 0 : index
      %c0_15 = arith.constant 0 : index
      %19 = vector.load %arg6[%c0_14, %c0_15] : memref<8x128xbf16, #tpu.memory_space<vmem>>, vector<8x128xbf16>
      tpu.vector_store %arg6[%c0_14, %c0_15], %18 {strides = array<i32>} : memref<8x128xbf16, #tpu.memory_space<vmem>>, vector<8x128xbf16>,
    } else {
    }
    return
  }
  func.func @transform_0(%arg0: i32, %arg1: i32, %arg2: i32) -> (i32, i32) {
    %c0_i32 = arith.constant 0 : i32
    return %arg0, %arg2 : i32, i32
  }
  func.func @transform_1(%arg0: i32, %arg1: i32, %arg2: i32) -> (i32, i32) {
    %c0_i32 = arith.constant 0 : i32
    return %arg2, %arg1 : i32, i32
  }
  func.func @transform_2(%arg0: i32, %arg1: i32, %arg2: i32) -> (i32, i32) {
    %c0_i32 = arith.constant 0 : i32
    %c0_i32_0 = arith.constant 0 : i32
    return %c0_i32, %arg1 : i32, i32
  }
  func.func @transform_3(%arg0: i32, %arg1: i32, %arg2: i32) -> (i32, i32) {
    %c0_i32 = arith.constant 0 : i32
    return %arg0, %arg1 : i32, i32
  }
}

module attributes {stable_mosaic.version = 11 : i64} {
  func.func @kernel(%arg0: i32, %arg1: i32, %arg2: i32, %arg3: memref<8x384xbf16, #tpu.memory_space<vmem>>, %arg4: memref<384x128xbf16, #tpu.memory_space<vmem>>, %arg5: memref<1x128xf32, #tpu.memory_space<vmem>>, %arg6: memref<8x128xbf16, #tpu.memory_space<vmem>>, %arg7: memref<8x128xbf16, #tpu.memory_space<vmem>>, %arg8: memref<8x128xf32, #tpu.memory_space<vmem>>) attributes {dimension_semantics = [#tpu.dimension_semantics<parallel>, #tpu.dimension_semantics<parallel>, #tpu.dimension_semantics<arbitrary>], iteration_bounds = array<i64: 1, 1, 3>, scalar_prefetch = 0 : i64, scratch_operands = 1 : i64, tpu.core_type = #tpu.core_type<tc>, window_params = [{transform_indices = @transform_0, window_bounds = array<i64: 8, 384>}, {transform_indices = @transform_1, window_bounds = array<i64: 384, 128>}, {transform_indices = @transform_2, window_bounds = array<i64: 1, 128>}, {transform_indices = @transform_3, window_bounds = array<i64: 8, 128>}, {transform_indices = @transform_4, window_bounds = array<i64: 8, 128>}]} {
    %c0_i32 = arith.constant 0 : i32
    %0 = arith.cmpi eq, %arg2, %c0_i32 : i32
    %1 = arith.extui %0 : i1 to i32
    %c0_i32_0 = arith.constant 0 : i32
    %2 = arith.cmpi ne, %1, %c0_i32_0 : i32
    scf.if %2 {
      %cst_9 = arith.constant 0.000000e+00 : f32
      %12 = vector.broadcast %cst_9 : f32 to vector<8x128xf32>
      %c0_10 = arith.constant 0 : index
      %c0_11 = arith.constant 0 : index
      %13 = vector.load %arg8[%c0_10, %c0_11] : memref<8x128xf32, #tpu.memory_space<vmem>>, vector<8x128xf32>
      tpu.vector_store %arg8[%c0_10, %c0_11], %12 {strides = array<i32>} : memref<8x128xf32, #tpu.memory_space<vmem>>, vector<8x128xf32>,
    } else {
    }
    %c0 = arith.constant 0 : index
    %c0_1 = arith.constant 0 : index
    %3 = vector.load %arg8[%c0, %c0_1] : memref<8x128xf32, #tpu.memory_space<vmem>>, vector<8x128xf32>
    %c0_2 = arith.constant 0 : index
    %c0_3 = arith.constant 0 : index
    %4 = vector.load %arg3[%c0_2, %c0_3] : memref<8x384xbf16, #tpu.memory_space<vmem>>, vector<8x384xbf16>
    %c0_4 = arith.constant 0 : index
    %c0_5 = arith.constant 0 : index
    %5 = vector.load %arg4[%c0_4, %c0_5] : memref<384x128xbf16, #tpu.memory_space<vmem>>, vector<384x128xbf16>
    %cst = arith.constant dense<0.000000e+00> : vector<8x128xf32>
    %6 = tpu.matmul %4, %5, %cst {dimension_numbers = #tpu.dot_dimension_numbers<[1], [0], [0], [1], [0, 0, 1, 1], [], []>} : vector<8x384xbf16>, vector<384x128xbf16>, vector<8x128xf32> -> vector<8x128xf32>
    %7 = arith.addf %3, %6 : vector<8x128xf32>
    %c0_6 = arith.constant 0 : index
    %c0_7 = arith.constant 0 : index
    %8 = vector.load %arg8[%c0_6, %c0_7] : memref<8x128xf32, #tpu.memory_space<vmem>>, vector<8x128xf32>
    tpu.vector_store %arg8[%c0_6, %c0_7], %7 {strides = array<i32>} : memref<8x128xf32, #tpu.memory_space<vmem>>, vector<8x128xf32>,
    %c2_i32 = arith.constant 2 : i32
    %9 = arith.cmpi eq, %arg2, %c2_i32 : i32
    %10 = arith.extui %9 : i1 to i32
    %c0_i32_8 = arith.constant 0 : i32
    %11 = arith.cmpi ne, %10, %c0_i32_8 : i32
    scf.if %11 {
      %c0_9 = arith.constant 0 : index
      %c0_10 = arith.constant 0 : index
      %12 = vector.load %arg8[%c0_9, %c0_10] : memref<8x128xf32, #tpu.memory_space<vmem>>, vector<8x128xf32>
      %c0_11 = arith.constant 0 : index
      %c0_12 = arith.constant 0 : index
      %13 = vector.load %arg5[%c0_11, %c0_12] : memref<1x128xf32, #tpu.memory_space<vmem>>, vector<1x128xf32>
      %14 = vector.broadcast %13 : vector<1x128xf32> to vector<8x128xf32>
      %15 = arith.addf %12, %14 : vector<8x128xf32>
      %c0_13 = arith.constant 0 : index
      %c0_14 = arith.constant 0 : index
      %16 = vector.load %arg6[%c0_13, %c0_14] : memref<8x128xbf16, #tpu.memory_space<vmem>>, vector<8x128xbf16>
      %17 = arith.extf %16 : vector<8x128xbf16> to vector<8x128xf32>
      %18 = arith.addf %15, %17 : vector<8x128xf32>
      %cst_15 = arith.constant 0.000000e+00 : f32
      %19 = vector.broadcast %cst_15 : f32 to vector<8x128xf32>
      %20 = arith.maximumf %18, %19 : vector<8x128xf32>
      %21 = arith.truncf %20 : vector<8x128xf32> to vector<8x128xbf16>
      %c0_16 = arith.constant 0 : index
      %c0_17 = arith.constant 0 : index
      %22 = vector.load %arg7[%c0_16, %c0_17] : memref<8x128xbf16, #tpu.memory_space<vmem>>, vector<8x128xbf16>
      tpu.vector_store %arg7[%c0_16, %c0_17], %21 {strides = array<i32>} : memref<8x128xbf16, #tpu.memory_space<vmem>>, vector<8x128xbf16>,
    } else {
    }
    return
  }
  func.func @transform_0(%arg0: i32, %arg1: i32, %arg2: i32) -> (i32, i32) {
    %c0_i32 = arith.constant 0 : i32
    return %arg0, %arg2 : i32, i32
  }
  func.func @transform_1(%arg0: i32, %arg1: i32, %arg2: i32) -> (i32, i32) {
    %c0_i32 = arith.constant 0 : i32
    return %arg2, %arg1 : i32, i32
  }
  func.func @transform_2(%arg0: i32, %arg1: i32, %arg2: i32) -> (i32, i32) {
    %c0_i32 = arith.constant 0 : i32
    %c0_i32_0 = arith.constant 0 : i32
    return %c0_i32, %arg1 : i32, i32
  }
  func.func @transform_3(%arg0: i32, %arg1: i32, %arg2: i32) -> (i32, i32) {
    %c0_i32 = arith.constant 0 : i32
    return %arg0, %arg1 : i32, i32
  }
  func.func @transform_4(%arg0: i32, %arg1: i32, %arg2: i32) -> (i32, i32) {
    %c0_i32 = arith.constant 0 : i32
    return %arg0, %arg1 : i32, i32
  }
}

module attributes {stable_mosaic.version = 11 : i64} {
  func.func @kernel(%arg0: i32, %arg1: i32, %arg2: i32, %arg3: memref<8x384xbf16, #tpu.memory_space<vmem>>, %arg4: memref<384x128xbf16, #tpu.memory_space<vmem>>, %arg5: memref<1x128xf32, #tpu.memory_space<vmem>>, %arg6: memref<8x128xbf16, #tpu.memory_space<vmem>>, %arg7: memref<8x128xf32, #tpu.memory_space<vmem>>) attributes {dimension_semantics = [#tpu.dimension_semantics<parallel>, #tpu.dimension_semantics<parallel>, #tpu.dimension_semantics<arbitrary>], iteration_bounds = array<i64: 1, 2, 3>, scalar_prefetch = 0 : i64, scratch_operands = 1 : i64, tpu.core_type = #tpu.core_type<tc>, window_params = [{transform_indices = @transform_0, window_bounds = array<i64: 8, 384>}, {transform_indices = @transform_1, window_bounds = array<i64: 384, 128>}, {transform_indices = @transform_2, window_bounds = array<i64: 1, 128>}, {transform_indices = @transform_3, window_bounds = array<i64: 8, 128>}]} {
    %c0_i32 = arith.constant 0 : i32
    %0 = arith.cmpi eq, %arg2, %c0_i32 : i32
    %1 = arith.extui %0 : i1 to i32
    %c0_i32_0 = arith.constant 0 : i32
    %2 = arith.cmpi ne, %1, %c0_i32_0 : i32
    scf.if %2 {
      %cst_9 = arith.constant 0.000000e+00 : f32
      %12 = vector.broadcast %cst_9 : f32 to vector<8x128xf32>
      %c0_10 = arith.constant 0 : index
      %c0_11 = arith.constant 0 : index
      %13 = vector.load %arg7[%c0_10, %c0_11] : memref<8x128xf32, #tpu.memory_space<vmem>>, vector<8x128xf32>
      tpu.vector_store %arg7[%c0_10, %c0_11], %12 {strides = array<i32>} : memref<8x128xf32, #tpu.memory_space<vmem>>, vector<8x128xf32>,
    } else {
    }
    %c0 = arith.constant 0 : index
    %c0_1 = arith.constant 0 : index
    %3 = vector.load %arg7[%c0, %c0_1] : memref<8x128xf32, #tpu.memory_space<vmem>>, vector<8x128xf32>
    %c0_2 = arith.constant 0 : index
    %c0_3 = arith.constant 0 : index
    %4 = vector.load %arg3[%c0_2, %c0_3] : memref<8x384xbf16, #tpu.memory_space<vmem>>, vector<8x384xbf16>
    %c0_4 = arith.constant 0 : index
    %c0_5 = arith.constant 0 : index
    %5 = vector.load %arg4[%c0_4, %c0_5] : memref<384x128xbf16, #tpu.memory_space<vmem>>, vector<384x128xbf16>
    %cst = arith.constant dense<0.000000e+00> : vector<8x128xf32>
    %6 = tpu.matmul %4, %5, %cst {dimension_numbers = #tpu.dot_dimension_numbers<[1], [0], [0], [1], [0, 0, 1, 1], [], []>} : vector<8x384xbf16>, vector<384x128xbf16>, vector<8x128xf32> -> vector<8x128xf32>
    %7 = arith.addf %3, %6 : vector<8x128xf32>
    %c0_6 = arith.constant 0 : index
    %c0_7 = arith.constant 0 : index
    %8 = vector.load %arg7[%c0_6, %c0_7] : memref<8x128xf32, #tpu.memory_space<vmem>>, vector<8x128xf32>
    tpu.vector_store %arg7[%c0_6, %c0_7], %7 {strides = array<i32>} : memref<8x128xf32, #tpu.memory_space<vmem>>, vector<8x128xf32>,
    %c2_i32 = arith.constant 2 : i32
    %9 = arith.cmpi eq, %arg2, %c2_i32 : i32
    %10 = arith.extui %9 : i1 to i32
    %c0_i32_8 = arith.constant 0 : i32
    %11 = arith.cmpi ne, %10, %c0_i32_8 : i32
    scf.if %11 {
      %c0_9 = arith.constant 0 : index
      %c0_10 = arith.constant 0 : index
      %12 = vector.load %arg7[%c0_9, %c0_10] : memref<8x128xf32, #tpu.memory_space<vmem>>, vector<8x128xf32>
      %c0_11 = arith.constant 0 : index
      %c0_12 = arith.constant 0 : index
      %13 = vector.load %arg5[%c0_11, %c0_12] : memref<1x128xf32, #tpu.memory_space<vmem>>, vector<1x128xf32>
      %14 = vector.broadcast %13 : vector<1x128xf32> to vector<8x128xf32>
      %15 = arith.addf %12, %14 : vector<8x128xf32>
      %cst_13 = arith.constant 0.000000e+00 : f32
      %16 = vector.broadcast %cst_13 : f32 to vector<8x128xf32>
      %17 = arith.maximumf %15, %16 : vector<8x128xf32>
      %18 = arith.truncf %17 : vector<8x128xf32> to vector<8x128xbf16>
      %c0_14 = arith.constant 0 : index
      %c0_15 = arith.constant 0 : index
      %19 = vector.load %arg6[%c0_14, %c0_15] : memref<8x128xbf16, #tpu.memory_space<vmem>>, vector<8x128xbf16>
      tpu.vector_store %arg6[%c0_14, %c0_15], %18 {strides = array<i32>} : memref<8x128xbf16, #tpu.memory_space<vmem>>, vector<8x128xbf16>,
    } else {
    }
    return
  }
  func.func @transform_0(%arg0: i32, %arg1: i32, %arg2: i32) -> (i32, i32) {
    %c0_i32 = arith.constant 0 : i32
    return %arg0, %arg2 : i32, i32
  }
  func.func @transform_1(%arg0: i32, %arg1: i32, %arg2: i32) -> (i32, i32) {
    %c0_i32 = arith.constant 0 : i32
    return %arg2, %arg1 : i32, i32
  }
  func.func @transform_2(%arg0: i32, %arg1: i32, %arg2: i32) -> (i32, i32) {
    %c0_i32 = arith.constant 0 : i32
    %c0_i32_0 = arith.constant 0 : i32
    return %c0_i32, %arg1 : i32, i32
  }
  func.func @transform_3(%arg0: i32, %arg1: i32, %arg2: i32) -> (i32, i32) {
    %c0_i32 = arith.constant 0 : i32
    return %arg0, %arg1 : i32, i32
  }
}

module attributes {stable_mosaic.version = 11 : i64} {
  func.func @kernel(%arg0: i32, %arg1: i32, %arg2: i32, %arg3: memref<8x128xbf16, #tpu.memory_space<vmem>>, %arg4: memref<128x128xbf16, #tpu.memory_space<vmem>>, %arg5: memref<1x128xf32, #tpu.memory_space<vmem>>, %arg6: memref<8x128xbf16, #tpu.memory_space<vmem>>, %arg7: memref<8x128xf32, #tpu.memory_space<vmem>>) attributes {dimension_semantics = [#tpu.dimension_semantics<parallel>, #tpu.dimension_semantics<parallel>, #tpu.dimension_semantics<arbitrary>], iteration_bounds = array<i64: 1, 2, 1>, scalar_prefetch = 0 : i64, scratch_operands = 1 : i64, tpu.core_type = #tpu.core_type<tc>, window_params = [{transform_indices = @transform_0, window_bounds = array<i64: 8, 128>}, {transform_indices = @transform_1, window_bounds = array<i64: 128, 128>}, {transform_indices = @transform_2, window_bounds = array<i64: 1, 128>}, {transform_indices = @transform_3, window_bounds = array<i64: 8, 128>}]} {
    %c0_i32 = arith.constant 0 : i32
    %0 = arith.cmpi eq, %arg2, %c0_i32 : i32
    %1 = arith.extui %0 : i1 to i32
    %c0_i32_0 = arith.constant 0 : i32
    %2 = arith.cmpi ne, %1, %c0_i32_0 : i32
    scf.if %2 {
      %cst_10 = arith.constant 0.000000e+00 : f32
      %12 = vector.broadcast %cst_10 : f32 to vector<8x128xf32>
      %c0_11 = arith.constant 0 : index
      %c0_12 = arith.constant 0 : index
      %13 = vector.load %arg7[%c0_11, %c0_12] : memref<8x128xf32, #tpu.memory_space<vmem>>, vector<8x128xf32>
      tpu.vector_store %arg7[%c0_11, %c0_12], %12 {strides = array<i32>} : memref<8x128xf32, #tpu.memory_space<vmem>>, vector<8x128xf32>,
    } else {
    }
    %c0 = arith.constant 0 : index
    %c0_1 = arith.constant 0 : index
    %3 = vector.load %arg7[%c0, %c0_1] : memref<8x128xf32, #tpu.memory_space<vmem>>, vector<8x128xf32>
    %c0_2 = arith.constant 0 : index
    %c0_3 = arith.constant 0 : index
    %4 = vector.load %arg3[%c0_2, %c0_3] : memref<8x128xbf16, #tpu.memory_space<vmem>>, vector<8x128xbf16>
    %c0_4 = arith.constant 0 : index
    %c0_5 = arith.constant 0 : index
    %5 = vector.load %arg4[%c0_4, %c0_5] : memref<128x128xbf16, #tpu.memory_space<vmem>>, vector<128x128xbf16>
    %cst = arith.constant dense<0.000000e+00> : vector<8x128xf32>
    %6 = tpu.matmul %4, %5, %cst {dimension_numbers = #tpu.dot_dimension_numbers<[1], [0], [0], [1], [0, 0, 1, 1], [], []>} : vector<8x128xbf16>, vector<128x128xbf16>, vector<8x128xf32> -> vector<8x128xf32>
    %7 = arith.addf %3, %6 : vector<8x128xf32>
    %c0_6 = arith.constant 0 : index
    %c0_7 = arith.constant 0 : index
    %8 = vector.load %arg7[%c0_6, %c0_7] : memref<8x128xf32, #tpu.memory_space<vmem>>, vector<8x128xf32>
    tpu.vector_store %arg7[%c0_6, %c0_7], %7 {strides = array<i32>} : memref<8x128xf32, #tpu.memory_space<vmem>>, vector<8x128xf32>,
    %c0_i32_8 = arith.constant 0 : i32
    %9 = arith.cmpi eq, %arg2, %c0_i32_8 : i32
    %10 = arith.extui %9 : i1 to i32
    %c0_i32_9 = arith.constant 0 : i32
    %11 = arith.cmpi ne, %10, %c0_i32_9 : i32
    scf.if %11 {
      %c0_10 = arith.constant 0 : index
      %c0_11 = arith.constant 0 : index
      %12 = vector.load %arg7[%c0_10, %c0_11] : memref<8x128xf32, #tpu.memory_space<vmem>>, vector<8x128xf32>
      %c0_12 = arith.constant 0 : index
      %c0_13 = arith.constant 0 : index
      %13 = vector.load %arg5[%c0_12, %c0_13] : memref<1x128xf32, #tpu.memory_space<vmem>>, vector<1x128xf32>
      %14 = vector.broadcast %13 : vector<1x128xf32> to vector<8x128xf32>
      %15 = arith.addf %12, %14 : vector<8x128xf32>
      %16 = arith.truncf %15 : vector<8x128xf32> to vector<8x128xbf16>
      %c0_14 = arith.constant 0 : index
      %c0_15 = arith.constant 0 : index
      %17 = vector.load %arg6[%c0_14, %c0_15] : memref<8x128xbf16, #tpu.memory_space<vmem>>, vector<8x128xbf16>
      tpu.vector_store %arg6[%c0_14, %c0_15], %16 {strides = array<i32>} : memref<8x128xbf16, #tpu.memory_space<vmem>>, vector<8x128xbf16>,
    } else {
    }
    return
  }
  func.func @transform_0(%arg0: i32, %arg1: i32, %arg2: i32) -> (i32, i32) {
    %c0_i32 = arith.constant 0 : i32
    return %arg0, %arg2 : i32, i32
  }
  func.func @transform_1(%arg0: i32, %arg1: i32, %arg2: i32) -> (i32, i32) {
    %c0_i32 = arith.constant 0 : i32
    return %arg2, %arg1 : i32, i32
  }
  func.func @transform_2(%arg0: i32, %arg1: i32, %arg2: i32) -> (i32, i32) {
    %c0_i32 = arith.constant 0 : i32
    %c0_i32_0 = arith.constant 0 : i32
    return %c0_i32, %arg1 : i32, i32
  }
  func.func @transform_3(%arg0: i32, %arg1: i32, %arg2: i32) -> (i32, i32) {
    %c0_i32 = arith.constant 0 : i32
    return %arg0, %arg1 : i32, i32
  }
}

module attributes {stable_mosaic.version = 11 : i64} {
  func.func @kernel(%arg0: i32, %arg1: i32, %arg2: i32, %arg3: memref<8x768xbf16, #tpu.memory_space<vmem>>, %arg4: memref<768x128xbf16, #tpu.memory_space<vmem>>, %arg5: memref<1x128xf32, #tpu.memory_space<vmem>>, %arg6: memref<8x128xbf16, #tpu.memory_space<vmem>>, %arg7: memref<8x128xbf16, #tpu.memory_space<vmem>>, %arg8: memref<8x128xf32, #tpu.memory_space<vmem>>) attributes {dimension_semantics = [#tpu.dimension_semantics<parallel>, #tpu.dimension_semantics<parallel>, #tpu.dimension_semantics<arbitrary>], iteration_bounds = array<i64: 1, 2, 3>, scalar_prefetch = 0 : i64, scratch_operands = 1 : i64, tpu.core_type = #tpu.core_type<tc>, window_params = [{transform_indices = @transform_0, window_bounds = array<i64: 8, 768>}, {transform_indices = @transform_1, window_bounds = array<i64: 768, 128>}, {transform_indices = @transform_2, window_bounds = array<i64: 1, 128>}, {transform_indices = @transform_3, window_bounds = array<i64: 8, 128>}, {transform_indices = @transform_4, window_bounds = array<i64: 8, 128>}]} {
    %c0_i32 = arith.constant 0 : i32
    %0 = arith.cmpi eq, %arg2, %c0_i32 : i32
    %1 = arith.extui %0 : i1 to i32
    %c0_i32_0 = arith.constant 0 : i32
    %2 = arith.cmpi ne, %1, %c0_i32_0 : i32
    scf.if %2 {
      %cst_9 = arith.constant 0.000000e+00 : f32
      %12 = vector.broadcast %cst_9 : f32 to vector<8x128xf32>
      %c0_10 = arith.constant 0 : index
      %c0_11 = arith.constant 0 : index
      %13 = vector.load %arg8[%c0_10, %c0_11] : memref<8x128xf32, #tpu.memory_space<vmem>>, vector<8x128xf32>
      tpu.vector_store %arg8[%c0_10, %c0_11], %12 {strides = array<i32>} : memref<8x128xf32, #tpu.memory_space<vmem>>, vector<8x128xf32>,
    } else {
    }
    %c0 = arith.constant 0 : index
    %c0_1 = arith.constant 0 : index
    %3 = vector.load %arg8[%c0, %c0_1] : memref<8x128xf32, #tpu.memory_space<vmem>>, vector<8x128xf32>
    %c0_2 = arith.constant 0 : index
    %c0_3 = arith.constant 0 : index
    %4 = vector.load %arg3[%c0_2, %c0_3] : memref<8x768xbf16, #tpu.memory_space<vmem>>, vector<8x768xbf16>
    %c0_4 = arith.constant 0 : index
    %c0_5 = arith.constant 0 : index
    %5 = vector.load %arg4[%c0_4, %c0_5] : memref<768x128xbf16, #tpu.memory_space<vmem>>, vector<768x128xbf16>
    %cst = arith.constant dense<0.000000e+00> : vector<8x128xf32>
    %6 = tpu.matmul %4, %5, %cst {dimension_numbers = #tpu.dot_dimension_numbers<[1], [0], [0], [1], [0, 0, 1, 1], [], []>} : vector<8x768xbf16>, vector<768x128xbf16>, vector<8x128xf32> -> vector<8x128xf32>
    %7 = arith.addf %3, %6 : vector<8x128xf32>
    %c0_6 = arith.constant 0 : index
    %c0_7 = arith.constant 0 : index
    %8 = vector.load %arg8[%c0_6, %c0_7] : memref<8x128xf32, #tpu.memory_space<vmem>>, vector<8x128xf32>
    tpu.vector_store %arg8[%c0_6, %c0_7], %7 {strides = array<i32>} : memref<8x128xf32, #tpu.memory_space<vmem>>, vector<8x128xf32>,
    %c2_i32 = arith.constant 2 : i32
    %9 = arith.cmpi eq, %arg2, %c2_i32 : i32
    %10 = arith.extui %9 : i1 to i32
    %c0_i32_8 = arith.constant 0 : i32
    %11 = arith.cmpi ne, %10, %c0_i32_8 : i32
    scf.if %11 {
      %c0_9 = arith.constant 0 : index
      %c0_10 = arith.constant 0 : index
      %12 = vector.load %arg8[%c0_9, %c0_10] : memref<8x128xf32, #tpu.memory_space<vmem>>, vector<8x128xf32>
      %c0_11 = arith.constant 0 : index
      %c0_12 = arith.constant 0 : index
      %13 = vector.load %arg5[%c0_11, %c0_12] : memref<1x128xf32, #tpu.memory_space<vmem>>, vector<1x128xf32>
      %14 = vector.broadcast %13 : vector<1x128xf32> to vector<8x128xf32>
      %15 = arith.addf %12, %14 : vector<8x128xf32>
      %c0_13 = arith.constant 0 : index
      %c0_14 = arith.constant 0 : index
      %16 = vector.load %arg6[%c0_13, %c0_14] : memref<8x128xbf16, #tpu.memory_space<vmem>>, vector<8x128xbf16>
      %17 = arith.extf %16 : vector<8x128xbf16> to vector<8x128xf32>
      %18 = arith.addf %15, %17 : vector<8x128xf32>
      %cst_15 = arith.constant 0.000000e+00 : f32
      %19 = vector.broadcast %cst_15 : f32 to vector<8x128xf32>
      %20 = arith.maximumf %18, %19 : vector<8x128xf32>
      %21 = arith.truncf %20 : vector<8x128xf32> to vector<8x128xbf16>
      %c0_16 = arith.constant 0 : index
      %c0_17 = arith.constant 0 : index
      %22 = vector.load %arg7[%c0_16, %c0_17] : memref<8x128xbf16, #tpu.memory_space<vmem>>, vector<8x128xbf16>
      tpu.vector_store %arg7[%c0_16, %c0_17], %21 {strides = array<i32>} : memref<8x128xbf16, #tpu.memory_space<vmem>>, vector<8x128xbf16>,
    } else {
    }
    return
  }
  func.func @transform_0(%arg0: i32, %arg1: i32, %arg2: i32) -> (i32, i32) {
    %c0_i32 = arith.constant 0 : i32
    return %arg0, %arg2 : i32, i32
  }
  func.func @transform_1(%arg0: i32, %arg1: i32, %arg2: i32) -> (i32, i32) {
    %c0_i32 = arith.constant 0 : i32
    return %arg2, %arg1 : i32, i32
  }
  func.func @transform_2(%arg0: i32, %arg1: i32, %arg2: i32) -> (i32, i32) {
    %c0_i32 = arith.constant 0 : i32
    %c0_i32_0 = arith.constant 0 : i32
    return %c0_i32, %arg1 : i32, i32
  }
  func.func @transform_3(%arg0: i32, %arg1: i32, %arg2: i32) -> (i32, i32) {
    %c0_i32 = arith.constant 0 : i32
    return %arg0, %arg1 : i32, i32
  }
  func.func @transform_4(%arg0: i32, %arg1: i32, %arg2: i32) -> (i32, i32) {
    %c0_i32 = arith.constant 0 : i32
    return %arg0, %arg1 : i32, i32
  }
}

module attributes {stable_mosaic.version = 11 : i64} {
  func.func @kernel(%arg0: i32, %arg1: i32, %arg2: i32, %arg3: memref<8x768xbf16, #tpu.memory_space<vmem>>, %arg4: memref<768x128xbf16, #tpu.memory_space<vmem>>, %arg5: memref<1x128xf32, #tpu.memory_space<vmem>>, %arg6: memref<8x128xbf16, #tpu.memory_space<vmem>>, %arg7: memref<8x128xf32, #tpu.memory_space<vmem>>) attributes {dimension_semantics = [#tpu.dimension_semantics<parallel>, #tpu.dimension_semantics<parallel>, #tpu.dimension_semantics<arbitrary>], iteration_bounds = array<i64: 1, 2, 3>, scalar_prefetch = 0 : i64, scratch_operands = 1 : i64, tpu.core_type = #tpu.core_type<tc>, window_params = [{transform_indices = @transform_0, window_bounds = array<i64: 8, 768>}, {transform_indices = @transform_1, window_bounds = array<i64: 768, 128>}, {transform_indices = @transform_2, window_bounds = array<i64: 1, 128>}, {transform_indices = @transform_3, window_bounds = array<i64: 8, 128>}]} {
    %c0_i32 = arith.constant 0 : i32
    %0 = arith.cmpi eq, %arg2, %c0_i32 : i32
    %1 = arith.extui %0 : i1 to i32
    %c0_i32_0 = arith.constant 0 : i32
    %2 = arith.cmpi ne, %1, %c0_i32_0 : i32
    scf.if %2 {
      %cst_9 = arith.constant 0.000000e+00 : f32
      %12 = vector.broadcast %cst_9 : f32 to vector<8x128xf32>
      %c0_10 = arith.constant 0 : index
      %c0_11 = arith.constant 0 : index
      %13 = vector.load %arg7[%c0_10, %c0_11] : memref<8x128xf32, #tpu.memory_space<vmem>>, vector<8x128xf32>
      tpu.vector_store %arg7[%c0_10, %c0_11], %12 {strides = array<i32>} : memref<8x128xf32, #tpu.memory_space<vmem>>, vector<8x128xf32>,
    } else {
    }
    %c0 = arith.constant 0 : index
    %c0_1 = arith.constant 0 : index
    %3 = vector.load %arg7[%c0, %c0_1] : memref<8x128xf32, #tpu.memory_space<vmem>>, vector<8x128xf32>
    %c0_2 = arith.constant 0 : index
    %c0_3 = arith.constant 0 : index
    %4 = vector.load %arg3[%c0_2, %c0_3] : memref<8x768xbf16, #tpu.memory_space<vmem>>, vector<8x768xbf16>
    %c0_4 = arith.constant 0 : index
    %c0_5 = arith.constant 0 : index
    %5 = vector.load %arg4[%c0_4, %c0_5] : memref<768x128xbf16, #tpu.memory_space<vmem>>, vector<768x128xbf16>
    %cst = arith.constant dense<0.000000e+00> : vector<8x128xf32>
    %6 = tpu.matmul %4, %5, %cst {dimension_numbers = #tpu.dot_dimension_numbers<[1], [0], [0], [1], [0, 0, 1, 1], [], []>} : vector<8x768xbf16>, vector<768x128xbf16>, vector<8x128xf32> -> vector<8x128xf32>
    %7 = arith.addf %3, %6 : vector<8x128xf32>
    %c0_6 = arith.constant 0 : index
    %c0_7 = arith.constant 0 : index
    %8 = vector.load %arg7[%c0_6, %c0_7] : memref<8x128xf32, #tpu.memory_space<vmem>>, vector<8x128xf32>
    tpu.vector_store %arg7[%c0_6, %c0_7], %7 {strides = array<i32>} : memref<8x128xf32, #tpu.memory_space<vmem>>, vector<8x128xf32>,
    %c2_i32 = arith.constant 2 : i32
    %9 = arith.cmpi eq, %arg2, %c2_i32 : i32
    %10 = arith.extui %9 : i1 to i32
    %c0_i32_8 = arith.constant 0 : i32
    %11 = arith.cmpi ne, %10, %c0_i32_8 : i32
    scf.if %11 {
      %c0_9 = arith.constant 0 : index
      %c0_10 = arith.constant 0 : index
      %12 = vector.load %arg7[%c0_9, %c0_10] : memref<8x128xf32, #tpu.memory_space<vmem>>, vector<8x128xf32>
      %c0_11 = arith.constant 0 : index
      %c0_12 = arith.constant 0 : index
      %13 = vector.load %arg5[%c0_11, %c0_12] : memref<1x128xf32, #tpu.memory_space<vmem>>, vector<1x128xf32>
      %14 = vector.broadcast %13 : vector<1x128xf32> to vector<8x128xf32>
      %15 = arith.addf %12, %14 : vector<8x128xf32>
      %cst_13 = arith.constant 0.000000e+00 : f32
      %16 = vector.broadcast %cst_13 : f32 to vector<8x128xf32>
      %17 = arith.maximumf %15, %16 : vector<8x128xf32>
      %18 = arith.truncf %17 : vector<8x128xf32> to vector<8x128xbf16>
      %c0_14 = arith.constant 0 : index
      %c0_15 = arith.constant 0 : index
      %19 = vector.load %arg6[%c0_14, %c0_15] : memref<8x128xbf16, #tpu.memory_space<vmem>>, vector<8x128xbf16>
      tpu.vector_store %arg6[%c0_14, %c0_15], %18 {strides = array<i32>} : memref<8x128xbf16, #tpu.memory_space<vmem>>, vector<8x128xbf16>,
    } else {
    }
    return
  }
  func.func @transform_0(%arg0: i32, %arg1: i32, %arg2: i32) -> (i32, i32) {
    %c0_i32 = arith.constant 0 : i32
    return %arg0, %arg2 : i32, i32
  }
  func.func @transform_1(%arg0: i32, %arg1: i32, %arg2: i32) -> (i32, i32) {
    %c0_i32 = arith.constant 0 : i32
    return %arg2, %arg1 : i32, i32
  }
  func.func @transform_2(%arg0: i32, %arg1: i32, %arg2: i32) -> (i32, i32) {
    %c0_i32 = arith.constant 0 : i32
    %c0_i32_0 = arith.constant 0 : i32
    return %c0_i32, %arg1 : i32, i32
  }
  func.func @transform_3(%arg0: i32, %arg1: i32, %arg2: i32) -> (i32, i32) {
    %c0_i32 = arith.constant 0 : i32
    return %arg0, %arg1 : i32, i32
  }
}

module attributes {stable_mosaic.version = 11 : i64} {
  func.func @kernel(%arg0: i32, %arg1: i32, %arg2: i32, %arg3: memref<8x768xbf16, #tpu.memory_space<vmem>>, %arg4: memref<768x256xbf16, #tpu.memory_space<vmem>>, %arg5: memref<1x256xf32, #tpu.memory_space<vmem>>, %arg6: memref<8x256xbf16, #tpu.memory_space<vmem>>, %arg7: memref<8x256xf32, #tpu.memory_space<vmem>>) attributes {dimension_semantics = [#tpu.dimension_semantics<parallel>, #tpu.dimension_semantics<parallel>, #tpu.dimension_semantics<arbitrary>], iteration_bounds = array<i64: 1, 2, 3>, scalar_prefetch = 0 : i64, scratch_operands = 1 : i64, tpu.core_type = #tpu.core_type<tc>, window_params = [{transform_indices = @transform_0, window_bounds = array<i64: 8, 768>}, {transform_indices = @transform_1, window_bounds = array<i64: 768, 256>}, {transform_indices = @transform_2, window_bounds = array<i64: 1, 256>}, {transform_indices = @transform_3, window_bounds = array<i64: 8, 256>}]} {
    %c0_i32 = arith.constant 0 : i32
    %0 = arith.cmpi eq, %arg2, %c0_i32 : i32
    %1 = arith.extui %0 : i1 to i32
    %c0_i32_0 = arith.constant 0 : i32
    %2 = arith.cmpi ne, %1, %c0_i32_0 : i32
    scf.if %2 {
      %cst_9 = arith.constant 0.000000e+00 : f32
      %12 = vector.broadcast %cst_9 : f32 to vector<8x256xf32>
      %c0_10 = arith.constant 0 : index
      %c0_11 = arith.constant 0 : index
      %13 = vector.load %arg7[%c0_10, %c0_11] : memref<8x256xf32, #tpu.memory_space<vmem>>, vector<8x256xf32>
      tpu.vector_store %arg7[%c0_10, %c0_11], %12 {strides = array<i32>} : memref<8x256xf32, #tpu.memory_space<vmem>>, vector<8x256xf32>,
    } else {
    }
    %c0 = arith.constant 0 : index
    %c0_1 = arith.constant 0 : index
    %3 = vector.load %arg7[%c0, %c0_1] : memref<8x256xf32, #tpu.memory_space<vmem>>, vector<8x256xf32>
    %c0_2 = arith.constant 0 : index
    %c0_3 = arith.constant 0 : index
    %4 = vector.load %arg3[%c0_2, %c0_3] : memref<8x768xbf16, #tpu.memory_space<vmem>>, vector<8x768xbf16>
    %c0_4 = arith.constant 0 : index
    %c0_5 = arith.constant 0 : index
    %5 = vector.load %arg4[%c0_4, %c0_5] : memref<768x256xbf16, #tpu.memory_space<vmem>>, vector<768x256xbf16>
    %cst = arith.constant dense<0.000000e+00> : vector<8x256xf32>
    %6 = tpu.matmul %4, %5, %cst {dimension_numbers = #tpu.dot_dimension_numbers<[1], [0], [0], [1], [0, 0, 1, 1], [], []>} : vector<8x768xbf16>, vector<768x256xbf16>, vector<8x256xf32> -> vector<8x256xf32>
    %7 = arith.addf %3, %6 : vector<8x256xf32>
    %c0_6 = arith.constant 0 : index
    %c0_7 = arith.constant 0 : index
    %8 = vector.load %arg7[%c0_6, %c0_7] : memref<8x256xf32, #tpu.memory_space<vmem>>, vector<8x256xf32>
    tpu.vector_store %arg7[%c0_6, %c0_7], %7 {strides = array<i32>} : memref<8x256xf32, #tpu.memory_space<vmem>>, vector<8x256xf32>,
    %c2_i32 = arith.constant 2 : i32
    %9 = arith.cmpi eq, %arg2, %c2_i32 : i32
    %10 = arith.extui %9 : i1 to i32
    %c0_i32_8 = arith.constant 0 : i32
    %11 = arith.cmpi ne, %10, %c0_i32_8 : i32
    scf.if %11 {
      %c0_9 = arith.constant 0 : index
      %c0_10 = arith.constant 0 : index
      %12 = vector.load %arg7[%c0_9, %c0_10] : memref<8x256xf32, #tpu.memory_space<vmem>>, vector<8x256xf32>
      %c0_11 = arith.constant 0 : index
      %c0_12 = arith.constant 0 : index
      %13 = vector.load %arg5[%c0_11, %c0_12] : memref<1x256xf32, #tpu.memory_space<vmem>>, vector<1x256xf32>
      %14 = vector.broadcast %13 : vector<1x256xf32> to vector<8x256xf32>
      %15 = arith.addf %12, %14 : vector<8x256xf32>
      %cst_13 = arith.constant 0.000000e+00 : f32
      %16 = vector.broadcast %cst_13 : f32 to vector<8x256xf32>
      %17 = arith.maximumf %15, %16 : vector<8x256xf32>
      %18 = arith.truncf %17 : vector<8x256xf32> to vector<8x256xbf16>
      %c0_14 = arith.constant 0 : index
      %c0_15 = arith.constant 0 : index
      %19 = vector.load %arg6[%c0_14, %c0_15] : memref<8x256xbf16, #tpu.memory_space<vmem>>, vector<8x256xbf16>
      tpu.vector_store %arg6[%c0_14, %c0_15], %18 {strides = array<i32>} : memref<8x256xbf16, #tpu.memory_space<vmem>>, vector<8x256xbf16>,
    } else {
    }
    return
  }
  func.func @transform_0(%arg0: i32, %arg1: i32, %arg2: i32) -> (i32, i32) {
    %c0_i32 = arith.constant 0 : i32
    return %arg0, %arg2 : i32, i32
  }
  func.func @transform_1(%arg0: i32, %arg1: i32, %arg2: i32) -> (i32, i32) {
    %c0_i32 = arith.constant 0 : i32
    return %arg2, %arg1 : i32, i32
  }
  func.func @transform_2(%arg0: i32, %arg1: i32, %arg2: i32) -> (i32, i32) {
    %c0_i32 = arith.constant 0 : i32
    %c0_i32_0 = arith.constant 0 : i32
    return %c0_i32, %arg1 : i32, i32
  }
  func.func @transform_3(%arg0: i32, %arg1: i32, %arg2: i32) -> (i32, i32) {
    %c0_i32 = arith.constant 0 : i32
    return %arg0, %arg1 : i32, i32
  }
}

module attributes {stable_mosaic.version = 11 : i64} {
  func.func @kernel(%arg0: i32, %arg1: i32, %arg2: i32, %arg3: memref<8x256xbf16, #tpu.memory_space<vmem>>, %arg4: memref<256x256xbf16, #tpu.memory_space<vmem>>, %arg5: memref<1x256xf32, #tpu.memory_space<vmem>>, %arg6: memref<8x256xbf16, #tpu.memory_space<vmem>>, %arg7: memref<8x256xf32, #tpu.memory_space<vmem>>) attributes {dimension_semantics = [#tpu.dimension_semantics<parallel>, #tpu.dimension_semantics<parallel>, #tpu.dimension_semantics<arbitrary>], iteration_bounds = array<i64: 1, 2, 1>, scalar_prefetch = 0 : i64, scratch_operands = 1 : i64, tpu.core_type = #tpu.core_type<tc>, window_params = [{transform_indices = @transform_0, window_bounds = array<i64: 8, 256>}, {transform_indices = @transform_1, window_bounds = array<i64: 256, 256>}, {transform_indices = @transform_2, window_bounds = array<i64: 1, 256>}, {transform_indices = @transform_3, window_bounds = array<i64: 8, 256>}]} {
    %c0_i32 = arith.constant 0 : i32
    %0 = arith.cmpi eq, %arg2, %c0_i32 : i32
    %1 = arith.extui %0 : i1 to i32
    %c0_i32_0 = arith.constant 0 : i32
    %2 = arith.cmpi ne, %1, %c0_i32_0 : i32
    scf.if %2 {
      %cst_10 = arith.constant 0.000000e+00 : f32
      %12 = vector.broadcast %cst_10 : f32 to vector<8x256xf32>
      %c0_11 = arith.constant 0 : index
      %c0_12 = arith.constant 0 : index
      %13 = vector.load %arg7[%c0_11, %c0_12] : memref<8x256xf32, #tpu.memory_space<vmem>>, vector<8x256xf32>
      tpu.vector_store %arg7[%c0_11, %c0_12], %12 {strides = array<i32>} : memref<8x256xf32, #tpu.memory_space<vmem>>, vector<8x256xf32>,
    } else {
    }
    %c0 = arith.constant 0 : index
    %c0_1 = arith.constant 0 : index
    %3 = vector.load %arg7[%c0, %c0_1] : memref<8x256xf32, #tpu.memory_space<vmem>>, vector<8x256xf32>
    %c0_2 = arith.constant 0 : index
    %c0_3 = arith.constant 0 : index
    %4 = vector.load %arg3[%c0_2, %c0_3] : memref<8x256xbf16, #tpu.memory_space<vmem>>, vector<8x256xbf16>
    %c0_4 = arith.constant 0 : index
    %c0_5 = arith.constant 0 : index
    %5 = vector.load %arg4[%c0_4, %c0_5] : memref<256x256xbf16, #tpu.memory_space<vmem>>, vector<256x256xbf16>
    %cst = arith.constant dense<0.000000e+00> : vector<8x256xf32>
    %6 = tpu.matmul %4, %5, %cst {dimension_numbers = #tpu.dot_dimension_numbers<[1], [0], [0], [1], [0, 0, 1, 1], [], []>} : vector<8x256xbf16>, vector<256x256xbf16>, vector<8x256xf32> -> vector<8x256xf32>
    %7 = arith.addf %3, %6 : vector<8x256xf32>
    %c0_6 = arith.constant 0 : index
    %c0_7 = arith.constant 0 : index
    %8 = vector.load %arg7[%c0_6, %c0_7] : memref<8x256xf32, #tpu.memory_space<vmem>>, vector<8x256xf32>
    tpu.vector_store %arg7[%c0_6, %c0_7], %7 {strides = array<i32>} : memref<8x256xf32, #tpu.memory_space<vmem>>, vector<8x256xf32>,
    %c0_i32_8 = arith.constant 0 : i32
    %9 = arith.cmpi eq, %arg2, %c0_i32_8 : i32
    %10 = arith.extui %9 : i1 to i32
    %c0_i32_9 = arith.constant 0 : i32
    %11 = arith.cmpi ne, %10, %c0_i32_9 : i32
    scf.if %11 {
      %c0_10 = arith.constant 0 : index
      %c0_11 = arith.constant 0 : index
      %12 = vector.load %arg7[%c0_10, %c0_11] : memref<8x256xf32, #tpu.memory_space<vmem>>, vector<8x256xf32>
      %c0_12 = arith.constant 0 : index
      %c0_13 = arith.constant 0 : index
      %13 = vector.load %arg5[%c0_12, %c0_13] : memref<1x256xf32, #tpu.memory_space<vmem>>, vector<1x256xf32>
      %14 = vector.broadcast %13 : vector<1x256xf32> to vector<8x256xf32>
      %15 = arith.addf %12, %14 : vector<8x256xf32>
      %16 = arith.truncf %15 : vector<8x256xf32> to vector<8x256xbf16>
      %c0_14 = arith.constant 0 : index
      %c0_15 = arith.constant 0 : index
      %17 = vector.load %arg6[%c0_14, %c0_15] : memref<8x256xbf16, #tpu.memory_space<vmem>>, vector<8x256xbf16>
      tpu.vector_store %arg6[%c0_14, %c0_15], %16 {strides = array<i32>} : memref<8x256xbf16, #tpu.memory_space<vmem>>, vector<8x256xbf16>,
    } else {
    }
    return
  }
  func.func @transform_0(%arg0: i32, %arg1: i32, %arg2: i32) -> (i32, i32) {
    %c0_i32 = arith.constant 0 : i32
    return %arg0, %arg2 : i32, i32
  }
  func.func @transform_1(%arg0: i32, %arg1: i32, %arg2: i32) -> (i32, i32) {
    %c0_i32 = arith.constant 0 : i32
    return %arg2, %arg1 : i32, i32
  }
  func.func @transform_2(%arg0: i32, %arg1: i32, %arg2: i32) -> (i32, i32) {
    %c0_i32 = arith.constant 0 : i32
    %c0_i32_0 = arith.constant 0 : i32
    return %c0_i32, %arg1 : i32, i32
  }
  func.func @transform_3(%arg0: i32, %arg1: i32, %arg2: i32) -> (i32, i32) {
    %c0_i32 = arith.constant 0 : i32
    return %arg0, %arg1 : i32, i32
  }
}

module attributes {stable_mosaic.version = 11 : i64} {
  func.func @kernel(%arg0: i32, %arg1: i32, %arg2: i32, %arg3: memref<8x768xbf16, #tpu.memory_space<vmem>>, %arg4: memref<768x256xbf16, #tpu.memory_space<vmem>>, %arg5: memref<1x256xf32, #tpu.memory_space<vmem>>, %arg6: memref<8x256xbf16, #tpu.memory_space<vmem>>, %arg7: memref<8x256xbf16, #tpu.memory_space<vmem>>, %arg8: memref<8x256xf32, #tpu.memory_space<vmem>>) attributes {dimension_semantics = [#tpu.dimension_semantics<parallel>, #tpu.dimension_semantics<parallel>, #tpu.dimension_semantics<arbitrary>], iteration_bounds = array<i64: 1, 2, 6>, scalar_prefetch = 0 : i64, scratch_operands = 1 : i64, tpu.core_type = #tpu.core_type<tc>, window_params = [{transform_indices = @transform_0, window_bounds = array<i64: 8, 768>}, {transform_indices = @transform_1, window_bounds = array<i64: 768, 256>}, {transform_indices = @transform_2, window_bounds = array<i64: 1, 256>}, {transform_indices = @transform_3, window_bounds = array<i64: 8, 256>}, {transform_indices = @transform_4, window_bounds = array<i64: 8, 256>}]} {
    %c0_i32 = arith.constant 0 : i32
    %0 = arith.cmpi eq, %arg2, %c0_i32 : i32
    %1 = arith.extui %0 : i1 to i32
    %c0_i32_0 = arith.constant 0 : i32
    %2 = arith.cmpi ne, %1, %c0_i32_0 : i32
    scf.if %2 {
      %cst_9 = arith.constant 0.000000e+00 : f32
      %12 = vector.broadcast %cst_9 : f32 to vector<8x256xf32>
      %c0_10 = arith.constant 0 : index
      %c0_11 = arith.constant 0 : index
      %13 = vector.load %arg8[%c0_10, %c0_11] : memref<8x256xf32, #tpu.memory_space<vmem>>, vector<8x256xf32>
      tpu.vector_store %arg8[%c0_10, %c0_11], %12 {strides = array<i32>} : memref<8x256xf32, #tpu.memory_space<vmem>>, vector<8x256xf32>,
    } else {
    }
    %c0 = arith.constant 0 : index
    %c0_1 = arith.constant 0 : index
    %3 = vector.load %arg8[%c0, %c0_1] : memref<8x256xf32, #tpu.memory_space<vmem>>, vector<8x256xf32>
    %c0_2 = arith.constant 0 : index
    %c0_3 = arith.constant 0 : index
    %4 = vector.load %arg3[%c0_2, %c0_3] : memref<8x768xbf16, #tpu.memory_space<vmem>>, vector<8x768xbf16>
    %c0_4 = arith.constant 0 : index
    %c0_5 = arith.constant 0 : index
    %5 = vector.load %arg4[%c0_4, %c0_5] : memref<768x256xbf16, #tpu.memory_space<vmem>>, vector<768x256xbf16>
    %cst = arith.constant dense<0.000000e+00> : vector<8x256xf32>
    %6 = tpu.matmul %4, %5, %cst {dimension_numbers = #tpu.dot_dimension_numbers<[1], [0], [0], [1], [0, 0, 1, 1], [], []>} : vector<8x768xbf16>, vector<768x256xbf16>, vector<8x256xf32> -> vector<8x256xf32>
    %7 = arith.addf %3, %6 : vector<8x256xf32>
    %c0_6 = arith.constant 0 : index
    %c0_7 = arith.constant 0 : index
    %8 = vector.load %arg8[%c0_6, %c0_7] : memref<8x256xf32, #tpu.memory_space<vmem>>, vector<8x256xf32>
    tpu.vector_store %arg8[%c0_6, %c0_7], %7 {strides = array<i32>} : memref<8x256xf32, #tpu.memory_space<vmem>>, vector<8x256xf32>,
    %c5_i32 = arith.constant 5 : i32
    %9 = arith.cmpi eq, %arg2, %c5_i32 : i32
    %10 = arith.extui %9 : i1 to i32
    %c0_i32_8 = arith.constant 0 : i32
    %11 = arith.cmpi ne, %10, %c0_i32_8 : i32
    scf.if %11 {
      %c0_9 = arith.constant 0 : index
      %c0_10 = arith.constant 0 : index
      %12 = vector.load %arg8[%c0_9, %c0_10] : memref<8x256xf32, #tpu.memory_space<vmem>>, vector<8x256xf32>
      %c0_11 = arith.constant 0 : index
      %c0_12 = arith.constant 0 : index
      %13 = vector.load %arg5[%c0_11, %c0_12] : memref<1x256xf32, #tpu.memory_space<vmem>>, vector<1x256xf32>
      %14 = vector.broadcast %13 : vector<1x256xf32> to vector<8x256xf32>
      %15 = arith.addf %12, %14 : vector<8x256xf32>
      %c0_13 = arith.constant 0 : index
      %c0_14 = arith.constant 0 : index
      %16 = vector.load %arg6[%c0_13, %c0_14] : memref<8x256xbf16, #tpu.memory_space<vmem>>, vector<8x256xbf16>
      %17 = arith.extf %16 : vector<8x256xbf16> to vector<8x256xf32>
      %18 = arith.addf %15, %17 : vector<8x256xf32>
      %cst_15 = arith.constant 0.000000e+00 : f32
      %19 = vector.broadcast %cst_15 : f32 to vector<8x256xf32>
      %20 = arith.maximumf %18, %19 : vector<8x256xf32>
      %21 = arith.truncf %20 : vector<8x256xf32> to vector<8x256xbf16>
      %c0_16 = arith.constant 0 : index
      %c0_17 = arith.constant 0 : index
      %22 = vector.load %arg7[%c0_16, %c0_17] : memref<8x256xbf16, #tpu.memory_space<vmem>>, vector<8x256xbf16>
      tpu.vector_store %arg7[%c0_16, %c0_17], %21 {strides = array<i32>} : memref<8x256xbf16, #tpu.memory_space<vmem>>, vector<8x256xbf16>,
    } else {
    }
    return
  }
  func.func @transform_0(%arg0: i32, %arg1: i32, %arg2: i32) -> (i32, i32) {
    %c0_i32 = arith.constant 0 : i32
    return %arg0, %arg2 : i32, i32
  }
  func.func @transform_1(%arg0: i32, %arg1: i32, %arg2: i32) -> (i32, i32) {
    %c0_i32 = arith.constant 0 : i32
    return %arg2, %arg1 : i32, i32
  }
  func.func @transform_2(%arg0: i32, %arg1: i32, %arg2: i32) -> (i32, i32) {
    %c0_i32 = arith.constant 0 : i32
    %c0_i32_0 = arith.constant 0 : i32
    return %c0_i32, %arg1 : i32, i32
  }
  func.func @transform_3(%arg0: i32, %arg1: i32, %arg2: i32) -> (i32, i32) {
    %c0_i32 = arith.constant 0 : i32
    return %arg0, %arg1 : i32, i32
  }
  func.func @transform_4(%arg0: i32, %arg1: i32, %arg2: i32) -> (i32, i32) {
    %c0_i32 = arith.constant 0 : i32
    return %arg0, %arg1 : i32, i32
  }
}

module attributes {stable_mosaic.version = 11 : i64} {
  func.func @kernel(%arg0: i32, %arg1: i32, %arg2: i32, %arg3: memref<8x768xbf16, #tpu.memory_space<vmem>>, %arg4: memref<768x256xbf16, #tpu.memory_space<vmem>>, %arg5: memref<1x256xf32, #tpu.memory_space<vmem>>, %arg6: memref<8x256xbf16, #tpu.memory_space<vmem>>, %arg7: memref<8x256xf32, #tpu.memory_space<vmem>>) attributes {dimension_semantics = [#tpu.dimension_semantics<parallel>, #tpu.dimension_semantics<parallel>, #tpu.dimension_semantics<arbitrary>], iteration_bounds = array<i64: 1, 2, 6>, scalar_prefetch = 0 : i64, scratch_operands = 1 : i64, tpu.core_type = #tpu.core_type<tc>, window_params = [{transform_indices = @transform_0, window_bounds = array<i64: 8, 768>}, {transform_indices = @transform_1, window_bounds = array<i64: 768, 256>}, {transform_indices = @transform_2, window_bounds = array<i64: 1, 256>}, {transform_indices = @transform_3, window_bounds = array<i64: 8, 256>}]} {
    %c0_i32 = arith.constant 0 : i32
    %0 = arith.cmpi eq, %arg2, %c0_i32 : i32
    %1 = arith.extui %0 : i1 to i32
    %c0_i32_0 = arith.constant 0 : i32
    %2 = arith.cmpi ne, %1, %c0_i32_0 : i32
    scf.if %2 {
      %cst_9 = arith.constant 0.000000e+00 : f32
      %12 = vector.broadcast %cst_9 : f32 to vector<8x256xf32>
      %c0_10 = arith.constant 0 : index
      %c0_11 = arith.constant 0 : index
      %13 = vector.load %arg7[%c0_10, %c0_11] : memref<8x256xf32, #tpu.memory_space<vmem>>, vector<8x256xf32>
      tpu.vector_store %arg7[%c0_10, %c0_11], %12 {strides = array<i32>} : memref<8x256xf32, #tpu.memory_space<vmem>>, vector<8x256xf32>,
    } else {
    }
    %c0 = arith.constant 0 : index
    %c0_1 = arith.constant 0 : index
    %3 = vector.load %arg7[%c0, %c0_1] : memref<8x256xf32, #tpu.memory_space<vmem>>, vector<8x256xf32>
    %c0_2 = arith.constant 0 : index
    %c0_3 = arith.constant 0 : index
    %4 = vector.load %arg3[%c0_2, %c0_3] : memref<8x768xbf16, #tpu.memory_space<vmem>>, vector<8x768xbf16>
    %c0_4 = arith.constant 0 : index
    %c0_5 = arith.constant 0 : index
    %5 = vector.load %arg4[%c0_4, %c0_5] : memref<768x256xbf16, #tpu.memory_space<vmem>>, vector<768x256xbf16>
    %cst = arith.constant dense<0.000000e+00> : vector<8x256xf32>
    %6 = tpu.matmul %4, %5, %cst {dimension_numbers = #tpu.dot_dimension_numbers<[1], [0], [0], [1], [0, 0, 1, 1], [], []>} : vector<8x768xbf16>, vector<768x256xbf16>, vector<8x256xf32> -> vector<8x256xf32>
    %7 = arith.addf %3, %6 : vector<8x256xf32>
    %c0_6 = arith.constant 0 : index
    %c0_7 = arith.constant 0 : index
    %8 = vector.load %arg7[%c0_6, %c0_7] : memref<8x256xf32, #tpu.memory_space<vmem>>, vector<8x256xf32>
    tpu.vector_store %arg7[%c0_6, %c0_7], %7 {strides = array<i32>} : memref<8x256xf32, #tpu.memory_space<vmem>>, vector<8x256xf32>,
    %c5_i32 = arith.constant 5 : i32
    %9 = arith.cmpi eq, %arg2, %c5_i32 : i32
    %10 = arith.extui %9 : i1 to i32
    %c0_i32_8 = arith.constant 0 : i32
    %11 = arith.cmpi ne, %10, %c0_i32_8 : i32
    scf.if %11 {
      %c0_9 = arith.constant 0 : index
      %c0_10 = arith.constant 0 : index
      %12 = vector.load %arg7[%c0_9, %c0_10] : memref<8x256xf32, #tpu.memory_space<vmem>>, vector<8x256xf32>
      %c0_11 = arith.constant 0 : index
      %c0_12 = arith.constant 0 : index
      %13 = vector.load %arg5[%c0_11, %c0_12] : memref<1x256xf32, #tpu.memory_space<vmem>>, vector<1x256xf32>
      %14 = vector.broadcast %13 : vector<1x256xf32> to vector<8x256xf32>
      %15 = arith.addf %12, %14 : vector<8x256xf32>
      %cst_13 = arith.constant 0.000000e+00 : f32
      %16 = vector.broadcast %cst_13 : f32 to vector<8x256xf32>
      %17 = arith.maximumf %15, %16 : vector<8x256xf32>
      %18 = arith.truncf %17 : vector<8x256xf32> to vector<8x256xbf16>
      %c0_14 = arith.constant 0 : index
      %c0_15 = arith.constant 0 : index
      %19 = vector.load %arg6[%c0_14, %c0_15] : memref<8x256xbf16, #tpu.memory_space<vmem>>, vector<8x256xbf16>
      tpu.vector_store %arg6[%c0_14, %c0_15], %18 {strides = array<i32>} : memref<8x256xbf16, #tpu.memory_space<vmem>>, vector<8x256xbf16>,
    } else {
    }
    return
  }
  func.func @transform_0(%arg0: i32, %arg1: i32, %arg2: i32) -> (i32, i32) {
    %c0_i32 = arith.constant 0 : i32
    return %arg0, %arg2 : i32, i32
  }
  func.func @transform_1(%arg0: i32, %arg1: i32, %arg2: i32) -> (i32, i32) {
    %c0_i32 = arith.constant 0 : i32
    return %arg2, %arg1 : i32, i32
  }
  func.func @transform_2(%arg0: i32, %arg1: i32, %arg2: i32) -> (i32, i32) {
    %c0_i32 = arith.constant 0 : i32
    %c0_i32_0 = arith.constant 0 : i32
    return %c0_i32, %arg1 : i32, i32
  }
  func.func @transform_3(%arg0: i32, %arg1: i32, %arg2: i32) -> (i32, i32) {
    %c0_i32 = arith.constant 0 : i32
    return %arg0, %arg1 : i32, i32
  }
}

module attributes {stable_mosaic.version = 11 : i64} {
  func.func @_gap_kernel(%arg0: i32, %arg1: memref<2x1x512xbf16, #tpu.memory_space<vmem>>, %arg2: memref<2x512xf32, #tpu.memory_space<vmem>>) attributes {dimension_semantics = [#tpu.dimension_semantics<arbitrary>], iteration_bounds = array<i64: 1>, scalar_prefetch = 0 : i64, scratch_operands = 0 : i64, tpu.core_type = #tpu.core_type<tc>, window_params = [{pipeline_mode = #tpu.pipeline_mode<synchronous>, transform_indices = @transform_0, window_bounds = array<i64: 2, 1, 512>}, {pipeline_mode = #tpu.pipeline_mode<synchronous>, transform_indices = @transform_1, window_bounds = array<i64: 2, 512>}]} {
    %c0 = arith.constant 0 : index
    %c0_0 = arith.constant 0 : index
    %c0_1 = arith.constant 0 : index
    %0 = vector.load %arg1[%c0, %c0_0, %c0_1] : memref<2x1x512xbf16, #tpu.memory_space<vmem>>, vector<2x1x512xbf16>
    %1 = arith.extf %0 : vector<2x1x512xbf16> to vector<2x1x512xf32>
    %cst = arith.constant dense<0.000000e+00> : vector<2x512xf32>
    %2 = vector.multi_reduction <add>, %1, %cst [1] : vector<2x1x512xf32> to vector<2x512xf32>
    %cst_2 = arith.constant 1.000000e+00 : f32
    %3 = vector.broadcast %cst_2 : f32 to vector<2x512xf32>
    %4 = arith.divf %2, %3 : vector<2x512xf32>
    %c0_3 = arith.constant 0 : index
    %c0_4 = arith.constant 0 : index
    %5 = vector.load %arg2[%c0_3, %c0_4] : memref<2x512xf32, #tpu.memory_space<vmem>>, vector<2x512xf32>
    tpu.vector_store %arg2[%c0_3, %c0_4], %4 {strides = array<i32>} : memref<2x512xf32, #tpu.memory_space<vmem>>, vector<2x512xf32>,
    return
  }
  func.func @transform_0(%arg0: i32) -> (i32, i32, i32) {
    %c0_i32 = arith.constant 0 : i32
    %c0_i32_0 = arith.constant 0 : i32
    %c0_i32_1 = arith.constant 0 : i32
    %c0_i32_2 = arith.constant 0 : i32
    return %c0_i32, %c0_i32_0, %c0_i32_1 : i32, i32, i32
  }
  func.func @transform_1(%arg0: i32) -> (i32, i32) {
    %c0_i32 = arith.constant 0 : i32
    %c0_i32_0 = arith.constant 0 : i32
    %c0_i32_1 = arith.constant 0 : i32
    return %c0_i32, %c0_i32_0 : i32, i32
  }
}

module attributes {stable_mosaic.version = 11 : i64} {
  func.func @kernel(%arg0: i32, %arg1: i32, %arg2: i32, %arg3: memref<8x512xbf16, #tpu.memory_space<vmem>>, %arg4: memref<512x128xbf16, #tpu.memory_space<vmem>>, %arg5: memref<1x128xf32, #tpu.memory_space<vmem>>, %arg6: memref<8x128xf32, #tpu.memory_space<vmem>>, %arg7: memref<8x128xf32, #tpu.memory_space<vmem>>) attributes {dimension_semantics = [#tpu.dimension_semantics<parallel>, #tpu.dimension_semantics<parallel>, #tpu.dimension_semantics<arbitrary>], iteration_bounds = array<i64: 1, 1, 1>, scalar_prefetch = 0 : i64, scratch_operands = 1 : i64, tpu.core_type = #tpu.core_type<tc>, window_params = [{transform_indices = @transform_0, window_bounds = array<i64: 8, 512>}, {transform_indices = @transform_1, window_bounds = array<i64: 512, 128>}, {transform_indices = @transform_2, window_bounds = array<i64: 1, 128>}, {transform_indices = @transform_3, window_bounds = array<i64: 8, 128>}]} {
    %c0_i32 = arith.constant 0 : i32
    %0 = arith.cmpi eq, %arg2, %c0_i32 : i32
    %1 = arith.extui %0 : i1 to i32
    %c0_i32_0 = arith.constant 0 : i32
    %2 = arith.cmpi ne, %1, %c0_i32_0 : i32
    scf.if %2 {
      %cst_10 = arith.constant 0.000000e+00 : f32
      %12 = vector.broadcast %cst_10 : f32 to vector<8x128xf32>
      %c0_11 = arith.constant 0 : index
      %c0_12 = arith.constant 0 : index
      %13 = vector.load %arg7[%c0_11, %c0_12] : memref<8x128xf32, #tpu.memory_space<vmem>>, vector<8x128xf32>
      tpu.vector_store %arg7[%c0_11, %c0_12], %12 {strides = array<i32>} : memref<8x128xf32, #tpu.memory_space<vmem>>, vector<8x128xf32>,
    } else {
    }
    %c0 = arith.constant 0 : index
    %c0_1 = arith.constant 0 : index
    %3 = vector.load %arg7[%c0, %c0_1] : memref<8x128xf32, #tpu.memory_space<vmem>>, vector<8x128xf32>
    %c0_2 = arith.constant 0 : index
    %c0_3 = arith.constant 0 : index
    %4 = vector.load %arg3[%c0_2, %c0_3] : memref<8x512xbf16, #tpu.memory_space<vmem>>, vector<8x512xbf16>
    %c0_4 = arith.constant 0 : index
    %c0_5 = arith.constant 0 : index
    %5 = vector.load %arg4[%c0_4, %c0_5] : memref<512x128xbf16, #tpu.memory_space<vmem>>, vector<512x128xbf16>
    %cst = arith.constant dense<0.000000e+00> : vector<8x128xf32>
    %6 = tpu.matmul %4, %5, %cst {dimension_numbers = #tpu.dot_dimension_numbers<[1], [0], [0], [1], [0, 0, 1, 1], [], []>} : vector<8x512xbf16>, vector<512x128xbf16>, vector<8x128xf32> -> vector<8x128xf32>
    %7 = arith.addf %3, %6 : vector<8x128xf32>
    %c0_6 = arith.constant 0 : index
    %c0_7 = arith.constant 0 : index
    %8 = vector.load %arg7[%c0_6, %c0_7] : memref<8x128xf32, #tpu.memory_space<vmem>>, vector<8x128xf32>
    tpu.vector_store %arg7[%c0_6, %c0_7], %7 {strides = array<i32>} : memref<8x128xf32, #tpu.memory_space<vmem>>, vector<8x128xf32>,
    %c0_i32_8 = arith.constant 0 : i32
    %9 = arith.cmpi eq, %arg2, %c0_i32_8 : i32
    %10 = arith.extui %9 : i1 to i32
    %c0_i32_9 = arith.constant 0 : i32
    %11 = arith.cmpi ne, %10, %c0_i32_9 : i32
    scf.if %11 {
      %c0_10 = arith.constant 0 : index
      %c0_11 = arith.constant 0 : index
      %12 = vector.load %arg7[%c0_10, %c0_11] : memref<8x128xf32, #tpu.memory_space<vmem>>, vector<8x128xf32>
      %c0_12 = arith.constant 0 : index
      %c0_13 = arith.constant 0 : index
      %13 = vector.load %arg5[%c0_12, %c0_13] : memref<1x128xf32, #tpu.memory_space<vmem>>, vector<1x128xf32>
      %14 = vector.broadcast %13 : vector<1x128xf32> to vector<8x128xf32>
      %15 = arith.addf %12, %14 : vector<8x128xf32>
      %c0_14 = arith.constant 0 : index
      %c0_15 = arith.constant 0 : index
      %16 = vector.load %arg6[%c0_14, %c0_15] : memref<8x128xf32, #tpu.memory_space<vmem>>, vector<8x128xf32>
      tpu.vector_store %arg6[%c0_14, %c0_15], %15 {strides = array<i32>} : memref<8x128xf32, #tpu.memory_space<vmem>>, vector<8x128xf32>,
    } else {
    }
    return
  }
  func.func @transform_0(%arg0: i32, %arg1: i32, %arg2: i32) -> (i32, i32) {
    %c0_i32 = arith.constant 0 : i32
    return %arg0, %arg2 : i32, i32
  }
  func.func @transform_1(%arg0: i32, %arg1: i32, %arg2: i32) -> (i32, i32) {
    %c0_i32 = arith.constant 0 : i32
    return %arg2, %arg1 : i32, i32
  }
  func.func @transform_2(%arg0: i32, %arg1: i32, %arg2: i32) -> (i32, i32) {
    %c0_i32 = arith.constant 0 : i32
    %c0_i32_0 = arith.constant 0 : i32
    return %c0_i32, %arg1 : i32, i32
  }
  func.func @transform_3(%arg0: i32, %arg1: i32, %arg2: i32) -> (i32, i32) {
    %c0_i32 = arith.constant 0 : i32
    return %arg0, %arg1 : i32, i32
  }
}

</mosaic_0001>

<bundles_post_ra>
// kernel: _lambda_.38
= control target key start
LH: loop header
LB: loop body
LE: loop exit
PB: predicated region body
PF: predicated region fallthrough
CT: control target
= control target key end

     0   :  { %vm19_vm0 = vcmask 523264   ;;  %v735_v32 = vmov 0.0   ;;  %vm528_vm1 = vcmask 519168   ;;  %s969_s1 = inlined_call_operand.vmem [shape: bf16[256,64], index: 1, kind: input, shape index: {}]   ;;  %s970_s0 = inlined_call_operand.vmem [shape: bf16[128,256], index: 0, kind: input, shape index: {}]   ;;  %s971_s2 = inlined_call_operand.vmem [shape: f32[1,64], index: 2, kind: input, shape index: {}]   ;;  %s972_s3 = inlined_call_operand.vmem [shape: bf16[128,64], index: 3, kind: output, shape index: {}]  }
   0x1   :  { %v695_v0 = vld [vmem:[%s969_s1 + $0x40] sm:$0xff]   ;;  %v697_v2 = vld [vmem:[%s969_s1 + $0x48] sm:$0xff]   ;;  %v699_v4 = vld [vmem:[%s969_s1 + $0x50] sm:$0xff]   ;;  %20 = vst.msk [vmem:[#allocation2] sm:$0xff] %vm19_vm0, %v735_v32 }
   0x2   :  { %v696_v1 = vld [vmem:[%s969_s1] sm:$0xff]   ;;  %614 = vmatprep.subr.bf16.mxu0 %v695_v0  ;;  %678 = vmatprep.subr.bf16.mxu1 %v695_v0  ;;  %v698_v3 = vld [vmem:[%s969_s1 + $0x8] sm:$0xff]   ;;  %v700_v5 = vld [vmem:[%s969_s1 + $0x10] sm:$0xff]   ;;  %21 = vst.msk [vmem:[#allocation2 + $0x8] sm:$0xff] %vm19_vm0, %v735_v32 }
   0x3   :  { %615 = vmatpush3.bf16.msra.mxu0 %v696_v1  ;;  %686 = vmatpush3.bf16.msra.mxu1 %v696_v1  ;;  %v701_v6 = vld [vmem:[%s969_s1 + $0x58] sm:$0xff]   ;;  %v703_v8 = vld [vmem:[%s969_s1 + $0x60] sm:$0xff]   ;;  %v705_v10 = vld [vmem:[%s969_s1 + $0x68] sm:$0xff]   ;;  %22 = vst.msk [vmem:[#allocation2 + $0x10] sm:$0xff] %vm19_vm0, %v735_v32 }
   0x4   :  { %616 = vmatprep.subr.bf16.mxu0 %v697_v2  ;;  %679 = vmatprep.subr.bf16.mxu1 %v697_v2  ;;  %v702_v7 = vld [vmem:[%s969_s1 + $0x18] sm:$0xff]   ;;  %v704_v9 = vld [vmem:[%s969_s1 + $0x20] sm:$0xff]   ;;  %v706_v13 = vld [vmem:[%s969_s1 + $0x28] sm:$0xff]   ;;  %23 = vst.msk [vmem:[#allocation2 + $0x18] sm:$0xff] %vm19_vm0, %v735_v32 }
   0x5   :  { %v713_v11 = vld [vmem:[%s970_s0 + $0x4] ss:$8 sps:$4 sm:$0xff]   ;;  %v707_v14 = vld [vmem:[%s969_s1 + $0x70] sm:$0xff]   ;;  %v709_v16 = vld [vmem:[%s969_s1 + $0x78] sm:$0xff]   ;;  %24 = vst.msk [vmem:[#allocation2 + $0x20] sm:$0xff] %vm19_vm0, %v735_v32 }
   0x6   :  { %v716_v12 = vld [vmem:[%s970_s0 + $0x44] ss:$8 sps:$4 sm:$0xff]   ;;  %308 = vmatprep.mubr.bf16.mxu0 %v713_v11  ;;  %v708_v15 = vld [vmem:[%s969_s1 + $0x30] sm:$0xff]   ;;  %v710_v17 = vld [vmem:[%s969_s1 + $0x38] sm:$0xff]   ;;  %25 = vst.msk [vmem:[#allocation2 + $0x28] sm:$0xff] %vm19_vm0, %v735_v32 }
   0x7   :  { %617 = vmatpush3.bf16.msra.mxu0 %v698_v3  ;;  %687 = vmatpush3.bf16.msra.mxu1 %v698_v3  ;;  %v711_v18 = vld [vmem:[%s970_s0] ss:$8 sps:$4 sm:$0xff]   ;;  %v717_v20 = vld [vmem:[%s970_s0 + $0x14] ss:$8 sps:$4 sm:$0xff]   ;;  %v721_v22 = vld [vmem:[%s970_s0 + $0x10] ss:$8 sps:$4 sm:$0xff]  }
   0x8   :  { %618 = vmatprep.subr.bf16.mxu0 %v699_v4  ;;  %680 = vmatprep.subr.bf16.mxu1 %v699_v4  ;;  %v714_v19 = vld [vmem:[%s970_s0 + $0x40] ss:$8 sps:$4 sm:$0xff]   ;;  %v719_v21 = vld [vmem:[%s970_s0 + $0x54] ss:$8 sps:$4 sm:$0xff]   ;;  %v722_v23 = vld [vmem:[%s970_s0 + $0x50] ss:$8 sps:$4 sm:$0xff]  }
   0x9   :  { %340 = vmatprep.mubr.bf16.mxu1 %v716_v12  ;;  %v723_v24 = vld [vmem:[%s970_s0 + $0x24] ss:$8 sps:$4 sm:$0xff]   ;;  %v727_v26 = vld [vmem:[%s970_s0 + $0x20] ss:$8 sps:$4 sm:$0xff]   ;;  %v729_v28 = vld [vmem:[%s970_s0 + $0x34] ss:$8 sps:$4 sm:$0xff]  }
   0xa   :  { %v725_v25 = vld [vmem:[%s970_s0 + $0x64] ss:$8 sps:$4 sm:$0xff]   ;;  %v728_v27 = vld [vmem:[%s970_s0 + $0x60] ss:$8 sps:$4 sm:$0xff]   ;;  %v731_v29 = vld [vmem:[%s970_s0 + $0x74] ss:$8 sps:$4 sm:$0xff]  }
   0xb   :  { %619 = vmatpush3.bf16.msra.mxu0 %v700_v5  ;;  %688 = vmatpush3.bf16.msra.mxu1 %v700_v5  ;;  %v733_v30 = vld [vmem:[%s970_s0 + $0x30] ss:$8 sps:$4 sm:$0xff]   ;;  %26 = vst.msk [vmem:[#allocation2 + $0x30] sm:$0xff] %vm19_vm0, %v735_v32  ;;  %27 = vst.msk [vmem:[#allocation2 + $0x38] sm:$0xff] %vm19_vm0, %v735_v32  ;;  %v36_v35 = vld [vmem:[#allocation2] sm:$0xff] }
   0xc   :  { %620 = vmatprep.subr.bf16.mxu0 %v701_v6  ;;  %681 = vmatprep.subr.bf16.mxu1 %v701_v6  ;;  %v734_v31 = vld [vmem:[%s970_s0 + $0x70] ss:$8 sps:$4 sm:$0xff]   ;;  %28 = vst.msk [vmem:[#allocation2 + $0x40] sm:$0xff] %vm19_vm0, %v735_v32  ;;  %29 = vst.msk [vmem:[#allocation2 + $0x48] sm:$0xff] %vm19_vm0, %v735_v32  ;;  %v875_v63 = vld [vmem:[%s971_s2] ss:$0 sm:$0xff] }
   0xd   :  { %30 = vst.msk [vmem:[#allocation2 + $0x50] sm:$0xff] %vm19_vm0, %v735_v32  ;;  %31 = vst.msk [vmem:[#allocation2 + $0x58] sm:$0xff] %vm19_vm0, %v735_v32  ;;  %v37_v43 = vld [vmem:[#allocation2 + $0x8] sm:$0xff]  ;;  %v38_v55 = vld [vmem:[#allocation2 + $0x10] sm:$0xff] }
   0xe   :  { %32 = vst.msk [vmem:[#allocation2 + $0x60] sm:$0xff] %vm19_vm0, %v735_v32  ;;  %33 = vst.msk [vmem:[#allocation2 + $0x68] sm:$0xff] %vm19_vm0, %v735_v32  ;;  %v39_v0 = vld [vmem:[#allocation2 + $0x18] sm:$0xff] }
   0xf   :  { %621 = vmatpush3.bf16.msra.mxu0 %v702_v7  ;;  %689 = vmatpush3.bf16.msra.mxu1 %v702_v7  ;;  %34 = vst.msk [vmem:[#allocation2 + $0x70] sm:$0xff] %vm19_vm0, %v735_v32  ;;  %35 = vst.msk [vmem:[#allocation2 + $0x78] sm:$0xff] %vm19_vm0, %v735_v32 }
  0x10   :  { %622 = vmatprep.subr.bf16.mxu0 %v703_v8  ;;  %682 = vmatprep.subr.bf16.mxu1 %v703_v8 }
  0x13   :  { %623 = vmatpush3.bf16.msra.mxu0 %v704_v9  ;;  %690 = vmatpush3.bf16.msra.mxu1 %v704_v9  ;;  %v44_v37 = vld [vmem:[#allocation2 + $0x40] sm:$0xff]  ;;  %v45_v45 = vld [vmem:[#allocation2 + $0x48] sm:$0xff] }
  0x14   :  { %624 = vmatprep.subr.bf16.mxu0 %v705_v10  ;;  %683 = vmatprep.subr.bf16.mxu1 %v705_v10  ;;  %v46_v57 = vld [vmem:[#allocation2 + $0x50] sm:$0xff]  ;;  %v47_v2 = vld [vmem:[#allocation2 + $0x58] sm:$0xff] }
  0x17   :  { %625 = vmatpush3.bf16.msra.mxu0 %v706_v13  ;;  %691 = vmatpush3.bf16.msra.mxu1 %v706_v13 }
  0x18   :  { %626 = vmatprep.subr.bf16.mxu0 %v707_v14  ;;  %684 = vmatprep.subr.bf16.mxu1 %v707_v14 }
  0x1b   :  { %627 = vmatpush3.bf16.msra.mxu0 %v708_v15  ;;  %692 = vmatpush3.bf16.msra.mxu1 %v708_v15 }
  0x1c   :  { %628 = vmatprep.subr.bf16.mxu0 %v709_v16  ;;  %685 = vmatprep.subr.bf16.mxu1 %v709_v16 }
  0x1f   :  { %629 = vmatpush3.bf16.msra.mxu0 %v710_v17  ;;  %693 = vmatpush3.bf16.msra.mxu1 %v710_v17 }
  0x22   :  { %309 = vmatmul.mubr.bf16.vlgmr.msra.gmra.mrb[0].mxu0 %v711_v18  ;;  %341 = vmatmul.mubr.bf16.vlgmr.msra.gmra.mrb[0].mxu1 %v714_v19 }
  0x23   :  { %316 = vmatprep.mubr.bf16.mxu0 %v717_v20  ;;  %348 = vmatprep.mubr.bf16.mxu1 %v719_v21 }
  0x2a   :  { %317 = vmatmul.mubr.bf16.gmra.mrb[4].mxu0 %v721_v22  ;;  %349 = vmatmul.mubr.bf16.gmra.mrb[4].mxu1 %v722_v23 }
  0x2b   :  { %324 = vmatprep.mubr.bf16.mxu0 %v723_v24  ;;  %356 = vmatprep.mubr.bf16.mxu1 %v725_v25 }
  0x32   :  { %325 = vmatmul.mubr.bf16.gmra.mrb[8].mxu0 %v727_v26  ;;  %357 = vmatmul.mubr.bf16.gmra.mrb[8].mxu1 %v728_v27 }
  0x33   :  { %332 = vmatprep.mubr.bf16.mxu0 %v729_v28  ;;  %364 = vmatprep.mubr.bf16.mxu1 %v731_v29  ;;  %v40_v28 = vld [vmem:[#allocation2 + $0x20] sm:$0xff] }
  0x34   :  { %v48_v29 = vld [vmem:[#allocation2 + $0x60] sm:$0xff] }
  0x3a   :  { %333 = vmatmul.mubr.bf16.gmra.mrb[12].mxu0 %v733_v30  ;;  %365 = vmatmul.mubr.bf16.gmra.mrb[12].mxu1 %v734_v31 }
  0xf5   :  { %v630_v33 = vpop.f32.mrb[0].mxu0  ;;  %v654_v34 = vpop.f32.mrb[0].mxu1 }
  0xf6   :  { %v631_v36 = vpop.f32.mrb[1].mxu0  ;;  %v655_v38 = vpop.f32.mrb[1].mxu1 }
  0xf7   :  { %v632_v39 = vadd.f32 %v631_v36, %v630_v33  ;;  %v656_v40 = vadd.f32 %v655_v38, %v654_v34  ;;  %v633_v41 = vpop.f32.mrb[2].mxu0  ;;  %v657_v42 = vpop.f32.mrb[2].mxu1  ;;  %v41_v34 = vld [vmem:[#allocation2 + $0x28] sm:$0xff] }
  0xf8   :  { %v634_v44 = vpop.f32.mrb[3].mxu0  ;;  %v658_v46 = vpop.f32.mrb[3].mxu1  ;;  %v49_v36 = vld [vmem:[#allocation2 + $0x68] sm:$0xff] }
  0xf9   :  { %v373_v47 = vadd.f32 %v632_v39, %v36_v35  ;;  %v381_v48 = vadd.f32 %v656_v40, %v44_v37  ;;  %v635_v49 = vadd.f32 %v634_v44, %v633_v41  ;;  %v659_v50 = vadd.f32 %v658_v46, %v657_v42 }
  0xfb   :  { %390 = vst.msk [vmem:[#allocation2] sm:$0xff] %vm19_vm0, %v373_v47  ;;  %398 = vst.msk [vmem:[#allocation2 + $0x40] sm:$0xff] %vm19_vm0, %v381_v48  ;;  %v374_v51 = vadd.f32 %v635_v49, %v37_v43  ;;  %v382_v52 = vadd.f32 %v659_v50, %v45_v45 }
  0xfd   :  { %391 = vst.msk [vmem:[#allocation2 + $0x8] sm:$0xff] %vm19_vm0, %v374_v51  ;;  %399 = vst.msk [vmem:[#allocation2 + $0x48] sm:$0xff] %vm19_vm0, %v382_v52  ;;  %v636_v53 = vpop.f32.mrb[4].mxu0  ;;  %v660_v54 = vpop.f32.mrb[4].mxu1 }
  0xfe   :  { %v637_v56 = vpop.f32.mrb[5].mxu0  ;;  %v661_v58 = vpop.f32.mrb[5].mxu1 }
  0xff   :  { %v638_v59 = vadd.f32 %v637_v56, %v636_v53  ;;  %v662_v60 = vadd.f32 %v661_v58, %v660_v54  ;;  %v639_v61 = vpop.f32.mrb[6].mxu0  ;;  %v663_v62 = vpop.f32.mrb[6].mxu1 }
 0x100   :  { %v640_v1 = vpop.f32.mrb[7].mxu0  ;;  %v664_v3 = vpop.f32.mrb[7].mxu1 }
 0x101   :  { %v375_v4 = vadd.f32 %v638_v59, %v38_v55  ;;  %v383_v5 = vadd.f32 %v662_v60, %v46_v57  ;;  %v641_v6 = vadd.f32 %v640_v1, %v639_v61  ;;  %v665_v7 = vadd.f32 %v664_v3, %v663_v62  ;;  %v42_v1 = vld [vmem:[#allocation2 + $0x30] sm:$0xff] }
 0x102   :  { %v409_v8 = vld [vmem:[#allocation2] sm:$0xff] }
 0x103   :  { %v417_v9 = vld [vmem:[#allocation2 + $0x40] sm:$0xff]  ;;  %v432_v10 = vadd.f32 %v875_v63, %v409_v8  ;;  %392 = vst.msk [vmem:[#allocation2 + $0x10] sm:$0xff] %vm19_vm0, %v375_v4  ;;  %400 = vst.msk [vmem:[#allocation2 + $0x50] sm:$0xff] %vm19_vm0, %v383_v5  ;;  %v376_v12 = vadd.f32 %v641_v6, %v39_v0  ;;  %v384_v13 = vadd.f32 %v665_v7, %v47_v2  ;;  %v50_v2 = vld [vmem:[#allocation2 + $0x70] sm:$0xff] }
 0x104   :  { %v440_v11 = vadd.f32 %v875_v63, %v417_v9  ;;  %v410_v14 = vld [vmem:[#allocation2 + $0x8] sm:$0xff]  ;;  %v43_v7 = vld [vmem:[#allocation2 + $0x38] sm:$0xff] }
 0x105   :  { %v418_v15 = vld [vmem:[#allocation2 + $0x48] sm:$0xff]  ;;  %v448_v16 = vmax.f32 %v432_v10, 0.0  ;;  %v433_v18 = vadd.f32 %v875_v63, %v410_v14  ;;  %393 = vst.msk [vmem:[#allocation2 + $0x18] sm:$0xff] %vm19_vm0, %v376_v12  ;;  %401 = vst.msk [vmem:[#allocation2 + $0x58] sm:$0xff] %vm19_vm0, %v384_v13  ;;  %v642_v20 = vpop.f32.mrb[8].mxu0  ;;  %v666_v21 = vpop.f32.mrb[8].mxu1 }
 0x106   :  { %v456_v17 = vmax.f32 %v440_v11, 0.0  ;;  %v441_v19 = vadd.f32 %v875_v63, %v418_v15  ;;  %v643_v22 = vpop.f32.mrb[9].mxu0  ;;  %v667_v23 = vpop.f32.mrb[9].mxu1  ;;  %v51_v9 = vld [vmem:[#allocation2 + $0x78] sm:$0xff] }
 0x107   :  { %v598_v24 = vpack.c.bf16 %v448_v16, %v448_v16  ;;  %v449_v26 = vmax.f32 %v433_v18, 0.0  ;;  %v645_v30 = vpop.f32.mrb[10].mxu0  ;;  %v669_v31 = vpop.f32.mrb[10].mxu1  ;;  %v644_v32 = vadd.f32 %v643_v22, %v642_v20  ;;  %v668_v33 = vadd.f32 %v667_v23, %v666_v21 }
 0x108   :  { %v606_v25 = vpack.c.bf16 %v456_v17, %v456_v17  ;;  %v457_v27 = vmax.f32 %v441_v19, 0.0  ;;  %v646_v35 = vpop.f32.mrb[11].mxu0  ;;  %v670_v37 = vpop.f32.mrb[11].mxu1 }
 0x109   :  { %529 = vst.msk [vmem:[%s972_s3] sm:$0xf] %vm528_vm1, %v598_v24  ;;  %v599_v38 = vpack.c.bf16 %v449_v26, %v449_v26  ;;  %v647_v40 = vadd.f32 %v646_v35, %v645_v30  ;;  %v671_v41 = vadd.f32 %v670_v37, %v669_v31  ;;  %v377_v44 = vadd.f32 %v644_v32, %v40_v28 }
 0x10a   :  { %537 = vst.msk [vmem:[%s972_s3 + $0x20] sm:$0xf] %vm528_vm1, %v606_v25  ;;  %v607_v39 = vpack.c.bf16 %v457_v27, %v457_v27  ;;  %v411_v42 = vld [vmem:[#allocation2 + $0x10] sm:$0xff]  ;;  %v385_v45 = vadd.f32 %v668_v33, %v48_v29 }
 0x10b   :  { %v419_v43 = vld [vmem:[#allocation2 + $0x50] sm:$0xff]  ;;  %530 = vst.msk [vmem:[%s972_s3 + $0x4] sm:$0xf] %vm528_vm1, %v599_v38  ;;  %v434_v46 = vadd.f32 %v875_v63, %v411_v42  ;;  %v378_v48 = vadd.f32 %v647_v40, %v41_v34  ;;  %v386_v49 = vadd.f32 %v671_v41, %v49_v36 }
 0x10c   :  { %538 = vst.msk [vmem:[%s972_s3 + $0x24] sm:$0xf] %vm528_vm1, %v607_v39  ;;  %v442_v47 = vadd.f32 %v875_v63, %v419_v43  ;;  %v412_v50 = vld [vmem:[#allocation2 + $0x18] sm:$0xff] }
 0x10d   :  { %v420_v51 = vld [vmem:[#allocation2 + $0x58] sm:$0xff]  ;;  %394 = vst.msk [vmem:[#allocation2 + $0x20] sm:$0xff] %vm19_vm0, %v377_v44  ;;  %402 = vst.msk [vmem:[#allocation2 + $0x60] sm:$0xff] %vm19_vm0, %v385_v45  ;;  %v450_v52 = vmax.f32 %v434_v46, 0.0  ;;  %v435_v54 = vadd.f32 %v875_v63, %v412_v50  ;;  %v648_v56 = vpop.f32.mrb[12].mxu0  ;;  %v672_v57 = vpop.f32.mrb[12].mxu1 }
 0x10e   :  { %v458_v53 = vmax.f32 %v442_v47, 0.0  ;;  %v443_v55 = vadd.f32 %v875_v63, %v420_v51  ;;  %395 = vst.msk [vmem:[#allocation2 + $0x28] sm:$0xff] %vm19_vm0, %v378_v48  ;;  %403 = vst.msk [vmem:[#allocation2 + $0x68] sm:$0xff] %vm19_vm0, %v386_v49  ;;  %v649_v58 = vpop.f32.mrb[13].mxu0  ;;  %v673_v59 = vpop.f32.mrb[13].mxu1 }
 0x10f   :  { %v600_v60 = vpack.c.bf16 %v450_v52, %v450_v52  ;;  %v451_v62 = vmax.f32 %v435_v54, 0.0  ;;  %v651_v3 = vpop.f32.mrb[14].mxu0  ;;  %v675_v4 = vpop.f32.mrb[14].mxu1  ;;  %v650_v5 = vadd.f32 %v649_v58, %v648_v56  ;;  %v674_v6 = vadd.f32 %v673_v59, %v672_v57 }
 0x110   :  { %v608_v61 = vpack.c.bf16 %v458_v53, %v458_v53  ;;  %v459_v0 = vmax.f32 %v443_v55, 0.0  ;;  %v652_v8 = vpop.f32.mrb[15].mxu0  ;;  %v676_v10 = vpop.f32.mrb[15].mxu1 }
 0x111   :  { %531 = vst.msk [vmem:[%s972_s3 + $0x8] sm:$0xf] %vm528_vm1, %v600_v60  ;;  %v601_v11 = vpack.c.bf16 %v451_v62, %v451_v62  ;;  %v653_v13 = vadd.f32 %v652_v8, %v651_v3  ;;  %v677_v14 = vadd.f32 %v676_v10, %v675_v4  ;;  %v379_v15 = vadd.f32 %v650_v5, %v42_v1 }
 0x112   :  { %539 = vst.msk [vmem:[%s972_s3 + $0x28] sm:$0xf] %vm528_vm1, %v608_v61  ;;  %v609_v12 = vpack.c.bf16 %v459_v0, %v459_v0  ;;  %v387_v16 = vadd.f32 %v674_v6, %v50_v2 }
 0x113   :  { %532 = vst.msk [vmem:[%s972_s3 + $0xc] sm:$0xf] %vm528_vm1, %v601_v11  ;;  %v380_v19 = vadd.f32 %v653_v13, %v43_v7  ;;  %v388_v20 = vadd.f32 %v677_v14, %v51_v9 }
 0x114   :  { %540 = vst.msk [vmem:[%s972_s3 + $0x2c] sm:$0xf] %vm528_vm1, %v609_v12  ;;  %v413_v17 = vld [vmem:[#allocation2 + $0x20] sm:$0xff] }
 0x115   :  { %v421_v18 = vld [vmem:[#allocation2 + $0x60] sm:$0xff]  ;;  %v436_v21 = vadd.f32 %v875_v63, %v413_v17  ;;  %v414_v23 = vld [vmem:[#allocation2 + $0x28] sm:$0xff]  ;;  %396 = vst.msk [vmem:[#allocation2 + $0x30] sm:$0xff] %vm19_vm0, %v379_v15  ;;  %404 = vst.msk [vmem:[#allocation2 + $0x70] sm:$0xff] %vm19_vm0, %v387_v16 }
 0x116   :  { %v444_v22 = vadd.f32 %v875_v63, %v421_v18  ;;  %v422_v24 = vld [vmem:[#allocation2 + $0x68] sm:$0xff]  ;;  %v437_v25 = vadd.f32 %v875_v63, %v414_v23  ;;  %397 = vst.msk [vmem:[#allocation2 + $0x38] sm:$0xff] %vm19_vm0, %v380_v19  ;;  %405 = vst.msk [vmem:[#allocation2 + $0x78] sm:$0xff] %vm19_vm0, %v388_v20 }
 0x117   :  { %v445_v26 = vadd.f32 %v875_v63, %v422_v24  ;;  %v452_v27 = vmax.f32 %v436_v21, 0.0 }
 0x118   :  { %v460_v28 = vmax.f32 %v444_v22, 0.0  ;;  %v453_v29 = vmax.f32 %v437_v25, 0.0 }
 0x119   :  { %v461_v30 = vmax.f32 %v445_v26, 0.0  ;;  %v602_v31 = vpack.c.bf16 %v452_v27, %v452_v27 }
 0x11a   :  { %v610_v32 = vpack.c.bf16 %v460_v28, %v460_v28  ;;  %v603_v33 = vpack.c.bf16 %v453_v29, %v453_v29 }
 0x11b   :  { %v611_v34 = vpack.c.bf16 %v461_v30, %v461_v30  ;;  %533 = vst.msk [vmem:[%s972_s3 + $0x10] sm:$0xf] %vm528_vm1, %v602_v31 }
 0x11c   :  { %541 = vst.msk [vmem:[%s972_s3 + $0x30] sm:$0xf] %vm528_vm1, %v610_v32  ;;  %534 = vst.msk [vmem:[%s972_s3 + $0x14] sm:$0xf] %vm528_vm1, %v603_v33  ;;  %v415_v35 = vld [vmem:[#allocation2 + $0x30] sm:$0xff] }
 0x11d   :  { %542 = vst.msk [vmem:[%s972_s3 + $0x34] sm:$0xf] %vm528_vm1, %v611_v34  ;;  %v423_v36 = vld [vmem:[#allocation2 + $0x70] sm:$0xff]  ;;  %v438_v37 = vadd.f32 %v875_v63, %v415_v35  ;;  %v416_v39 = vld [vmem:[#allocation2 + $0x38] sm:$0xff] }
 0x11e   :  { %v446_v38 = vadd.f32 %v875_v63, %v423_v36  ;;  %v424_v40 = vld [vmem:[#allocation2 + $0x78] sm:$0xff]  ;;  %v439_v41 = vadd.f32 %v875_v63, %v416_v39 }
 0x11f   :  { %v447_v42 = vadd.f32 %v875_v63, %v424_v40  ;;  %v454_v43 = vmax.f32 %v438_v37, 0.0 }
 0x120   :  { %v462_v44 = vmax.f32 %v446_v38, 0.0  ;;  %v455_v45 = vmax.f32 %v439_v41, 0.0 }
 0x121   :  { %v463_v46 = vmax.f32 %v447_v42, 0.0  ;;  %v604_v47 = vpack.c.bf16 %v454_v43, %v454_v43 }
 0x122   :  { %v612_v48 = vpack.c.bf16 %v462_v44, %v462_v44  ;;  %v605_v49 = vpack.c.bf16 %v455_v45, %v455_v45 }
 0x123   :  { %v613_v50 = vpack.c.bf16 %v463_v46, %v463_v46  ;;  %535 = vst.msk [vmem:[%s972_s3 + $0x18] sm:$0xf] %vm528_vm1, %v604_v47 }
 0x124   :  { %543 = vst.msk [vmem:[%s972_s3 + $0x38] sm:$0xf] %vm528_vm1, %v612_v48  ;;  %536 = vst.msk [vmem:[%s972_s3 + $0x1c] sm:$0xf] %vm528_vm1, %v605_v49 }
 0x125   :  { %544 = vst.msk [vmem:[%s972_s3 + $0x3c] sm:$0xf] %vm528_vm1, %v613_v50 }

// kernel: _lambda_.39
= control target key start
LH: loop header
LB: loop body
LE: loop exit
PB: predicated region body
PF: predicated region fallthrough
CT: control target
= control target key end

     0   :  { %vm19_vm0 = vcmask 523264   ;;  %v815_v50 = vmov 0.0   ;;  %vm606_vm1 = vcmask 519168   ;;  %s1009_s1 = inlined_call_operand.vmem [shape: bf16[640,64], index: 1, kind: input, shape index: {}]   ;;  %s1010_s0 = inlined_call_operand.vmem [shape: bf16[32,640], index: 0, kind: input, shape index: {}]   ;;  %s1011_s2 = inlined_call_operand.vmem [shape: f32[1,64], index: 2, kind: input, shape index: {}]   ;;  %s1012_s3 = inlined_call_operand.vmem [shape: bf16[32,64], index: 3, kind: output, shape index: {}]  }
   0x1   :  { %v761_v0 = vld [vmem:[%s1009_s1 + $0x40] sm:$0xff]   ;;  %v765_v4 = vld [vmem:[%s1009_s1 + $0x48] sm:$0xff]   ;;  %v769_v8 = vld [vmem:[%s1009_s1 + $0x50] sm:$0xff]   ;;  %22 = vst.msk [vmem:[#allocation2 + $0x10] sm:$0xff] %vm19_vm0, %v815_v50 }
   0x2   :  { %v762_v1 = vld [vmem:[%s1009_s1 + $0xc0] sm:$0xff]   ;;  %674 = vmatprep.subr.bf16.mxu0 %v761_v0  ;;  %v766_v5 = vld [vmem:[%s1009_s1 + $0xc8] sm:$0xff]   ;;  %v770_v9 = vld [vmem:[%s1009_s1 + $0xd0] sm:$0xff]   ;;  %20 = vst.msk [vmem:[#allocation2] sm:$0xff] %vm19_vm0, %v815_v50 }
   0x3   :  { %v763_v2 = vld [vmem:[%s1009_s1] sm:$0xff]   ;;  %702 = vmatprep.subr.bf16.mxu1 %v762_v1  ;;  %v767_v6 = vld [vmem:[%s1009_s1 + $0x8] sm:$0xff]   ;;  %v771_v10 = vld [vmem:[%s1009_s1 + $0x10] sm:$0xff]   ;;  %21 = vst.msk [vmem:[#allocation2 + $0x8] sm:$0xff] %vm19_vm0, %v815_v50 }
   0x4   :  { %v764_v3 = vld [vmem:[%s1009_s1 + $0x80] sm:$0xff]   ;;  %675 = vmatpush3.bf16.msra.mxu0 %v763_v2  ;;  %v768_v7 = vld [vmem:[%s1009_s1 + $0x88] sm:$0xff]   ;;  %v772_v11 = vld [vmem:[%s1009_s1 + $0x90] sm:$0xff]   ;;  %23 = vst.msk [vmem:[#allocation2 + $0x18] sm:$0xff] %vm19_vm0, %v815_v50 }
   0x5   :  { %703 = vmatpush3.bf16.msra.mxu1 %v764_v3  ;;  %676 = vmatprep.subr.bf16.mxu0 %v765_v4  ;;  %v773_v12 = vld [vmem:[%s1009_s1 + $0x58] sm:$0xff]   ;;  %v777_v16 = vld [vmem:[%s1009_s1 + $0x60] sm:$0xff]   ;;  %v781_v20 = vld [vmem:[%s1009_s1 + $0x68] sm:$0xff]  }
   0x6   :  { %704 = vmatprep.subr.bf16.mxu1 %v766_v5  ;;  %v774_v13 = vld [vmem:[%s1009_s1 + $0xd8] sm:$0xff]   ;;  %v778_v17 = vld [vmem:[%s1009_s1 + $0xe0] sm:$0xff]   ;;  %v782_v21 = vld [vmem:[%s1009_s1 + $0xe8] sm:$0xff]  }
   0x7   :  { %v775_v14 = vld [vmem:[%s1009_s1 + $0x18] sm:$0xff]   ;;  %v779_v18 = vld [vmem:[%s1009_s1 + $0x20] sm:$0xff]   ;;  %v783_v22 = vld [vmem:[%s1009_s1 + $0x28] sm:$0xff]  }
   0x8   :  { %677 = vmatpush3.bf16.msra.mxu0 %v767_v6  ;;  %v776_v15 = vld [vmem:[%s1009_s1 + $0x98] sm:$0xff]   ;;  %v780_v19 = vld [vmem:[%s1009_s1 + $0xa0] sm:$0xff]   ;;  %v784_v23 = vld [vmem:[%s1009_s1 + $0xa8] sm:$0xff]  }
   0x9   :  { %705 = vmatpush3.bf16.msra.mxu1 %v768_v7  ;;  %678 = vmatprep.subr.bf16.mxu0 %v769_v8  ;;  %v785_v24 = vld [vmem:[%s1009_s1 + $0x70] sm:$0xff]   ;;  %v789_v28 = vld [vmem:[%s1009_s1 + $0x78] sm:$0xff]   ;;  %v798_v35 = vld [vmem:[%s1010_s0 + $0xc] ss:$20 sps:$4 sm:$0xff]  }
   0xa   :  { %706 = vmatprep.subr.bf16.mxu1 %v770_v9  ;;  %v786_v25 = vld [vmem:[%s1009_s1 + $0xf0] sm:$0xff]   ;;  %v790_v29 = vld [vmem:[%s1009_s1 + $0xf8] sm:$0xff]   ;;  %v799_v36 = vld [vmem:[%s1009_s1 + $0x100] sm:$0xff]   ;;  %493 = vmatprep.mubr.bf16.mxu1 %v798_v35 }
   0xb   :  { %v787_v26 = vld [vmem:[%s1009_s1 + $0x30] sm:$0xff]   ;;  %v791_v30 = vld [vmem:[%s1009_s1 + $0x38] sm:$0xff]   ;;  %v800_v37 = vld [vmem:[%s1009_s1 + $0x108] sm:$0xff]  }
   0xc   :  { %679 = vmatpush3.bf16.msra.mxu0 %v771_v10  ;;  %v788_v27 = vld [vmem:[%s1009_s1 + $0xb0] sm:$0xff]   ;;  %v792_v31 = vld [vmem:[%s1009_s1 + $0xb8] sm:$0xff]   ;;  %v804_v39 = vld [vmem:[%s1010_s0 + $0x2c] ss:$20 sps:$4 sm:$0xff]  }
   0xd   :  { %707 = vmatpush3.bf16.msra.mxu1 %v772_v11  ;;  %680 = vmatprep.subr.bf16.mxu0 %v773_v12  ;;  %v793_v32 = vld [vmem:[%s1010_s0] ss:$20 sps:$4 sm:$0xff]   ;;  %v795_v33 = vld [vmem:[%s1010_s0 + $0x4] ss:$20 sps:$4 sm:$0xff]   ;;  %v796_v34 = vld [vmem:[%s1010_s0 + $0x8] ss:$20 sps:$4 sm:$0xff]  }
   0xe   :  { %708 = vmatprep.subr.bf16.mxu1 %v774_v13  ;;  %444 = vmatprep.mubr.bf16.mxu0 %v795_v33  ;;  %v801_v38 = vld [vmem:[%s1009_s1 + $0x110] sm:$0xff]   ;;  %v802_v41 = vld [vmem:[%s1009_s1 + $0x118] sm:$0xff]   ;;  %v803_v45 = vld [vmem:[%s1009_s1 + $0x120] sm:$0xff]  }
   0xf   :  { %v806_v40 = vld [vmem:[%s1010_s0 + $0x34] ss:$20 sps:$4 sm:$0xff]   ;;  %v810_v43 = vld [vmem:[%s1010_s0 + $0x30] ss:$20 sps:$4 sm:$0xff]   ;;  %v812_v48 = vld [vmem:[%s1009_s1 + $0x138] sm:$0xff]  }
  0x10   :  { %681 = vmatpush3.bf16.msra.mxu0 %v775_v14  ;;  %v809_v42 = vld [vmem:[%s1010_s0 + $0x28] ss:$20 sps:$4 sm:$0xff]   ;;  %v813_v44 = vld [vmem:[%s1010_s0 + $0x10] ss:$20 sps:$4 sm:$0xff]   ;;  %v814_v49 = vld [vmem:[%s1010_s0 + $0x38] ss:$20 sps:$4 sm:$0xff]  }
  0x11   :  { %709 = vmatpush3.bf16.msra.mxu1 %v776_v15  ;;  %682 = vmatprep.subr.bf16.mxu0 %v777_v16  ;;  %v808_v46 = vld [vmem:[%s1009_s1 + $0x128] sm:$0xff]   ;;  %v811_v47 = vld [vmem:[%s1009_s1 + $0x130] sm:$0xff]   ;;  %v26_v15 = vld [vmem:[#allocation2 + $0x10] sm:$0xff] }
  0x12   :  { %710 = vmatprep.subr.bf16.mxu1 %v778_v17 }
  0x14   :  { %683 = vmatpush3.bf16.msra.mxu0 %v779_v18  ;;  %v24_v18 = vld [vmem:[#allocation2] sm:$0xff] }
  0x15   :  { %711 = vmatpush3.bf16.msra.mxu1 %v780_v19  ;;  %684 = vmatprep.subr.bf16.mxu0 %v781_v20 }
  0x16   :  { %712 = vmatprep.subr.bf16.mxu1 %v782_v21  ;;  %v27_v21 = vld [vmem:[#allocation2 + $0x18] sm:$0xff] }
  0x18   :  { %685 = vmatpush3.bf16.msra.mxu0 %v783_v22 }
  0x19   :  { %713 = vmatpush3.bf16.msra.mxu1 %v784_v23  ;;  %686 = vmatprep.subr.bf16.mxu0 %v785_v24 }
  0x1a   :  { %714 = vmatprep.subr.bf16.mxu1 %v786_v25  ;;  %v25_v25 = vld [vmem:[#allocation2 + $0x8] sm:$0xff] }
  0x1c   :  { %687 = vmatpush3.bf16.msra.mxu0 %v787_v26 }
  0x1d   :  { %715 = vmatpush3.bf16.msra.mxu1 %v788_v27  ;;  %688 = vmatprep.subr.bf16.mxu0 %v789_v28 }
  0x1e   :  { %716 = vmatprep.subr.bf16.mxu1 %v790_v29 }
  0x20   :  { %689 = vmatpush3.bf16.msra.mxu0 %v791_v30 }
  0x21   :  { %717 = vmatpush3.bf16.msra.mxu1 %v792_v31  ;;  %740 = vmatprep.subr.bf16.mxu0 %v799_v36  ;;  %v665_v31 = vld [vmem:[%s1011_s2] ss:$0 sm:$0xff] }
  0x23   :  { %445 = vmatmul.mubr.bf16.vlgmr.msra.gmra.mrb[0].mxu0 %v793_v32 }
  0x24   :  { %494 = vmatmul.mubr.bf16.vlgmr.msra.gmra.mrb[0].mxu1 %v796_v34  ;;  %741 = vmatpush3.bf16.msra.mxu0 %v799_v36 }
  0x25   :  { %742 = vmatprep.subr.bf16.mxu0 %v800_v37  ;;  %452 = vmatprep.mubr.bf16.mxu0 %v804_v39 }
  0x26   :  { %501 = vmatprep.mubr.bf16.mxu1 %v806_v40 }
  0x28   :  { %743 = vmatpush3.bf16.msra.mxu0 %v800_v37 }
  0x29   :  { %744 = vmatprep.subr.bf16.mxu0 %v801_v38 }
  0x2b   :  { %453 = vmatmul.mubr.bf16.gmra.mrb[4].mxu0 %v809_v42 }
  0x2c   :  { %502 = vmatmul.mubr.bf16.gmra.mrb[4].mxu1 %v810_v43  ;;  %745 = vmatpush3.bf16.msra.mxu0 %v801_v38 }
  0x2d   :  { %746 = vmatprep.subr.bf16.mxu0 %v802_v41  ;;  %756 = vmatprep.mubr.bf16.mxu0 %v813_v44 }
  0x30   :  { %747 = vmatpush3.bf16.msra.mxu0 %v802_v41 }
  0x31   :  { %748 = vmatprep.subr.bf16.mxu0 %v803_v45 }
  0x34   :  { %749 = vmatpush3.bf16.msra.mxu0 %v803_v45 }
  0x35   :  { %750 = vmatprep.subr.bf16.mxu0 %v808_v46 }
  0x38   :  { %751 = vmatpush3.bf16.msra.mxu0 %v808_v46 }
  0x39   :  { %752 = vmatprep.subr.bf16.mxu0 %v811_v47 }
  0x3c   :  { %753 = vmatpush3.bf16.msra.mxu0 %v811_v47 }
  0x3d   :  { %754 = vmatprep.subr.bf16.mxu0 %v812_v48 }
  0x40   :  { %755 = vmatpush3.bf16.msra.mxu0 %v812_v48 }
  0x43   :  { %757 = vmatmul.mubr.bf16.vlgmr.msra.gmra.mrb[8].mxu0 %v814_v49 }
  0xf6   :  { %v690_v51 = vpop.f32.mrb[0].mxu0 }
  0xf7   :  { %v718_v52 = vpop.f32.mrb[0].mxu1  ;;  %v691_v53 = vpop.f32.mrb[1].mxu0 }
  0xf8   :  { %v692_v54 = vadd.f32 %v691_v53, %v690_v51  ;;  %v719_v55 = vpop.f32.mrb[1].mxu1  ;;  %v693_v56 = vpop.f32.mrb[2].mxu0 }
  0xf9   :  { %v720_v57 = vadd.f32 %v719_v55, %v718_v52  ;;  %v721_v58 = vpop.f32.mrb[2].mxu1  ;;  %v694_v59 = vpop.f32.mrb[3].mxu0 }
  0xfa   :  { %v695_v60 = vadd.f32 %v694_v59, %v693_v56  ;;  %v722_v61 = vpop.f32.mrb[3].mxu1 }
  0xfb   :  { %v723_v62 = vadd.f32 %v722_v61, %v721_v58  ;;  %v496_v63 = vadd.f32 %v720_v57, %v692_v54 }
  0xfd   :  { %v499_v0 = vadd.f32 %v723_v62, %v695_v60 }
  0xfe   :  { %v696_v1 = vpop.f32.mrb[4].mxu0 }
  0xff   :  { %v724_v2 = vpop.f32.mrb[4].mxu1  ;;  %v697_v3 = vpop.f32.mrb[5].mxu0 }
 0x100   :  { %v698_v4 = vadd.f32 %v697_v3, %v696_v1  ;;  %v725_v5 = vpop.f32.mrb[5].mxu1  ;;  %v699_v6 = vpop.f32.mrb[6].mxu0 }
 0x101   :  { %v726_v7 = vadd.f32 %v725_v5, %v724_v2  ;;  %v727_v8 = vpop.f32.mrb[6].mxu1  ;;  %v700_v9 = vpop.f32.mrb[7].mxu0 }
 0x102   :  { %v701_v10 = vadd.f32 %v700_v9, %v699_v6  ;;  %v728_v11 = vpop.f32.mrb[7].mxu1 }
 0x103   :  { %v729_v12 = vadd.f32 %v728_v11, %v727_v8  ;;  %v504_v13 = vadd.f32 %v726_v7, %v698_v4 }
 0x105   :  { %v507_v14 = vadd.f32 %v729_v12, %v701_v10 }
 0x116   :  { %v758_v16 = vpop.f32.mrb[8].mxu0 }
 0x117   :  { %v553_v17 = vadd.f32 %v758_v16, %v504_v13  ;;  %v544_v19 = vpop.f32.mrb[9].mxu0 }
 0x118   :  { %v545_v20 = vadd.f32 %v544_v19, %v496_v63  ;;  %v759_v22 = vpop.f32.mrb[10].mxu0 }
 0x119   :  { %v561_v23 = vadd.f32 %v553_v17, %v26_v15  ;;  %v556_v24 = vadd.f32 %v759_v22, %v507_v14  ;;  %v547_v26 = vpop.f32.mrb[11].mxu0 }
 0x11a   :  { %v559_v27 = vadd.f32 %v545_v20, %v24_v18  ;;  %v548_v28 = vadd.f32 %v547_v26, %v499_v0 }
 0x11b   :  { %566 = vst.msk [vmem:[#allocation2 + $0x10] sm:$0xff] %vm19_vm0, %v561_v23  ;;  %v562_v29 = vadd.f32 %v556_v24, %v27_v21 }
 0x11c   :  { %564 = vst.msk [vmem:[#allocation2] sm:$0xff] %vm19_vm0, %v559_v27  ;;  %v560_v30 = vadd.f32 %v548_v28, %v25_v25 }
 0x11d   :  { %567 = vst.msk [vmem:[#allocation2 + $0x18] sm:$0xff] %vm19_vm0, %v562_v29 }
 0x11e   :  { %565 = vst.msk [vmem:[#allocation2 + $0x8] sm:$0xff] %vm19_vm0, %v560_v30 }
 0x122   :  { %v573_v32 = vld [vmem:[#allocation2 + $0x10] sm:$0xff] }
 0x123   :  { %v584_v33 = vadd.f32 %v665_v31, %v573_v32  ;;  %v571_v34 = vld [vmem:[#allocation2] sm:$0xff] }
 0x124   :  { %v582_v35 = vadd.f32 %v665_v31, %v571_v34  ;;  %v574_v36 = vld [vmem:[#allocation2 + $0x18] sm:$0xff] }
 0x125   :  { %v588_v37 = vmax.f32 %v584_v33, 0.0  ;;  %v585_v38 = vadd.f32 %v665_v31, %v574_v36  ;;  %v572_v39 = vld [vmem:[#allocation2 + $0x8] sm:$0xff] }
 0x126   :  { %v586_v40 = vmax.f32 %v582_v35, 0.0  ;;  %v583_v41 = vadd.f32 %v665_v31, %v572_v39 }
 0x127   :  { %v672_v42 = vpack.c.bf16 %v588_v37, %v588_v37  ;;  %v589_v43 = vmax.f32 %v585_v38, 0.0 }
 0x128   :  { %v670_v44 = vpack.c.bf16 %v586_v40, %v586_v40  ;;  %v587_v45 = vmax.f32 %v583_v41, 0.0 }
 0x129   :  { %609 = vst.msk [vmem:[%s1012_s3 + $0x8] sm:$0xf] %vm606_vm1, %v672_v42  ;;  %v673_v46 = vpack.c.bf16 %v589_v43, %v589_v43 }
 0x12a   :  { %607 = vst.msk [vmem:[%s1012_s3] sm:$0xf] %vm606_vm1, %v670_v44  ;;  %v671_v47 = vpack.c.bf16 %v587_v45, %v587_v45 }
 0x12b   :  { %610 = vst.msk [vmem:[%s1012_s3 + $0xc] sm:$0xf] %vm606_vm1, %v673_v46 }
 0x12c   :  { %608 = vst.msk [vmem:[%s1012_s3 + $0x4] sm:$0xf] %vm606_vm1, %v671_v47 }

// kernel: _lambda_.40
= control target key start
LH: loop header
LB: loop body
LE: loop exit
PB: predicated region body
PF: predicated region fallthrough
CT: control target
= control target key end

     0   :  { %vm22_vm0 = vcmask 523264   ;;  %v839_v50 = vmov 0.0   ;;  %vm621_vm1 = vcmask 519168   ;;  %s1044_s1 = inlined_call_operand.vmem [shape: bf16[640,64], index: 1, kind: input, shape index: {}]   ;;  %s1045_s0 = inlined_call_operand.vmem [shape: bf16[32,640], index: 0, kind: input, shape index: {}]   ;;  %s1046_s3 = inlined_call_operand.vmem [shape: bf16[32,64], index: 3, kind: input, shape index: {}]   ;;  %s1047_s2 = inlined_call_operand.vmem [shape: f32[1,64], index: 2, kind: input, shape index: {}]   ;;  %s1048_s4 = inlined_call_operand.vmem [shape: bf16[32,64], index: 4, kind: output, shape index: {}]  }
   0x1   :  { %v785_v0 = vld [vmem:[%s1044_s1 + $0x40] sm:$0xff]   ;;  %v789_v4 = vld [vmem:[%s1044_s1 + $0x48] sm:$0xff]   ;;  %v793_v8 = vld [vmem:[%s1044_s1 + $0x50] sm:$0xff]   ;;  %25 = vst.msk [vmem:[#allocation2 + $0x10] sm:$0xff] %vm22_vm0, %v839_v50 }
   0x2   :  { %v786_v1 = vld [vmem:[%s1044_s1 + $0xc0] sm:$0xff]   ;;  %698 = vmatprep.subr.bf16.mxu0 %v785_v0  ;;  %v790_v5 = vld [vmem:[%s1044_s1 + $0xc8] sm:$0xff]   ;;  %v794_v9 = vld [vmem:[%s1044_s1 + $0xd0] sm:$0xff]   ;;  %23 = vst.msk [vmem:[#allocation2] sm:$0xff] %vm22_vm0, %v839_v50 }
   0x3   :  { %v787_v2 = vld [vmem:[%s1044_s1] sm:$0xff]   ;;  %726 = vmatprep.subr.bf16.mxu1 %v786_v1  ;;  %v791_v6 = vld [vmem:[%s1044_s1 + $0x8] sm:$0xff]   ;;  %v795_v10 = vld [vmem:[%s1044_s1 + $0x10] sm:$0xff]   ;;  %24 = vst.msk [vmem:[#allocation2 + $0x8] sm:$0xff] %vm22_vm0, %v839_v50 }
   0x4   :  { %v788_v3 = vld [vmem:[%s1044_s1 + $0x80] sm:$0xff]   ;;  %699 = vmatpush3.bf16.msra.mxu0 %v787_v2  ;;  %v792_v7 = vld [vmem:[%s1044_s1 + $0x88] sm:$0xff]   ;;  %v796_v11 = vld [vmem:[%s1044_s1 + $0x90] sm:$0xff]   ;;  %26 = vst.msk [vmem:[#allocation2 + $0x18] sm:$0xff] %vm22_vm0, %v839_v50 }
   0x5   :  { %727 = vmatpush3.bf16.msra.mxu1 %v788_v3  ;;  %700 = vmatprep.subr.bf16.mxu0 %v789_v4  ;;  %v797_v12 = vld [vmem:[%s1044_s1 + $0x58] sm:$0xff]   ;;  %v801_v16 = vld [vmem:[%s1044_s1 + $0x60] sm:$0xff]   ;;  %v805_v20 = vld [vmem:[%s1044_s1 + $0x68] sm:$0xff]  }
   0x6   :  { %728 = vmatprep.subr.bf16.mxu1 %v790_v5  ;;  %v798_v13 = vld [vmem:[%s1044_s1 + $0xd8] sm:$0xff]   ;;  %v802_v17 = vld [vmem:[%s1044_s1 + $0xe0] sm:$0xff]   ;;  %v806_v21 = vld [vmem:[%s1044_s1 + $0xe8] sm:$0xff]  }
   0x7   :  { %v799_v14 = vld [vmem:[%s1044_s1 + $0x18] sm:$0xff]   ;;  %v803_v18 = vld [vmem:[%s1044_s1 + $0x20] sm:$0xff]   ;;  %v807_v22 = vld [vmem:[%s1044_s1 + $0x28] sm:$0xff]  }
   0x8   :  { %701 = vmatpush3.bf16.msra.mxu0 %v791_v6  ;;  %v800_v15 = vld [vmem:[%s1044_s1 + $0x98] sm:$0xff]   ;;  %v804_v19 = vld [vmem:[%s1044_s1 + $0xa0] sm:$0xff]   ;;  %v808_v23 = vld [vmem:[%s1044_s1 + $0xa8] sm:$0xff]  }
   0x9   :  { %729 = vmatpush3.bf16.msra.mxu1 %v792_v7  ;;  %702 = vmatprep.subr.bf16.mxu0 %v793_v8  ;;  %v809_v24 = vld [vmem:[%s1044_s1 + $0x70] sm:$0xff]   ;;  %v813_v28 = vld [vmem:[%s1044_s1 + $0x78] sm:$0xff]   ;;  %v822_v35 = vld [vmem:[%s1045_s0 + $0xc] ss:$20 sps:$4 sm:$0xff]  }
   0xa   :  { %730 = vmatprep.subr.bf16.mxu1 %v794_v9  ;;  %v810_v25 = vld [vmem:[%s1044_s1 + $0xf0] sm:$0xff]   ;;  %v814_v29 = vld [vmem:[%s1044_s1 + $0xf8] sm:$0xff]   ;;  %v823_v36 = vld [vmem:[%s1044_s1 + $0x100] sm:$0xff]   ;;  %496 = vmatprep.mubr.bf16.mxu1 %v822_v35 }
   0xb   :  { %v811_v26 = vld [vmem:[%s1044_s1 + $0x30] sm:$0xff]   ;;  %v815_v30 = vld [vmem:[%s1044_s1 + $0x38] sm:$0xff]   ;;  %v824_v37 = vld [vmem:[%s1044_s1 + $0x108] sm:$0xff]  }
   0xc   :  { %703 = vmatpush3.bf16.msra.mxu0 %v795_v10  ;;  %v812_v27 = vld [vmem:[%s1044_s1 + $0xb0] sm:$0xff]   ;;  %v816_v31 = vld [vmem:[%s1044_s1 + $0xb8] sm:$0xff]   ;;  %v828_v39 = vld [vmem:[%s1045_s0 + $0x2c] ss:$20 sps:$4 sm:$0xff]  }
   0xd   :  { %731 = vmatpush3.bf16.msra.mxu1 %v796_v11  ;;  %704 = vmatprep.subr.bf16.mxu0 %v797_v12  ;;  %v817_v32 = vld [vmem:[%s1045_s0] ss:$20 sps:$4 sm:$0xff]   ;;  %v819_v33 = vld [vmem:[%s1045_s0 + $0x4] ss:$20 sps:$4 sm:$0xff]   ;;  %v820_v34 = vld [vmem:[%s1045_s0 + $0x8] ss:$20 sps:$4 sm:$0xff]  }
   0xe   :  { %732 = vmatprep.subr.bf16.mxu1 %v798_v13  ;;  %447 = vmatprep.mubr.bf16.mxu0 %v819_v33  ;;  %v825_v38 = vld [vmem:[%s1044_s1 + $0x110] sm:$0xff]   ;;  %v826_v41 = vld [vmem:[%s1044_s1 + $0x118] sm:$0xff]   ;;  %v827_v45 = vld [vmem:[%s1044_s1 + $0x120] sm:$0xff]  }
   0xf   :  { %v830_v40 = vld [vmem:[%s1045_s0 + $0x34] ss:$20 sps:$4 sm:$0xff]   ;;  %v834_v43 = vld [vmem:[%s1045_s0 + $0x30] ss:$20 sps:$4 sm:$0xff]   ;;  %v836_v48 = vld [vmem:[%s1044_s1 + $0x138] sm:$0xff]  }
  0x10   :  { %705 = vmatpush3.bf16.msra.mxu0 %v799_v14  ;;  %v833_v42 = vld [vmem:[%s1045_s0 + $0x28] ss:$20 sps:$4 sm:$0xff]   ;;  %v837_v44 = vld [vmem:[%s1045_s0 + $0x10] ss:$20 sps:$4 sm:$0xff]   ;;  %v838_v49 = vld [vmem:[%s1045_s0 + $0x38] ss:$20 sps:$4 sm:$0xff]  }
  0x11   :  { %733 = vmatpush3.bf16.msra.mxu1 %v800_v15  ;;  %706 = vmatprep.subr.bf16.mxu0 %v801_v16  ;;  %v832_v46 = vld [vmem:[%s1044_s1 + $0x128] sm:$0xff]   ;;  %v835_v47 = vld [vmem:[%s1044_s1 + $0x130] sm:$0xff]   ;;  %v29_v15 = vld [vmem:[#allocation2 + $0x10] sm:$0xff] }
  0x12   :  { %734 = vmatprep.subr.bf16.mxu1 %v802_v17  ;;  %v680_v33 = vld [vmem:[%s1047_s2] ss:$0 sm:$0xff] }
  0x14   :  { %707 = vmatpush3.bf16.msra.mxu0 %v803_v18  ;;  %v27_v18 = vld [vmem:[#allocation2] sm:$0xff] }
  0x15   :  { %735 = vmatpush3.bf16.msra.mxu1 %v804_v19  ;;  %708 = vmatprep.subr.bf16.mxu0 %v805_v20 }
  0x16   :  { %736 = vmatprep.subr.bf16.mxu1 %v806_v21  ;;  %v30_v21 = vld [vmem:[#allocation2 + $0x18] sm:$0xff] }
  0x18   :  { %709 = vmatpush3.bf16.msra.mxu0 %v807_v22 }
  0x19   :  { %737 = vmatpush3.bf16.msra.mxu1 %v808_v23  ;;  %710 = vmatprep.subr.bf16.mxu0 %v809_v24 }
  0x1a   :  { %738 = vmatprep.subr.bf16.mxu1 %v810_v25  ;;  %v28_v25 = vld [vmem:[#allocation2 + $0x8] sm:$0xff] }
  0x1c   :  { %711 = vmatpush3.bf16.msra.mxu0 %v811_v26 }
  0x1d   :  { %739 = vmatpush3.bf16.msra.mxu1 %v812_v27  ;;  %712 = vmatprep.subr.bf16.mxu0 %v813_v28 }
  0x1e   :  { %740 = vmatprep.subr.bf16.mxu1 %v814_v29 }
  0x20   :  { %713 = vmatpush3.bf16.msra.mxu0 %v815_v30 }
  0x21   :  { %741 = vmatpush3.bf16.msra.mxu1 %v816_v31  ;;  %764 = vmatprep.subr.bf16.mxu0 %v823_v36  ;;  %v697_v31 = vld [vmem:[%s1046_s3 + $0x8] sm:$0xff]  }
  0x23   :  { %448 = vmatmul.mubr.bf16.vlgmr.msra.gmra.mrb[0].mxu0 %v817_v32  ;;  %v690_v32 = vld [vmem:[%s1046_s3] sm:$0xff]  }
  0x24   :  { %497 = vmatmul.mubr.bf16.vlgmr.msra.gmra.mrb[0].mxu1 %v820_v34  ;;  %765 = vmatpush3.bf16.msra.mxu0 %v823_v36  ;;  %v695_v34 = vunpack.c.l.bf16 %v697_v31  ;;  %v691_v36 = vunpack.c.l.bf16 %v690_v32 }
  0x25   :  { %766 = vmatprep.subr.bf16.mxu0 %v824_v37  ;;  %455 = vmatprep.mubr.bf16.mxu0 %v828_v39  ;;  %v696_v39 = vunpack.c.h.bf16 %v697_v31 }
  0x26   :  { %504 = vmatprep.mubr.bf16.mxu1 %v830_v40 }
  0x28   :  { %767 = vmatpush3.bf16.msra.mxu0 %v824_v37 }
  0x29   :  { %768 = vmatprep.subr.bf16.mxu0 %v825_v38 }
  0x2b   :  { %456 = vmatmul.mubr.bf16.gmra.mrb[4].mxu0 %v833_v42  ;;  %v692_v42 = vunpack.c.h.bf16 %v690_v32 }
  0x2c   :  { %505 = vmatmul.mubr.bf16.gmra.mrb[4].mxu1 %v834_v43  ;;  %769 = vmatpush3.bf16.msra.mxu0 %v825_v38 }
  0x2d   :  { %770 = vmatprep.subr.bf16.mxu0 %v826_v41  ;;  %780 = vmatprep.mubr.bf16.mxu0 %v837_v44 }
  0x30   :  { %771 = vmatpush3.bf16.msra.mxu0 %v826_v41 }
  0x31   :  { %772 = vmatprep.subr.bf16.mxu0 %v827_v45 }
  0x34   :  { %773 = vmatpush3.bf16.msra.mxu0 %v827_v45 }
  0x35   :  { %774 = vmatprep.subr.bf16.mxu0 %v832_v46 }
  0x38   :  { %775 = vmatpush3.bf16.msra.mxu0 %v832_v46 }
  0x39   :  { %776 = vmatprep.subr.bf16.mxu0 %v835_v47 }
  0x3c   :  { %777 = vmatpush3.bf16.msra.mxu0 %v835_v47 }
  0x3d   :  { %778 = vmatprep.subr.bf16.mxu0 %v836_v48 }
  0x40   :  { %779 = vmatpush3.bf16.msra.mxu0 %v836_v48 }
  0x43   :  { %781 = vmatmul.mubr.bf16.vlgmr.msra.gmra.mrb[8].mxu0 %v838_v49 }
  0xf6   :  { %v714_v51 = vpop.f32.mrb[0].mxu0 }
  0xf7   :  { %v742_v52 = vpop.f32.mrb[0].mxu1  ;;  %v715_v53 = vpop.f32.mrb[1].mxu0 }
  0xf8   :  { %v716_v54 = vadd.f32 %v715_v53, %v714_v51  ;;  %v743_v55 = vpop.f32.mrb[1].mxu1  ;;  %v717_v56 = vpop.f32.mrb[2].mxu0 }
  0xf9   :  { %v744_v57 = vadd.f32 %v743_v55, %v742_v52  ;;  %v745_v58 = vpop.f32.mrb[2].mxu1  ;;  %v718_v59 = vpop.f32.mrb[3].mxu0 }
  0xfa   :  { %v719_v60 = vadd.f32 %v718_v59, %v717_v56  ;;  %v746_v61 = vpop.f32.mrb[3].mxu1 }
  0xfb   :  { %v747_v62 = vadd.f32 %v746_v61, %v745_v58  ;;  %v499_v63 = vadd.f32 %v744_v57, %v716_v54 }
  0xfd   :  { %v502_v0 = vadd.f32 %v747_v62, %v719_v60 }
  0xfe   :  { %v720_v1 = vpop.f32.mrb[4].mxu0 }
  0xff   :  { %v748_v2 = vpop.f32.mrb[4].mxu1  ;;  %v721_v3 = vpop.f32.mrb[5].mxu0 }
 0x100   :  { %v722_v4 = vadd.f32 %v721_v3, %v720_v1  ;;  %v749_v5 = vpop.f32.mrb[5].mxu1  ;;  %v723_v6 = vpop.f32.mrb[6].mxu0 }
 0x101   :  { %v750_v7 = vadd.f32 %v749_v5, %v748_v2  ;;  %v751_v8 = vpop.f32.mrb[6].mxu1  ;;  %v724_v9 = vpop.f32.mrb[7].mxu0 }
 0x102   :  { %v725_v10 = vadd.f32 %v724_v9, %v723_v6  ;;  %v752_v11 = vpop.f32.mrb[7].mxu1 }
 0x103   :  { %v753_v12 = vadd.f32 %v752_v11, %v751_v8  ;;  %v507_v13 = vadd.f32 %v750_v7, %v722_v4 }
 0x105   :  { %v510_v14 = vadd.f32 %v753_v12, %v725_v10 }
 0x116   :  { %v782_v16 = vpop.f32.mrb[8].mxu0 }
 0x117   :  { %v556_v17 = vadd.f32 %v782_v16, %v507_v13  ;;  %v547_v19 = vpop.f32.mrb[9].mxu0 }
 0x118   :  { %v548_v20 = vadd.f32 %v547_v19, %v499_v63  ;;  %v783_v22 = vpop.f32.mrb[10].mxu0 }
 0x119   :  { %v564_v23 = vadd.f32 %v556_v17, %v29_v15  ;;  %v559_v24 = vadd.f32 %v783_v22, %v510_v14  ;;  %v550_v26 = vpop.f32.mrb[11].mxu0 }
 0x11a   :  { %v562_v27 = vadd.f32 %v548_v20, %v27_v18  ;;  %v551_v28 = vadd.f32 %v550_v26, %v502_v0 }
 0x11b   :  { %569 = vst.msk [vmem:[#allocation2 + $0x10] sm:$0xff] %vm22_vm0, %v564_v23  ;;  %v565_v29 = vadd.f32 %v559_v24, %v30_v21 }
 0x11c   :  { %567 = vst.msk [vmem:[#allocation2] sm:$0xff] %vm22_vm0, %v562_v27  ;;  %v563_v30 = vadd.f32 %v551_v28, %v28_v25 }
 0x11d   :  { %570 = vst.msk [vmem:[#allocation2 + $0x18] sm:$0xff] %vm22_vm0, %v565_v29 }
 0x11e   :  { %568 = vst.msk [vmem:[#allocation2 + $0x8] sm:$0xff] %vm22_vm0, %v563_v30 }
 0x122   :  { %v576_v35 = vld [vmem:[#allocation2 + $0x10] sm:$0xff] }
 0x123   :  { %v587_v37 = vadd.f32 %v680_v33, %v576_v35  ;;  %v574_v38 = vld [vmem:[#allocation2] sm:$0xff] }
 0x124   :  { %v585_v40 = vadd.f32 %v680_v33, %v574_v38  ;;  %v577_v41 = vld [vmem:[#allocation2 + $0x18] sm:$0xff] }
 0x125   :  { %v599_v43 = vadd.f32 %v695_v34, %v587_v37  ;;  %v588_v44 = vadd.f32 %v680_v33, %v577_v41  ;;  %v575_v45 = vld [vmem:[#allocation2 + $0x8] sm:$0xff] }
 0x126   :  { %v597_v46 = vadd.f32 %v691_v36, %v585_v40  ;;  %v586_v47 = vadd.f32 %v680_v33, %v575_v45 }
 0x127   :  { %v603_v48 = vmax.f32 %v599_v43, 0.0  ;;  %v600_v49 = vadd.f32 %v696_v39, %v588_v44 }
 0x128   :  { %v601_v50 = vmax.f32 %v597_v46, 0.0  ;;  %v598_v51 = vadd.f32 %v692_v42, %v586_v47 }
 0x129   :  { %v687_v52 = vpack.c.bf16 %v603_v48, %v603_v48  ;;  %v604_v53 = vmax.f32 %v600_v49, 0.0 }
 0x12a   :  { %v685_v54 = vpack.c.bf16 %v601_v50, %v601_v50  ;;  %v602_v55 = vmax.f32 %v598_v51, 0.0 }
 0x12b   :  { %624 = vst.msk [vmem:[%s1048_s4 + $0x8] sm:$0xf] %vm621_vm1, %v687_v52  ;;  %v688_v56 = vpack.c.bf16 %v604_v53, %v604_v53 }
 0x12c   :  { %622 = vst.msk [vmem:[%s1048_s4] sm:$0xf] %vm621_vm1, %v685_v54  ;;  %v686_v57 = vpack.c.bf16 %v602_v55, %v602_v55 }
 0x12d   :  { %625 = vst.msk [vmem:[%s1048_s4 + $0xc] sm:$0xf] %vm621_vm1, %v688_v56 }
 0x12e   :  { %623 = vst.msk [vmem:[%s1048_s4 + $0x4] sm:$0xf] %vm621_vm1, %v686_v57 }

// kernel: _lambda_.46
= control target key start
LH: loop header
LB: loop body
LE: loop exit
PB: predicated region body
PF: predicated region fallthrough
CT: control target
= control target key end

     0   :  { %v669_v36 = vmov 0.0   ;;  %vm670_vm0 = vmmov 0   ;;  %s826_s1 = inlined_call_operand.vmem [shape: bf16[640,128], index: 1, kind: input, shape index: {}]   ;;  %s827_s0 = inlined_call_operand.vmem [shape: bf16[8,640], index: 0, kind: input, shape index: {}]   ;;  %s828_s2 = inlined_call_operand.vmem [shape: f32[1,128], index: 2, kind: input, shape index: {}]   ;;  %s829_s3 = inlined_call_operand.vmem [shape: bf16[8,128], index: 3, kind: output, shape index: {}]  }
   0x1   :  { %v624_v0 = vld [vmem:[%s826_s1 + $0x40] sm:$0xff]   ;;  %v628_v4 = vld [vmem:[%s826_s1 + $0x48] sm:$0xff]   ;;  %v632_v8 = vld [vmem:[%s826_s1 + $0x50] sm:$0xff]  }
   0x2   :  { %v625_v1 = vld [vmem:[%s826_s1 + $0xc0] sm:$0xff]   ;;  %549 = vmatprep.subr.bf16.mxu0 %v624_v0  ;;  %v629_v5 = vld [vmem:[%s826_s1 + $0xc8] sm:$0xff]   ;;  %v633_v9 = vld [vmem:[%s826_s1 + $0xd0] sm:$0xff]  }
   0x3   :  { %v626_v2 = vld [vmem:[%s826_s1] sm:$0xff]   ;;  %571 = vmatprep.subr.bf16.mxu1 %v625_v1  ;;  %v630_v6 = vld [vmem:[%s826_s1 + $0x8] sm:$0xff]   ;;  %v634_v10 = vld [vmem:[%s826_s1 + $0x10] sm:$0xff]  }
   0x4   :  { %v627_v3 = vld [vmem:[%s826_s1 + $0x80] sm:$0xff]   ;;  %550 = vmatpush3.bf16.msra.mxu0 %v626_v2  ;;  %v631_v7 = vld [vmem:[%s826_s1 + $0x88] sm:$0xff]   ;;  %v635_v11 = vld [vmem:[%s826_s1 + $0x90] sm:$0xff]  }
   0x5   :  { %572 = vmatpush3.bf16.msra.mxu1 %v627_v3  ;;  %551 = vmatprep.subr.bf16.mxu0 %v628_v4  ;;  %v636_v12 = vld [vmem:[%s826_s1 + $0x58] sm:$0xff]   ;;  %v640_v16 = vld [vmem:[%s826_s1 + $0x60] sm:$0xff]   ;;  %v644_v20 = vld [vmem:[%s826_s1 + $0x68] sm:$0xff]  }
   0x6   :  { %573 = vmatprep.subr.bf16.mxu1 %v629_v5  ;;  %v637_v13 = vld [vmem:[%s826_s1 + $0xd8] sm:$0xff]   ;;  %v641_v17 = vld [vmem:[%s826_s1 + $0xe0] sm:$0xff]   ;;  %v645_v21 = vld [vmem:[%s826_s1 + $0xe8] sm:$0xff]  }
   0x7   :  { %v638_v14 = vld [vmem:[%s826_s1 + $0x18] sm:$0xff]   ;;  %v642_v18 = vld [vmem:[%s826_s1 + $0x20] sm:$0xff]   ;;  %v646_v22 = vld [vmem:[%s826_s1 + $0x28] sm:$0xff]  }
   0x8   :  { %552 = vmatpush3.bf16.msra.mxu0 %v630_v6  ;;  %v639_v15 = vld [vmem:[%s826_s1 + $0x98] sm:$0xff]   ;;  %v643_v19 = vld [vmem:[%s826_s1 + $0xa0] sm:$0xff]   ;;  %v647_v23 = vld [vmem:[%s826_s1 + $0xa8] sm:$0xff]  }
   0x9   :  { %574 = vmatpush3.bf16.msra.mxu1 %v631_v7  ;;  %553 = vmatprep.subr.bf16.mxu0 %v632_v8  ;;  %v648_v24 = vld [vmem:[%s826_s1 + $0x70] sm:$0xff]   ;;  %v652_v28 = vld [vmem:[%s826_s1 + $0x78] sm:$0xff]   ;;  %v21_v32 = vld [vmem:[%s827_s0] sm:$0xff] }
   0xa   :  { %575 = vmatprep.subr.bf16.mxu1 %v633_v9  ;;  %v649_v25 = vld [vmem:[%s826_s1 + $0xf0] sm:$0xff]   ;;  %v653_v29 = vld [vmem:[%s826_s1 + $0xf8] sm:$0xff]   ;;  %v503_v33 = vcombine.low %v21_v32, %v21_v32  ;;  %v504_v34 = vcombine.high %v21_v32, %v21_v32  ;;  %v22_v35 = vld [vmem:[%s827_s0 + $0x8] sm:$0xff] }
   0xb   :  { %v650_v26 = vld [vmem:[%s826_s1 + $0x30] sm:$0xff]   ;;  %v654_v30 = vld [vmem:[%s826_s1 + $0x38] sm:$0xff]   ;;  %v505_v37 = vcombine.low %v22_v35, %v22_v35  ;;  %v506_v38 = vcombine.high %v22_v35, %v22_v35  ;;  %v661_v39 = vld [vmem:[%s826_s1 + $0x100] sm:$0xff]  }
   0xc   :  { %554 = vmatpush3.bf16.msra.mxu0 %v634_v10  ;;  %v651_v27 = vld [vmem:[%s826_s1 + $0xb0] sm:$0xff]   ;;  %v655_v31 = vld [vmem:[%s826_s1 + $0xb8] sm:$0xff]   ;;  %394 = vmatprep.mubr.bf16.mxu0 %v504_v34  ;;  %v662_v40 = vld [vmem:[%s826_s1 + $0x108] sm:$0xff]  }
   0xd   :  { %576 = vmatpush3.bf16.msra.mxu1 %v635_v11  ;;  %555 = vmatprep.subr.bf16.mxu0 %v636_v12  ;;  %v663_v41 = vld [vmem:[%s826_s1 + $0x110] sm:$0xff]   ;;  %v664_v42 = vld [vmem:[%s826_s1 + $0x118] sm:$0xff]   ;;  %v665_v43 = vld [vmem:[%s826_s1 + $0x120] sm:$0xff]  }
   0xe   :  { %577 = vmatprep.subr.bf16.mxu1 %v637_v13  ;;  %434 = vmatprep.mubr.bf16.mxu1 %v506_v38  ;;  %v666_v44 = vld [vmem:[%s826_s1 + $0x128] sm:$0xff]   ;;  %v667_v45 = vld [vmem:[%s826_s1 + $0x130] sm:$0xff]   ;;  %v668_v46 = vld [vmem:[%s826_s1 + $0x138] sm:$0xff]  }
   0xf   :  { %v658_v47 = vld [vmem:[%s827_s0 + $0x10] ss:$0 sps:$4 sm:$0xff]   ;;  %v548_v60 = vld [vmem:[%s828_s2] ss:$0 sm:$0xff] }
  0x10   :  { %556 = vmatpush3.bf16.msra.mxu0 %v638_v14 }
  0x11   :  { %578 = vmatpush3.bf16.msra.mxu1 %v639_v15  ;;  %557 = vmatprep.subr.bf16.mxu0 %v640_v16 }
  0x12   :  { %579 = vmatprep.subr.bf16.mxu1 %v641_v17 }
  0x14   :  { %558 = vmatpush3.bf16.msra.mxu0 %v642_v18 }
  0x15   :  { %580 = vmatpush3.bf16.msra.mxu1 %v643_v19  ;;  %559 = vmatprep.subr.bf16.mxu0 %v644_v20 }
  0x16   :  { %581 = vmatprep.subr.bf16.mxu1 %v645_v21 }
  0x18   :  { %560 = vmatpush3.bf16.msra.mxu0 %v646_v22 }
  0x19   :  { %582 = vmatpush3.bf16.msra.mxu1 %v647_v23  ;;  %561 = vmatprep.subr.bf16.mxu0 %v648_v24 }
  0x1a   :  { %583 = vmatprep.subr.bf16.mxu1 %v649_v25 }
  0x1c   :  { %562 = vmatpush3.bf16.msra.mxu0 %v650_v26 }
  0x1d   :  { %584 = vmatpush3.bf16.msra.mxu1 %v651_v27  ;;  %563 = vmatprep.subr.bf16.mxu0 %v652_v28 }
  0x1e   :  { %585 = vmatprep.subr.bf16.mxu1 %v653_v29 }
  0x20   :  { %564 = vmatpush3.bf16.msra.mxu0 %v654_v30 }
  0x21   :  { %586 = vmatpush3.bf16.msra.mxu1 %v655_v31  ;;  %602 = vmatprep.subr.bf16.mxu0 %v669_v36 }
  0x23   :  { %395 = vmatmul.mubr.bf16.vlgmr.msra.gmra.mrb[0].mxu0 %v503_v33 }
  0x24   :  { %435 = vmatmul.mubr.bf16.vlgmr.msra.gmra.mrb[0].mxu1 %v505_v37  ;;  %603 = vmatpush3.bf16.msra.mxu0 %v661_v39 }
  0x25   :  { %604 = vmatprep.subr.bf16.mxu0 %v669_v36  ;;  %618 = vmatprep.mubr.msk.bf16.mxu0 %vm670_vm0, %v669_v36 }
  0x28   :  { %605 = vmatpush3.bf16.msra.mxu0 %v662_v40 }
  0x29   :  { %606 = vmatprep.subr.bf16.mxu0 %v669_v36 }
  0x2c   :  { %607 = vmatpush3.bf16.msra.mxu0 %v663_v41 }
  0x2d   :  { %608 = vmatprep.subr.bf16.mxu0 %v669_v36 }
  0x30   :  { %609 = vmatpush3.bf16.msra.mxu0 %v664_v42 }
  0x31   :  { %610 = vmatprep.subr.bf16.mxu0 %v669_v36 }
  0x34   :  { %611 = vmatpush3.bf16.msra.mxu0 %v665_v43 }
  0x35   :  { %612 = vmatprep.subr.bf16.mxu0 %v669_v36 }
  0x38   :  { %613 = vmatpush3.bf16.msra.mxu0 %v666_v44 }
  0x39   :  { %614 = vmatprep.subr.bf16.mxu0 %v669_v36 }
  0x3c   :  { %615 = vmatpush3.bf16.msra.mxu0 %v667_v45 }
  0x3d   :  { %616 = vmatprep.subr.bf16.mxu0 %v669_v36 }
  0x40   :  { %617 = vmatpush3.bf16.msra.mxu0 %v668_v46 }
  0x43   :  { %619 = vmatmul.mubr.bf16.vlgmr.msra.gmra.mrb[4].mxu0 %v658_v47 }
  0xf6   :  { %v565_v48 = vpop.f32.mrb[0].mxu0 }
  0xf7   :  { %v587_v49 = vpop.f32.mrb[0].mxu1  ;;  %v566_v50 = vpop.f32.mrb[1].mxu0 }
  0xf8   :  { %v567_v51 = vadd.f32 %v566_v50, %v565_v48  ;;  %v588_v52 = vpop.f32.mrb[1].mxu1  ;;  %v568_v53 = vpop.f32.mrb[2].mxu0 }
  0xf9   :  { %v589_v54 = vadd.f32 %v588_v52, %v587_v49  ;;  %v569_v55 = vpop.f32.mrb[3].mxu0  ;;  %v590_v56 = vpop.f32.mrb[2].mxu1 }
  0xfa   :  { %v591_v57 = vpop.f32.mrb[3].mxu1 }
  0xfb   :  { %v437_v58 = vadd.f32 %v589_v54, %v567_v51 }
 0x116   :  { %v476_v59 = vpop.f32.mrb[4].mxu0 }
 0x117   :  { %v477_v61 = vadd.f32 %v476_v59, %v437_v58  ;;  %v620_v62 = vpop.f32.mrb[5].mxu0 }
 0x118   :  { %v479_v63 = vpop.f32.mrb[6].mxu0 }
 0x119   :  { %v495_v0 = vadd.f32 %v548_v60, %v477_v61  ;;  %v621_v1 = vpop.f32.mrb[7].mxu0 }
 0x11b   :  { %v496_v2 = vmax.f32 %v495_v0, 0.0 }
 0x11d   :  { %v497_v3 = vpack.c.bf16 %v496_v2, %v496_v2 }
 0x11f   :  { %498 = vst [vmem:[%s829_s3] sm:$0xf] %v497_v3 }

// kernel: _lambda_.45
= control target key start
LH: loop header
LB: loop body
LE: loop exit
PB: predicated region body
PF: predicated region fallthrough
CT: control target
= control target key end

     0   :  { %v194_v0 = vmov 0.0   ;;  %vm195_vm0 = vmmov 0   ;;  %s249_s1 = inlined_call_operand.vmem [shape: bf16[128,128], index: 1, kind: input, shape index: {}]   ;;  %s250_s0 = inlined_call_operand.vmem [shape: bf16[8,128], index: 0, kind: input, shape index: {}]   ;;  %s251_s2 = inlined_call_operand.vmem [shape: f32[1,128], index: 2, kind: input, shape index: {}]   ;;  %s252_s3 = inlined_call_operand.vmem [shape: bf16[8,128], index: 3, kind: output, shape index: {}]  }
   0x1   :  { %164 = vmatprep.subr.bf16.mxu0 %v194_v0  ;;  %v186_v1 = vld [vmem:[%s249_s1] sm:$0xff]   ;;  %180 = vmatprep.mubr.msk.bf16.mxu0 %vm195_vm0, %v194_v0  ;;  %v187_v2 = vld [vmem:[%s249_s1 + $0x8] sm:$0xff]   ;;  %v188_v3 = vld [vmem:[%s249_s1 + $0x10] sm:$0xff]  }
   0x2   :  { %165 = vmatpush3.bf16.msra.mxu0 %v186_v1  ;;  %v189_v4 = vld [vmem:[%s249_s1 + $0x18] sm:$0xff]   ;;  %v190_v5 = vld [vmem:[%s249_s1 + $0x20] sm:$0xff]   ;;  %v191_v6 = vld [vmem:[%s249_s1 + $0x28] sm:$0xff]  }
   0x3   :  { %166 = vmatprep.subr.bf16.mxu0 %v194_v0  ;;  %v192_v7 = vld [vmem:[%s249_s1 + $0x30] sm:$0xff]   ;;  %v193_v8 = vld [vmem:[%s249_s1 + $0x38] sm:$0xff]   ;;  %v21_v9 = vld [vmem:[%s250_s0] sm:$0xf] }
   0x4   :  { %v154_v10 = vld [vmem:[%s251_s2] ss:$0 sm:$0xff] }
   0x6   :  { %167 = vmatpush3.bf16.msra.mxu0 %v187_v2 }
   0x7   :  { %168 = vmatprep.subr.bf16.mxu0 %v194_v0 }
   0xa   :  { %169 = vmatpush3.bf16.msra.mxu0 %v188_v3 }
   0xb   :  { %170 = vmatprep.subr.bf16.mxu0 %v194_v0 }
   0xe   :  { %171 = vmatpush3.bf16.msra.mxu0 %v189_v4 }
   0xf   :  { %172 = vmatprep.subr.bf16.mxu0 %v194_v0 }
  0x12   :  { %173 = vmatpush3.bf16.msra.mxu0 %v190_v5 }
  0x13   :  { %174 = vmatprep.subr.bf16.mxu0 %v194_v0 }
  0x16   :  { %175 = vmatpush3.bf16.msra.mxu0 %v191_v6 }
  0x17   :  { %176 = vmatprep.subr.bf16.mxu0 %v194_v0 }
  0x1a   :  { %177 = vmatpush3.bf16.msra.mxu0 %v192_v7 }
  0x1b   :  { %178 = vmatprep.subr.bf16.mxu0 %v194_v0 }
  0x1e   :  { %179 = vmatpush3.bf16.msra.mxu0 %v193_v8 }
  0x21   :  { %181 = vmatmul.mubr.bf16.vlgmr.msra.gmra.mrb[0].mxu0 %v21_v9 }
  0xf4   :  { %v120_v11 = vpop.f32.mrb[0].mxu0 }
  0xf5   :  { %v139_v12 = vadd.f32 %v154_v10, %v120_v11  ;;  %v182_v13 = vpop.f32.mrb[1].mxu0 }
  0xf6   :  { %v123_v14 = vpop.f32.mrb[2].mxu0 }
  0xf7   :  { %v140_v15 = vpack.c.bf16 %v139_v12, %v139_v12  ;;  %v183_v16 = vpop.f32.mrb[3].mxu0 }
  0xf9   :  { %141 = vst [vmem:[%s252_s3] sm:$0xf] %v140_v15 }

// kernel: _lambda_.48
= control target key start
LH: loop header
LB: loop body
LE: loop exit
PB: predicated region body
PF: predicated region fallthrough
CT: control target
= control target key end

     0   :  { %s866_s12 = smov 0   ;;  %s868_s13 = smov 0   ;;  %s941_s0 = inlined_call_operand.vmem [shape: bf16[8,1152], index: 0, kind: input, shape index: {}]   ;;  %s942_s1 = inlined_call_operand.vmem [shape: bf16[1152,128], index: 1, kind: input, shape index: {}]   ;;  %s943_s2 = inlined_call_operand.vmem [shape: f32[1,128], index: 2, kind: input, shape index: {}]   ;;  %s944_s3 = inlined_call_operand.vmem [shape: bf16[8,128], index: 3, kind: output, shape index: {}]  }
   0x1   :  { %s870_s14 = smov 0  }
   0x2 LB: > { %s25_s15 = sadd.s32 1, %s837_s13  ;;  %p678_p0 = scmp.ge.s32.totalorder %s841_s14, 1  ;;  %s841_s14 = sphi %s870_s14, %s13_s14   ;;  %s837_s13 = sphi %s868_s13, %s946_s13   ;;  %s833_s12 = sphi %s866_s12, %s945_s12  }
   0x3   : > { %p26_p1 = scmp.ge.s32.totalorder %s25_s15, 3  ;;  %p189_p2 = scmp.lt.s32.totalorder %s841_s14, 4 }
   0x5   : > { %s948_s15 = smov (%p26_p1, %s25_s15), 0  ;;  %p190_p3 = pnand %p678_p0, %p189_p2 }
   0x6   : > { %s230_s16 = smul.u32 (!%p190_p3), 3, %s833_s12  ;;  %p681_p6 = scmp.ne.s32.totalorder (!%p190_p3), %s833_s12, 0 }
   0x7   : > { %193 = sbr.rel (%p190_p3) target bundleno = 291 (0x123), region = 32 }
   0x8   : > { %s240_s17 = smul.u32 (!%p190_p3), 48, %s833_s12  ;;  %p233_p4 = scmp.lt.s32.totalorder (!%p190_p3), %s230_s16, 8 }
   0xa   : > { %p241_p5 = scmp.lt.s32.totalorder (!%p190_p3), %s240_s17, 143 }
   0xe   : > { %s950_s16 = smov (!%p233_p4, %s230_s16), 8  ;;  %s952_s17 = smov (!%p241_p5, %s240_s17), 143 }
   0xf   : > { %s679_s18 = sshll.u32 %s950_s16, 2  ;;  %s680_s22 = sshll.u32 %s952_s17, 2  ;;  %v843_v0 = vmov (!%p681_p6), 0.0  }
  0x10   : > { %s891_s21 = scalar_lea.vmem %s941_s0, %s679_s18  ;;  %s896_s25 = scalar_lea.vmem %s942_s1, %s680_s22  ;;  %264 = vst [vmem:[#allocation2] sm:$0xff] (!%p681_p6), %v843_v0 }
  0x11   : > { %263 = sbr.rel (%p681_p6) target bundleno = 24 (0x18), region = 36 }
  0x18 PF: > { %v792_v1 = vld [vmem:[%s896_s25 + $0x40] sm:$0xff]   ;;  %v844_v2 = vmov 0.0   ;;  %vm845_vm0 = vmmov 0   ;;  %v795_v5 = vld [vmem:[%s896_s25 + $0x48] sm:$0xff]   ;;  %v798_v8 = vld [vmem:[%s896_s25 + $0x50] sm:$0xff]   ;;  %p709_p7 = scmp.ne.s32.totalorder %s833_s12, 2 }
  0x19   : > { %745 = vmatprep.subr.bf16.mxu1 %v844_v2  ;;  %v793_v3 = vld [vmem:[%s896_s25] sm:$0xff]   ;;  %714 = vmatprep.subr.bf16.mxu0 %v792_v1  ;;  %v796_v6 = vld [vmem:[%s896_s25 + $0x8] sm:$0xff]   ;;  %v799_v9 = vld [vmem:[%s896_s25 + $0x10] sm:$0xff]  }
  0x1a   : > { %v794_v4 = vld [vmem:[%s896_s25 + $0x80] sm:$0xff]   ;;  %761 = vmatprep.mubr.msk.bf16.mxu1 %vm845_vm0, %v844_v2  ;;  %715 = vmatpush3.bf16.msra.mxu0 %v793_v3  ;;  %v797_v7 = vld [vmem:[%s896_s25 + $0x88] sm:$0xff]   ;;  %v800_v10 = vld [vmem:[%s896_s25 + $0x90] sm:$0xff]  }
  0x1b   : > { %746 = vmatpush3.bf16.msra.mxu1 %v794_v4  ;;  %716 = vmatprep.subr.bf16.mxu0 %v795_v5  ;;  %v801_v11 = vld [vmem:[%s896_s25 + $0x58] sm:$0xff]   ;;  %v804_v14 = vld [vmem:[%s896_s25 + $0x60] sm:$0xff]   ;;  %v807_v17 = vld [vmem:[%s896_s25 + $0x68] sm:$0xff]  }
  0x1c   : > { %747 = vmatprep.subr.bf16.mxu1 %v844_v2  ;;  %v802_v12 = vld [vmem:[%s896_s25 + $0x18] sm:$0xff]   ;;  %v805_v15 = vld [vmem:[%s896_s25 + $0x20] sm:$0xff]   ;;  %v808_v18 = vld [vmem:[%s896_s25 + $0x28] sm:$0xff]  }
  0x1d   : > { %v803_v13 = vld [vmem:[%s896_s25 + $0x98] sm:$0xff]   ;;  %v806_v16 = vld [vmem:[%s896_s25 + $0xa0] sm:$0xff]   ;;  %v809_v19 = vld [vmem:[%s896_s25 + $0xa8] sm:$0xff]  }
  0x1e   : > { %717 = vmatpush3.bf16.msra.mxu0 %v796_v6  ;;  %v810_v20 = vld [vmem:[%s896_s25 + $0x70] sm:$0xff]   ;;  %v813_v23 = vld [vmem:[%s896_s25 + $0x78] sm:$0xff]   ;;  %v266_v24 = vld [vmem:[%s891_s21] sm:$0xff] }
  0x1f   : > { %748 = vmatpush3.bf16.msra.mxu1 %v797_v7  ;;  %718 = vmatprep.subr.bf16.mxu0 %v798_v8  ;;  %v811_v21 = vld [vmem:[%s896_s25 + $0x30] sm:$0xff]   ;;  %v683_v25 = vcombine.high %v266_v24, %v266_v24  ;;  %v814_v26 = vld [vmem:[%s896_s25 + $0x38] sm:$0xff]   ;;  %v682_v28 = vcombine.low %v266_v24, %v266_v24  ;;  %v818_v29 = vld [vmem:[%s891_s21 + $0x8] ss:$0 sps:$4 sm:$0xff]  }
  0x20   : > { %749 = vmatprep.subr.bf16.mxu1 %v844_v2  ;;  %v812_v22 = vld [vmem:[%s896_s25 + $0xb0] sm:$0xff]   ;;  %v815_v27 = vld [vmem:[%s896_s25 + $0xb8] sm:$0xff]   ;;  %v265_v36 = vld [vmem:[#allocation2] sm:$0xff] }
  0x21   : > { %503 = vmatprep.mubr.bf16.mxu0 %v683_v25  ;;  %v710_v43 = vld [vmem:[%s943_s2] ss:$0 sm:$0xff] (!%p709_p7) }
  0x22   : > { %719 = vmatpush3.bf16.msra.mxu0 %v799_v9 }
  0x23   : > { %750 = vmatpush3.bf16.msra.mxu1 %v800_v10  ;;  %720 = vmatprep.subr.bf16.mxu0 %v801_v11 }
  0x24   : > { %751 = vmatprep.subr.bf16.mxu1 %v844_v2 }
  0x26   : > { %721 = vmatpush3.bf16.msra.mxu0 %v802_v12 }
  0x27   : > { %752 = vmatpush3.bf16.msra.mxu1 %v803_v13  ;;  %722 = vmatprep.subr.bf16.mxu0 %v804_v14 }
  0x28   : > { %753 = vmatprep.subr.bf16.mxu1 %v844_v2 }
  0x2a   : > { %723 = vmatpush3.bf16.msra.mxu0 %v805_v15 }
  0x2b   : > { %754 = vmatpush3.bf16.msra.mxu1 %v806_v16  ;;  %724 = vmatprep.subr.bf16.mxu0 %v807_v17 }
  0x2c   : > { %755 = vmatprep.subr.bf16.mxu1 %v844_v2 }
  0x2e   : > { %725 = vmatpush3.bf16.msra.mxu0 %v808_v18 }
  0x2f   : > { %756 = vmatpush3.bf16.msra.mxu1 %v809_v19  ;;  %726 = vmatprep.subr.bf16.mxu0 %v810_v20 }
  0x30   : > { %757 = vmatprep.subr.bf16.mxu1 %v844_v2 }
  0x32   : > { %727 = vmatpush3.bf16.msra.mxu0 %v811_v21 }
  0x33   : > { %758 = vmatpush3.bf16.msra.mxu1 %v812_v22  ;;  %728 = vmatprep.subr.bf16.mxu0 %v813_v23 }
  0x34   : > { %759 = vmatprep.subr.bf16.mxu1 %v844_v2 }
  0x36   : > { %729 = vmatpush3.bf16.msra.mxu0 %v814_v26 }
  0x37   : > { %760 = vmatpush3.bf16.msra.mxu1 %v815_v27 }
  0x39   : > { %504 = vmatmul.mubr.bf16.vlgmr.msra.gmra.mrb[0].mxu0 %v682_v28 }
  0x3a   : > { %762 = vmatmul.mubr.bf16.vlgmr.msra.gmra.mrb[0].mxu1 %v818_v29 }
 0x10c   : > { %v730_v30 = vpop.f32.mrb[0].mxu0 }
 0x10d   : > { %v545_v31 = vpop.f32.mrb[0].mxu1  ;;  %v731_v32 = vpop.f32.mrb[1].mxu0 }
 0x10e   : > { %v732_v33 = vadd.f32 %v731_v32, %v730_v30  ;;  %v763_v34 = vpop.f32.mrb[1].mxu1  ;;  %v733_v35 = vpop.f32.mrb[2].mxu0  ;;  %556 = sbr.rel (%p709_p7) target bundleno = 291 (0x123), region = 40 }
 0x10f   : > { %v548_v37 = vpop.f32.mrb[2].mxu1  ;;  %v734_v38 = vpop.f32.mrb[3].mxu0 }
 0x110   : > { %v546_v39 = vadd.f32 %v732_v33, %v545_v31  ;;  %v764_v40 = vpop.f32.mrb[3].mxu1 }
 0x112   : > { %v551_v41 = vadd.f32 %v546_v39, %v265_v36 }
 0x114   : > { %552 = vst [vmem:[#allocation2] sm:$0xff] %v551_v41 }
 0x11b   : > { %v557_v42 = vld [vmem:[#allocation2] sm:$0xff] }
 0x11c   : > { %v565_v44 = vadd.f32 %v710_v43, %v557_v42 }
 0x11e   : > { %v566_v45 = vmax.f32 %v565_v44, 0.0 }
 0x120   : > { %v567_v46 = vpack.c.bf16 %v566_v45, %v566_v45 }
 0x122   : > { %568 = vst [vmem:[%s944_s3] sm:$0xf] %v567_v46 }
 0x123 PF: > { %s13_s14 = sadd.s32 1, %s841_s14   ;;  %s945_s12 = smov %s837_s13 }
 0x124   : > { %p10_p8 = scmp.ge.s32.totalorder %s13_s14, 5   ;;  %s946_s13 = smov %s948_s15 }
 0x126   :  { %12 = sbr.rel (!%p10_p8) target bundleno = 2 (0x2), region = 76 }

// kernel: _lambda_.47
= control target key start
LH: loop header
LB: loop body
LE: loop exit
PB: predicated region body
PF: predicated region fallthrough
CT: control target
= control target key end

     0   :  { %s948_s15 = smov 0   ;;  %s950_s16 = smov 0   ;;  %s1026_s0 = inlined_call_operand.vmem [shape: bf16[8,1152], index: 0, kind: input, shape index: {}]   ;;  %s1027_s1 = inlined_call_operand.vmem [shape: bf16[1152,128], index: 1, kind: input, shape index: {}]   ;;  %s1028_s2 = inlined_call_operand.vmem [shape: f32[1,128], index: 2, kind: input, shape index: {}]   ;;  %s1029_s3 = inlined_call_operand.vmem [shape: bf16[8,128], index: 3, kind: input, shape index: {}]   ;;  %s1030_s4 = inlined_call_operand.vmem [shape: bf16[8,128], index: 4, kind: output, shape index: {}]  }
   0x1   :  { %s952_s17 = smov 0  }
   0x2 LB: > { %s26_s18 = sadd.s32 1, %s914_s16  ;;  %p755_p0 = scmp.ge.s32.totalorder %s918_s17, 1  ;;  %s918_s17 = sphi %s952_s17, %s14_s17   ;;  %s914_s16 = sphi %s950_s16, %s1032_s16   ;;  %s910_s15 = sphi %s948_s15, %s1031_s15  }
   0x3   : > { %p27_p1 = scmp.ge.s32.totalorder %s26_s18, 3  ;;  %p228_p2 = scmp.lt.s32.totalorder %s918_s17, 4 }
   0x5   : > { %s1034_s18 = smov (%p27_p1, %s26_s18), 0  ;;  %p229_p3 = pnand %p755_p0, %p228_p2 }
   0x6   : > { %s278_s19 = smul.u32 (!%p229_p3), 3, %s910_s15  ;;  %p758_p6 = scmp.ne.s32.totalorder (!%p229_p3), %s910_s15, 0 }
   0x7   : > { %232 = sbr.rel (%p229_p3) target bundleno = 293 (0x125), region = 36 }
   0x8   : > { %s288_s20 = smul.u32 (!%p229_p3), 48, %s910_s15  ;;  %p281_p4 = scmp.lt.s32.totalorder (!%p229_p3), %s278_s19, 8 }
   0xa   : > { %p289_p5 = scmp.lt.s32.totalorder (!%p229_p3), %s288_s20, 143 }
   0xe   : > { %s1036_s19 = smov (!%p281_p4, %s278_s19), 8  ;;  %s1038_s20 = smov (!%p289_p5, %s288_s20), 143 }
   0xf   : > { %s756_s21 = sshll.u32 %s1036_s19, 2  ;;  %s757_s25 = sshll.u32 %s1038_s20, 2  ;;  %v920_v0 = vmov (!%p758_p6), 0.0  }
  0x10   : > { %s973_s24 = scalar_lea.vmem %s1026_s0, %s756_s21  ;;  %s978_s28 = scalar_lea.vmem %s1027_s1, %s757_s25  ;;  %319 = vst [vmem:[#allocation2] sm:$0xff] (!%p758_p6), %v920_v0 }
  0x11   : > { %318 = sbr.rel (%p758_p6) target bundleno = 24 (0x18), region = 40 }
  0x18 PF: > { %v869_v1 = vld [vmem:[%s978_s28 + $0x40] sm:$0xff]   ;;  %v921_v2 = vmov 0.0   ;;  %vm922_vm0 = vmmov 0   ;;  %v872_v5 = vld [vmem:[%s978_s28 + $0x48] sm:$0xff]   ;;  %v875_v8 = vld [vmem:[%s978_s28 + $0x50] sm:$0xff]   ;;  %p786_p7 = scmp.ne.s32.totalorder %s910_s15, 2 }
  0x19   : > { %822 = vmatprep.subr.bf16.mxu1 %v921_v2  ;;  %v870_v3 = vld [vmem:[%s978_s28] sm:$0xff]   ;;  %791 = vmatprep.subr.bf16.mxu0 %v869_v1  ;;  %v873_v6 = vld [vmem:[%s978_s28 + $0x8] sm:$0xff]   ;;  %v876_v9 = vld [vmem:[%s978_s28 + $0x10] sm:$0xff]  }
  0x1a   : > { %v871_v4 = vld [vmem:[%s978_s28 + $0x80] sm:$0xff]   ;;  %838 = vmatprep.mubr.msk.bf16.mxu1 %vm922_vm0, %v921_v2  ;;  %792 = vmatpush3.bf16.msra.mxu0 %v870_v3  ;;  %v874_v7 = vld [vmem:[%s978_s28 + $0x88] sm:$0xff]   ;;  %v877_v10 = vld [vmem:[%s978_s28 + $0x90] sm:$0xff]  }
  0x1b   : > { %823 = vmatpush3.bf16.msra.mxu1 %v871_v4  ;;  %793 = vmatprep.subr.bf16.mxu0 %v872_v5  ;;  %v878_v11 = vld [vmem:[%s978_s28 + $0x58] sm:$0xff]   ;;  %v881_v14 = vld [vmem:[%s978_s28 + $0x60] sm:$0xff]   ;;  %v884_v17 = vld [vmem:[%s978_s28 + $0x68] sm:$0xff]  }
  0x1c   : > { %824 = vmatprep.subr.bf16.mxu1 %v921_v2  ;;  %v879_v12 = vld [vmem:[%s978_s28 + $0x18] sm:$0xff]   ;;  %v882_v15 = vld [vmem:[%s978_s28 + $0x20] sm:$0xff]   ;;  %v885_v18 = vld [vmem:[%s978_s28 + $0x28] sm:$0xff]  }
  0x1d   : > { %v880_v13 = vld [vmem:[%s978_s28 + $0x98] sm:$0xff]   ;;  %v883_v16 = vld [vmem:[%s978_s28 + $0xa0] sm:$0xff]   ;;  %v886_v19 = vld [vmem:[%s978_s28 + $0xa8] sm:$0xff]  }
  0x1e   : > { %794 = vmatpush3.bf16.msra.mxu0 %v873_v6  ;;  %v887_v20 = vld [vmem:[%s978_s28 + $0x70] sm:$0xff]   ;;  %v890_v23 = vld [vmem:[%s978_s28 + $0x78] sm:$0xff]   ;;  %v321_v24 = vld [vmem:[%s973_s24] sm:$0xff] }
  0x1f   : > { %825 = vmatpush3.bf16.msra.mxu1 %v874_v7  ;;  %795 = vmatprep.subr.bf16.mxu0 %v875_v8  ;;  %v888_v21 = vld [vmem:[%s978_s28 + $0x30] sm:$0xff]   ;;  %v760_v25 = vcombine.high %v321_v24, %v321_v24  ;;  %v891_v26 = vld [vmem:[%s978_s28 + $0x38] sm:$0xff]   ;;  %v759_v28 = vcombine.low %v321_v24, %v321_v24  ;;  %v895_v29 = vld [vmem:[%s973_s24 + $0x8] ss:$0 sps:$4 sm:$0xff]  }
  0x20   : > { %826 = vmatprep.subr.bf16.mxu1 %v921_v2  ;;  %v889_v22 = vld [vmem:[%s978_s28 + $0xb0] sm:$0xff]   ;;  %v892_v27 = vld [vmem:[%s978_s28 + $0xb8] sm:$0xff]   ;;  %v320_v36 = vld [vmem:[#allocation2] sm:$0xff] }
  0x21   : > { %558 = vmatprep.mubr.bf16.mxu0 %v760_v25  ;;  %v787_v43 = vld [vmem:[%s1028_s2] ss:$0 sm:$0xff] (!%p786_p7) }
  0x22   : > { %796 = vmatpush3.bf16.msra.mxu0 %v876_v9  ;;  %v621_v44 = vld [vmem:[%s1029_s3] sm:$0xf] (!%p786_p7) }
  0x23   : > { %827 = vmatpush3.bf16.msra.mxu1 %v877_v10  ;;  %797 = vmatprep.subr.bf16.mxu0 %v878_v11  ;;  %v622_v46 = vunpack.c.l.bf16 (!%p786_p7), %v621_v44 }
  0x24   : > { %828 = vmatprep.subr.bf16.mxu1 %v921_v2 }
  0x26   : > { %798 = vmatpush3.bf16.msra.mxu0 %v879_v12 }
  0x27   : > { %829 = vmatpush3.bf16.msra.mxu1 %v880_v13  ;;  %799 = vmatprep.subr.bf16.mxu0 %v881_v14 }
  0x28   : > { %830 = vmatprep.subr.bf16.mxu1 %v921_v2 }
  0x2a   : > { %800 = vmatpush3.bf16.msra.mxu0 %v882_v15 }
  0x2b   : > { %831 = vmatpush3.bf16.msra.mxu1 %v883_v16  ;;  %801 = vmatprep.subr.bf16.mxu0 %v884_v17 }
  0x2c   : > { %832 = vmatprep.subr.bf16.mxu1 %v921_v2 }
  0x2e   : > { %802 = vmatpush3.bf16.msra.mxu0 %v885_v18 }
  0x2f   : > { %833 = vmatpush3.bf16.msra.mxu1 %v886_v19  ;;  %803 = vmatprep.subr.bf16.mxu0 %v887_v20 }
  0x30   : > { %834 = vmatprep.subr.bf16.mxu1 %v921_v2 }
  0x32   : > { %804 = vmatpush3.bf16.msra.mxu0 %v888_v21 }
  0x33   : > { %835 = vmatpush3.bf16.msra.mxu1 %v889_v22  ;;  %805 = vmatprep.subr.bf16.mxu0 %v890_v23 }
  0x34   : > { %836 = vmatprep.subr.bf16.mxu1 %v921_v2 }
  0x36   : > { %806 = vmatpush3.bf16.msra.mxu0 %v891_v26 }
  0x37   : > { %837 = vmatpush3.bf16.msra.mxu1 %v892_v27 }
  0x39   : > { %559 = vmatmul.mubr.bf16.vlgmr.msra.gmra.mrb[0].mxu0 %v759_v28 }
  0x3a   : > { %839 = vmatmul.mubr.bf16.vlgmr.msra.gmra.mrb[0].mxu1 %v895_v29 }
 0x10c   : > { %v807_v30 = vpop.f32.mrb[0].mxu0 }
 0x10d   : > { %v600_v31 = vpop.f32.mrb[0].mxu1  ;;  %v808_v32 = vpop.f32.mrb[1].mxu0 }
 0x10e   : > { %v809_v33 = vadd.f32 %v808_v32, %v807_v30  ;;  %v840_v34 = vpop.f32.mrb[1].mxu1  ;;  %v810_v35 = vpop.f32.mrb[2].mxu0  ;;  %611 = sbr.rel (%p786_p7) target bundleno = 293 (0x125), region = 44 }
 0x10f   : > { %v603_v37 = vpop.f32.mrb[2].mxu1  ;;  %v811_v38 = vpop.f32.mrb[3].mxu0 }
 0x110   : > { %v601_v39 = vadd.f32 %v809_v33, %v600_v31  ;;  %v841_v40 = vpop.f32.mrb[3].mxu1 }
 0x112   : > { %v606_v41 = vadd.f32 %v601_v39, %v320_v36 }
 0x114   : > { %607 = vst [vmem:[#allocation2] sm:$0xff] %v606_v41 }
 0x11b   : > { %v612_v42 = vld [vmem:[#allocation2] sm:$0xff] }
 0x11c   : > { %v620_v45 = vadd.f32 %v787_v43, %v612_v42 }
 0x11e   : > { %v623_v47 = vadd.f32 %v622_v46, %v620_v45 }
 0x120   : > { %v624_v48 = vmax.f32 %v623_v47, 0.0 }
 0x122   : > { %v625_v49 = vpack.c.bf16 %v624_v48, %v624_v48 }
 0x124   : > { %626 = vst [vmem:[%s1030_s4] sm:$0xf] %v625_v49 }
 0x125 PF: > { %s14_s17 = sadd.s32 1, %s918_s17   ;;  %s1031_s15 = smov %s914_s16 }
 0x126   : > { %p11_p8 = scmp.ge.s32.totalorder %s14_s17, 5   ;;  %s1032_s16 = smov %s1034_s18 }
 0x128   :  { %13 = sbr.rel (!%p11_p8) target bundleno = 2 (0x2), region = 83 }

// kernel: _lambda_.55
= control target key start
LH: loop header
LB: loop body
LE: loop exit
PB: predicated region body
PF: predicated region fallthrough
CT: control target
= control target key end

     0   :  { %s1171_s12 = smov 0   ;;  %s1173_s13 = smov 0   ;;  %s1411_s0 = inlined_call_operand.vmem [shape: bf16[8,1152], index: 0, kind: input, shape index: {}]   ;;  %s1412_s1 = inlined_call_operand.vmem [shape: bf16[1152,256], index: 1, kind: input, shape index: {}]   ;;  %s1413_s2 = inlined_call_operand.vmem [shape: f32[1,256], index: 2, kind: input, shape index: {}]   ;;  %s1414_s3 = inlined_call_operand.vmem [shape: bf16[8,256], index: 3, kind: output, shape index: {}]  }
   0x1   :  { %s1175_s14 = smov 0   ;;  %s1177_s15 = smov 0  }
   0x2   :  { %s1179_s16 = smov 0   ;;  %s1181_s17 = smov 0  }
   0x3   :  { %s1183_s18 = smov 0  }
   0x4 LB: > { %s25_s19 = sadd.s32 1, %s1138_s16  ;;  %s28_s20 = sadd.s32 1, %s1142_s17  ;;  %s1146_s18 = sphi %s1183_s18, %s13_s18   ;;  %s1142_s17 = sphi %s1181_s17, %s1420_s17   ;;  %s1138_s16 = sphi %s1179_s16, %s1419_s16   ;;  %s1134_s15 = sphi %s1177_s15, %s1418_s15   ;;  %s1130_s14 = sphi %s1175_s14, %s1417_s14   ;;  %s1126_s13 = sphi %s1173_s13, %s1416_s13   ;;  %s1122_s12 = sphi %s1171_s12, %s1415_s12  }
   0x5   : > { %p26_p0 = scmp.ge.s32.totalorder %s25_s19, 3  ;;  %p76_p1 = scmp.ne.s32.totalorder %s1126_s13, %s1122_s12 }
   0x6   : > { %p77_p2 = scmp.eq.s32.totalorder %s1146_s18, 0  ;;  %s69_s24 = sadd.s32 1, %s1126_s13 }
   0x7   : > { %s1422_s19 = smov (%p26_p0, %s25_s19), 0  ;;  %s1424_s20 = smov (!%p26_p0, %s28_s20), %s1142_s17 }
   0x8   : > { %p78_p3 = por %p77_p2, %p76_p1  ;;  %p30_p4 = scmp.ge.s32.totalorder %s1424_s20, 2 }
   0x9   : > { %s64_s21 = ssub.s32 %s1138_s16, %s1422_s19  ;;  %p914_p6 = scmp.ge.s32.totalorder %s1146_s18, 6 }
   0xa   : > { %s1426_s20 = smov (%p30_p4, %s1424_s20), 0 }
   0xb   : > { %s65_s22 = ssub.s32 %s1142_s17, %s1426_s20  ;;  %156 = sbr.rel (%p914_p6) target bundleno = 57 (0x39), region = 16 }
   0xc   : > { %s66_s23 = sor.u32 %s65_s22, %s64_s21 }
   0xd   : > { %p67_p5 = scmp.eq.s32.totalorder %s66_s23, 0 }
   0xf   : > { %s1222_s25 = scalar_select %p67_p5, %s1126_s13, %s69_s24  }
  0x12   : > { %172 = sbr.rel (!%p78_p3) target bundleno = 57 (0x39), region = 24  ;;  %s174_s26 = sand.u32 (%p78_p3), 1, %s1126_s13  }
  0x13   : > { %s952_s27 = smul.u32 (%p78_p3), 96, %s1138_s16 }
  0x14   : > { %s1004_s28 = smul.u32 (%p78_p3), 192, %s174_s26 }
  0x15   : > { %s179_s29 = sadd.s32 (%p78_p3), %s1142_s17, %s952_s27 }
  0x16   : > { %s916_s30 = sshll.u32 (%p78_p3), %s179_s29, 2  ;;  %s1236_s7 = scalar_lea.vmem (%p78_p3), [#allocation3], %s1004_s28 }
  0x17   : > { %s1231_s6 = scalar_lea.vmem (%p78_p3), %s1412_s1, %s916_s30 }
  0x18   : > { %v197_v0 = vld [vmem:[%s1231_s6] sm:$0xf] (%p78_p3)  ;;  %v199_v1 = vld [vmem:[%s1231_s6 + $0x8] sm:$0xf] (%p78_p3)  ;;  %v201_v2 = vld [vmem:[%s1231_s6 + $0x10] sm:$0xf] (%p78_p3) }
  0x19   : > { %198 = vst [vmem:[%s1236_s7] sm:$0xf] %v197_v0  ;;  %200 = vst [vmem:[%s1236_s7 + $0x4] sm:$0xf] %v199_v1  ;;  %v203_v3 = vld [vmem:[%s1231_s6 + $0x18] sm:$0xf] }
  0x1a   : > { %202 = vst [vmem:[%s1236_s7 + $0x8] sm:$0xf] %v201_v2  ;;  %v205_v4 = vld [vmem:[%s1231_s6 + $0x20] sm:$0xf]  ;;  %v207_v5 = vld [vmem:[%s1231_s6 + $0x28] sm:$0xf] }
  0x1b   : > { %204 = vst [vmem:[%s1236_s7 + $0xc] sm:$0xf] %v203_v3  ;;  %206 = vst [vmem:[%s1236_s7 + $0x10] sm:$0xf] %v205_v4  ;;  %v209_v6 = vld [vmem:[%s1231_s6 + $0x30] sm:$0xf] }
  0x1c   : > { %208 = vst [vmem:[%s1236_s7 + $0x14] sm:$0xf] %v207_v5  ;;  %v211_v7 = vld [vmem:[%s1231_s6 + $0x38] sm:$0xf]  ;;  %v213_v8 = vld [vmem:[%s1231_s6 + $0x40] sm:$0xf] }
  0x1d   : > { %210 = vst [vmem:[%s1236_s7 + $0x18] sm:$0xf] %v209_v6  ;;  %212 = vst [vmem:[%s1236_s7 + $0x1c] sm:$0xf] %v211_v7  ;;  %v215_v9 = vld [vmem:[%s1231_s6 + $0x48] sm:$0xf] }
  0x1e   : > { %214 = vst [vmem:[%s1236_s7 + $0x20] sm:$0xf] %v213_v8  ;;  %v217_v10 = vld [vmem:[%s1231_s6 + $0x50] sm:$0xf]  ;;  %v219_v11 = vld [vmem:[%s1231_s6 + $0x58] sm:$0xf] }
  0x1f   : > { %216 = vst [vmem:[%s1236_s7 + $0x24] sm:$0xf] %v215_v9  ;;  %218 = vst [vmem:[%s1236_s7 + $0x28] sm:$0xf] %v217_v10  ;;  %v221_v12 = vld [vmem:[%s1231_s6 + $0x60] sm:$0xf] }
  0x20   : > { %220 = vst [vmem:[%s1236_s7 + $0x2c] sm:$0xf] %v219_v11  ;;  %v223_v13 = vld [vmem:[%s1231_s6 + $0x68] sm:$0xf]  ;;  %v225_v14 = vld [vmem:[%s1231_s6 + $0x70] sm:$0xf] }
  0x21   : > { %222 = vst [vmem:[%s1236_s7 + $0x30] sm:$0xf] %v221_v12  ;;  %224 = vst [vmem:[%s1236_s7 + $0x34] sm:$0xf] %v223_v13  ;;  %v227_v15 = vld [vmem:[%s1231_s6 + $0x78] sm:$0xf] }
  0x22   : > { %226 = vst [vmem:[%s1236_s7 + $0x38] sm:$0xf] %v225_v14  ;;  %v229_v16 = vld [vmem:[%s1231_s6 + $0x80] sm:$0xf]  ;;  %v231_v17 = vld [vmem:[%s1231_s6 + $0x88] sm:$0xf] }
  0x23   : > { %228 = vst [vmem:[%s1236_s7 + $0x3c] sm:$0xf] %v227_v15  ;;  %230 = vst [vmem:[%s1236_s7 + $0x40] sm:$0xf] %v229_v16  ;;  %v233_v18 = vld [vmem:[%s1231_s6 + $0x90] sm:$0xf] }
  0x24   : > { %232 = vst [vmem:[%s1236_s7 + $0x44] sm:$0xf] %v231_v17  ;;  %v235_v19 = vld [vmem:[%s1231_s6 + $0x98] sm:$0xf]  ;;  %v237_v20 = vld [vmem:[%s1231_s6 + $0xa0] sm:$0xf] }
  0x25   : > { %234 = vst [vmem:[%s1236_s7 + $0x48] sm:$0xf] %v233_v18  ;;  %236 = vst [vmem:[%s1236_s7 + $0x4c] sm:$0xf] %v235_v19  ;;  %v239_v21 = vld [vmem:[%s1231_s6 + $0xa8] sm:$0xf] }
  0x26   : > { %238 = vst [vmem:[%s1236_s7 + $0x50] sm:$0xf] %v237_v20  ;;  %v241_v22 = vld [vmem:[%s1231_s6 + $0xb0] sm:$0xf]  ;;  %v243_v23 = vld [vmem:[%s1231_s6 + $0xb8] sm:$0xf] }
  0x27   : > { %240 = vst [vmem:[%s1236_s7 + $0x54] sm:$0xf] %v239_v21  ;;  %242 = vst [vmem:[%s1236_s7 + $0x58] sm:$0xf] %v241_v22  ;;  %v245_v24 = vld [vmem:[%s1231_s6 + $0xc0] sm:$0xf] }
  0x28   : > { %244 = vst [vmem:[%s1236_s7 + $0x5c] sm:$0xf] %v243_v23  ;;  %v247_v25 = vld [vmem:[%s1231_s6 + $0xc8] sm:$0xf]  ;;  %v249_v26 = vld [vmem:[%s1231_s6 + $0xd0] sm:$0xf] }
  0x29   : > { %246 = vst [vmem:[%s1236_s7 + $0x60] sm:$0xf] %v245_v24  ;;  %248 = vst [vmem:[%s1236_s7 + $0x64] sm:$0xf] %v247_v25  ;;  %v251_v27 = vld [vmem:[%s1231_s6 + $0xd8] sm:$0xf] }
  0x2a   : > { %250 = vst [vmem:[%s1236_s7 + $0x68] sm:$0xf] %v249_v26  ;;  %v253_v28 = vld [vmem:[%s1231_s6 + $0xe0] sm:$0xf]  ;;  %v255_v29 = vld [vmem:[%s1231_s6 + $0xe8] sm:$0xf] }
  0x2b   : > { %252 = vst [vmem:[%s1236_s7 + $0x6c] sm:$0xf] %v251_v27  ;;  %254 = vst [vmem:[%s1236_s7 + $0x70] sm:$0xf] %v253_v28  ;;  %v257_v30 = vld [vmem:[%s1231_s6 + $0xf0] sm:$0xf] }
  0x2c   : > { %256 = vst [vmem:[%s1236_s7 + $0x74] sm:$0xf] %v255_v29  ;;  %v259_v31 = vld [vmem:[%s1231_s6 + $0xf8] sm:$0xf]  ;;  %v261_v32 = vld [vmem:[%s1231_s6 + $0x100] sm:$0xf] }
  0x2d   : > { %258 = vst [vmem:[%s1236_s7 + $0x78] sm:$0xf] %v257_v30  ;;  %260 = vst [vmem:[%s1236_s7 + $0x7c] sm:$0xf] %v259_v31  ;;  %v263_v33 = vld [vmem:[%s1231_s6 + $0x108] sm:$0xf] }
  0x2e   : > { %262 = vst [vmem:[%s1236_s7 + $0x80] sm:$0xf] %v261_v32  ;;  %v265_v34 = vld [vmem:[%s1231_s6 + $0x110] sm:$0xf]  ;;  %v267_v35 = vld [vmem:[%s1231_s6 + $0x118] sm:$0xf] }
  0x2f   : > { %264 = vst [vmem:[%s1236_s7 + $0x84] sm:$0xf] %v263_v33  ;;  %266 = vst [vmem:[%s1236_s7 + $0x88] sm:$0xf] %v265_v34  ;;  %v269_v36 = vld [vmem:[%s1231_s6 + $0x120] sm:$0xf] }
  0x30   : > { %268 = vst [vmem:[%s1236_s7 + $0x8c] sm:$0xf] %v267_v35  ;;  %v271_v37 = vld [vmem:[%s1231_s6 + $0x128] sm:$0xf]  ;;  %v273_v38 = vld [vmem:[%s1231_s6 + $0x130] sm:$0xf] }
  0x31   : > { %270 = vst [vmem:[%s1236_s7 + $0x90] sm:$0xf] %v269_v36  ;;  %272 = vst [vmem:[%s1236_s7 + $0x94] sm:$0xf] %v271_v37  ;;  %v275_v39 = vld [vmem:[%s1231_s6 + $0x138] sm:$0xf] }
  0x32   : > { %274 = vst [vmem:[%s1236_s7 + $0x98] sm:$0xf] %v273_v38  ;;  %v277_v40 = vld [vmem:[%s1231_s6 + $0x140] sm:$0xf]  ;;  %v279_v41 = vld [vmem:[%s1231_s6 + $0x148] sm:$0xf] }
  0x33   : > { %276 = vst [vmem:[%s1236_s7 + $0x9c] sm:$0xf] %v275_v39  ;;  %278 = vst [vmem:[%s1236_s7 + $0xa0] sm:$0xf] %v277_v40  ;;  %v281_v42 = vld [vmem:[%s1231_s6 + $0x150] sm:$0xf] }
  0x34   : > { %280 = vst [vmem:[%s1236_s7 + $0xa4] sm:$0xf] %v279_v41  ;;  %v283_v43 = vld [vmem:[%s1231_s6 + $0x158] sm:$0xf]  ;;  %v285_v44 = vld [vmem:[%s1231_s6 + $0x160] sm:$0xf] }
  0x35   : > { %282 = vst [vmem:[%s1236_s7 + $0xa8] sm:$0xf] %v281_v42  ;;  %284 = vst [vmem:[%s1236_s7 + $0xac] sm:$0xf] %v283_v43  ;;  %v287_v45 = vld [vmem:[%s1231_s6 + $0x168] sm:$0xf] }
  0x36   : > { %286 = vst [vmem:[%s1236_s7 + $0xb0] sm:$0xf] %v285_v44  ;;  %v289_v46 = vld [vmem:[%s1231_s6 + $0x170] sm:$0xf]  ;;  %v291_v47 = vld [vmem:[%s1231_s6 + $0x178] sm:$0xf] }
  0x37   : > { %288 = vst [vmem:[%s1236_s7 + $0xb4] sm:$0xf] %v287_v45  ;;  %290 = vst [vmem:[%s1236_s7 + $0xb8] sm:$0xf] %v289_v46 }
  0x38   : > { %292 = vst [vmem:[%s1236_s7 + $0xbc] sm:$0xf] %v291_v47 }
  0x39 PF: > { %p917_p7 = scmp.ge.s32.totalorder %s1146_s18, 1  ;;  %p416_p8 = scmp.lt.s32.totalorder %s1146_s18, 7 }
  0x3b   : > { %p417_p9 = pnand %p917_p7, %p416_p8 }
  0x3c   : > { %s423_s8 = sand.u32 (!%p417_p9), 1, %s1122_s12   ;;  %s461_s9 = smul.u32 (!%p417_p9), 3, %s1130_s14 }
  0x3d   : > { %420 = sbr.rel (%p417_p9) target bundleno = 345 (0x159), region = 69  ;;  %p472_p10 = scmp.lt.s32.totalorder (!%p417_p9), %s1134_s15, 1 }
  0x3e   : > { %s1005_s10 = smul.u32 (!%p417_p9), 192, %s423_s8  ;;  %p464_p11 = scmp.lt.s32.totalorder (!%p417_p9), %s461_s9, 8 }
  0x3f   : > { %p920_p12 = scmp.ne.s32.totalorder (!%p417_p9), %s1130_s14, 0 }
  0x40   : > { %s1354_s4 = scalar_lea.vmem (!%p417_p9), [#allocation3], %s1005_s10 }
  0x44   : > { %s1428_s9 = smov (!%p464_p11, %s461_s9), 8  ;;  %s1430_s15 = smov (!%p472_p10, %s1134_s15), 1 }
  0x45   : > { %s918_s11 = sshll.u32 %s1428_s9, 2  ;;  %s474_s27 = scalar_lea.vmem %s1413_s2, %s1430_s15  ;;  %v1148_v48 = vmov (!%p920_p12), 0.0  }
  0x46   : > { %s1342_s23 = scalar_lea.vmem %s1411_s0, %s918_s11  ;;  %s919_s12 = sshll.u32 %s1430_s15, 2  ;;  %488 = vst [vmem:[#allocation2] sm:$0xff] (!%p920_p12), %v1148_v48 }
  0x47   : > { %s1352_s30 = scalar_lea.vmem %s1414_s3, %s919_s12  ;;  %487 = sbr.rel (%p920_p12) target bundleno = 78 (0x4e), region = 77 }
  0x4e PF: > { %v1065_v49 = vld [vmem:[%s1354_s4 + $0x40] sm:$0xff]   ;;  %v1149_v50 = vmov 0.0   ;;  %vm1150_vm0 = vmmov 0   ;;  %v1068_v53 = vld [vmem:[%s1354_s4 + $0x48] sm:$0xff]   ;;  %v1071_v56 = vld [vmem:[%s1354_s4 + $0x50] sm:$0xff]   ;;  %p948_p13 = scmp.ne.s32.totalorder %s1130_s14, 2 }
  0x4f   : > { %984 = vmatprep.subr.bf16.mxu1 %v1149_v50  ;;  %v1066_v51 = vld [vmem:[%s1354_s4] sm:$0xff]   ;;  %953 = vmatprep.subr.bf16.mxu0 %v1065_v49  ;;  %v1069_v54 = vld [vmem:[%s1354_s4 + $0x8] sm:$0xff]   ;;  %v1072_v57 = vld [vmem:[%s1354_s4 + $0x10] sm:$0xff]  }
  0x50   : > { %v1067_v52 = vld [vmem:[%s1354_s4 + $0x80] sm:$0xff]   ;;  %1000 = vmatprep.mubr.msk.bf16.mxu1 %vm1150_vm0, %v1149_v50  ;;  %954 = vmatpush3.bf16.msra.mxu0 %v1066_v51  ;;  %v1070_v55 = vld [vmem:[%s1354_s4 + $0x88] sm:$0xff]   ;;  %v1073_v58 = vld [vmem:[%s1354_s4 + $0x90] sm:$0xff]  }
  0x51   : > { %985 = vmatpush3.bf16.msra.mxu1 %v1067_v52  ;;  %955 = vmatprep.subr.bf16.mxu0 %v1068_v53  ;;  %v1074_v59 = vld [vmem:[%s1354_s4 + $0x58] sm:$0xff]   ;;  %v1077_v62 = vld [vmem:[%s1354_s4 + $0x60] sm:$0xff]   ;;  %v1080_v1 = vld [vmem:[%s1354_s4 + $0x68] sm:$0xff]  }
  0x52   : > { %986 = vmatprep.subr.bf16.mxu1 %v1149_v50  ;;  %v1075_v60 = vld [vmem:[%s1354_s4 + $0x18] sm:$0xff]   ;;  %v1078_v63 = vld [vmem:[%s1354_s4 + $0x20] sm:$0xff]   ;;  %v1081_v2 = vld [vmem:[%s1354_s4 + $0x28] sm:$0xff]  }
  0x53   : > { %v1076_v61 = vld [vmem:[%s1354_s4 + $0x98] sm:$0xff]   ;;  %v1079_v0 = vld [vmem:[%s1354_s4 + $0xa0] sm:$0xff]   ;;  %v1082_v3 = vld [vmem:[%s1354_s4 + $0xa8] sm:$0xff]  }
  0x54   : > { %956 = vmatpush3.bf16.msra.mxu0 %v1069_v54  ;;  %v1083_v4 = vld [vmem:[%s1354_s4 + $0x70] sm:$0xff]   ;;  %v1086_v7 = vld [vmem:[%s1354_s4 + $0x78] sm:$0xff]  }
  0x55   : > { %987 = vmatpush3.bf16.msra.mxu1 %v1070_v55  ;;  %957 = vmatprep.subr.bf16.mxu0 %v1071_v56  ;;  %v1084_v5 = vld [vmem:[%s1354_s4 + $0x30] sm:$0xff]   ;;  %v1087_v10 = vld [vmem:[%s1354_s4 + $0x38] sm:$0xff]  }
  0x56   : > { %988 = vmatprep.subr.bf16.mxu1 %v1149_v50  ;;  %v1085_v6 = vld [vmem:[%s1354_s4 + $0xb0] sm:$0xff]   ;;  %v1088_v11 = vld [vmem:[%s1354_s4 + $0xb8] sm:$0xff]  }
  0x57   : > { %v490_v8 = vld [vmem:[%s1342_s23] sm:$0xff]  ;;  %v1091_v13 = vld [vmem:[%s1342_s23 + $0x8] ss:$0 sps:$4 sm:$0xff]  }
  0x58   : > { %958 = vmatpush3.bf16.msra.mxu0 %v1072_v57  ;;  %v922_v9 = vcombine.high %v490_v8, %v490_v8  ;;  %v921_v12 = vcombine.low %v490_v8, %v490_v8  ;;  %v489_v20 = vld [vmem:[#allocation2] sm:$0xff]  ;;  %v949_v27 = vld [vmem:[%s474_s27] ss:$0 sm:$0xff] (!%p948_p13) }
  0x59   : > { %989 = vmatpush3.bf16.msra.mxu1 %v1073_v58  ;;  %959 = vmatprep.subr.bf16.mxu0 %v1074_v59 }
  0x5a   : > { %990 = vmatprep.subr.bf16.mxu1 %v1149_v50  ;;  %727 = vmatprep.mubr.bf16.mxu0 %v922_v9 }
  0x5c   : > { %960 = vmatpush3.bf16.msra.mxu0 %v1075_v60 }
  0x5d   : > { %991 = vmatpush3.bf16.msra.mxu1 %v1076_v61  ;;  %961 = vmatprep.subr.bf16.mxu0 %v1077_v62 }
  0x5e   : > { %992 = vmatprep.subr.bf16.mxu1 %v1149_v50 }
  0x60   : > { %962 = vmatpush3.bf16.msra.mxu0 %v1078_v63 }
  0x61   : > { %993 = vmatpush3.bf16.msra.mxu1 %v1079_v0  ;;  %963 = vmatprep.subr.bf16.mxu0 %v1080_v1 }
  0x62   : > { %994 = vmatprep.subr.bf16.mxu1 %v1149_v50 }
  0x64   : > { %964 = vmatpush3.bf16.msra.mxu0 %v1081_v2 }
  0x65   : > { %995 = vmatpush3.bf16.msra.mxu1 %v1082_v3  ;;  %965 = vmatprep.subr.bf16.mxu0 %v1083_v4 }
  0x66   : > { %996 = vmatprep.subr.bf16.mxu1 %v1149_v50 }
  0x68   : > { %966 = vmatpush3.bf16.msra.mxu0 %v1084_v5 }
  0x69   : > { %997 = vmatpush3.bf16.msra.mxu1 %v1085_v6  ;;  %967 = vmatprep.subr.bf16.mxu0 %v1086_v7 }
  0x6a   : > { %998 = vmatprep.subr.bf16.mxu1 %v1149_v50 }
  0x6c   : > { %968 = vmatpush3.bf16.msra.mxu0 %v1087_v10 }
  0x6d   : > { %999 = vmatpush3.bf16.msra.mxu1 %v1088_v11 }
  0x6f   : > { %728 = vmatmul.mubr.bf16.vlgmr.msra.gmra.mrb[0].mxu0 %v921_v12 }
  0x70   : > { %1001 = vmatmul.mubr.bf16.vlgmr.msra.gmra.mrb[0].mxu1 %v1091_v13 }
 0x142   : > { %v969_v14 = vpop.f32.mrb[0].mxu0 }
 0x143   : > { %v769_v15 = vpop.f32.mrb[0].mxu1  ;;  %v970_v16 = vpop.f32.mrb[1].mxu0 }
 0x144   : > { %v971_v17 = vadd.f32 %v970_v16, %v969_v14  ;;  %v1002_v18 = vpop.f32.mrb[1].mxu1  ;;  %v972_v19 = vpop.f32.mrb[2].mxu0  ;;  %780 = sbr.rel (%p948_p13) target bundleno = 345 (0x159), region = 81 }
 0x145   : > { %v772_v21 = vpop.f32.mrb[2].mxu1  ;;  %v973_v22 = vpop.f32.mrb[3].mxu0 }
 0x146   : > { %v770_v23 = vadd.f32 %v971_v17, %v769_v15  ;;  %v1003_v24 = vpop.f32.mrb[3].mxu1 }
 0x148   : > { %v775_v25 = vadd.f32 %v770_v23, %v489_v20 }
 0x14a   : > { %776 = vst [vmem:[#allocation2] sm:$0xff] %v775_v25 }
 0x151   : > { %v781_v26 = vld [vmem:[#allocation2] sm:$0xff] }
 0x152   : > { %v789_v28 = vadd.f32 %v949_v27, %v781_v26 }
 0x154   : > { %v790_v29 = vmax.f32 %v789_v28, 0.0 }
 0x156   : > { %v791_v30 = vpack.c.bf16 %v790_v29, %v790_v29 }
 0x158   : > { %792 = vst [vmem:[%s1352_s30] sm:$0xf] %v791_v30 }
 0x159 PF: > { %s13_s18 = sadd.s32 1, %s1146_s18   ;;  %s1415_s12 = smov %s1126_s13 }
 0x15a   : > { %p10_p0 = scmp.ge.s32.totalorder %s13_s18, 8   ;;  %s1416_s13 = smov %s1222_s25 }
 0x15b   : > { %s1417_s14 = smov %s1138_s16  ;;  %s1418_s15 = smov %s1142_s17 }
 0x15c   : > { %s1419_s16 = smov %s1422_s19  ;;  %s1420_s17 = smov %s1426_s20 }
 0x15d   :  { %12 = sbr.rel (!%p10_p0) target bundleno = 4 (0x4), region = 122 }

// kernel: _lambda_.54
= control target key start
LH: loop header
LB: loop body
LE: loop exit
PB: predicated region body
PF: predicated region fallthrough
CT: control target
= control target key end

     0   :  { %s753_s12 = smov 0   ;;  %s755_s13 = smov 0   ;;  %s843_s0 = inlined_call_operand.vmem [shape: bf16[8,128], index: 0, kind: input, shape index: {}]   ;;  %s844_s1 = inlined_call_operand.vmem [shape: bf16[128,256], index: 1, kind: input, shape index: {}]   ;;  %s845_s2 = inlined_call_operand.vmem [shape: f32[1,256], index: 2, kind: input, shape index: {}]   ;;  %s846_s3 = inlined_call_operand.vmem [shape: bf16[8,256], index: 3, kind: output, shape index: {}]  }
   0x1   :  { %s757_s14 = smov 0   ;;  %s759_s15 = smov 0  }
   0x2   :  { %s761_s16 = smov 0  }
   0x3 LB: > { %s28_s17 = sadd.s32 1, %s725_s15  ;;  %p76_p1 = scmp.ne.s32.totalorder %s717_s13, %s713_s12  ;;  %s729_s16 = sphi %s761_s16, %s13_s16   ;;  %s725_s15 = sphi %s759_s15, %s850_s15   ;;  %s721_s14 = sphi %s757_s14, %s849_s14   ;;  %s717_s13 = sphi %s755_s13, %s848_s13   ;;  %s713_s12 = sphi %s753_s12, %s847_s12  }
   0x4   : > { %p30_p0 = scmp.ge.s32.totalorder %s28_s17, 2  ;;  %p77_p2 = scmp.eq.s32.totalorder %s729_s16, 0 }
   0x5   : > { %s69_s19 = sadd.s32 1, %s717_s13  ;;  %p595_p5 = scmp.ge.s32.totalorder %s729_s16, 2 }
   0x6   : > { %s852_s17 = smov (%p30_p0, %s28_s17), 0  ;;  %p78_p3 = por %p77_p2, %p76_p1 }
   0x7   : > { %s65_s18 = ssub.s32 %s725_s15, %s852_s17  ;;  %166 = sbr.rel (%p595_p5) target bundleno = 28 (0x1c), region = 20 }
   0x8   : > { %p67_p4 = scmp.eq.s32.totalorder %s65_s18, 0 }
   0xa   : > { %s788_s20 = scalar_select %p67_p4, %s717_s13, %s69_s19  }
   0xe   : > { %169 = sbr.rel (!%p78_p3) target bundleno = 28 (0x1c), region = 24  ;;  %s171_s21 = sand.u32 (%p78_p3), 1, %s717_s13  }
   0xf   : > { %s597_s22 = sshll.u32 (%p78_p3), %s725_s15, 2  ;;  %s596_s23 = sshll.u32 (%p78_p3), %s171_s21, 6 }
  0x10   : > { %s796_s26 = scalar_lea.vmem (%p78_p3), %s844_s1, %s597_s22  ;;  %s173_s27 = scalar_lea.vmem (%p78_p3), [#allocation3], %s596_s23 }
  0x11   : > { %v194_v0 = vld [vmem:[%s796_s26] sm:$0xf] (%p78_p3)  ;;  %v196_v1 = vld [vmem:[%s796_s26 + $0x8] sm:$0xf] (%p78_p3)  ;;  %v198_v2 = vld [vmem:[%s796_s26 + $0x10] sm:$0xf] (%p78_p3) }
  0x12   : > { %195 = vst [vmem:[%s173_s27] sm:$0xf] (%p78_p3), %v194_v0  ;;  %197 = vst [vmem:[%s173_s27 + $0x4] sm:$0xf] (%p78_p3), %v196_v1  ;;  %v200_v3 = vld [vmem:[%s796_s26 + $0x18] sm:$0xf] (%p78_p3) }
  0x13   : > { %v202_v4 = vld [vmem:[%s796_s26 + $0x20] sm:$0xf] (%p78_p3)  ;;  %199 = vst [vmem:[%s173_s27 + $0x8] sm:$0xf] (%p78_p3), %v198_v2  ;;  %201 = vst [vmem:[%s173_s27 + $0xc] sm:$0xf] (%p78_p3), %v200_v3 }
  0x14   : > { %203 = vst [vmem:[%s173_s27 + $0x10] sm:$0xf] (%p78_p3), %v202_v4  ;;  %v204_v5 = vld [vmem:[%s796_s26 + $0x28] sm:$0xf] (%p78_p3)  ;;  %v206_v6 = vld [vmem:[%s796_s26 + $0x30] sm:$0xf] (%p78_p3) }
  0x15   : > { %v208_v7 = vld [vmem:[%s796_s26 + $0x38] sm:$0xf]  ;;  %205 = vst [vmem:[%s173_s27 + $0x14] sm:$0xf] %v204_v5  ;;  %207 = vst [vmem:[%s173_s27 + $0x18] sm:$0xf] %v206_v6 }
  0x16   : > { %209 = vst [vmem:[%s173_s27 + $0x1c] sm:$0xf] %v208_v7  ;;  %v210_v8 = vld [vmem:[%s796_s26 + $0x40] sm:$0xf]  ;;  %v212_v9 = vld [vmem:[%s796_s26 + $0x48] sm:$0xf] }
  0x17   : > { %v214_v10 = vld [vmem:[%s796_s26 + $0x50] sm:$0xf]  ;;  %211 = vst [vmem:[%s173_s27 + $0x20] sm:$0xf] %v210_v8  ;;  %213 = vst [vmem:[%s173_s27 + $0x24] sm:$0xf] %v212_v9 }
  0x18   : > { %215 = vst [vmem:[%s173_s27 + $0x28] sm:$0xf] %v214_v10  ;;  %v216_v11 = vld [vmem:[%s796_s26 + $0x58] sm:$0xf]  ;;  %v218_v12 = vld [vmem:[%s796_s26 + $0x60] sm:$0xf] }
  0x19   : > { %v220_v13 = vld [vmem:[%s796_s26 + $0x68] sm:$0xf]  ;;  %217 = vst [vmem:[%s173_s27 + $0x2c] sm:$0xf] %v216_v11  ;;  %219 = vst [vmem:[%s173_s27 + $0x30] sm:$0xf] %v218_v12 }
  0x1a   : > { %221 = vst [vmem:[%s173_s27 + $0x34] sm:$0xf] %v220_v13  ;;  %v222_v14 = vld [vmem:[%s796_s26 + $0x70] sm:$0xf]  ;;  %v224_v15 = vld [vmem:[%s796_s26 + $0x78] sm:$0xf] }
  0x1b   : > { %223 = vst [vmem:[%s173_s27 + $0x38] sm:$0xf] %v222_v14  ;;  %225 = vst [vmem:[%s173_s27 + $0x3c] sm:$0xf] %v224_v15 }
  0x1c PF: > { %p598_p6 = scmp.ge.s32.totalorder %s729_s16, 1  ;;  %p285_p7 = scmp.lt.s32.totalorder %s729_s16, 3 }
  0x1e   : > { %p286_p8 = pnand %p598_p6, %p285_p7 }
  0x1f   : > { %s292_s28 = sand.u32 (!%p286_p8), 1, %s713_s12   ;;  %v731_v16 = vmov (!%p286_p8), 0.0   ;;  %vm732_vm0 = vmmov (!%p286_p8), 0   ;;  %v354_v25 = vld [vmem:[%s843_s0] sm:$0xf] (!%p286_p8)  ;;  %p336_p9 = scmp.lt.s32.totalorder (!%p286_p8), %s721_s14, 1 }
  0x20   : > { %289 = sbr.rel (%p286_p8) target bundleno = 283 (0x11b), region = 69  ;;  %621 = vmatprep.subr.bf16.mxu0 (!%p286_p8), %v731_v16  ;;  %s599_s29 = sshll.u32 (!%p286_p8), %s292_s28, 6  ;;  %637 = vmatprep.mubr.msk.bf16.mxu0 (!%p286_p8), %vm732_vm0, %v731_v16 }
  0x21   : > { %s294_s30 = scalar_lea.vmem (!%p286_p8), [#allocation3], %s599_s29 }
  0x22   : > { %v683_v17 = vld [vmem:[%s294_s30] sm:$0xff] (!%p286_p8)   ;;  %v684_v18 = vld [vmem:[%s294_s30 + $0x8] sm:$0xff] (!%p286_p8)   ;;  %v685_v19 = vld [vmem:[%s294_s30 + $0x10] sm:$0xff] (!%p286_p8)  }
  0x23   : > { %622 = vmatpush3.bf16.msra.mxu0 (!%p286_p8), %v683_v17  ;;  %v686_v20 = vld [vmem:[%s294_s30 + $0x18] sm:$0xff] (!%p286_p8)   ;;  %v687_v21 = vld [vmem:[%s294_s30 + $0x20] sm:$0xff] (!%p286_p8)   ;;  %v688_v22 = vld [vmem:[%s294_s30 + $0x28] sm:$0xff] (!%p286_p8)  }
  0x24   : > { %623 = vmatprep.subr.bf16.mxu0 (!%p286_p8), %v731_v16  ;;  %v689_v23 = vld [vmem:[%s294_s30 + $0x30] sm:$0xff] (!%p286_p8)   ;;  %v690_v24 = vld [vmem:[%s294_s30 + $0x38] sm:$0xff] (!%p286_p8)  }
  0x27   : > { %624 = vmatpush3.bf16.msra.mxu0 %v684_v18  ;;  %s854_s14 = smov (!%p336_p9, %s721_s14), 1 }
  0x28   : > { %625 = vmatprep.subr.bf16.mxu0 %v731_v16  ;;  %s338_s8 = scalar_lea.vmem %s845_s2, %s854_s14  ;;  %s600_s9 = sshll.u32 %s854_s14, 2 }
  0x29   : > { %v609_v26 = vld [vmem:[%s338_s8] ss:$0 sm:$0xff]  ;;  %s346_s12 = scalar_lea.vmem %s846_s3, %s600_s9 }
  0x2b   : > { %626 = vmatpush3.bf16.msra.mxu0 %v685_v19 }
  0x2c   : > { %627 = vmatprep.subr.bf16.mxu0 %v731_v16 }
  0x2f   : > { %628 = vmatpush3.bf16.msra.mxu0 %v686_v20 }
  0x30   : > { %629 = vmatprep.subr.bf16.mxu0 %v731_v16 }
  0x33   : > { %630 = vmatpush3.bf16.msra.mxu0 %v687_v21 }
  0x34   : > { %631 = vmatprep.subr.bf16.mxu0 %v731_v16 }
  0x37   : > { %632 = vmatpush3.bf16.msra.mxu0 %v688_v22 }
  0x38   : > { %633 = vmatprep.subr.bf16.mxu0 %v731_v16 }
  0x3b   : > { %634 = vmatpush3.bf16.msra.mxu0 %v689_v23 }
  0x3c   : > { %635 = vmatprep.subr.bf16.mxu0 %v731_v16 }
  0x3f   : > { %636 = vmatpush3.bf16.msra.mxu0 %v690_v24 }
  0x42   : > { %638 = vmatmul.mubr.bf16.vlgmr.msra.gmra.mrb[0].mxu0 %v354_v25 }
 0x115   : > { %v453_v27 = vpop.f32.mrb[0].mxu0 }
 0x116   : > { %v472_v28 = vadd.f32 %v609_v26, %v453_v27  ;;  %v639_v29 = vpop.f32.mrb[1].mxu0 }
 0x117   : > { %v456_v30 = vpop.f32.mrb[2].mxu0 }
 0x118   : > { %v473_v31 = vpack.c.bf16 %v472_v28, %v472_v28  ;;  %v640_v32 = vpop.f32.mrb[3].mxu0 }
 0x11a   : > { %474 = vst [vmem:[%s346_s12] sm:$0xf] %v473_v31 }
 0x11b PF: > { %s13_s16 = sadd.s32 1, %s729_s16   ;;  %s847_s12 = smov %s717_s13 }
 0x11c   : > { %p10_p10 = scmp.ge.s32.totalorder %s13_s16, 4   ;;  %s848_s13 = smov %s788_s20 }
 0x11d   : > { %s849_s14 = smov %s725_s15  ;;  %s850_s15 = smov %s852_s17 }
 0x11e   :  { %12 = sbr.rel (!%p10_p10) target bundleno = 3 (0x3), region = 122 }

// kernel: _lambda_.56
= control target key start
LH: loop header
LB: loop body
LE: loop exit
PB: predicated region body
PF: predicated region fallthrough
CT: control target
= control target key end

     0   :  { %s1756_s15 = smov 0   ;;  %s1758_s16 = smov 0   ;;  %s2123_s0 = inlined_call_operand.vmem [shape: bf16[8,2304], index: 0, kind: input, shape index: {}]   ;;  %s2124_s1 = inlined_call_operand.vmem [shape: bf16[2304,256], index: 1, kind: input, shape index: {}]   ;;  %s2125_s2 = inlined_call_operand.vmem [shape: f32[1,256], index: 2, kind: input, shape index: {}]   ;;  %s2126_s3 = inlined_call_operand.vmem [shape: bf16[8,256], index: 3, kind: input, shape index: {}]   ;;  %s2127_s4 = inlined_call_operand.vmem [shape: bf16[8,256], index: 4, kind: output, shape index: {}]  }
   0x1   :  { %s1760_s17 = smov 0   ;;  %s1762_s18 = smov 0  }
   0x2   :  { %s1764_s19 = smov 0   ;;  %s1766_s20 = smov 0  }
   0x3   :  { %s1768_s21 = smov 0  }
   0x4 LB: > { %s26_s22 = sadd.s32 1, %s1720_s19  ;;  %s29_s23 = sadd.s32 1, %s1724_s20  ;;  %s1728_s21 = sphi %s1768_s21, %s14_s21   ;;  %s1724_s20 = sphi %s1766_s20, %s2133_s20   ;;  %s1720_s19 = sphi %s1764_s19, %s2132_s19   ;;  %s1716_s18 = sphi %s1762_s18, %s2131_s18   ;;  %s1712_s17 = sphi %s1760_s17, %s2130_s17   ;;  %s1708_s16 = sphi %s1758_s16, %s2129_s16   ;;  %s1704_s15 = sphi %s1756_s15, %s2128_s15  }
   0x5   : > { %p27_p0 = scmp.ge.s32.totalorder %s26_s22, 3  ;;  %p77_p1 = scmp.ne.s32.totalorder %s1708_s16, %s1704_s15 }
   0x6   : > { %p78_p2 = scmp.eq.s32.totalorder %s1728_s21, 0  ;;  %s70_s27 = sadd.s32 1, %s1708_s16 }
   0x7   : > { %s2135_s22 = smov (%p27_p0, %s26_s22), 0  ;;  %s2137_s23 = smov (!%p27_p0, %s29_s23), %s1724_s20 }
   0x8   : > { %p79_p3 = por %p78_p2, %p77_p1  ;;  %p31_p4 = scmp.ge.s32.totalorder %s2137_s23, 2 }
   0x9   : > { %s65_s24 = ssub.s32 %s1720_s19, %s2135_s22  ;;  %p1428_p6 = scmp.ge.s32.totalorder %s1728_s21, 6 }
   0xa   : > { %s2139_s23 = smov (%p31_p4, %s2137_s23), 0 }
   0xb   : > { %s66_s25 = ssub.s32 %s1724_s20, %s2139_s23  ;;  %185 = sbr.rel (%p1428_p6) target bundleno = 89 (0x59), region = 16 }
   0xc   : > { %s67_s26 = sor.u32 %s66_s25, %s65_s24 }
   0xd   : > { %p68_p5 = scmp.eq.s32.totalorder %s67_s26, 0 }
   0xf   : > { %s1807_s28 = scalar_select %p68_p5, %s1708_s16, %s70_s27  }
  0x12   : > { %201 = sbr.rel (!%p79_p3) target bundleno = 89 (0x59), region = 24  ;;  %s203_s29 = sand.u32 (%p79_p3), 1, %s1708_s16  }
  0x13   : > { %s1494_s30 = smul.u32 (%p79_p3), 192, %s1720_s19 }
  0x14   : > { %s1561_s5 = smul.u32 (%p79_p3), 384, %s203_s29 }
  0x15   : > { %s208_s6 = sadd.s32 (%p79_p3), %s1724_s20, %s1494_s30 }
  0x16   : > { %s1430_s7 = sshll.u32 (%p79_p3), %s208_s6, 2  ;;  %s1821_s11 = scalar_lea.vmem (%p79_p3), [#allocation3], %s1561_s5 }
  0x17   : > { %s1816_s10 = scalar_lea.vmem (%p79_p3), %s2124_s1, %s1430_s7 }
  0x18   : > { %v226_v0 = vld [vmem:[%s1816_s10] sm:$0xf] (%p79_p3)  ;;  %v228_v1 = vld [vmem:[%s1816_s10 + $0x8] sm:$0xf] (%p79_p3)  ;;  %v230_v2 = vld [vmem:[%s1816_s10 + $0x10] sm:$0xf] (%p79_p3) }
  0x19   : > { %227 = vst [vmem:[%s1821_s11] sm:$0xf] %v226_v0  ;;  %229 = vst [vmem:[%s1821_s11 + $0x4] sm:$0xf] %v228_v1  ;;  %v232_v3 = vld [vmem:[%s1816_s10 + $0x18] sm:$0xf] }
  0x1a   : > { %231 = vst [vmem:[%s1821_s11 + $0x8] sm:$0xf] %v230_v2  ;;  %v234_v4 = vld [vmem:[%s1816_s10 + $0x20] sm:$0xf]  ;;  %v236_v5 = vld [vmem:[%s1816_s10 + $0x28] sm:$0xf] }
  0x1b   : > { %233 = vst [vmem:[%s1821_s11 + $0xc] sm:$0xf] %v232_v3  ;;  %235 = vst [vmem:[%s1821_s11 + $0x10] sm:$0xf] %v234_v4  ;;  %v238_v6 = vld [vmem:[%s1816_s10 + $0x30] sm:$0xf] }
  0x1c   : > { %237 = vst [vmem:[%s1821_s11 + $0x14] sm:$0xf] %v236_v5  ;;  %v240_v7 = vld [vmem:[%s1816_s10 + $0x38] sm:$0xf]  ;;  %v242_v8 = vld [vmem:[%s1816_s10 + $0x40] sm:$0xf] }
  0x1d   : > { %239 = vst [vmem:[%s1821_s11 + $0x18] sm:$0xf] %v238_v6  ;;  %241 = vst [vmem:[%s1821_s11 + $0x1c] sm:$0xf] %v240_v7  ;;  %v244_v9 = vld [vmem:[%s1816_s10 + $0x48] sm:$0xf] }
  0x1e   : > { %243 = vst [vmem:[%s1821_s11 + $0x20] sm:$0xf] %v242_v8  ;;  %v246_v10 = vld [vmem:[%s1816_s10 + $0x50] sm:$0xf]  ;;  %v248_v11 = vld [vmem:[%s1816_s10 + $0x58] sm:$0xf] }
  0x1f   : > { %245 = vst [vmem:[%s1821_s11 + $0x24] sm:$0xf] %v244_v9  ;;  %247 = vst [vmem:[%s1821_s11 + $0x28] sm:$0xf] %v246_v10  ;;  %v250_v12 = vld [vmem:[%s1816_s10 + $0x60] sm:$0xf] }
  0x20   : > { %249 = vst [vmem:[%s1821_s11 + $0x2c] sm:$0xf] %v248_v11  ;;  %v252_v13 = vld [vmem:[%s1816_s10 + $0x68] sm:$0xf]  ;;  %v254_v14 = vld [vmem:[%s1816_s10 + $0x70] sm:$0xf] }
  0x21   : > { %251 = vst [vmem:[%s1821_s11 + $0x30] sm:$0xf] %v250_v12  ;;  %253 = vst [vmem:[%s1821_s11 + $0x34] sm:$0xf] %v252_v13  ;;  %v256_v15 = vld [vmem:[%s1816_s10 + $0x78] sm:$0xf] }
  0x22   : > { %255 = vst [vmem:[%s1821_s11 + $0x38] sm:$0xf] %v254_v14  ;;  %v258_v16 = vld [vmem:[%s1816_s10 + $0x80] sm:$0xf]  ;;  %v260_v17 = vld [vmem:[%s1816_s10 + $0x88] sm:$0xf] }
  0x23   : > { %257 = vst [vmem:[%s1821_s11 + $0x3c] sm:$0xf] %v256_v15  ;;  %259 = vst [vmem:[%s1821_s11 + $0x40] sm:$0xf] %v258_v16  ;;  %v262_v18 = vld [vmem:[%s1816_s10 + $0x90] sm:$0xf] }
  0x24   : > { %261 = vst [vmem:[%s1821_s11 + $0x44] sm:$0xf] %v260_v17  ;;  %v264_v19 = vld [vmem:[%s1816_s10 + $0x98] sm:$0xf]  ;;  %v266_v20 = vld [vmem:[%s1816_s10 + $0xa0] sm:$0xf] }
  0x25   : > { %263 = vst [vmem:[%s1821_s11 + $0x48] sm:$0xf] %v262_v18  ;;  %265 = vst [vmem:[%s1821_s11 + $0x4c] sm:$0xf] %v264_v19  ;;  %v268_v21 = vld [vmem:[%s1816_s10 + $0xa8] sm:$0xf] }
  0x26   : > { %267 = vst [vmem:[%s1821_s11 + $0x50] sm:$0xf] %v266_v20  ;;  %v270_v22 = vld [vmem:[%s1816_s10 + $0xb0] sm:$0xf]  ;;  %v272_v23 = vld [vmem:[%s1816_s10 + $0xb8] sm:$0xf] }
  0x27   : > { %269 = vst [vmem:[%s1821_s11 + $0x54] sm:$0xf] %v268_v21  ;;  %271 = vst [vmem:[%s1821_s11 + $0x58] sm:$0xf] %v270_v22  ;;  %v274_v24 = vld [vmem:[%s1816_s10 + $0xc0] sm:$0xf] }
  0x28   : > { %273 = vst [vmem:[%s1821_s11 + $0x5c] sm:$0xf] %v272_v23  ;;  %v276_v25 = vld [vmem:[%s1816_s10 + $0xc8] sm:$0xf]  ;;  %v278_v26 = vld [vmem:[%s1816_s10 + $0xd0] sm:$0xf] }
  0x29   : > { %275 = vst [vmem:[%s1821_s11 + $0x60] sm:$0xf] %v274_v24  ;;  %277 = vst [vmem:[%s1821_s11 + $0x64] sm:$0xf] %v276_v25  ;;  %v280_v27 = vld [vmem:[%s1816_s10 + $0xd8] sm:$0xf] }
  0x2a   : > { %279 = vst [vmem:[%s1821_s11 + $0x68] sm:$0xf] %v278_v26  ;;  %v282_v28 = vld [vmem:[%s1816_s10 + $0xe0] sm:$0xf]  ;;  %v284_v29 = vld [vmem:[%s1816_s10 + $0xe8] sm:$0xf] }
  0x2b   : > { %281 = vst [vmem:[%s1821_s11 + $0x6c] sm:$0xf] %v280_v27  ;;  %283 = vst [vmem:[%s1821_s11 + $0x70] sm:$0xf] %v282_v28  ;;  %v286_v30 = vld [vmem:[%s1816_s10 + $0xf0] sm:$0xf] }
  0x2c   : > { %285 = vst [vmem:[%s1821_s11 + $0x74] sm:$0xf] %v284_v29  ;;  %v288_v31 = vld [vmem:[%s1816_s10 + $0xf8] sm:$0xf]  ;;  %v290_v32 = vld [vmem:[%s1816_s10 + $0x100] sm:$0xf] }
  0x2d   : > { %287 = vst [vmem:[%s1821_s11 + $0x78] sm:$0xf] %v286_v30  ;;  %289 = vst [vmem:[%s1821_s11 + $0x7c] sm:$0xf] %v288_v31  ;;  %v292_v33 = vld [vmem:[%s1816_s10 + $0x108] sm:$0xf] }
  0x2e   : > { %291 = vst [vmem:[%s1821_s11 + $0x80] sm:$0xf] %v290_v32  ;;  %v294_v34 = vld [vmem:[%s1816_s10 + $0x110] sm:$0xf]  ;;  %v296_v35 = vld [vmem:[%s1816_s10 + $0x118] sm:$0xf] }
  0x2f   : > { %293 = vst [vmem:[%s1821_s11 + $0x84] sm:$0xf] %v292_v33  ;;  %295 = vst [vmem:[%s1821_s11 + $0x88] sm:$0xf] %v294_v34  ;;  %v298_v36 = vld [vmem:[%s1816_s10 + $0x120] sm:$0xf] }
  0x30   : > { %297 = vst [vmem:[%s1821_s11 + $0x8c] sm:$0xf] %v296_v35  ;;  %v300_v37 = vld [vmem:[%s1816_s10 + $0x128] sm:$0xf]  ;;  %v302_v38 = vld [vmem:[%s1816_s10 + $0x130] sm:$0xf] }
  0x31   : > { %299 = vst [vmem:[%s1821_s11 + $0x90] sm:$0xf] %v298_v36  ;;  %301 = vst [vmem:[%s1821_s11 + $0x94] sm:$0xf] %v300_v37  ;;  %v304_v39 = vld [vmem:[%s1816_s10 + $0x138] sm:$0xf] }
  0x32   : > { %303 = vst [vmem:[%s1821_s11 + $0x98] sm:$0xf] %v302_v38  ;;  %v306_v40 = vld [vmem:[%s1816_s10 + $0x140] sm:$0xf]  ;;  %v308_v41 = vld [vmem:[%s1816_s10 + $0x148] sm:$0xf] }
  0x33   : > { %305 = vst [vmem:[%s1821_s11 + $0x9c] sm:$0xf] %v304_v39  ;;  %307 = vst [vmem:[%s1821_s11 + $0xa0] sm:$0xf] %v306_v40  ;;  %v310_v42 = vld [vmem:[%s1816_s10 + $0x150] sm:$0xf] }
  0x34   : > { %309 = vst [vmem:[%s1821_s11 + $0xa4] sm:$0xf] %v308_v41  ;;  %v312_v43 = vld [vmem:[%s1816_s10 + $0x158] sm:$0xf]  ;;  %v314_v44 = vld [vmem:[%s1816_s10 + $0x160] sm:$0xf] }
  0x35   : > { %311 = vst [vmem:[%s1821_s11 + $0xa8] sm:$0xf] %v310_v42  ;;  %313 = vst [vmem:[%s1821_s11 + $0xac] sm:$0xf] %v312_v43  ;;  %v316_v45 = vld [vmem:[%s1816_s10 + $0x168] sm:$0xf] }
  0x36   : > { %315 = vst [vmem:[%s1821_s11 + $0xb0] sm:$0xf] %v314_v44  ;;  %v318_v46 = vld [vmem:[%s1816_s10 + $0x170] sm:$0xf]  ;;  %v320_v47 = vld [vmem:[%s1816_s10 + $0x178] sm:$0xf] }
  0x37   : > { %317 = vst [vmem:[%s1821_s11 + $0xb4] sm:$0xf] %v316_v45  ;;  %319 = vst [vmem:[%s1821_s11 + $0xb8] sm:$0xf] %v318_v46  ;;  %v322_v48 = vld [vmem:[%s1816_s10 + $0x180] sm:$0xf] }
  0x38   : > { %321 = vst [vmem:[%s1821_s11 + $0xbc] sm:$0xf] %v320_v47  ;;  %v324_v49 = vld [vmem:[%s1816_s10 + $0x188] sm:$0xf]  ;;  %v326_v50 = vld [vmem:[%s1816_s10 + $0x190] sm:$0xf] }
  0x39   : > { %323 = vst [vmem:[%s1821_s11 + $0xc0] sm:$0xf] %v322_v48  ;;  %325 = vst [vmem:[%s1821_s11 + $0xc4] sm:$0xf] %v324_v49  ;;  %v328_v51 = vld [vmem:[%s1816_s10 + $0x198] sm:$0xf] }
  0x3a   : > { %327 = vst [vmem:[%s1821_s11 + $0xc8] sm:$0xf] %v326_v50  ;;  %v330_v52 = vld [vmem:[%s1816_s10 + $0x1a0] sm:$0xf]  ;;  %v332_v53 = vld [vmem:[%s1816_s10 + $0x1a8] sm:$0xf] }
  0x3b   : > { %329 = vst [vmem:[%s1821_s11 + $0xcc] sm:$0xf] %v328_v51  ;;  %331 = vst [vmem:[%s1821_s11 + $0xd0] sm:$0xf] %v330_v52  ;;  %v334_v54 = vld [vmem:[%s1816_s10 + $0x1b0] sm:$0xf] }
  0x3c   : > { %333 = vst [vmem:[%s1821_s11 + $0xd4] sm:$0xf] %v332_v53  ;;  %v336_v55 = vld [vmem:[%s1816_s10 + $0x1b8] sm:$0xf]  ;;  %v338_v56 = vld [vmem:[%s1816_s10 + $0x1c0] sm:$0xf] }
  0x3d   : > { %335 = vst [vmem:[%s1821_s11 + $0xd8] sm:$0xf] %v334_v54  ;;  %337 = vst [vmem:[%s1821_s11 + $0xdc] sm:$0xf] %v336_v55  ;;  %v340_v57 = vld [vmem:[%s1816_s10 + $0x1c8] sm:$0xf] }
  0x3e   : > { %339 = vst [vmem:[%s1821_s11 + $0xe0] sm:$0xf] %v338_v56  ;;  %v342_v58 = vld [vmem:[%s1816_s10 + $0x1d0] sm:$0xf]  ;;  %v344_v59 = vld [vmem:[%s1816_s10 + $0x1d8] sm:$0xf] }
  0x3f   : > { %341 = vst [vmem:[%s1821_s11 + $0xe4] sm:$0xf] %v340_v57  ;;  %343 = vst [vmem:[%s1821_s11 + $0xe8] sm:$0xf] %v342_v58  ;;  %v346_v60 = vld [vmem:[%s1816_s10 + $0x1e0] sm:$0xf] }
  0x40   : > { %345 = vst [vmem:[%s1821_s11 + $0xec] sm:$0xf] %v344_v59  ;;  %v348_v61 = vld [vmem:[%s1816_s10 + $0x1e8] sm:$0xf]  ;;  %v350_v62 = vld [vmem:[%s1816_s10 + $0x1f0] sm:$0xf] }
  0x41   : > { %347 = vst [vmem:[%s1821_s11 + $0xf0] sm:$0xf] %v346_v60  ;;  %349 = vst [vmem:[%s1821_s11 + $0xf4] sm:$0xf] %v348_v61  ;;  %v352_v63 = vld [vmem:[%s1816_s10 + $0x1f8] sm:$0xf] }
  0x42   : > { %351 = vst [vmem:[%s1821_s11 + $0xf8] sm:$0xf] %v350_v62  ;;  %v354_v0 = vld [vmem:[%s1816_s10 + $0x200] sm:$0xf]  ;;  %v356_v1 = vld [vmem:[%s1816_s10 + $0x208] sm:$0xf] }
  0x43   : > { %353 = vst [vmem:[%s1821_s11 + $0xfc] sm:$0xf] %v352_v63  ;;  %355 = vst [vmem:[%s1821_s11 + $0x100] sm:$0xf] %v354_v0  ;;  %v358_v2 = vld [vmem:[%s1816_s10 + $0x210] sm:$0xf] }
  0x44   : > { %357 = vst [vmem:[%s1821_s11 + $0x104] sm:$0xf] %v356_v1  ;;  %v360_v3 = vld [vmem:[%s1816_s10 + $0x218] sm:$0xf]  ;;  %v362_v4 = vld [vmem:[%s1816_s10 + $0x220] sm:$0xf] }
  0x45   : > { %359 = vst [vmem:[%s1821_s11 + $0x108] sm:$0xf] %v358_v2  ;;  %361 = vst [vmem:[%s1821_s11 + $0x10c] sm:$0xf] %v360_v3  ;;  %v364_v5 = vld [vmem:[%s1816_s10 + $0x228] sm:$0xf] }
  0x46   : > { %363 = vst [vmem:[%s1821_s11 + $0x110] sm:$0xf] %v362_v4  ;;  %v366_v6 = vld [vmem:[%s1816_s10 + $0x230] sm:$0xf]  ;;  %v368_v7 = vld [vmem:[%s1816_s10 + $0x238] sm:$0xf] }
  0x47   : > { %365 = vst [vmem:[%s1821_s11 + $0x114] sm:$0xf] %v364_v5  ;;  %367 = vst [vmem:[%s1821_s11 + $0x118] sm:$0xf] %v366_v6  ;;  %v370_v8 = vld [vmem:[%s1816_s10 + $0x240] sm:$0xf] }
  0x48   : > { %369 = vst [vmem:[%s1821_s11 + $0x11c] sm:$0xf] %v368_v7  ;;  %v372_v9 = vld [vmem:[%s1816_s10 + $0x248] sm:$0xf]  ;;  %v374_v10 = vld [vmem:[%s1816_s10 + $0x250] sm:$0xf] }
  0x49   : > { %371 = vst [vmem:[%s1821_s11 + $0x120] sm:$0xf] %v370_v8  ;;  %373 = vst [vmem:[%s1821_s11 + $0x124] sm:$0xf] %v372_v9  ;;  %v376_v11 = vld [vmem:[%s1816_s10 + $0x258] sm:$0xf] }
  0x4a   : > { %375 = vst [vmem:[%s1821_s11 + $0x128] sm:$0xf] %v374_v10  ;;  %v378_v12 = vld [vmem:[%s1816_s10 + $0x260] sm:$0xf]  ;;  %v380_v13 = vld [vmem:[%s1816_s10 + $0x268] sm:$0xf] }
  0x4b   : > { %377 = vst [vmem:[%s1821_s11 + $0x12c] sm:$0xf] %v376_v11  ;;  %379 = vst [vmem:[%s1821_s11 + $0x130] sm:$0xf] %v378_v12  ;;  %v382_v14 = vld [vmem:[%s1816_s10 + $0x270] sm:$0xf] }
  0x4c   : > { %381 = vst [vmem:[%s1821_s11 + $0x134] sm:$0xf] %v380_v13  ;;  %v384_v15 = vld [vmem:[%s1816_s10 + $0x278] sm:$0xf]  ;;  %v386_v16 = vld [vmem:[%s1816_s10 + $0x280] sm:$0xf] }
  0x4d   : > { %383 = vst [vmem:[%s1821_s11 + $0x138] sm:$0xf] %v382_v14  ;;  %385 = vst [vmem:[%s1821_s11 + $0x13c] sm:$0xf] %v384_v15  ;;  %v388_v17 = vld [vmem:[%s1816_s10 + $0x288] sm:$0xf] }
  0x4e   : > { %387 = vst [vmem:[%s1821_s11 + $0x140] sm:$0xf] %v386_v16  ;;  %v390_v18 = vld [vmem:[%s1816_s10 + $0x290] sm:$0xf]  ;;  %v392_v19 = vld [vmem:[%s1816_s10 + $0x298] sm:$0xf] }
  0x4f   : > { %389 = vst [vmem:[%s1821_s11 + $0x144] sm:$0xf] %v388_v17  ;;  %391 = vst [vmem:[%s1821_s11 + $0x148] sm:$0xf] %v390_v18  ;;  %v394_v20 = vld [vmem:[%s1816_s10 + $0x2a0] sm:$0xf] }
  0x50   : > { %393 = vst [vmem:[%s1821_s11 + $0x14c] sm:$0xf] %v392_v19  ;;  %v396_v21 = vld [vmem:[%s1816_s10 + $0x2a8] sm:$0xf]  ;;  %v398_v22 = vld [vmem:[%s1816_s10 + $0x2b0] sm:$0xf] }
  0x51   : > { %395 = vst [vmem:[%s1821_s11 + $0x150] sm:$0xf] %v394_v20  ;;  %397 = vst [vmem:[%s1821_s11 + $0x154] sm:$0xf] %v396_v21  ;;  %v400_v23 = vld [vmem:[%s1816_s10 + $0x2b8] sm:$0xf] }
  0x52   : > { %399 = vst [vmem:[%s1821_s11 + $0x158] sm:$0xf] %v398_v22  ;;  %v402_v24 = vld [vmem:[%s1816_s10 + $0x2c0] sm:$0xf]  ;;  %v404_v25 = vld [vmem:[%s1816_s10 + $0x2c8] sm:$0xf] }
  0x53   : > { %401 = vst [vmem:[%s1821_s11 + $0x15c] sm:$0xf] %v400_v23  ;;  %403 = vst [vmem:[%s1821_s11 + $0x160] sm:$0xf] %v402_v24  ;;  %v406_v26 = vld [vmem:[%s1816_s10 + $0x2d0] sm:$0xf] }
  0x54   : > { %405 = vst [vmem:[%s1821_s11 + $0x164] sm:$0xf] %v404_v25  ;;  %v408_v27 = vld [vmem:[%s1816_s10 + $0x2d8] sm:$0xf]  ;;  %v410_v28 = vld [vmem:[%s1816_s10 + $0x2e0] sm:$0xf] }
  0x55   : > { %407 = vst [vmem:[%s1821_s11 + $0x168] sm:$0xf] %v406_v26  ;;  %409 = vst [vmem:[%s1821_s11 + $0x16c] sm:$0xf] %v408_v27  ;;  %v412_v29 = vld [vmem:[%s1816_s10 + $0x2e8] sm:$0xf] }
  0x56   : > { %411 = vst [vmem:[%s1821_s11 + $0x170] sm:$0xf] %v410_v28  ;;  %v414_v30 = vld [vmem:[%s1816_s10 + $0x2f0] sm:$0xf]  ;;  %v416_v31 = vld [vmem:[%s1816_s10 + $0x2f8] sm:$0xf] }
  0x57   : > { %413 = vst [vmem:[%s1821_s11 + $0x174] sm:$0xf] %v412_v29  ;;  %415 = vst [vmem:[%s1821_s11 + $0x178] sm:$0xf] %v414_v30 }
  0x58   : > { %417 = vst [vmem:[%s1821_s11 + $0x17c] sm:$0xf] %v416_v31 }
  0x59 PF: > { %p1431_p7 = scmp.ge.s32.totalorder %s1728_s21, 1  ;;  %p648_p8 = scmp.lt.s32.totalorder %s1728_s21, 7 }
  0x5b   : > { %p649_p9 = pnand %p1431_p7, %p648_p8 }
  0x5c   : > { %s655_s12 = sand.u32 (!%p649_p9), 1, %s1704_s15   ;;  %s703_s13 = smul.u32 (!%p649_p9), 6, %s1712_s17 }
  0x5d   : > { %652 = sbr.rel (%p649_p9) target bundleno = 413 (0x19d), region = 73  ;;  %p714_p10 = scmp.lt.s32.totalorder (!%p649_p9), %s1716_s18, 1 }
  0x5e   : > { %s1562_s14 = smul.u32 (!%p649_p9), 384, %s655_s12  ;;  %p706_p11 = scmp.lt.s32.totalorder (!%p649_p9), %s703_s13, 17 }
  0x5f   : > { %p1435_p12 = scmp.ne.s32.totalorder (!%p649_p9), %s1712_s17, 0 }
  0x60   : > { %s2040_s12 = scalar_lea.vmem (!%p649_p9), [#allocation3], %s1562_s14 }
  0x64   : > { %s2141_s13 = smov (!%p706_p11, %s703_s13), 17  ;;  %s2143_s18 = smov (!%p714_p10, %s1716_s18), 1 }
  0x65   : > { %s1432_s24 = sshll.u32 %s2141_s13, 2  ;;  %s716_s5 = scalar_lea.vmem %s2125_s2, %s2143_s18  ;;  %v1730_v32 = vmov (!%p1435_p12), 0.0  }
  0x66   : > { %s2023_s27 = scalar_lea.vmem %s2123_s0, %s1432_s24  ;;  %s1433_s15 = sshll.u32 %s2143_s18, 2  ;;  %738 = vst [vmem:[#allocation2] sm:$0xff] (!%p1435_p12), %v1730_v32 }
  0x67   : > { %s2033_s8 = scalar_lea.vmem %s2126_s3, %s1433_s15  ;;  %s2038_s11 = scalar_lea.vmem %s2127_s4, %s1433_s15 }
  0x68   : > { %737 = sbr.rel (%p1435_p12) target bundleno = 111 (0x6f), region = 81 }
  0x6f PF: > { %v1620_v33 = vld [vmem:[%s2040_s12 + $0x40] sm:$0xff]   ;;  %v1624_v37 = vld [vmem:[%s2040_s12 + $0x48] sm:$0xff]   ;;  %v1628_v41 = vld [vmem:[%s2040_s12 + $0x50] sm:$0xff]   ;;  %p1490_p13 = scmp.ne.s32.totalorder %s1712_s17, 2 }
  0x70   : > { %v1621_v34 = vld [vmem:[%s2040_s12 + $0xc0] sm:$0xff]   ;;  %1495 = vmatprep.subr.bf16.mxu0 %v1620_v33  ;;  %v1625_v38 = vld [vmem:[%s2040_s12 + $0xc8] sm:$0xff]   ;;  %v1629_v42 = vld [vmem:[%s2040_s12 + $0xd0] sm:$0xff]  }
  0x71   : > { %v1622_v35 = vld [vmem:[%s2040_s12] sm:$0xff]   ;;  %1517 = vmatprep.subr.bf16.mxu1 %v1621_v34  ;;  %v1626_v39 = vld [vmem:[%s2040_s12 + $0x8] sm:$0xff]   ;;  %v1630_v43 = vld [vmem:[%s2040_s12 + $0x10] sm:$0xff]  }
  0x72   : > { %v1623_v36 = vld [vmem:[%s2040_s12 + $0x80] sm:$0xff]   ;;  %1496 = vmatpush3.bf16.msra.mxu0 %v1622_v35  ;;  %v1627_v40 = vld [vmem:[%s2040_s12 + $0x88] sm:$0xff]   ;;  %v1631_v44 = vld [vmem:[%s2040_s12 + $0x90] sm:$0xff]  }
  0x73   : > { %1518 = vmatpush3.bf16.msra.mxu1 %v1623_v36  ;;  %1497 = vmatprep.subr.bf16.mxu0 %v1624_v37  ;;  %v1632_v45 = vld [vmem:[%s2040_s12 + $0x58] sm:$0xff]   ;;  %v1636_v49 = vld [vmem:[%s2040_s12 + $0x60] sm:$0xff]   ;;  %v1640_v53 = vld [vmem:[%s2040_s12 + $0x68] sm:$0xff]  }
  0x74   : > { %1519 = vmatprep.subr.bf16.mxu1 %v1625_v38  ;;  %v1633_v46 = vld [vmem:[%s2040_s12 + $0xd8] sm:$0xff]   ;;  %v1637_v50 = vld [vmem:[%s2040_s12 + $0xe0] sm:$0xff]   ;;  %v1641_v54 = vld [vmem:[%s2040_s12 + $0xe8] sm:$0xff]  }
  0x75   : > { %v1634_v47 = vld [vmem:[%s2040_s12 + $0x18] sm:$0xff]   ;;  %v1638_v51 = vld [vmem:[%s2040_s12 + $0x20] sm:$0xff]   ;;  %v1642_v55 = vld [vmem:[%s2040_s12 + $0x28] sm:$0xff]  }
  0x76   : > { %1498 = vmatpush3.bf16.msra.mxu0 %v1626_v39  ;;  %v1635_v48 = vld [vmem:[%s2040_s12 + $0x98] sm:$0xff]   ;;  %v1639_v52 = vld [vmem:[%s2040_s12 + $0xa0] sm:$0xff]   ;;  %v1643_v56 = vld [vmem:[%s2040_s12 + $0xa8] sm:$0xff]  }
  0x77   : > { %1520 = vmatpush3.bf16.msra.mxu1 %v1627_v40  ;;  %1499 = vmatprep.subr.bf16.mxu0 %v1628_v41  ;;  %v1644_v57 = vld [vmem:[%s2040_s12 + $0x70] sm:$0xff]   ;;  %v1648_v61 = vld [vmem:[%s2040_s12 + $0x78] sm:$0xff]   ;;  %v1656_v7 = vld [vmem:[%s2040_s12 + $0x140] sm:$0xff]  }
  0x78   : > { %1521 = vmatprep.subr.bf16.mxu1 %v1629_v42  ;;  %v1645_v58 = vld [vmem:[%s2040_s12 + $0xf0] sm:$0xff]   ;;  %v1649_v62 = vld [vmem:[%s2040_s12 + $0xf8] sm:$0xff]   ;;  %v1657_v8 = vld [vmem:[%s2040_s12 + $0x100] sm:$0xff]  }
  0x79   : > { %v1646_v59 = vld [vmem:[%s2040_s12 + $0x30] sm:$0xff]   ;;  %v1650_v63 = vld [vmem:[%s2040_s12 + $0x38] sm:$0xff]   ;;  %v1658_v9 = vld [vmem:[%s2040_s12 + $0x148] sm:$0xff]  }
  0x7a   : > { %1500 = vmatpush3.bf16.msra.mxu0 %v1630_v43  ;;  %v1647_v60 = vld [vmem:[%s2040_s12 + $0xb0] sm:$0xff]   ;;  %v1651_v0 = vld [vmem:[%s2040_s12 + $0xb8] sm:$0xff]   ;;  %v1659_v10 = vld [vmem:[%s2040_s12 + $0x108] sm:$0xff]  }
  0x7b   : > { %1522 = vmatpush3.bf16.msra.mxu1 %v1631_v44  ;;  %1501 = vmatprep.subr.bf16.mxu0 %v1632_v45  ;;  %v740_v1 = vld [vmem:[%s2023_s27] sm:$0xff]  ;;  %v741_v2 = vld [vmem:[%s2023_s27 + $0x8] sm:$0xff]  ;;  %v1664_v15 = vld [vmem:[%s2040_s12 + $0x160] sm:$0xff]  }
  0x7c   : > { %1523 = vmatprep.subr.bf16.mxu1 %v1633_v46  ;;  %v1436_v3 = vcombine.low %v740_v1, %v740_v1  ;;  %v1437_v4 = vcombine.high %v740_v1, %v740_v1  ;;  %v1438_v5 = vcombine.low %v741_v2, %v741_v2  ;;  %v1439_v6 = vcombine.high %v741_v2, %v741_v2  ;;  %v1660_v11 = vld [vmem:[%s2040_s12 + $0x150] sm:$0xff]   ;;  %v1662_v13 = vld [vmem:[%s2040_s12 + $0x158] sm:$0xff]   ;;  %v742_v16 = vld [vmem:[%s2023_s27 + $0x10] sm:$0xff] }
  0x7d   : > { %v1661_v12 = vld [vmem:[%s2040_s12 + $0x110] sm:$0xff]   ;;  %v1663_v14 = vld [vmem:[%s2040_s12 + $0x118] sm:$0xff]   ;;  %v1441_v17 = vcombine.high %v742_v16, %v742_v16  ;;  %v1665_v18 = vld [vmem:[%s2040_s12 + $0x120] sm:$0xff]   ;;  %v1440_v25 = vcombine.low %v742_v16, %v742_v16 }
  0x7e   : > { %1502 = vmatpush3.bf16.msra.mxu0 %v1634_v47  ;;  %1180 = vmatprep.mubr.bf16.mxu0 %v1437_v4  ;;  %v1666_v19 = vld [vmem:[%s2040_s12 + $0x168] sm:$0xff]   ;;  %v1668_v21 = vld [vmem:[%s2040_s12 + $0x170] sm:$0xff]   ;;  %v1670_v23 = vld [vmem:[%s2040_s12 + $0x178] sm:$0xff]  }
  0x7f   : > { %1524 = vmatpush3.bf16.msra.mxu1 %v1635_v48  ;;  %1503 = vmatprep.subr.bf16.mxu0 %v1636_v49  ;;  %v1667_v20 = vld [vmem:[%s2040_s12 + $0x128] sm:$0xff]   ;;  %v1669_v22 = vld [vmem:[%s2040_s12 + $0x130] sm:$0xff]   ;;  %v1671_v24 = vld [vmem:[%s2040_s12 + $0x138] sm:$0xff]  }
  0x80   : > { %1525 = vmatprep.subr.bf16.mxu1 %v1637_v50  ;;  %1220 = vmatprep.mubr.bf16.mxu1 %v1439_v6  ;;  %v739_v41 = vld [vmem:[#allocation2] sm:$0xff]  ;;  %v1491_v46 = vld [vmem:[%s716_s5] ss:$0 sm:$0xff] (!%p1490_p13) }
  0x81   : > { %v1283_v47 = vld [vmem:[%s2033_s8] sm:$0xf] (!%p1490_p13) }
  0x82   : > { %1504 = vmatpush3.bf16.msra.mxu0 %v1638_v51  ;;  %v1284_v49 = vunpack.c.l.bf16 (!%p1490_p13), %v1283_v47 }
  0x83   : > { %1526 = vmatpush3.bf16.msra.mxu1 %v1639_v52  ;;  %1505 = vmatprep.subr.bf16.mxu0 %v1640_v53 }
  0x84   : > { %1527 = vmatprep.subr.bf16.mxu1 %v1641_v54 }
  0x86   : > { %1506 = vmatpush3.bf16.msra.mxu0 %v1642_v55 }
  0x87   : > { %1528 = vmatpush3.bf16.msra.mxu1 %v1643_v56  ;;  %1507 = vmatprep.subr.bf16.mxu0 %v1644_v57 }
  0x88   : > { %1529 = vmatprep.subr.bf16.mxu1 %v1645_v58 }
  0x8a   : > { %1508 = vmatpush3.bf16.msra.mxu0 %v1646_v59 }
  0x8b   : > { %1530 = vmatpush3.bf16.msra.mxu1 %v1647_v60  ;;  %1509 = vmatprep.subr.bf16.mxu0 %v1648_v61 }
  0x8c   : > { %1531 = vmatprep.subr.bf16.mxu1 %v1649_v62 }
  0x8e   : > { %1510 = vmatpush3.bf16.msra.mxu0 %v1650_v63 }
  0x8f   : > { %1532 = vmatpush3.bf16.msra.mxu1 %v1651_v0  ;;  %1539 = vmatprep.subr.bf16.mxu0 %v1656_v7 }
  0x91   : > { %1181 = vmatmul.mubr.bf16.vlgmr.msra.gmra.mrb[0].mxu0 %v1436_v3 }
  0x92   : > { %1221 = vmatmul.mubr.bf16.vlgmr.msra.gmra.mrb[0].mxu1 %v1438_v5  ;;  %1540 = vmatpush3.bf16.msra.mxu0 %v1657_v8 }
  0x93   : > { %1541 = vmatprep.subr.bf16.mxu0 %v1658_v9  ;;  %1260 = vmatprep.mubr.bf16.mxu0 %v1441_v17 }
  0x96   : > { %1542 = vmatpush3.bf16.msra.mxu0 %v1659_v10 }
  0x97   : > { %1543 = vmatprep.subr.bf16.mxu0 %v1660_v11 }
  0x9a   : > { %1544 = vmatpush3.bf16.msra.mxu0 %v1661_v12 }
  0x9b   : > { %1545 = vmatprep.subr.bf16.mxu0 %v1662_v13 }
  0x9e   : > { %1546 = vmatpush3.bf16.msra.mxu0 %v1663_v14 }
  0x9f   : > { %1547 = vmatprep.subr.bf16.mxu0 %v1664_v15 }
  0xa2   : > { %1548 = vmatpush3.bf16.msra.mxu0 %v1665_v18 }
  0xa3   : > { %1549 = vmatprep.subr.bf16.mxu0 %v1666_v19 }
  0xa6   : > { %1550 = vmatpush3.bf16.msra.mxu0 %v1667_v20 }
  0xa7   : > { %1551 = vmatprep.subr.bf16.mxu0 %v1668_v21 }
  0xaa   : > { %1552 = vmatpush3.bf16.msra.mxu0 %v1669_v22 }
  0xab   : > { %1553 = vmatprep.subr.bf16.mxu0 %v1670_v23 }
  0xae   : > { %1554 = vmatpush3.bf16.msra.mxu0 %v1671_v24 }
  0xb1   : > { %1261 = vmatmul.mubr.bf16.vlgmr.msra.gmra.mrb[4].mxu0 %v1440_v25 }
 0x164   : > { %v1511_v26 = vpop.f32.mrb[0].mxu0 }
 0x165   : > { %v1533_v27 = vpop.f32.mrb[0].mxu1  ;;  %v1512_v28 = vpop.f32.mrb[1].mxu0 }
 0x166   : > { %v1534_v29 = vpop.f32.mrb[1].mxu1  ;;  %v1513_v30 = vadd.f32 %v1512_v28, %v1511_v26  ;;  %v1514_v32 = vpop.f32.mrb[2].mxu0 }
 0x167   : > { %v1535_v31 = vadd.f32 %v1534_v29, %v1533_v27  ;;  %v1536_v33 = vpop.f32.mrb[2].mxu1  ;;  %v1515_v34 = vpop.f32.mrb[3].mxu0 }
 0x168   : > { %v1537_v35 = vpop.f32.mrb[3].mxu1 }
 0x169   : > { %v1223_v36 = vadd.f32 %v1535_v31, %v1513_v30 }
 0x184   : > { %v1555_v37 = vpop.f32.mrb[4].mxu0 }
 0x185   : > { %v1556_v38 = vpop.f32.mrb[5].mxu0 }
 0x186   : > { %v1557_v39 = vadd.f32 %v1556_v38, %v1555_v37  ;;  %v1558_v40 = vpop.f32.mrb[6].mxu0  ;;  %1273 = sbr.rel (%p1490_p13) target bundleno = 413 (0x19d), region = 85 }
 0x187   : > { %v1559_v42 = vpop.f32.mrb[7].mxu0 }
 0x188   : > { %v1263_v43 = vadd.f32 %v1557_v39, %v1223_v36 }
 0x18a   : > { %v1268_v44 = vadd.f32 %v1263_v43, %v739_v41 }
 0x18c   : > { %1269 = vst [vmem:[#allocation2] sm:$0xff] %v1268_v44 }
 0x193   : > { %v1274_v45 = vld [vmem:[#allocation2] sm:$0xff] }
 0x194   : > { %v1282_v48 = vadd.f32 %v1491_v46, %v1274_v45 }
 0x196   : > { %v1285_v50 = vadd.f32 %v1284_v49, %v1282_v48 }
 0x198   : > { %v1286_v51 = vmax.f32 %v1285_v50, 0.0 }
 0x19a   : > { %v1287_v52 = vpack.c.bf16 %v1286_v51, %v1286_v51 }
 0x19c   : > { %1288 = vst [vmem:[%s2038_s11] sm:$0xf] %v1287_v52 }
 0x19d PF: > { %s14_s21 = sadd.s32 1, %s1728_s21   ;;  %s2128_s15 = smov %s1708_s16 }
 0x19e   : > { %p11_p0 = scmp.ge.s32.totalorder %s14_s21, 8   ;;  %s2129_s16 = smov %s1807_s28 }
 0x19f   : > { %s2130_s17 = smov %s1720_s19  ;;  %s2131_s18 = smov %s1724_s20 }
 0x1a0   : > { %s2132_s19 = smov %s2135_s22  ;;  %s2133_s20 = smov %s2139_s23 }
 0x1a1   :  { %13 = sbr.rel (!%p11_p0) target bundleno = 4 (0x4), region = 129 }

// kernel: _lambda_.57
= control target key start
LH: loop header
LB: loop body
LE: loop exit
PB: predicated region body
PF: predicated region fallthrough
CT: control target
= control target key end

     0   :  { %s1671_s12 = smov 0   ;;  %s1673_s13 = smov 0   ;;  %s2032_s0 = inlined_call_operand.vmem [shape: bf16[8,2304], index: 0, kind: input, shape index: {}]   ;;  %s2033_s1 = inlined_call_operand.vmem [shape: bf16[2304,256], index: 1, kind: input, shape index: {}]   ;;  %s2034_s2 = inlined_call_operand.vmem [shape: f32[1,256], index: 2, kind: input, shape index: {}]   ;;  %s2035_s3 = inlined_call_operand.vmem [shape: bf16[8,256], index: 3, kind: output, shape index: {}]  }
   0x1   :  { %s1675_s14 = smov 0   ;;  %s1677_s15 = smov 0  }
   0x2   :  { %s1679_s16 = smov 0   ;;  %s1681_s17 = smov 0  }
   0x3   :  { %s1683_s18 = smov 0  }
   0x4 LB: > { %s25_s19 = sadd.s32 1, %s1640_s16  ;;  %s28_s20 = sadd.s32 1, %s1644_s17  ;;  %s1648_s18 = sphi %s1683_s18, %s13_s18   ;;  %s1644_s17 = sphi %s1681_s17, %s2041_s17   ;;  %s1640_s16 = sphi %s1679_s16, %s2040_s16   ;;  %s1636_s15 = sphi %s1677_s15, %s2039_s15   ;;  %s1632_s14 = sphi %s1675_s14, %s2038_s14   ;;  %s1628_s13 = sphi %s1673_s13, %s2037_s13   ;;  %s1624_s12 = sphi %s1671_s12, %s2036_s12  }
   0x5   : > { %p26_p0 = scmp.ge.s32.totalorder %s25_s19, 3  ;;  %p76_p1 = scmp.ne.s32.totalorder %s1628_s13, %s1624_s12 }
   0x6   : > { %p77_p2 = scmp.eq.s32.totalorder %s1648_s18, 0  ;;  %s69_s24 = sadd.s32 1, %s1628_s13 }
   0x7   : > { %s2043_s19 = smov (%p26_p0, %s25_s19), 0  ;;  %s2045_s20 = smov (!%p26_p0, %s28_s20), %s1644_s17 }
   0x8   : > { %p78_p3 = por %p77_p2, %p76_p1  ;;  %p30_p4 = scmp.ge.s32.totalorder %s2045_s20, 2 }
   0x9   : > { %s64_s21 = ssub.s32 %s1640_s16, %s2043_s19  ;;  %p1349_p6 = scmp.ge.s32.totalorder %s1648_s18, 6 }
   0xa   : > { %s2047_s20 = smov (%p30_p4, %s2045_s20), 0 }
   0xb   : > { %s65_s22 = ssub.s32 %s1644_s17, %s2047_s20  ;;  %156 = sbr.rel (%p1349_p6) target bundleno = 89 (0x59), region = 16 }
   0xc   : > { %s66_s23 = sor.u32 %s65_s22, %s64_s21 }
   0xd   : > { %p67_p5 = scmp.eq.s32.totalorder %s66_s23, 0 }
   0xf   : > { %s1722_s25 = scalar_select %p67_p5, %s1628_s13, %s69_s24  }
  0x12   : > { %172 = sbr.rel (!%p78_p3) target bundleno = 89 (0x59), region = 24  ;;  %s174_s26 = sand.u32 (%p78_p3), 1, %s1628_s13  }
  0x13   : > { %s1414_s27 = smul.u32 (%p78_p3), 192, %s1640_s16 }
  0x14   : > { %s1481_s28 = smul.u32 (%p78_p3), 384, %s174_s26 }
  0x15   : > { %s179_s29 = sadd.s32 (%p78_p3), %s1644_s17, %s1414_s27 }
  0x16   : > { %s1351_s30 = sshll.u32 (%p78_p3), %s179_s29, 2  ;;  %s1736_s7 = scalar_lea.vmem (%p78_p3), [#allocation3], %s1481_s28 }
  0x17   : > { %s1731_s6 = scalar_lea.vmem (%p78_p3), %s2033_s1, %s1351_s30 }
  0x18   : > { %v197_v0 = vld [vmem:[%s1731_s6] sm:$0xf] (%p78_p3)  ;;  %v199_v1 = vld [vmem:[%s1731_s6 + $0x8] sm:$0xf] (%p78_p3)  ;;  %v201_v2 = vld [vmem:[%s1731_s6 + $0x10] sm:$0xf] (%p78_p3) }
  0x19   : > { %198 = vst [vmem:[%s1736_s7] sm:$0xf] %v197_v0  ;;  %200 = vst [vmem:[%s1736_s7 + $0x4] sm:$0xf] %v199_v1  ;;  %v203_v3 = vld [vmem:[%s1731_s6 + $0x18] sm:$0xf] }
  0x1a   : > { %202 = vst [vmem:[%s1736_s7 + $0x8] sm:$0xf] %v201_v2  ;;  %v205_v4 = vld [vmem:[%s1731_s6 + $0x20] sm:$0xf]  ;;  %v207_v5 = vld [vmem:[%s1731_s6 + $0x28] sm:$0xf] }
  0x1b   : > { %204 = vst [vmem:[%s1736_s7 + $0xc] sm:$0xf] %v203_v3  ;;  %206 = vst [vmem:[%s1736_s7 + $0x10] sm:$0xf] %v205_v4  ;;  %v209_v6 = vld [vmem:[%s1731_s6 + $0x30] sm:$0xf] }
  0x1c   : > { %208 = vst [vmem:[%s1736_s7 + $0x14] sm:$0xf] %v207_v5  ;;  %v211_v7 = vld [vmem:[%s1731_s6 + $0x38] sm:$0xf]  ;;  %v213_v8 = vld [vmem:[%s1731_s6 + $0x40] sm:$0xf] }
  0x1d   : > { %210 = vst [vmem:[%s1736_s7 + $0x18] sm:$0xf] %v209_v6  ;;  %212 = vst [vmem:[%s1736_s7 + $0x1c] sm:$0xf] %v211_v7  ;;  %v215_v9 = vld [vmem:[%s1731_s6 + $0x48] sm:$0xf] }
  0x1e   : > { %214 = vst [vmem:[%s1736_s7 + $0x20] sm:$0xf] %v213_v8  ;;  %v217_v10 = vld [vmem:[%s1731_s6 + $0x50] sm:$0xf]  ;;  %v219_v11 = vld [vmem:[%s1731_s6 + $0x58] sm:$0xf] }
  0x1f   : > { %216 = vst [vmem:[%s1736_s7 + $0x24] sm:$0xf] %v215_v9  ;;  %218 = vst [vmem:[%s1736_s7 + $0x28] sm:$0xf] %v217_v10  ;;  %v221_v12 = vld [vmem:[%s1731_s6 + $0x60] sm:$0xf] }
  0x20   : > { %220 = vst [vmem:[%s1736_s7 + $0x2c] sm:$0xf] %v219_v11  ;;  %v223_v13 = vld [vmem:[%s1731_s6 + $0x68] sm:$0xf]  ;;  %v225_v14 = vld [vmem:[%s1731_s6 + $0x70] sm:$0xf] }
  0x21   : > { %222 = vst [vmem:[%s1736_s7 + $0x30] sm:$0xf] %v221_v12  ;;  %224 = vst [vmem:[%s1736_s7 + $0x34] sm:$0xf] %v223_v13  ;;  %v227_v15 = vld [vmem:[%s1731_s6 + $0x78] sm:$0xf] }
  0x22   : > { %226 = vst [vmem:[%s1736_s7 + $0x38] sm:$0xf] %v225_v14  ;;  %v229_v16 = vld [vmem:[%s1731_s6 + $0x80] sm:$0xf]  ;;  %v231_v17 = vld [vmem:[%s1731_s6 + $0x88] sm:$0xf] }
  0x23   : > { %228 = vst [vmem:[%s1736_s7 + $0x3c] sm:$0xf] %v227_v15  ;;  %230 = vst [vmem:[%s1736_s7 + $0x40] sm:$0xf] %v229_v16  ;;  %v233_v18 = vld [vmem:[%s1731_s6 + $0x90] sm:$0xf] }
  0x24   : > { %232 = vst [vmem:[%s1736_s7 + $0x44] sm:$0xf] %v231_v17  ;;  %v235_v19 = vld [vmem:[%s1731_s6 + $0x98] sm:$0xf]  ;;  %v237_v20 = vld [vmem:[%s1731_s6 + $0xa0] sm:$0xf] }
  0x25   : > { %234 = vst [vmem:[%s1736_s7 + $0x48] sm:$0xf] %v233_v18  ;;  %236 = vst [vmem:[%s1736_s7 + $0x4c] sm:$0xf] %v235_v19  ;;  %v239_v21 = vld [vmem:[%s1731_s6 + $0xa8] sm:$0xf] }
  0x26   : > { %238 = vst [vmem:[%s1736_s7 + $0x50] sm:$0xf] %v237_v20  ;;  %v241_v22 = vld [vmem:[%s1731_s6 + $0xb0] sm:$0xf]  ;;  %v243_v23 = vld [vmem:[%s1731_s6 + $0xb8] sm:$0xf] }
  0x27   : > { %240 = vst [vmem:[%s1736_s7 + $0x54] sm:$0xf] %v239_v21  ;;  %242 = vst [vmem:[%s1736_s7 + $0x58] sm:$0xf] %v241_v22  ;;  %v245_v24 = vld [vmem:[%s1731_s6 + $0xc0] sm:$0xf] }
  0x28   : > { %244 = vst [vmem:[%s1736_s7 + $0x5c] sm:$0xf] %v243_v23  ;;  %v247_v25 = vld [vmem:[%s1731_s6 + $0xc8] sm:$0xf]  ;;  %v249_v26 = vld [vmem:[%s1731_s6 + $0xd0] sm:$0xf] }
  0x29   : > { %246 = vst [vmem:[%s1736_s7 + $0x60] sm:$0xf] %v245_v24  ;;  %248 = vst [vmem:[%s1736_s7 + $0x64] sm:$0xf] %v247_v25  ;;  %v251_v27 = vld [vmem:[%s1731_s6 + $0xd8] sm:$0xf] }
  0x2a   : > { %250 = vst [vmem:[%s1736_s7 + $0x68] sm:$0xf] %v249_v26  ;;  %v253_v28 = vld [vmem:[%s1731_s6 + $0xe0] sm:$0xf]  ;;  %v255_v29 = vld [vmem:[%s1731_s6 + $0xe8] sm:$0xf] }
  0x2b   : > { %252 = vst [vmem:[%s1736_s7 + $0x6c] sm:$0xf] %v251_v27  ;;  %254 = vst [vmem:[%s1736_s7 + $0x70] sm:$0xf] %v253_v28  ;;  %v257_v30 = vld [vmem:[%s1731_s6 + $0xf0] sm:$0xf] }
  0x2c   : > { %256 = vst [vmem:[%s1736_s7 + $0x74] sm:$0xf] %v255_v29  ;;  %v259_v31 = vld [vmem:[%s1731_s6 + $0xf8] sm:$0xf]  ;;  %v261_v32 = vld [vmem:[%s1731_s6 + $0x100] sm:$0xf] }
  0x2d   : > { %258 = vst [vmem:[%s1736_s7 + $0x78] sm:$0xf] %v257_v30  ;;  %260 = vst [vmem:[%s1736_s7 + $0x7c] sm:$0xf] %v259_v31  ;;  %v263_v33 = vld [vmem:[%s1731_s6 + $0x108] sm:$0xf] }
  0x2e   : > { %262 = vst [vmem:[%s1736_s7 + $0x80] sm:$0xf] %v261_v32  ;;  %v265_v34 = vld [vmem:[%s1731_s6 + $0x110] sm:$0xf]  ;;  %v267_v35 = vld [vmem:[%s1731_s6 + $0x118] sm:$0xf] }
  0x2f   : > { %264 = vst [vmem:[%s1736_s7 + $0x84] sm:$0xf] %v263_v33  ;;  %266 = vst [vmem:[%s1736_s7 + $0x88] sm:$0xf] %v265_v34  ;;  %v269_v36 = vld [vmem:[%s1731_s6 + $0x120] sm:$0xf] }
  0x30   : > { %268 = vst [vmem:[%s1736_s7 + $0x8c] sm:$0xf] %v267_v35  ;;  %v271_v37 = vld [vmem:[%s1731_s6 + $0x128] sm:$0xf]  ;;  %v273_v38 = vld [vmem:[%s1731_s6 + $0x130] sm:$0xf] }
  0x31   : > { %270 = vst [vmem:[%s1736_s7 + $0x90] sm:$0xf] %v269_v36  ;;  %272 = vst [vmem:[%s1736_s7 + $0x94] sm:$0xf] %v271_v37  ;;  %v275_v39 = vld [vmem:[%s1731_s6 + $0x138] sm:$0xf] }
  0x32   : > { %274 = vst [vmem:[%s1736_s7 + $0x98] sm:$0xf] %v273_v38  ;;  %v277_v40 = vld [vmem:[%s1731_s6 + $0x140] sm:$0xf]  ;;  %v279_v41 = vld [vmem:[%s1731_s6 + $0x148] sm:$0xf] }
  0x33   : > { %276 = vst [vmem:[%s1736_s7 + $0x9c] sm:$0xf] %v275_v39  ;;  %278 = vst [vmem:[%s1736_s7 + $0xa0] sm:$0xf] %v277_v40  ;;  %v281_v42 = vld [vmem:[%s1731_s6 + $0x150] sm:$0xf] }
  0x34   : > { %280 = vst [vmem:[%s1736_s7 + $0xa4] sm:$0xf] %v279_v41  ;;  %v283_v43 = vld [vmem:[%s1731_s6 + $0x158] sm:$0xf]  ;;  %v285_v44 = vld [vmem:[%s1731_s6 + $0x160] sm:$0xf] }
  0x35   : > { %282 = vst [vmem:[%s1736_s7 + $0xa8] sm:$0xf] %v281_v42  ;;  %284 = vst [vmem:[%s1736_s7 + $0xac] sm:$0xf] %v283_v43  ;;  %v287_v45 = vld [vmem:[%s1731_s6 + $0x168] sm:$0xf] }
  0x36   : > { %286 = vst [vmem:[%s1736_s7 + $0xb0] sm:$0xf] %v285_v44  ;;  %v289_v46 = vld [vmem:[%s1731_s6 + $0x170] sm:$0xf]  ;;  %v291_v47 = vld [vmem:[%s1731_s6 + $0x178] sm:$0xf] }
  0x37   : > { %288 = vst [vmem:[%s1736_s7 + $0xb4] sm:$0xf] %v287_v45  ;;  %290 = vst [vmem:[%s1736_s7 + $0xb8] sm:$0xf] %v289_v46  ;;  %v293_v48 = vld [vmem:[%s1731_s6 + $0x180] sm:$0xf] }
  0x38   : > { %292 = vst [vmem:[%s1736_s7 + $0xbc] sm:$0xf] %v291_v47  ;;  %v295_v49 = vld [vmem:[%s1731_s6 + $0x188] sm:$0xf]  ;;  %v297_v50 = vld [vmem:[%s1731_s6 + $0x190] sm:$0xf] }
  0x39   : > { %294 = vst [vmem:[%s1736_s7 + $0xc0] sm:$0xf] %v293_v48  ;;  %296 = vst [vmem:[%s1736_s7 + $0xc4] sm:$0xf] %v295_v49  ;;  %v299_v51 = vld [vmem:[%s1731_s6 + $0x198] sm:$0xf] }
  0x3a   : > { %298 = vst [vmem:[%s1736_s7 + $0xc8] sm:$0xf] %v297_v50  ;;  %v301_v52 = vld [vmem:[%s1731_s6 + $0x1a0] sm:$0xf]  ;;  %v303_v53 = vld [vmem:[%s1731_s6 + $0x1a8] sm:$0xf] }
  0x3b   : > { %300 = vst [vmem:[%s1736_s7 + $0xcc] sm:$0xf] %v299_v51  ;;  %302 = vst [vmem:[%s1736_s7 + $0xd0] sm:$0xf] %v301_v52  ;;  %v305_v54 = vld [vmem:[%s1731_s6 + $0x1b0] sm:$0xf] }
  0x3c   : > { %304 = vst [vmem:[%s1736_s7 + $0xd4] sm:$0xf] %v303_v53  ;;  %v307_v55 = vld [vmem:[%s1731_s6 + $0x1b8] sm:$0xf]  ;;  %v309_v56 = vld [vmem:[%s1731_s6 + $0x1c0] sm:$0xf] }
  0x3d   : > { %306 = vst [vmem:[%s1736_s7 + $0xd8] sm:$0xf] %v305_v54  ;;  %308 = vst [vmem:[%s1736_s7 + $0xdc] sm:$0xf] %v307_v55  ;;  %v311_v57 = vld [vmem:[%s1731_s6 + $0x1c8] sm:$0xf] }
  0x3e   : > { %310 = vst [vmem:[%s1736_s7 + $0xe0] sm:$0xf] %v309_v56  ;;  %v313_v58 = vld [vmem:[%s1731_s6 + $0x1d0] sm:$0xf]  ;;  %v315_v59 = vld [vmem:[%s1731_s6 + $0x1d8] sm:$0xf] }
  0x3f   : > { %312 = vst [vmem:[%s1736_s7 + $0xe4] sm:$0xf] %v311_v57  ;;  %314 = vst [vmem:[%s1736_s7 + $0xe8] sm:$0xf] %v313_v58  ;;  %v317_v60 = vld [vmem:[%s1731_s6 + $0x1e0] sm:$0xf] }
  0x40   : > { %316 = vst [vmem:[%s1736_s7 + $0xec] sm:$0xf] %v315_v59  ;;  %v319_v61 = vld [vmem:[%s1731_s6 + $0x1e8] sm:$0xf]  ;;  %v321_v62 = vld [vmem:[%s1731_s6 + $0x1f0] sm:$0xf] }
  0x41   : > { %318 = vst [vmem:[%s1736_s7 + $0xf0] sm:$0xf] %v317_v60  ;;  %320 = vst [vmem:[%s1736_s7 + $0xf4] sm:$0xf] %v319_v61  ;;  %v323_v63 = vld [vmem:[%s1731_s6 + $0x1f8] sm:$0xf] }
  0x42   : > { %322 = vst [vmem:[%s1736_s7 + $0xf8] sm:$0xf] %v321_v62  ;;  %v325_v0 = vld [vmem:[%s1731_s6 + $0x200] sm:$0xf]  ;;  %v327_v1 = vld [vmem:[%s1731_s6 + $0x208] sm:$0xf] }
  0x43   : > { %324 = vst [vmem:[%s1736_s7 + $0xfc] sm:$0xf] %v323_v63  ;;  %326 = vst [vmem:[%s1736_s7 + $0x100] sm:$0xf] %v325_v0  ;;  %v329_v2 = vld [vmem:[%s1731_s6 + $0x210] sm:$0xf] }
  0x44   : > { %328 = vst [vmem:[%s1736_s7 + $0x104] sm:$0xf] %v327_v1  ;;  %v331_v3 = vld [vmem:[%s1731_s6 + $0x218] sm:$0xf]  ;;  %v333_v4 = vld [vmem:[%s1731_s6 + $0x220] sm:$0xf] }
  0x45   : > { %330 = vst [vmem:[%s1736_s7 + $0x108] sm:$0xf] %v329_v2  ;;  %332 = vst [vmem:[%s1736_s7 + $0x10c] sm:$0xf] %v331_v3  ;;  %v335_v5 = vld [vmem:[%s1731_s6 + $0x228] sm:$0xf] }
  0x46   : > { %334 = vst [vmem:[%s1736_s7 + $0x110] sm:$0xf] %v333_v4  ;;  %v337_v6 = vld [vmem:[%s1731_s6 + $0x230] sm:$0xf]  ;;  %v339_v7 = vld [vmem:[%s1731_s6 + $0x238] sm:$0xf] }
  0x47   : > { %336 = vst [vmem:[%s1736_s7 + $0x114] sm:$0xf] %v335_v5  ;;  %338 = vst [vmem:[%s1736_s7 + $0x118] sm:$0xf] %v337_v6  ;;  %v341_v8 = vld [vmem:[%s1731_s6 + $0x240] sm:$0xf] }
  0x48   : > { %340 = vst [vmem:[%s1736_s7 + $0x11c] sm:$0xf] %v339_v7  ;;  %v343_v9 = vld [vmem:[%s1731_s6 + $0x248] sm:$0xf]  ;;  %v345_v10 = vld [vmem:[%s1731_s6 + $0x250] sm:$0xf] }
  0x49   : > { %342 = vst [vmem:[%s1736_s7 + $0x120] sm:$0xf] %v341_v8  ;;  %344 = vst [vmem:[%s1736_s7 + $0x124] sm:$0xf] %v343_v9  ;;  %v347_v11 = vld [vmem:[%s1731_s6 + $0x258] sm:$0xf] }
  0x4a   : > { %346 = vst [vmem:[%s1736_s7 + $0x128] sm:$0xf] %v345_v10  ;;  %v349_v12 = vld [vmem:[%s1731_s6 + $0x260] sm:$0xf]  ;;  %v351_v13 = vld [vmem:[%s1731_s6 + $0x268] sm:$0xf] }
  0x4b   : > { %348 = vst [vmem:[%s1736_s7 + $0x12c] sm:$0xf] %v347_v11  ;;  %350 = vst [vmem:[%s1736_s7 + $0x130] sm:$0xf] %v349_v12  ;;  %v353_v14 = vld [vmem:[%s1731_s6 + $0x270] sm:$0xf] }
  0x4c   : > { %352 = vst [vmem:[%s1736_s7 + $0x134] sm:$0xf] %v351_v13  ;;  %v355_v15 = vld [vmem:[%s1731_s6 + $0x278] sm:$0xf]  ;;  %v357_v16 = vld [vmem:[%s1731_s6 + $0x280] sm:$0xf] }
  0x4d   : > { %354 = vst [vmem:[%s1736_s7 + $0x138] sm:$0xf] %v353_v14  ;;  %356 = vst [vmem:[%s1736_s7 + $0x13c] sm:$0xf] %v355_v15  ;;  %v359_v17 = vld [vmem:[%s1731_s6 + $0x288] sm:$0xf] }
  0x4e   : > { %358 = vst [vmem:[%s1736_s7 + $0x140] sm:$0xf] %v357_v16  ;;  %v361_v18 = vld [vmem:[%s1731_s6 + $0x290] sm:$0xf]  ;;  %v363_v19 = vld [vmem:[%s1731_s6 + $0x298] sm:$0xf] }
  0x4f   : > { %360 = vst [vmem:[%s1736_s7 + $0x144] sm:$0xf] %v359_v17  ;;  %362 = vst [vmem:[%s1736_s7 + $0x148] sm:$0xf] %v361_v18  ;;  %v365_v20 = vld [vmem:[%s1731_s6 + $0x2a0] sm:$0xf] }
  0x50   : > { %364 = vst [vmem:[%s1736_s7 + $0x14c] sm:$0xf] %v363_v19  ;;  %v367_v21 = vld [vmem:[%s1731_s6 + $0x2a8] sm:$0xf]  ;;  %v369_v22 = vld [vmem:[%s1731_s6 + $0x2b0] sm:$0xf] }
  0x51   : > { %366 = vst [vmem:[%s1736_s7 + $0x150] sm:$0xf] %v365_v20  ;;  %368 = vst [vmem:[%s1736_s7 + $0x154] sm:$0xf] %v367_v21  ;;  %v371_v23 = vld [vmem:[%s1731_s6 + $0x2b8] sm:$0xf] }
  0x52   : > { %370 = vst [vmem:[%s1736_s7 + $0x158] sm:$0xf] %v369_v22  ;;  %v373_v24 = vld [vmem:[%s1731_s6 + $0x2c0] sm:$0xf]  ;;  %v375_v25 = vld [vmem:[%s1731_s6 + $0x2c8] sm:$0xf] }
  0x53   : > { %372 = vst [vmem:[%s1736_s7 + $0x15c] sm:$0xf] %v371_v23  ;;  %374 = vst [vmem:[%s1736_s7 + $0x160] sm:$0xf] %v373_v24  ;;  %v377_v26 = vld [vmem:[%s1731_s6 + $0x2d0] sm:$0xf] }
  0x54   : > { %376 = vst [vmem:[%s1736_s7 + $0x164] sm:$0xf] %v375_v25  ;;  %v379_v27 = vld [vmem:[%s1731_s6 + $0x2d8] sm:$0xf]  ;;  %v381_v28 = vld [vmem:[%s1731_s6 + $0x2e0] sm:$0xf] }
  0x55   : > { %378 = vst [vmem:[%s1736_s7 + $0x168] sm:$0xf] %v377_v26  ;;  %380 = vst [vmem:[%s1736_s7 + $0x16c] sm:$0xf] %v379_v27  ;;  %v383_v29 = vld [vmem:[%s1731_s6 + $0x2e8] sm:$0xf] }
  0x56   : > { %382 = vst [vmem:[%s1736_s7 + $0x170] sm:$0xf] %v381_v28  ;;  %v385_v30 = vld [vmem:[%s1731_s6 + $0x2f0] sm:$0xf]  ;;  %v387_v31 = vld [vmem:[%s1731_s6 + $0x2f8] sm:$0xf] }
  0x57   : > { %384 = vst [vmem:[%s1736_s7 + $0x174] sm:$0xf] %v383_v29  ;;  %386 = vst [vmem:[%s1736_s7 + $0x178] sm:$0xf] %v385_v30 }
  0x58   : > { %388 = vst [vmem:[%s1736_s7 + $0x17c] sm:$0xf] %v387_v31 }
  0x59 PF: > { %p1352_p7 = scmp.ge.s32.totalorder %s1648_s18, 1  ;;  %p608_p8 = scmp.lt.s32.totalorder %s1648_s18, 7 }
  0x5b   : > { %p609_p9 = pnand %p1352_p7, %p608_p8 }
  0x5c   : > { %s615_s8 = sand.u32 (!%p609_p9), 1, %s1624_s12   ;;  %s653_s9 = smul.u32 (!%p609_p9), 6, %s1632_s14 }
  0x5d   : > { %612 = sbr.rel (%p609_p9) target bundleno = 410 (0x19a), region = 69  ;;  %p664_p10 = scmp.lt.s32.totalorder (!%p609_p9), %s1636_s15, 1 }
  0x5e   : > { %s1482_s10 = smul.u32 (!%p609_p9), 384, %s615_s8  ;;  %p656_p11 = scmp.lt.s32.totalorder (!%p609_p9), %s653_s9, 17 }
  0x5f   : > { %p1355_p12 = scmp.ne.s32.totalorder (!%p609_p9), %s1632_s14, 0 }
  0x60   : > { %s1950_s4 = scalar_lea.vmem (!%p609_p9), [#allocation3], %s1482_s10 }
  0x64   : > { %s2049_s9 = smov (!%p656_p11, %s653_s9), 17  ;;  %s2051_s15 = smov (!%p664_p10, %s1636_s15), 1 }
  0x65   : > { %s1353_s11 = sshll.u32 %s2049_s9, 2  ;;  %s666_s27 = scalar_lea.vmem %s2034_s2, %s2051_s15  ;;  %v1650_v32 = vmov (!%p1355_p12), 0.0  }
  0x66   : > { %s1938_s23 = scalar_lea.vmem %s2032_s0, %s1353_s11  ;;  %s1354_s12 = sshll.u32 %s2051_s15, 2  ;;  %680 = vst [vmem:[#allocation2] sm:$0xff] (!%p1355_p12), %v1650_v32 }
  0x67   : > { %s1948_s30 = scalar_lea.vmem %s2035_s3, %s1354_s12  ;;  %679 = sbr.rel (%p1355_p12) target bundleno = 110 (0x6e), region = 77 }
  0x6e PF: > { %v1540_v33 = vld [vmem:[%s1950_s4 + $0x40] sm:$0xff]   ;;  %v1544_v37 = vld [vmem:[%s1950_s4 + $0x48] sm:$0xff]   ;;  %v1548_v41 = vld [vmem:[%s1950_s4 + $0x50] sm:$0xff]   ;;  %p1410_p13 = scmp.ne.s32.totalorder %s1632_s14, 2 }
  0x6f   : > { %v1541_v34 = vld [vmem:[%s1950_s4 + $0xc0] sm:$0xff]   ;;  %1415 = vmatprep.subr.bf16.mxu0 %v1540_v33  ;;  %v1545_v38 = vld [vmem:[%s1950_s4 + $0xc8] sm:$0xff]   ;;  %v1549_v42 = vld [vmem:[%s1950_s4 + $0xd0] sm:$0xff]  }
  0x70   : > { %v1542_v35 = vld [vmem:[%s1950_s4] sm:$0xff]   ;;  %1437 = vmatprep.subr.bf16.mxu1 %v1541_v34  ;;  %v1546_v39 = vld [vmem:[%s1950_s4 + $0x8] sm:$0xff]   ;;  %v1550_v43 = vld [vmem:[%s1950_s4 + $0x10] sm:$0xff]  }
  0x71   : > { %v1543_v36 = vld [vmem:[%s1950_s4 + $0x80] sm:$0xff]   ;;  %1416 = vmatpush3.bf16.msra.mxu0 %v1542_v35  ;;  %v1547_v40 = vld [vmem:[%s1950_s4 + $0x88] sm:$0xff]   ;;  %v1551_v44 = vld [vmem:[%s1950_s4 + $0x90] sm:$0xff]  }
  0x72   : > { %1438 = vmatpush3.bf16.msra.mxu1 %v1543_v36  ;;  %1417 = vmatprep.subr.bf16.mxu0 %v1544_v37  ;;  %v1552_v45 = vld [vmem:[%s1950_s4 + $0x58] sm:$0xff]   ;;  %v1556_v49 = vld [vmem:[%s1950_s4 + $0x60] sm:$0xff]   ;;  %v1560_v53 = vld [vmem:[%s1950_s4 + $0x68] sm:$0xff]  }
  0x73   : > { %1439 = vmatprep.subr.bf16.mxu1 %v1545_v38  ;;  %v1553_v46 = vld [vmem:[%s1950_s4 + $0xd8] sm:$0xff]   ;;  %v1557_v50 = vld [vmem:[%s1950_s4 + $0xe0] sm:$0xff]   ;;  %v1561_v54 = vld [vmem:[%s1950_s4 + $0xe8] sm:$0xff]  }
  0x74   : > { %v1554_v47 = vld [vmem:[%s1950_s4 + $0x18] sm:$0xff]   ;;  %v1558_v51 = vld [vmem:[%s1950_s4 + $0x20] sm:$0xff]   ;;  %v1562_v55 = vld [vmem:[%s1950_s4 + $0x28] sm:$0xff]  }
  0x75   : > { %1418 = vmatpush3.bf16.msra.mxu0 %v1546_v39  ;;  %v1555_v48 = vld [vmem:[%s1950_s4 + $0x98] sm:$0xff]   ;;  %v1559_v52 = vld [vmem:[%s1950_s4 + $0xa0] sm:$0xff]   ;;  %v1563_v56 = vld [vmem:[%s1950_s4 + $0xa8] sm:$0xff]  }
  0x76   : > { %1440 = vmatpush3.bf16.msra.mxu1 %v1547_v40  ;;  %1419 = vmatprep.subr.bf16.mxu0 %v1548_v41  ;;  %v1564_v57 = vld [vmem:[%s1950_s4 + $0x70] sm:$0xff]   ;;  %v1568_v61 = vld [vmem:[%s1950_s4 + $0x78] sm:$0xff]   ;;  %v1576_v7 = vld [vmem:[%s1950_s4 + $0x140] sm:$0xff]  }
  0x77   : > { %1441 = vmatprep.subr.bf16.mxu1 %v1549_v42  ;;  %v1565_v58 = vld [vmem:[%s1950_s4 + $0xf0] sm:$0xff]   ;;  %v1569_v62 = vld [vmem:[%s1950_s4 + $0xf8] sm:$0xff]   ;;  %v1577_v8 = vld [vmem:[%s1950_s4 + $0x100] sm:$0xff]  }
  0x78   : > { %v1566_v59 = vld [vmem:[%s1950_s4 + $0x30] sm:$0xff]   ;;  %v1570_v63 = vld [vmem:[%s1950_s4 + $0x38] sm:$0xff]   ;;  %v1578_v9 = vld [vmem:[%s1950_s4 + $0x148] sm:$0xff]  }
  0x79   : > { %1420 = vmatpush3.bf16.msra.mxu0 %v1550_v43  ;;  %v1567_v60 = vld [vmem:[%s1950_s4 + $0xb0] sm:$0xff]   ;;  %v1571_v0 = vld [vmem:[%s1950_s4 + $0xb8] sm:$0xff]   ;;  %v1579_v10 = vld [vmem:[%s1950_s4 + $0x108] sm:$0xff]  }
  0x7a   : > { %1442 = vmatpush3.bf16.msra.mxu1 %v1551_v44  ;;  %1421 = vmatprep.subr.bf16.mxu0 %v1552_v45  ;;  %v682_v1 = vld [vmem:[%s1938_s23] sm:$0xff]  ;;  %v683_v2 = vld [vmem:[%s1938_s23 + $0x8] sm:$0xff]  ;;  %v1584_v15 = vld [vmem:[%s1950_s4 + $0x160] sm:$0xff]  }
  0x7b   : > { %1443 = vmatprep.subr.bf16.mxu1 %v1553_v46  ;;  %v1356_v3 = vcombine.low %v682_v1, %v682_v1  ;;  %v1357_v4 = vcombine.high %v682_v1, %v682_v1  ;;  %v1358_v5 = vcombine.low %v683_v2, %v683_v2  ;;  %v1359_v6 = vcombine.high %v683_v2, %v683_v2  ;;  %v1580_v11 = vld [vmem:[%s1950_s4 + $0x150] sm:$0xff]   ;;  %v1582_v13 = vld [vmem:[%s1950_s4 + $0x158] sm:$0xff]   ;;  %v684_v16 = vld [vmem:[%s1938_s23 + $0x10] sm:$0xff] }
  0x7c   : > { %v1581_v12 = vld [vmem:[%s1950_s4 + $0x110] sm:$0xff]   ;;  %v1583_v14 = vld [vmem:[%s1950_s4 + $0x118] sm:$0xff]   ;;  %v1361_v17 = vcombine.high %v684_v16, %v684_v16  ;;  %v1585_v18 = vld [vmem:[%s1950_s4 + $0x120] sm:$0xff]   ;;  %v1360_v25 = vcombine.low %v684_v16, %v684_v16 }
  0x7d   : > { %1422 = vmatpush3.bf16.msra.mxu0 %v1554_v47  ;;  %1122 = vmatprep.mubr.bf16.mxu0 %v1357_v4  ;;  %v1586_v19 = vld [vmem:[%s1950_s4 + $0x168] sm:$0xff]   ;;  %v1588_v21 = vld [vmem:[%s1950_s4 + $0x170] sm:$0xff]   ;;  %v1590_v23 = vld [vmem:[%s1950_s4 + $0x178] sm:$0xff]  }
  0x7e   : > { %1444 = vmatpush3.bf16.msra.mxu1 %v1555_v48  ;;  %1423 = vmatprep.subr.bf16.mxu0 %v1556_v49  ;;  %v1587_v20 = vld [vmem:[%s1950_s4 + $0x128] sm:$0xff]   ;;  %v1589_v22 = vld [vmem:[%s1950_s4 + $0x130] sm:$0xff]   ;;  %v1591_v24 = vld [vmem:[%s1950_s4 + $0x138] sm:$0xff]  }
  0x7f   : > { %1445 = vmatprep.subr.bf16.mxu1 %v1557_v50  ;;  %1162 = vmatprep.mubr.bf16.mxu1 %v1359_v6  ;;  %v681_v41 = vld [vmem:[#allocation2] sm:$0xff]  ;;  %v1411_v46 = vld [vmem:[%s666_s27] ss:$0 sm:$0xff] (!%p1410_p13) }
  0x81   : > { %1424 = vmatpush3.bf16.msra.mxu0 %v1558_v51 }
  0x82   : > { %1446 = vmatpush3.bf16.msra.mxu1 %v1559_v52  ;;  %1425 = vmatprep.subr.bf16.mxu0 %v1560_v53 }
  0x83   : > { %1447 = vmatprep.subr.bf16.mxu1 %v1561_v54 }
  0x85   : > { %1426 = vmatpush3.bf16.msra.mxu0 %v1562_v55 }
  0x86   : > { %1448 = vmatpush3.bf16.msra.mxu1 %v1563_v56  ;;  %1427 = vmatprep.subr.bf16.mxu0 %v1564_v57 }
  0x87   : > { %1449 = vmatprep.subr.bf16.mxu1 %v1565_v58 }
  0x89   : > { %1428 = vmatpush3.bf16.msra.mxu0 %v1566_v59 }
  0x8a   : > { %1450 = vmatpush3.bf16.msra.mxu1 %v1567_v60  ;;  %1429 = vmatprep.subr.bf16.mxu0 %v1568_v61 }
  0x8b   : > { %1451 = vmatprep.subr.bf16.mxu1 %v1569_v62 }
  0x8d   : > { %1430 = vmatpush3.bf16.msra.mxu0 %v1570_v63 }
  0x8e   : > { %1452 = vmatpush3.bf16.msra.mxu1 %v1571_v0  ;;  %1459 = vmatprep.subr.bf16.mxu0 %v1576_v7 }
  0x90   : > { %1123 = vmatmul.mubr.bf16.vlgmr.msra.gmra.mrb[0].mxu0 %v1356_v3 }
  0x91   : > { %1163 = vmatmul.mubr.bf16.vlgmr.msra.gmra.mrb[0].mxu1 %v1358_v5  ;;  %1460 = vmatpush3.bf16.msra.mxu0 %v1577_v8 }
  0x92   : > { %1461 = vmatprep.subr.bf16.mxu0 %v1578_v9  ;;  %1202 = vmatprep.mubr.bf16.mxu0 %v1361_v17 }
  0x95   : > { %1462 = vmatpush3.bf16.msra.mxu0 %v1579_v10 }
  0x96   : > { %1463 = vmatprep.subr.bf16.mxu0 %v1580_v11 }
  0x99   : > { %1464 = vmatpush3.bf16.msra.mxu0 %v1581_v12 }
  0x9a   : > { %1465 = vmatprep.subr.bf16.mxu0 %v1582_v13 }
  0x9d   : > { %1466 = vmatpush3.bf16.msra.mxu0 %v1583_v14 }
  0x9e   : > { %1467 = vmatprep.subr.bf16.mxu0 %v1584_v15 }
  0xa1   : > { %1468 = vmatpush3.bf16.msra.mxu0 %v1585_v18 }
  0xa2   : > { %1469 = vmatprep.subr.bf16.mxu0 %v1586_v19 }
  0xa5   : > { %1470 = vmatpush3.bf16.msra.mxu0 %v1587_v20 }
  0xa6   : > { %1471 = vmatprep.subr.bf16.mxu0 %v1588_v21 }
  0xa9   : > { %1472 = vmatpush3.bf16.msra.mxu0 %v1589_v22 }
  0xaa   : > { %1473 = vmatprep.subr.bf16.mxu0 %v1590_v23 }
  0xad   : > { %1474 = vmatpush3.bf16.msra.mxu0 %v1591_v24 }
  0xb0   : > { %1203 = vmatmul.mubr.bf16.vlgmr.msra.gmra.mrb[4].mxu0 %v1360_v25 }
 0x163   : > { %v1431_v26 = vpop.f32.mrb[0].mxu0 }
 0x164   : > { %v1453_v27 = vpop.f32.mrb[0].mxu1  ;;  %v1432_v28 = vpop.f32.mrb[1].mxu0 }
 0x165   : > { %v1454_v29 = vpop.f32.mrb[1].mxu1  ;;  %v1433_v30 = vadd.f32 %v1432_v28, %v1431_v26  ;;  %v1434_v32 = vpop.f32.mrb[2].mxu0 }
 0x166   : > { %v1455_v31 = vadd.f32 %v1454_v29, %v1453_v27  ;;  %v1456_v33 = vpop.f32.mrb[2].mxu1  ;;  %v1435_v34 = vpop.f32.mrb[3].mxu0 }
 0x167   : > { %v1457_v35 = vpop.f32.mrb[3].mxu1 }
 0x168   : > { %v1165_v36 = vadd.f32 %v1455_v31, %v1433_v30 }
 0x183   : > { %v1475_v37 = vpop.f32.mrb[4].mxu0 }
 0x184   : > { %v1476_v38 = vpop.f32.mrb[5].mxu0 }
 0x185   : > { %v1477_v39 = vadd.f32 %v1476_v38, %v1475_v37  ;;  %v1478_v40 = vpop.f32.mrb[6].mxu0  ;;  %1215 = sbr.rel (%p1410_p13) target bundleno = 410 (0x19a), region = 81 }
 0x186   : > { %v1479_v42 = vpop.f32.mrb[7].mxu0 }
 0x187   : > { %v1205_v43 = vadd.f32 %v1477_v39, %v1165_v36 }
 0x189   : > { %v1210_v44 = vadd.f32 %v1205_v43, %v681_v41 }
 0x18b   : > { %1211 = vst [vmem:[#allocation2] sm:$0xff] %v1210_v44 }
 0x192   : > { %v1216_v45 = vld [vmem:[#allocation2] sm:$0xff] }
 0x193   : > { %v1224_v47 = vadd.f32 %v1411_v46, %v1216_v45 }
 0x195   : > { %v1225_v48 = vmax.f32 %v1224_v47, 0.0 }
 0x197   : > { %v1226_v49 = vpack.c.bf16 %v1225_v48, %v1225_v48 }
 0x199   : > { %1227 = vst [vmem:[%s1948_s30] sm:$0xf] %v1226_v49 }
 0x19a PF: > { %s13_s18 = sadd.s32 1, %s1648_s18   ;;  %s2036_s12 = smov %s1628_s13 }
 0x19b   : > { %p10_p0 = scmp.ge.s32.totalorder %s13_s18, 8   ;;  %s2037_s13 = smov %s1722_s25 }
 0x19c   : > { %s2038_s14 = smov %s1640_s16  ;;  %s2039_s15 = smov %s1644_s17 }
 0x19d   : > { %s2040_s16 = smov %s2043_s19  ;;  %s2041_s17 = smov %s2047_s20 }
 0x19e   :  { %12 = sbr.rel (!%p10_p0) target bundleno = 4 (0x4), region = 122 }

// kernel: _lambda_.68
= control target key start
LH: loop header
LB: loop body
LE: loop exit
PB: predicated region body
PF: predicated region fallthrough
CT: control target
= control target key end

     0   :  { %s1974_s12 = smov 0   ;;  %s1976_s13 = smov 0   ;;  %s2388_s0 = inlined_call_operand.vmem [shape: bf16[8,2304], index: 0, kind: input, shape index: {}]   ;;  %s2389_s1 = inlined_call_operand.vmem [shape: bf16[2304,512], index: 1, kind: input, shape index: {}]   ;;  %s2390_s2 = inlined_call_operand.vmem [shape: f32[1,512], index: 2, kind: input, shape index: {}]   ;;  %s2391_s3 = inlined_call_operand.vmem [shape: bf16[8,512], index: 3, kind: output, shape index: {}]  }
   0x1   :  { %s1978_s14 = smov 0   ;;  %s1980_s15 = smov 0  }
   0x2   :  { %s1982_s16 = smov 0   ;;  %s1984_s17 = smov 0  }
   0x3   :  { %s1986_s18 = smov 0  }
   0x4 LB: > { %s25_s19 = sadd.s32 1, %s1943_s16  ;;  %s28_s20 = sadd.s32 1, %s1947_s17  ;;  %s1951_s18 = sphi %s1986_s18, %s13_s18   ;;  %s1947_s17 = sphi %s1984_s17, %s2397_s17   ;;  %s1943_s16 = sphi %s1982_s16, %s2396_s16   ;;  %s1939_s15 = sphi %s1980_s15, %s2395_s15   ;;  %s1935_s14 = sphi %s1978_s14, %s2394_s14   ;;  %s1931_s13 = sphi %s1976_s13, %s2393_s13   ;;  %s1927_s12 = sphi %s1974_s12, %s2392_s12  }
   0x5   : > { %p26_p0 = scmp.ge.s32.totalorder %s25_s19, 3  ;;  %p76_p1 = scmp.ne.s32.totalorder %s1931_s13, %s1927_s12 }
   0x6   : > { %p77_p2 = scmp.eq.s32.totalorder %s1951_s18, 0  ;;  %s69_s24 = sadd.s32 1, %s1931_s13 }
   0x7   : > { %s2399_s19 = smov (%p26_p0, %s25_s19), 0  ;;  %s2401_s20 = smov (!%p26_p0, %s28_s20), %s1947_s17 }
   0x8   : > { %p78_p3 = por %p77_p2, %p76_p1  ;;  %p30_p4 = scmp.ge.s32.totalorder %s2401_s20, 2 }
   0x9   : > { %s64_s21 = ssub.s32 %s1943_s16, %s2399_s19  ;;  %p1570_p6 = scmp.ge.s32.totalorder %s1951_s18, 6 }
   0xa   : > { %s2403_s20 = smov (%p30_p4, %s2401_s20), 0 }
   0xb   : > { %s65_s22 = ssub.s32 %s1947_s17, %s2403_s20  ;;  %156 = sbr.rel (%p1570_p6) target bundleno = 74 (0x4a), region = 16 }
   0xc   : > { %s66_s23 = sor.u32 %s65_s22, %s64_s21 }
   0xd   : > { %p67_p5 = scmp.eq.s32.totalorder %s66_s23, 0 }
   0xf   : > { %s2025_s25 = scalar_select %p67_p5, %s1931_s13, %s69_s24  }
  0x12   : > { %172 = sbr.rel (!%p78_p3) target bundleno = 74 (0x4a), region = 24  ;;  %s174_s26 = sand.u32 (%p78_p3), 1, %s1931_s13  }
  0x13   : > { %s1688_s27 = smul.u32 (%p78_p3), 768, %s174_s26  ;;  %s1571_s28 = sshll.u32 (%p78_p3), %s1947_s17, 1 }
  0x14   : > { %s1686_s29 = smul.u32 (%p78_p3), 384, %s1943_s16 }
  0x15   : > { %s2039_s8 = scalar_lea.vmem (%p78_p3), [#allocation3], %s1688_s27 }
  0x16   : > { %s180_s30 = sadd.s32 (%p78_p3), %s1686_s29, %s1571_s28 }
  0x17   : > { %s1573_s4 = sshll.u32 (%p78_p3), %s180_s30, 2 }
  0x18   : > { %s2034_s7 = scalar_lea.vmem (%p78_p3), %s2389_s1, %s1573_s4 }
  0x19   : > { %v400_v0 = vld [vmem:[%s2034_s7] sm:$0xff]  ;;  %v402_v1 = vld [vmem:[%s2034_s7 + $0x10] sm:$0xff] }
  0x1a   : > { %v404_v2 = vld [vmem:[%s2034_s7 + $0x20] sm:$0xff]  ;;  %401 = vst [vmem:[%s2039_s8] sm:$0xff] %v400_v0  ;;  %403 = vst [vmem:[%s2039_s8 + $0x8] sm:$0xff] %v402_v1  ;;  %v406_v3 = vld [vmem:[%s2034_s7 + $0x30] sm:$0xff] }
  0x1b   : > { %405 = vst [vmem:[%s2039_s8 + $0x10] sm:$0xff] %v404_v2  ;;  %v408_v4 = vld [vmem:[%s2034_s7 + $0x40] sm:$0xff]  ;;  %v410_v5 = vld [vmem:[%s2034_s7 + $0x50] sm:$0xff]  ;;  %407 = vst [vmem:[%s2039_s8 + $0x18] sm:$0xff] %v406_v3 }
  0x1c   : > { %409 = vst [vmem:[%s2039_s8 + $0x20] sm:$0xff] %v408_v4  ;;  %411 = vst [vmem:[%s2039_s8 + $0x28] sm:$0xff] %v410_v5  ;;  %v412_v6 = vld [vmem:[%s2034_s7 + $0x60] sm:$0xff]  ;;  %v414_v7 = vld [vmem:[%s2034_s7 + $0x70] sm:$0xff] }
  0x1d   : > { %v416_v8 = vld [vmem:[%s2034_s7 + $0x80] sm:$0xff]  ;;  %413 = vst [vmem:[%s2039_s8 + $0x30] sm:$0xff] %v412_v6  ;;  %415 = vst [vmem:[%s2039_s8 + $0x38] sm:$0xff] %v414_v7  ;;  %v418_v9 = vld [vmem:[%s2034_s7 + $0x90] sm:$0xff] }
  0x1e   : > { %417 = vst [vmem:[%s2039_s8 + $0x40] sm:$0xff] %v416_v8  ;;  %v420_v10 = vld [vmem:[%s2034_s7 + $0xa0] sm:$0xff]  ;;  %v422_v11 = vld [vmem:[%s2034_s7 + $0xb0] sm:$0xff]  ;;  %419 = vst [vmem:[%s2039_s8 + $0x48] sm:$0xff] %v418_v9 }
  0x1f   : > { %421 = vst [vmem:[%s2039_s8 + $0x50] sm:$0xff] %v420_v10  ;;  %423 = vst [vmem:[%s2039_s8 + $0x58] sm:$0xff] %v422_v11  ;;  %v424_v12 = vld [vmem:[%s2034_s7 + $0xc0] sm:$0xff]  ;;  %v426_v13 = vld [vmem:[%s2034_s7 + $0xd0] sm:$0xff] }
  0x20   : > { %v428_v14 = vld [vmem:[%s2034_s7 + $0xe0] sm:$0xff]  ;;  %425 = vst [vmem:[%s2039_s8 + $0x60] sm:$0xff] %v424_v12  ;;  %427 = vst [vmem:[%s2039_s8 + $0x68] sm:$0xff] %v426_v13  ;;  %v430_v15 = vld [vmem:[%s2034_s7 + $0xf0] sm:$0xff] }
  0x21   : > { %429 = vst [vmem:[%s2039_s8 + $0x70] sm:$0xff] %v428_v14  ;;  %v432_v16 = vld [vmem:[%s2034_s7 + $0x100] sm:$0xff]  ;;  %v434_v17 = vld [vmem:[%s2034_s7 + $0x110] sm:$0xff]  ;;  %431 = vst [vmem:[%s2039_s8 + $0x78] sm:$0xff] %v430_v15 }
  0x22   : > { %433 = vst [vmem:[%s2039_s8 + $0x80] sm:$0xff] %v432_v16  ;;  %435 = vst [vmem:[%s2039_s8 + $0x88] sm:$0xff] %v434_v17  ;;  %v436_v18 = vld [vmem:[%s2034_s7 + $0x120] sm:$0xff]  ;;  %v438_v19 = vld [vmem:[%s2034_s7 + $0x130] sm:$0xff] }
  0x23   : > { %v440_v20 = vld [vmem:[%s2034_s7 + $0x140] sm:$0xff]  ;;  %437 = vst [vmem:[%s2039_s8 + $0x90] sm:$0xff] %v436_v18  ;;  %439 = vst [vmem:[%s2039_s8 + $0x98] sm:$0xff] %v438_v19  ;;  %v442_v21 = vld [vmem:[%s2034_s7 + $0x150] sm:$0xff] }
  0x24   : > { %441 = vst [vmem:[%s2039_s8 + $0xa0] sm:$0xff] %v440_v20  ;;  %v444_v22 = vld [vmem:[%s2034_s7 + $0x160] sm:$0xff]  ;;  %v446_v23 = vld [vmem:[%s2034_s7 + $0x170] sm:$0xff]  ;;  %443 = vst [vmem:[%s2039_s8 + $0xa8] sm:$0xff] %v442_v21 }
  0x25   : > { %445 = vst [vmem:[%s2039_s8 + $0xb0] sm:$0xff] %v444_v22  ;;  %447 = vst [vmem:[%s2039_s8 + $0xb8] sm:$0xff] %v446_v23  ;;  %v448_v24 = vld [vmem:[%s2034_s7 + $0x180] sm:$0xff]  ;;  %v450_v25 = vld [vmem:[%s2034_s7 + $0x190] sm:$0xff] }
  0x26   : > { %v452_v26 = vld [vmem:[%s2034_s7 + $0x1a0] sm:$0xff]  ;;  %449 = vst [vmem:[%s2039_s8 + $0xc0] sm:$0xff] %v448_v24  ;;  %451 = vst [vmem:[%s2039_s8 + $0xc8] sm:$0xff] %v450_v25  ;;  %v454_v27 = vld [vmem:[%s2034_s7 + $0x1b0] sm:$0xff] }
  0x27   : > { %453 = vst [vmem:[%s2039_s8 + $0xd0] sm:$0xff] %v452_v26  ;;  %v456_v28 = vld [vmem:[%s2034_s7 + $0x1c0] sm:$0xff]  ;;  %v458_v29 = vld [vmem:[%s2034_s7 + $0x1d0] sm:$0xff]  ;;  %455 = vst [vmem:[%s2039_s8 + $0xd8] sm:$0xff] %v454_v27 }
  0x28   : > { %457 = vst [vmem:[%s2039_s8 + $0xe0] sm:$0xff] %v456_v28  ;;  %459 = vst [vmem:[%s2039_s8 + $0xe8] sm:$0xff] %v458_v29  ;;  %v460_v30 = vld [vmem:[%s2034_s7 + $0x1e0] sm:$0xff]  ;;  %v462_v31 = vld [vmem:[%s2034_s7 + $0x1f0] sm:$0xff] }
  0x29   : > { %v464_v32 = vld [vmem:[%s2034_s7 + $0x200] sm:$0xff]  ;;  %461 = vst [vmem:[%s2039_s8 + $0xf0] sm:$0xff] %v460_v30  ;;  %463 = vst [vmem:[%s2039_s8 + $0xf8] sm:$0xff] %v462_v31  ;;  %v466_v33 = vld [vmem:[%s2034_s7 + $0x210] sm:$0xff] }
  0x2a   : > { %465 = vst [vmem:[%s2039_s8 + $0x100] sm:$0xff] %v464_v32  ;;  %v468_v34 = vld [vmem:[%s2034_s7 + $0x220] sm:$0xff]  ;;  %v470_v35 = vld [vmem:[%s2034_s7 + $0x230] sm:$0xff]  ;;  %467 = vst [vmem:[%s2039_s8 + $0x108] sm:$0xff] %v466_v33 }
  0x2b   : > { %469 = vst [vmem:[%s2039_s8 + $0x110] sm:$0xff] %v468_v34  ;;  %471 = vst [vmem:[%s2039_s8 + $0x118] sm:$0xff] %v470_v35  ;;  %v472_v36 = vld [vmem:[%s2034_s7 + $0x240] sm:$0xff]  ;;  %v474_v37 = vld [vmem:[%s2034_s7 + $0x250] sm:$0xff] }
  0x2c   : > { %v476_v38 = vld [vmem:[%s2034_s7 + $0x260] sm:$0xff]  ;;  %473 = vst [vmem:[%s2039_s8 + $0x120] sm:$0xff] %v472_v36  ;;  %475 = vst [vmem:[%s2039_s8 + $0x128] sm:$0xff] %v474_v37  ;;  %v478_v39 = vld [vmem:[%s2034_s7 + $0x270] sm:$0xff] }
  0x2d   : > { %477 = vst [vmem:[%s2039_s8 + $0x130] sm:$0xff] %v476_v38  ;;  %v480_v40 = vld [vmem:[%s2034_s7 + $0x280] sm:$0xff]  ;;  %v482_v41 = vld [vmem:[%s2034_s7 + $0x290] sm:$0xff]  ;;  %479 = vst [vmem:[%s2039_s8 + $0x138] sm:$0xff] %v478_v39 }
  0x2e   : > { %481 = vst [vmem:[%s2039_s8 + $0x140] sm:$0xff] %v480_v40  ;;  %483 = vst [vmem:[%s2039_s8 + $0x148] sm:$0xff] %v482_v41  ;;  %v484_v42 = vld [vmem:[%s2034_s7 + $0x2a0] sm:$0xff]  ;;  %v486_v43 = vld [vmem:[%s2034_s7 + $0x2b0] sm:$0xff] }
  0x2f   : > { %v488_v44 = vld [vmem:[%s2034_s7 + $0x2c0] sm:$0xff]  ;;  %485 = vst [vmem:[%s2039_s8 + $0x150] sm:$0xff] %v484_v42  ;;  %487 = vst [vmem:[%s2039_s8 + $0x158] sm:$0xff] %v486_v43  ;;  %v490_v45 = vld [vmem:[%s2034_s7 + $0x2d0] sm:$0xff] }
  0x30   : > { %489 = vst [vmem:[%s2039_s8 + $0x160] sm:$0xff] %v488_v44  ;;  %v492_v46 = vld [vmem:[%s2034_s7 + $0x2e0] sm:$0xff]  ;;  %v494_v47 = vld [vmem:[%s2034_s7 + $0x2f0] sm:$0xff]  ;;  %491 = vst [vmem:[%s2039_s8 + $0x168] sm:$0xff] %v490_v45 }
  0x31   : > { %493 = vst [vmem:[%s2039_s8 + $0x170] sm:$0xff] %v492_v46  ;;  %495 = vst [vmem:[%s2039_s8 + $0x178] sm:$0xff] %v494_v47  ;;  %v496_v48 = vld [vmem:[%s2034_s7 + $0x300] sm:$0xff]  ;;  %v498_v49 = vld [vmem:[%s2034_s7 + $0x310] sm:$0xff] }
  0x32   : > { %v500_v50 = vld [vmem:[%s2034_s7 + $0x320] sm:$0xff]  ;;  %497 = vst [vmem:[%s2039_s8 + $0x180] sm:$0xff] %v496_v48  ;;  %499 = vst [vmem:[%s2039_s8 + $0x188] sm:$0xff] %v498_v49  ;;  %v502_v51 = vld [vmem:[%s2034_s7 + $0x330] sm:$0xff] }
  0x33   : > { %501 = vst [vmem:[%s2039_s8 + $0x190] sm:$0xff] %v500_v50  ;;  %v504_v52 = vld [vmem:[%s2034_s7 + $0x340] sm:$0xff]  ;;  %v506_v53 = vld [vmem:[%s2034_s7 + $0x350] sm:$0xff]  ;;  %503 = vst [vmem:[%s2039_s8 + $0x198] sm:$0xff] %v502_v51 }
  0x34   : > { %505 = vst [vmem:[%s2039_s8 + $0x1a0] sm:$0xff] %v504_v52  ;;  %507 = vst [vmem:[%s2039_s8 + $0x1a8] sm:$0xff] %v506_v53  ;;  %v508_v54 = vld [vmem:[%s2034_s7 + $0x360] sm:$0xff]  ;;  %v510_v55 = vld [vmem:[%s2034_s7 + $0x370] sm:$0xff] }
  0x35   : > { %v512_v56 = vld [vmem:[%s2034_s7 + $0x380] sm:$0xff]  ;;  %509 = vst [vmem:[%s2039_s8 + $0x1b0] sm:$0xff] %v508_v54  ;;  %511 = vst [vmem:[%s2039_s8 + $0x1b8] sm:$0xff] %v510_v55  ;;  %v514_v57 = vld [vmem:[%s2034_s7 + $0x390] sm:$0xff] }
  0x36   : > { %513 = vst [vmem:[%s2039_s8 + $0x1c0] sm:$0xff] %v512_v56  ;;  %v516_v58 = vld [vmem:[%s2034_s7 + $0x3a0] sm:$0xff]  ;;  %v518_v59 = vld [vmem:[%s2034_s7 + $0x3b0] sm:$0xff]  ;;  %515 = vst [vmem:[%s2039_s8 + $0x1c8] sm:$0xff] %v514_v57 }
  0x37   : > { %517 = vst [vmem:[%s2039_s8 + $0x1d0] sm:$0xff] %v516_v58  ;;  %519 = vst [vmem:[%s2039_s8 + $0x1d8] sm:$0xff] %v518_v59  ;;  %v520_v60 = vld [vmem:[%s2034_s7 + $0x3c0] sm:$0xff]  ;;  %v522_v61 = vld [vmem:[%s2034_s7 + $0x3d0] sm:$0xff] }
  0x38   : > { %v524_v62 = vld [vmem:[%s2034_s7 + $0x3e0] sm:$0xff]  ;;  %521 = vst [vmem:[%s2039_s8 + $0x1e0] sm:$0xff] %v520_v60  ;;  %523 = vst [vmem:[%s2039_s8 + $0x1e8] sm:$0xff] %v522_v61  ;;  %v526_v63 = vld [vmem:[%s2034_s7 + $0x3f0] sm:$0xff] }
  0x39   : > { %525 = vst [vmem:[%s2039_s8 + $0x1f0] sm:$0xff] %v524_v62  ;;  %v528_v0 = vld [vmem:[%s2034_s7 + $0x400] sm:$0xff]  ;;  %v530_v1 = vld [vmem:[%s2034_s7 + $0x410] sm:$0xff]  ;;  %527 = vst [vmem:[%s2039_s8 + $0x1f8] sm:$0xff] %v526_v63 }
  0x3a   : > { %529 = vst [vmem:[%s2039_s8 + $0x200] sm:$0xff] %v528_v0  ;;  %531 = vst [vmem:[%s2039_s8 + $0x208] sm:$0xff] %v530_v1  ;;  %v532_v2 = vld [vmem:[%s2034_s7 + $0x420] sm:$0xff]  ;;  %v534_v3 = vld [vmem:[%s2034_s7 + $0x430] sm:$0xff] }
  0x3b   : > { %v536_v4 = vld [vmem:[%s2034_s7 + $0x440] sm:$0xff]  ;;  %533 = vst [vmem:[%s2039_s8 + $0x210] sm:$0xff] %v532_v2  ;;  %535 = vst [vmem:[%s2039_s8 + $0x218] sm:$0xff] %v534_v3  ;;  %v538_v5 = vld [vmem:[%s2034_s7 + $0x450] sm:$0xff] }
  0x3c   : > { %537 = vst [vmem:[%s2039_s8 + $0x220] sm:$0xff] %v536_v4  ;;  %v540_v6 = vld [vmem:[%s2034_s7 + $0x460] sm:$0xff]  ;;  %v542_v7 = vld [vmem:[%s2034_s7 + $0x470] sm:$0xff]  ;;  %539 = vst [vmem:[%s2039_s8 + $0x228] sm:$0xff] %v538_v5 }
  0x3d   : > { %541 = vst [vmem:[%s2039_s8 + $0x230] sm:$0xff] %v540_v6  ;;  %543 = vst [vmem:[%s2039_s8 + $0x238] sm:$0xff] %v542_v7  ;;  %v544_v8 = vld [vmem:[%s2034_s7 + $0x480] sm:$0xff]  ;;  %v546_v9 = vld [vmem:[%s2034_s7 + $0x490] sm:$0xff] }
  0x3e   : > { %v548_v10 = vld [vmem:[%s2034_s7 + $0x4a0] sm:$0xff]  ;;  %545 = vst [vmem:[%s2039_s8 + $0x240] sm:$0xff] %v544_v8  ;;  %547 = vst [vmem:[%s2039_s8 + $0x248] sm:$0xff] %v546_v9  ;;  %v550_v11 = vld [vmem:[%s2034_s7 + $0x4b0] sm:$0xff] }
  0x3f   : > { %549 = vst [vmem:[%s2039_s8 + $0x250] sm:$0xff] %v548_v10  ;;  %v552_v12 = vld [vmem:[%s2034_s7 + $0x4c0] sm:$0xff]  ;;  %v554_v13 = vld [vmem:[%s2034_s7 + $0x4d0] sm:$0xff]  ;;  %551 = vst [vmem:[%s2039_s8 + $0x258] sm:$0xff] %v550_v11 }
  0x40   : > { %553 = vst [vmem:[%s2039_s8 + $0x260] sm:$0xff] %v552_v12  ;;  %555 = vst [vmem:[%s2039_s8 + $0x268] sm:$0xff] %v554_v13  ;;  %v556_v14 = vld [vmem:[%s2034_s7 + $0x4e0] sm:$0xff]  ;;  %v558_v15 = vld [vmem:[%s2034_s7 + $0x4f0] sm:$0xff] }
  0x41   : > { %v560_v16 = vld [vmem:[%s2034_s7 + $0x500] sm:$0xff]  ;;  %557 = vst [vmem:[%s2039_s8 + $0x270] sm:$0xff] %v556_v14  ;;  %559 = vst [vmem:[%s2039_s8 + $0x278] sm:$0xff] %v558_v15  ;;  %v562_v17 = vld [vmem:[%s2034_s7 + $0x510] sm:$0xff] }
  0x42   : > { %561 = vst [vmem:[%s2039_s8 + $0x280] sm:$0xff] %v560_v16  ;;  %v564_v18 = vld [vmem:[%s2034_s7 + $0x520] sm:$0xff]  ;;  %v566_v19 = vld [vmem:[%s2034_s7 + $0x530] sm:$0xff]  ;;  %563 = vst [vmem:[%s2039_s8 + $0x288] sm:$0xff] %v562_v17 }
  0x43   : > { %565 = vst [vmem:[%s2039_s8 + $0x290] sm:$0xff] %v564_v18  ;;  %567 = vst [vmem:[%s2039_s8 + $0x298] sm:$0xff] %v566_v19  ;;  %v568_v20 = vld [vmem:[%s2034_s7 + $0x540] sm:$0xff]  ;;  %v570_v21 = vld [vmem:[%s2034_s7 + $0x550] sm:$0xff] }
  0x44   : > { %v572_v22 = vld [vmem:[%s2034_s7 + $0x560] sm:$0xff]  ;;  %569 = vst [vmem:[%s2039_s8 + $0x2a0] sm:$0xff] %v568_v20  ;;  %571 = vst [vmem:[%s2039_s8 + $0x2a8] sm:$0xff] %v570_v21  ;;  %v574_v23 = vld [vmem:[%s2034_s7 + $0x570] sm:$0xff] }
  0x45   : > { %573 = vst [vmem:[%s2039_s8 + $0x2b0] sm:$0xff] %v572_v22  ;;  %v576_v24 = vld [vmem:[%s2034_s7 + $0x580] sm:$0xff]  ;;  %v578_v25 = vld [vmem:[%s2034_s7 + $0x590] sm:$0xff]  ;;  %575 = vst [vmem:[%s2039_s8 + $0x2b8] sm:$0xff] %v574_v23 }
  0x46   : > { %577 = vst [vmem:[%s2039_s8 + $0x2c0] sm:$0xff] %v576_v24  ;;  %579 = vst [vmem:[%s2039_s8 + $0x2c8] sm:$0xff] %v578_v25  ;;  %v580_v26 = vld [vmem:[%s2034_s7 + $0x5a0] sm:$0xff]  ;;  %v582_v27 = vld [vmem:[%s2034_s7 + $0x5b0] sm:$0xff] }
  0x47   : > { %v584_v28 = vld [vmem:[%s2034_s7 + $0x5c0] sm:$0xff]  ;;  %581 = vst [vmem:[%s2039_s8 + $0x2d0] sm:$0xff] %v580_v26  ;;  %583 = vst [vmem:[%s2039_s8 + $0x2d8] sm:$0xff] %v582_v27  ;;  %v586_v29 = vld [vmem:[%s2034_s7 + $0x5d0] sm:$0xff] }
  0x48   : > { %585 = vst [vmem:[%s2039_s8 + $0x2e0] sm:$0xff] %v584_v28  ;;  %v588_v30 = vld [vmem:[%s2034_s7 + $0x5e0] sm:$0xff]  ;;  %v590_v31 = vld [vmem:[%s2034_s7 + $0x5f0] sm:$0xff]  ;;  %587 = vst [vmem:[%s2039_s8 + $0x2e8] sm:$0xff] %v586_v29 }
  0x49   : > { %589 = vst [vmem:[%s2039_s8 + $0x2f0] sm:$0xff] %v588_v30  ;;  %591 = vst [vmem:[%s2039_s8 + $0x2f8] sm:$0xff] %v590_v31 }
  0x4a PF: > { %p1574_p7 = scmp.ge.s32.totalorder %s1951_s18, 1  ;;  %p604_p8 = scmp.lt.s32.totalorder %s1951_s18, 7 }
  0x4c   : > { %p605_p9 = pnand %p1574_p7, %p604_p8 }
  0x4d   : > { %s611_s9 = sand.u32 (!%p605_p9), 1, %s1927_s12   ;;  %s651_s10 = smul.u32 (!%p605_p9), 6, %s1935_s14 }
  0x4e   : > { %608 = sbr.rel (%p605_p9) target bundleno = 456 (0x1c8), region = 66  ;;  %s1576_s21 = sshll.u32 (!%p605_p9), %s1939_s15, 1 }
  0x4f   : > { %s1689_s11 = smul.u32 (!%p605_p9), 768, %s611_s9  ;;  %p654_p10 = scmp.lt.s32.totalorder (!%p605_p9), %s651_s10, 17 }
  0x50   : > { %p664_p11 = scmp.lt.s32.totalorder (!%p605_p9), %s1576_s21, 3  ;;  %p1579_p12 = scmp.ne.s32.totalorder (!%p605_p9), %s1935_s14, 0 }
  0x51   : > { %s2252_s5 = scalar_lea.vmem (!%p605_p9), [#allocation3], %s1689_s11 }
  0x55   : > { %s2405_s10 = smov (!%p654_p10, %s651_s10), 17  ;;  %s2407_s21 = smov (!%p664_p11, %s1576_s21), 3 }
  0x56   : > { %s1575_s22 = sshll.u32 %s2405_s10, 2  ;;  %s666_s12 = scalar_lea.vmem %s2390_s2, %s2407_s21  ;;  %v1953_v32 = vmov (!%p1579_p12), 0.0  }
  0x57   : > { %s2240_s26 = scalar_lea.vmem %s2388_s0, %s1575_s22  ;;  %s1578_s29 = sshll.u32 %s2407_s21, 2  ;;  %682 = vst [vmem:[#allocation2] sm:$0xff] (!%p1579_p12), %v1953_v32  ;;  %683 = vst [vmem:[#allocation2 + $0x8] sm:$0xff] (!%p1579_p12), %v1953_v32 }
  0x58   : > { %s2250_s4 = scalar_lea.vmem %s2391_s3, %s1578_s29  ;;  %681 = sbr.rel (%p1579_p12) target bundleno = 95 (0x5f), region = 74 }
  0x5f PF: > { %v1747_v33 = vld [vmem:[%s2252_s5 + $0x4] ss:$8 sps:$4 sm:$0xff]   ;;  %v1751_v35 = vld [vmem:[%s2252_s5] ss:$8 sps:$4 sm:$0xff]   ;;  %v1753_v37 = vld [vmem:[%s2252_s5 + $0x14] ss:$8 sps:$4 sm:$0xff]  }
  0x60   : > { %v1749_v34 = vld [vmem:[%s2252_s5 + $0x104] ss:$8 sps:$4 sm:$0xff]   ;;  %1286 = vmatprep.subr.bf16.mxu0 %v1747_v33  ;;  %v1752_v36 = vld [vmem:[%s2252_s5 + $0x100] ss:$8 sps:$4 sm:$0xff]   ;;  %v1755_v38 = vld [vmem:[%s2252_s5 + $0x114] ss:$8 sps:$4 sm:$0xff]  }
  0x61   : > { %1327 = vmatprep.subr.bf16.mxu1 %v1749_v34  ;;  %1287 = vmatpush1.bf16.msra.mxu0 %v1751_v35  ;;  %v1757_v39 = vld [vmem:[%s2252_s5 + $0x10] ss:$8 sps:$4 sm:$0xff]   ;;  %v1759_v41 = vld [vmem:[%s2252_s5 + $0x24] ss:$8 sps:$4 sm:$0xff]   ;;  %v1763_v43 = vld [vmem:[%s2252_s5 + $0x20] ss:$8 sps:$4 sm:$0xff]  }
  0x62   : > { %1328 = vmatpush1.bf16.msra.mxu1 %v1752_v36  ;;  %1288 = vmatprep.subr.bf16.mxu0 %v1753_v37  ;;  %v1758_v40 = vld [vmem:[%s2252_s5 + $0x110] ss:$8 sps:$4 sm:$0xff]   ;;  %v1761_v42 = vld [vmem:[%s2252_s5 + $0x124] ss:$8 sps:$4 sm:$0xff]   ;;  %v1764_v44 = vld [vmem:[%s2252_s5 + $0x120] ss:$8 sps:$4 sm:$0xff]  }
  0x63   : > { %1329 = vmatprep.subr.bf16.mxu1 %v1755_v38  ;;  %v1765_v45 = vld [vmem:[%s2252_s5 + $0x34] ss:$8 sps:$4 sm:$0xff]   ;;  %v1769_v47 = vld [vmem:[%s2252_s5 + $0x30] ss:$8 sps:$4 sm:$0xff]   ;;  %v1771_v49 = vld [vmem:[%s2252_s5 + $0x44] ss:$8 sps:$4 sm:$0xff]  }
  0x64   : > { %v1767_v46 = vld [vmem:[%s2252_s5 + $0x134] ss:$8 sps:$4 sm:$0xff]   ;;  %v1770_v48 = vld [vmem:[%s2252_s5 + $0x130] ss:$8 sps:$4 sm:$0xff]   ;;  %v1773_v50 = vld [vmem:[%s2252_s5 + $0x144] ss:$8 sps:$4 sm:$0xff]  }
  0x65   : > { %1289 = vmatpush1.bf16.msra.mxu0 %v1757_v39  ;;  %v1775_v51 = vld [vmem:[%s2252_s5 + $0x40] ss:$8 sps:$4 sm:$0xff]   ;;  %v1777_v53 = vld [vmem:[%s2252_s5 + $0x54] ss:$8 sps:$4 sm:$0xff]   ;;  %v1781_v55 = vld [vmem:[%s2252_s5 + $0x50] ss:$8 sps:$4 sm:$0xff]  }
  0x66   : > { %1330 = vmatpush1.bf16.msra.mxu1 %v1758_v40  ;;  %1290 = vmatprep.subr.bf16.mxu0 %v1759_v41  ;;  %v1776_v52 = vld [vmem:[%s2252_s5 + $0x140] ss:$8 sps:$4 sm:$0xff]   ;;  %v1779_v54 = vld [vmem:[%s2252_s5 + $0x154] ss:$8 sps:$4 sm:$0xff]   ;;  %v1782_v56 = vld [vmem:[%s2252_s5 + $0x150] ss:$8 sps:$4 sm:$0xff]  }
  0x67   : > { %1331 = vmatprep.subr.bf16.mxu1 %v1761_v42  ;;  %v1783_v57 = vld [vmem:[%s2252_s5 + $0x64] ss:$8 sps:$4 sm:$0xff]   ;;  %v1787_v59 = vld [vmem:[%s2252_s5 + $0x60] ss:$8 sps:$4 sm:$0xff]   ;;  %v1789_v61 = vld [vmem:[%s2252_s5 + $0x74] ss:$8 sps:$4 sm:$0xff]  }
  0x68   : > { %v1785_v58 = vld [vmem:[%s2252_s5 + $0x164] ss:$8 sps:$4 sm:$0xff]   ;;  %v1788_v60 = vld [vmem:[%s2252_s5 + $0x160] ss:$8 sps:$4 sm:$0xff]   ;;  %v1791_v62 = vld [vmem:[%s2252_s5 + $0x174] ss:$8 sps:$4 sm:$0xff]  }
  0x69   : > { %1291 = vmatpush1.bf16.msra.mxu0 %v1763_v43  ;;  %v1793_v63 = vld [vmem:[%s2252_s5 + $0x70] ss:$8 sps:$4 sm:$0xff]   ;;  %v1795_v1 = vld [vmem:[%s2252_s5 + $0x84] ss:$8 sps:$4 sm:$0xff]   ;;  %v1799_v3 = vld [vmem:[%s2252_s5 + $0x80] ss:$8 sps:$4 sm:$0xff]  }
  0x6a   : > { %1332 = vmatpush1.bf16.msra.mxu1 %v1764_v44  ;;  %1292 = vmatprep.subr.bf16.mxu0 %v1765_v45  ;;  %v1794_v0 = vld [vmem:[%s2252_s5 + $0x170] ss:$8 sps:$4 sm:$0xff]   ;;  %v1797_v2 = vld [vmem:[%s2252_s5 + $0x184] ss:$8 sps:$4 sm:$0xff]   ;;  %v1800_v4 = vld [vmem:[%s2252_s5 + $0x180] ss:$8 sps:$4 sm:$0xff]  }
  0x6b   : > { %1333 = vmatprep.subr.bf16.mxu1 %v1767_v46  ;;  %v1801_v5 = vld [vmem:[%s2252_s5 + $0x94] ss:$8 sps:$4 sm:$0xff]   ;;  %v1805_v7 = vld [vmem:[%s2252_s5 + $0x90] ss:$8 sps:$4 sm:$0xff]   ;;  %v1807_v9 = vld [vmem:[%s2252_s5 + $0xa4] ss:$8 sps:$4 sm:$0xff]  }
  0x6c   : > { %v1803_v6 = vld [vmem:[%s2252_s5 + $0x194] ss:$8 sps:$4 sm:$0xff]   ;;  %v1806_v8 = vld [vmem:[%s2252_s5 + $0x190] ss:$8 sps:$4 sm:$0xff]   ;;  %v1809_v10 = vld [vmem:[%s2252_s5 + $0x1a4] ss:$8 sps:$4 sm:$0xff]  }
  0x6d   : > { %1293 = vmatpush1.bf16.msra.mxu0 %v1769_v47  ;;  %v1811_v11 = vld [vmem:[%s2252_s5 + $0xa0] ss:$8 sps:$4 sm:$0xff]   ;;  %v1813_v13 = vld [vmem:[%s2252_s5 + $0xb4] ss:$8 sps:$4 sm:$0xff]   ;;  %v1817_v18 = vld [vmem:[%s2252_s5 + $0xb0] ss:$8 sps:$4 sm:$0xff]  }
  0x6e   : > { %1334 = vmatpush1.bf16.msra.mxu1 %v1770_v48  ;;  %1294 = vmatprep.subr.bf16.mxu0 %v1771_v49  ;;  %v1812_v12 = vld [vmem:[%s2252_s5 + $0x1a0] ss:$8 sps:$4 sm:$0xff]   ;;  %v1815_v14 = vld [vmem:[%s2252_s5 + $0x1b4] ss:$8 sps:$4 sm:$0xff]   ;;  %v1818_v19 = vld [vmem:[%s2252_s5 + $0x1b0] ss:$8 sps:$4 sm:$0xff]  }
  0x6f   : > { %1335 = vmatprep.subr.bf16.mxu1 %v1773_v50  ;;  %v686_v15 = vld [vmem:[%s2240_s26] sm:$0xff]  ;;  %v687_v17 = vld [vmem:[%s2240_s26 + $0x8] sm:$0xff]  ;;  %v2324_v41 = vld [vmem:[%s2240_s26 + $0x10] sm:$0xff]  ;;  %p1682_p13 = scmp.ne.s32.totalorder %s1935_s14, 2 }
  0x70   : > { %v1581_v16 = vcombine.high %v686_v15, %v686_v15  ;;  %v1583_v20 = vcombine.high %v687_v17, %v687_v17  ;;  %v1819_v21 = vld [vmem:[%s2252_s5 + $0xc4] ss:$8 sps:$4 sm:$0xff]   ;;  %v1823_v23 = vld [vmem:[%s2252_s5 + $0xc0] ss:$8 sps:$4 sm:$0xff]   ;;  %v1825_v25 = vld [vmem:[%s2252_s5 + $0xd4] ss:$8 sps:$4 sm:$0xff]   ;;  %v1580_v38 = vcombine.low %v686_v15, %v686_v15  ;;  %v1582_v39 = vcombine.low %v687_v17, %v687_v17 }
  0x71   : > { %1295 = vmatpush1.bf16.msra.mxu0 %v1775_v51  ;;  %v1821_v22 = vld [vmem:[%s2252_s5 + $0x1c4] ss:$8 sps:$4 sm:$0xff]   ;;  %v1824_v24 = vld [vmem:[%s2252_s5 + $0x1c0] ss:$8 sps:$4 sm:$0xff]   ;;  %v1827_v26 = vld [vmem:[%s2252_s5 + $0x1d4] ss:$8 sps:$4 sm:$0xff]   ;;  %v1585_v43 = vcombine.high %v2324_v41, %v2324_v41 }
  0x72   : > { %1336 = vmatpush1.bf16.msra.mxu1 %v1776_v52  ;;  %1296 = vmatprep.subr.bf16.mxu0 %v1777_v53  ;;  %v1829_v27 = vld [vmem:[%s2252_s5 + $0xd0] ss:$8 sps:$4 sm:$0xff]   ;;  %v1831_v29 = vld [vmem:[%s2252_s5 + $0xe4] ss:$8 sps:$4 sm:$0xff]   ;;  %v1835_v31 = vld [vmem:[%s2252_s5 + $0xe0] ss:$8 sps:$4 sm:$0xff]  }
  0x73   : > { %1337 = vmatprep.subr.bf16.mxu1 %v1779_v54  ;;  %1318 = vmatprep.mubr.bf16.mxu0 %v1581_v16  ;;  %v1830_v28 = vld [vmem:[%s2252_s5 + $0x1d0] ss:$8 sps:$4 sm:$0xff]   ;;  %v1833_v30 = vld [vmem:[%s2252_s5 + $0x1e4] ss:$8 sps:$4 sm:$0xff]   ;;  %v1836_v32 = vld [vmem:[%s2252_s5 + $0x1e0] ss:$8 sps:$4 sm:$0xff]  }
  0x74   : > { %1359 = vmatprep.mubr.bf16.mxu1 %v1583_v20  ;;  %v1837_v33 = vld [vmem:[%s2252_s5 + $0xf4] ss:$8 sps:$4 sm:$0xff]   ;;  %v1841_v35 = vld [vmem:[%s2252_s5 + $0xf0] ss:$8 sps:$4 sm:$0xff]   ;;  %v1849_v37 = vld [vmem:[%s2252_s5 + $0x204] ss:$8 sps:$4 sm:$0xff]  }
  0x75   : > { %1297 = vmatpush1.bf16.msra.mxu0 %v1781_v55  ;;  %v1839_v34 = vld [vmem:[%s2252_s5 + $0x1f4] ss:$8 sps:$4 sm:$0xff]   ;;  %v1842_v36 = vld [vmem:[%s2252_s5 + $0x1f0] ss:$8 sps:$4 sm:$0xff]   ;;  %v1847_v40 = vld [vmem:[%s2252_s5 + $0x200] ss:$8 sps:$4 sm:$0xff]  }
  0x76   : > { %1338 = vmatpush1.bf16.msra.mxu1 %v1782_v56  ;;  %1298 = vmatprep.subr.bf16.mxu0 %v1783_v57  ;;  %v1852_v42 = vld [vmem:[%s2252_s5 + $0x214] ss:$8 sps:$4 sm:$0xff]   ;;  %v1850_v44 = vld [vmem:[%s2252_s5 + $0x210] ss:$8 sps:$4 sm:$0xff]   ;;  %v1855_v45 = vld [vmem:[%s2252_s5 + $0x224] ss:$8 sps:$4 sm:$0xff]  }
  0x77   : > { %1339 = vmatprep.subr.bf16.mxu1 %v1785_v58  ;;  %v1853_v46 = vld [vmem:[%s2252_s5 + $0x220] ss:$8 sps:$4 sm:$0xff]   ;;  %v1858_v47 = vld [vmem:[%s2252_s5 + $0x234] ss:$8 sps:$4 sm:$0xff]   ;;  %v1856_v48 = vld [vmem:[%s2252_s5 + $0x230] ss:$8 sps:$4 sm:$0xff]  }
  0x78   : > { %v1861_v49 = vld [vmem:[%s2252_s5 + $0x244] ss:$8 sps:$4 sm:$0xff]   ;;  %v1859_v50 = vld [vmem:[%s2252_s5 + $0x240] ss:$8 sps:$4 sm:$0xff]   ;;  %v1864_v51 = vld [vmem:[%s2252_s5 + $0x254] ss:$8 sps:$4 sm:$0xff]  }
  0x79   : > { %1299 = vmatpush1.bf16.msra.mxu0 %v1787_v59  ;;  %v1862_v52 = vld [vmem:[%s2252_s5 + $0x250] ss:$8 sps:$4 sm:$0xff]   ;;  %v1867_v53 = vld [vmem:[%s2252_s5 + $0x264] ss:$8 sps:$4 sm:$0xff]   ;;  %v1865_v54 = vld [vmem:[%s2252_s5 + $0x260] ss:$8 sps:$4 sm:$0xff]  }
  0x7a   : > { %1340 = vmatpush1.bf16.msra.mxu1 %v1788_v60  ;;  %1300 = vmatprep.subr.bf16.mxu0 %v1789_v61  ;;  %v1870_v55 = vld [vmem:[%s2252_s5 + $0x274] ss:$8 sps:$4 sm:$0xff]   ;;  %v1868_v56 = vld [vmem:[%s2252_s5 + $0x270] ss:$8 sps:$4 sm:$0xff]   ;;  %v1873_v57 = vld [vmem:[%s2252_s5 + $0x284] ss:$8 sps:$4 sm:$0xff]  }
  0x7b   : > { %1341 = vmatprep.subr.bf16.mxu1 %v1791_v62  ;;  %v1871_v58 = vld [vmem:[%s2252_s5 + $0x280] ss:$8 sps:$4 sm:$0xff]   ;;  %v1876_v59 = vld [vmem:[%s2252_s5 + $0x294] ss:$8 sps:$4 sm:$0xff]   ;;  %v1874_v60 = vld [vmem:[%s2252_s5 + $0x290] ss:$8 sps:$4 sm:$0xff]  }
  0x7c   : > { %v1879_v61 = vld [vmem:[%s2252_s5 + $0x2a4] ss:$8 sps:$4 sm:$0xff]   ;;  %v1877_v62 = vld [vmem:[%s2252_s5 + $0x2a0] ss:$8 sps:$4 sm:$0xff]   ;;  %v684_v20 = vld [vmem:[#allocation2] sm:$0xff] }
  0x7d   : > { %1301 = vmatpush1.bf16.msra.mxu0 %v1793_v63  ;;  %v1882_v63 = vld [vmem:[%s2252_s5 + $0x2b4] ss:$8 sps:$4 sm:$0xff]  }
  0x7e   : > { %1342 = vmatpush1.bf16.msra.mxu1 %v1794_v0  ;;  %1302 = vmatprep.subr.bf16.mxu0 %v1795_v1  ;;  %v1880_v0 = vld [vmem:[%s2252_s5 + $0x2b0] ss:$8 sps:$4 sm:$0xff]   ;;  %v1885_v1 = vld [vmem:[%s2252_s5 + $0x2c4] ss:$8 sps:$4 sm:$0xff]  }
  0x7f   : > { %1343 = vmatprep.subr.bf16.mxu1 %v1797_v2  ;;  %v1883_v2 = vld [vmem:[%s2252_s5 + $0x2c0] ss:$8 sps:$4 sm:$0xff]  }
  0x81   : > { %1303 = vmatpush1.bf16.msra.mxu0 %v1799_v3  ;;  %v1888_v3 = vld [vmem:[%s2252_s5 + $0x2d4] ss:$8 sps:$4 sm:$0xff]  }
  0x82   : > { %1344 = vmatpush1.bf16.msra.mxu1 %v1800_v4  ;;  %1304 = vmatprep.subr.bf16.mxu0 %v1801_v5  ;;  %v1886_v4 = vld [vmem:[%s2252_s5 + $0x2d0] ss:$8 sps:$4 sm:$0xff]   ;;  %v1891_v5 = vld [vmem:[%s2252_s5 + $0x2e4] ss:$8 sps:$4 sm:$0xff]  }
  0x83   : > { %1345 = vmatprep.subr.bf16.mxu1 %v1803_v6  ;;  %v1889_v6 = vld [vmem:[%s2252_s5 + $0x2e0] ss:$8 sps:$4 sm:$0xff]  }
  0x85   : > { %1305 = vmatpush1.bf16.msra.mxu0 %v1805_v7  ;;  %v1894_v7 = vld [vmem:[%s2252_s5 + $0x2f4] ss:$8 sps:$4 sm:$0xff]  }
  0x86   : > { %1346 = vmatpush1.bf16.msra.mxu1 %v1806_v8  ;;  %1306 = vmatprep.subr.bf16.mxu0 %v1807_v9  ;;  %v1892_v8 = vld [vmem:[%s2252_s5 + $0x2f0] ss:$8 sps:$4 sm:$0xff]   ;;  %v1584_v9 = vcombine.low %v2324_v41, %v2324_v41 }
  0x87   : > { %1347 = vmatprep.subr.bf16.mxu1 %v1809_v10 }
  0x89   : > { %1307 = vmatpush1.bf16.msra.mxu0 %v1811_v11 }
  0x8a   : > { %1348 = vmatpush1.bf16.msra.mxu1 %v1812_v12  ;;  %1308 = vmatprep.subr.bf16.mxu0 %v1813_v13 }
  0x8b   : > { %1349 = vmatprep.subr.bf16.mxu1 %v1815_v14 }
  0x8d   : > { %1309 = vmatpush1.bf16.msra.mxu0 %v1817_v18 }
  0x8e   : > { %1350 = vmatpush1.bf16.msra.mxu1 %v1818_v19  ;;  %1310 = vmatprep.subr.bf16.mxu0 %v1819_v21 }
  0x8f   : > { %1351 = vmatprep.subr.bf16.mxu1 %v1821_v22 }
  0x91   : > { %1311 = vmatpush1.bf16.msra.mxu0 %v1823_v23  ;;  %v685_v23 = vld [vmem:[#allocation2 + $0x8] sm:$0xff] }
  0x92   : > { %1352 = vmatpush1.bf16.msra.mxu1 %v1824_v24  ;;  %1312 = vmatprep.subr.bf16.mxu0 %v1825_v25 }
  0x93   : > { %1353 = vmatprep.subr.bf16.mxu1 %v1827_v26 }
  0x95   : > { %1313 = vmatpush1.bf16.msra.mxu0 %v1829_v27 }
  0x96   : > { %1354 = vmatpush1.bf16.msra.mxu1 %v1830_v28  ;;  %1314 = vmatprep.subr.bf16.mxu0 %v1831_v29 }
  0x97   : > { %1355 = vmatprep.subr.bf16.mxu1 %v1833_v30  ;;  %v1421_v30 = vlaneseq (!%p1682_p13) }
  0x99   : > { %1315 = vmatpush1.bf16.msra.mxu0 %v1835_v31  ;;  %v1422_v31 = vshrl.u32 (!%p1682_p13), %v1421_v30, 7 }
  0x9a   : > { %1356 = vmatpush1.bf16.msra.mxu1 %v1836_v32  ;;  %1316 = vmatprep.subr.bf16.mxu0 %v1837_v33  ;;  %v1419_v32 = vld [vmem:[%s666_s12] sm:$0x3] (!%p1682_p13) }
  0x9b   : > { %1357 = vmatprep.subr.bf16.mxu1 %v1839_v34  ;;  %v1423_v33 = vsub.s32 (!%p1682_p13), 0, %v1422_v31  ;;  %v1427_v34 = vsub.s32 (!%p1682_p13), 1, %v1422_v31 }
  0x9d   : > { %1317 = vmatpush1.bf16.msra.mxu0 %v1841_v35 }
  0x9e   : > { %1358 = vmatpush1.bf16.msra.mxu1 %v1842_v36  ;;  %1368 = vmatprep.subr.bf16.mxu0 %v1849_v37  ;;  %v1424_v37 = vrot.slane (!%p1682_p13), %v1419_v32, %v1423_v33 }
  0xa0   : > { %1319 = vmatmul.mubr.bf16.vlgmr.msra.gmra.mrb[0].mxu0 %v1580_v38  ;;  %v1428_v38 = vrot.slane (!%p1682_p13), %v1419_v32, %v1427_v34 }
  0xa1   : > { %1360 = vmatmul.mubr.bf16.vlgmr.msra.gmra.mrb[0].mxu1 %v1582_v39  ;;  %1369 = vmatpush1.bf16.msra.mxu0 %v1847_v40 }
  0xa2   : > { %1400 = vmatprep.mubr.bf16.mxu0 %v1585_v43  ;;  %1370 = vmatprep.subr.bf16.mxu0 %v1852_v42 }
  0xa5   : > { %1371 = vmatpush1.bf16.msra.mxu0 %v1850_v44 }
  0xa6   : > { %1372 = vmatprep.subr.bf16.mxu0 %v1855_v45 }
  0xa9   : > { %1373 = vmatpush1.bf16.msra.mxu0 %v1853_v46 }
  0xaa   : > { %1374 = vmatprep.subr.bf16.mxu0 %v1858_v47 }
  0xad   : > { %1375 = vmatpush1.bf16.msra.mxu0 %v1856_v48 }
  0xae   : > { %1376 = vmatprep.subr.bf16.mxu0 %v1861_v49 }
  0xb1   : > { %1377 = vmatpush1.bf16.msra.mxu0 %v1859_v50 }
  0xb2   : > { %1378 = vmatprep.subr.bf16.mxu0 %v1864_v51 }
  0xb5   : > { %1379 = vmatpush1.bf16.msra.mxu0 %v1862_v52 }
  0xb6   : > { %1380 = vmatprep.subr.bf16.mxu0 %v1867_v53 }
  0xb9   : > { %1381 = vmatpush1.bf16.msra.mxu0 %v1865_v54 }
  0xba   : > { %1382 = vmatprep.subr.bf16.mxu0 %v1870_v55 }
  0xbd   : > { %1383 = vmatpush1.bf16.msra.mxu0 %v1868_v56 }
  0xbe   : > { %1384 = vmatprep.subr.bf16.mxu0 %v1873_v57 }
  0xc1   : > { %1385 = vmatpush1.bf16.msra.mxu0 %v1871_v58 }
  0xc2   : > { %1386 = vmatprep.subr.bf16.mxu0 %v1876_v59 }
  0xc5   : > { %1387 = vmatpush1.bf16.msra.mxu0 %v1874_v60 }
  0xc6   : > { %1388 = vmatprep.subr.bf16.mxu0 %v1879_v61 }
  0xc9   : > { %1389 = vmatpush1.bf16.msra.mxu0 %v1877_v62 }
  0xca   : > { %1390 = vmatprep.subr.bf16.mxu0 %v1882_v63 }
  0xcd   : > { %1391 = vmatpush1.bf16.msra.mxu0 %v1880_v0 }
  0xce   : > { %1392 = vmatprep.subr.bf16.mxu0 %v1885_v1 }
  0xd1   : > { %1393 = vmatpush1.bf16.msra.mxu0 %v1883_v2 }
  0xd2   : > { %1394 = vmatprep.subr.bf16.mxu0 %v1888_v3 }
  0xd5   : > { %1395 = vmatpush1.bf16.msra.mxu0 %v1886_v4 }
  0xd6   : > { %1396 = vmatprep.subr.bf16.mxu0 %v1891_v5 }
  0xd9   : > { %1397 = vmatpush1.bf16.msra.mxu0 %v1889_v6 }
  0xda   : > { %1398 = vmatprep.subr.bf16.mxu0 %v1894_v7 }
  0xdd   : > { %1399 = vmatpush1.bf16.msra.mxu0 %v1892_v8 }
  0xe0   : > { %1401 = vmatmul.mubr.bf16.vlgmr.msra.gmra.mrb[4].mxu0 %v1584_v9 }
 0x173   : > { %v1320_v10 = vpop.f32.mrb[0].mxu0 }
 0x174   : > { %v1361_v11 = vpop.f32.mrb[0].mxu1  ;;  %v1322_v13 = vpop.f32.mrb[1].mxu0 }
 0x175   : > { %v1362_v12 = vadd.f32 %v1361_v11, %v1320_v10  ;;  %v1363_v14 = vpop.f32.mrb[1].mxu1  ;;  %v1324_v16 = vpop.f32.mrb[2].mxu0 }
 0x176   : > { %v1364_v15 = vadd.f32 %v1363_v14, %v1322_v13  ;;  %v1365_v17 = vpop.f32.mrb[2].mxu1  ;;  %v1325_v18 = vpop.f32.mrb[3].mxu0 }
 0x177   : > { %v1366_v19 = vpop.f32.mrb[3].mxu1 }
 0x1b3   : > { %v1402_v21 = vpop.f32.mrb[4].mxu0  ;;  %1416 = sbr.rel (%p1682_p13) target bundleno = 456 (0x1c8), region = 78 }
 0x1b4   : > { %v1403_v22 = vadd.f32 %v1402_v21, %v1362_v12  ;;  %v1404_v24 = vpop.f32.mrb[5].mxu0 }
 0x1b5   : > { %v1405_v25 = vadd.f32 %v1404_v24, %v1364_v15  ;;  %v1406_v26 = vpop.f32.mrb[6].mxu0 }
 0x1b6   : > { %v1409_v27 = vadd.f32 %v1403_v22, %v684_v20  ;;  %v1407_v28 = vpop.f32.mrb[7].mxu0 }
 0x1b7   : > { %v1410_v29 = vadd.f32 %v1405_v25, %v685_v23 }
 0x1b8   : > { %1411 = vst [vmem:[#allocation2] sm:$0xff] %v1409_v27 }
 0x1b9   : > { %1412 = vst [vmem:[#allocation2 + $0x8] sm:$0xff] %v1410_v29 }
 0x1bf   : > { %v1417_v35 = vld [vmem:[#allocation2] sm:$0xff] }
 0x1c0   : > { %v1418_v36 = vld [vmem:[#allocation2 + $0x8] sm:$0xff]  ;;  %v1431_v39 = vadd.f32 %v1424_v37, %v1417_v35 }
 0x1c1   : > { %v1432_v40 = vadd.f32 %v1428_v38, %v1418_v36 }
 0x1c2   : > { %v1433_v41 = vmax.f32 %v1431_v39, 0.0 }
 0x1c3   : > { %v1434_v42 = vmax.f32 %v1432_v40, 0.0 }
 0x1c5   : > { %v1687_v43 = vpack.c.bf16 %v1434_v42, %v1433_v41 }
 0x1c7   : > { %1443 = vst [vmem:[%s2250_s4] sm:$0xff] %v1687_v43 }
 0x1c8 PF: > { %s13_s18 = sadd.s32 1, %s1951_s18   ;;  %s2392_s12 = smov %s1931_s13 }
 0x1c9   : > { %p10_p0 = scmp.ge.s32.totalorder %s13_s18, 8   ;;  %s2393_s13 = smov %s2025_s25 }
 0x1ca   : > { %s2394_s14 = smov %s1943_s16  ;;  %s2395_s15 = smov %s1947_s17 }
 0x1cb   : > { %s2396_s16 = smov %s2399_s19  ;;  %s2397_s17 = smov %s2403_s20 }
 0x1cc   :  { %12 = sbr.rel (!%p10_p0) target bundleno = 4 (0x4), region = 119 }

// kernel: _lambda_.67
= control target key start
LH: loop header
LB: loop body
LE: loop exit
PB: predicated region body
PF: predicated region fallthrough
CT: control target
= control target key end

     0   :  { %s1028_s12 = smov 0   ;;  %s1030_s13 = smov 0   ;;  %s1207_s0 = inlined_call_operand.vmem [shape: bf16[8,256], index: 0, kind: input, shape index: {}]   ;;  %s1208_s1 = inlined_call_operand.vmem [shape: bf16[256,512], index: 1, kind: input, shape index: {}]   ;;  %s1209_s2 = inlined_call_operand.vmem [shape: f32[1,512], index: 2, kind: input, shape index: {}]   ;;  %s1210_s3 = inlined_call_operand.vmem [shape: bf16[8,512], index: 3, kind: output, shape index: {}]  }
   0x1   :  { %s1032_s14 = smov 0   ;;  %s1034_s15 = smov 0  }
   0x2   :  { %s1036_s16 = smov 0  }
   0x3 LB: > { %s28_s17 = sadd.s32 1, %s1002_s15  ;;  %p76_p1 = scmp.ne.s32.totalorder %s994_s13, %s990_s12  ;;  %s1006_s16 = sphi %s1036_s16, %s13_s16   ;;  %s1002_s15 = sphi %s1034_s15, %s1214_s15   ;;  %s998_s14 = sphi %s1032_s14, %s1213_s14   ;;  %s994_s13 = sphi %s1030_s13, %s1212_s13   ;;  %s990_s12 = sphi %s1028_s12, %s1211_s12  }
   0x4   : > { %p30_p0 = scmp.ge.s32.totalorder %s28_s17, 2  ;;  %p77_p2 = scmp.eq.s32.totalorder %s1006_s16, 0 }
   0x5   : > { %s69_s19 = sadd.s32 1, %s994_s13  ;;  %p830_p5 = scmp.ge.s32.totalorder %s1006_s16, 2 }
   0x6   : > { %s1216_s17 = smov (%p30_p0, %s28_s17), 0  ;;  %p78_p3 = por %p77_p2, %p76_p1 }
   0x7   : > { %s65_s18 = ssub.s32 %s1002_s15, %s1216_s17  ;;  %169 = sbr.rel (%p830_p5) target bundleno = 34 (0x22), region = 20 }
   0x8   : > { %p67_p4 = scmp.eq.s32.totalorder %s65_s18, 0 }
   0xa   : > { %s1063_s20 = scalar_select %p67_p4, %s994_s13, %s69_s19  }
   0xe   : > { %172 = sbr.rel (!%p78_p3) target bundleno = 34 (0x22), region = 24  ;;  %s174_s21 = sand.u32 (%p78_p3), 1, %s994_s13  }
   0xf   : > { %s876_s22 = sshll.u32 (%p78_p3), %s1002_s15, 3  ;;  %s831_s23 = sshll.u32 (%p78_p3), %s174_s21, 8 }
  0x10   : > { %s1071_s26 = scalar_lea.vmem (%p78_p3), %s1208_s1, %s876_s22  ;;  %s1076_s27 = scalar_lea.vmem (%p78_p3), [#allocation3], %s831_s23 }
  0x11   : > { %v272_v0 = vld [vmem:[%s1071_s26] sm:$0xff] (%p78_p3)  ;;  %v274_v1 = vld [vmem:[%s1071_s26 + $0x10] sm:$0xff] (%p78_p3) }
  0x12   : > { %v276_v2 = vld [vmem:[%s1071_s26 + $0x20] sm:$0xff] (%p78_p3)  ;;  %273 = vst [vmem:[%s1076_s27] sm:$0xff] (%p78_p3), %v272_v0  ;;  %275 = vst [vmem:[%s1076_s27 + $0x8] sm:$0xff] (%p78_p3), %v274_v1  ;;  %v278_v3 = vld [vmem:[%s1071_s26 + $0x30] sm:$0xff] (%p78_p3) }
  0x13   : > { %277 = vst [vmem:[%s1076_s27 + $0x10] sm:$0xff] (%p78_p3), %v276_v2  ;;  %v280_v4 = vld [vmem:[%s1071_s26 + $0x40] sm:$0xff] (%p78_p3)  ;;  %v282_v5 = vld [vmem:[%s1071_s26 + $0x50] sm:$0xff] (%p78_p3)  ;;  %279 = vst [vmem:[%s1076_s27 + $0x18] sm:$0xff] (%p78_p3), %v278_v3 }
  0x14   : > { %281 = vst [vmem:[%s1076_s27 + $0x20] sm:$0xff] (%p78_p3), %v280_v4  ;;  %283 = vst [vmem:[%s1076_s27 + $0x28] sm:$0xff] (%p78_p3), %v282_v5  ;;  %v284_v6 = vld [vmem:[%s1071_s26 + $0x60] sm:$0xff] (%p78_p3)  ;;  %v286_v7 = vld [vmem:[%s1071_s26 + $0x70] sm:$0xff] (%p78_p3) }
  0x15   : > { %v288_v8 = vld [vmem:[%s1071_s26 + $0x80] sm:$0xff]  ;;  %285 = vst [vmem:[%s1076_s27 + $0x30] sm:$0xff] %v284_v6  ;;  %287 = vst [vmem:[%s1076_s27 + $0x38] sm:$0xff] %v286_v7  ;;  %v290_v9 = vld [vmem:[%s1071_s26 + $0x90] sm:$0xff] }
  0x16   : > { %289 = vst [vmem:[%s1076_s27 + $0x40] sm:$0xff] %v288_v8  ;;  %v292_v10 = vld [vmem:[%s1071_s26 + $0xa0] sm:$0xff]  ;;  %v294_v11 = vld [vmem:[%s1071_s26 + $0xb0] sm:$0xff]  ;;  %291 = vst [vmem:[%s1076_s27 + $0x48] sm:$0xff] %v290_v9 }
  0x17   : > { %293 = vst [vmem:[%s1076_s27 + $0x50] sm:$0xff] %v292_v10  ;;  %295 = vst [vmem:[%s1076_s27 + $0x58] sm:$0xff] %v294_v11  ;;  %v296_v12 = vld [vmem:[%s1071_s26 + $0xc0] sm:$0xff]  ;;  %v298_v13 = vld [vmem:[%s1071_s26 + $0xd0] sm:$0xff] }
  0x18   : > { %v300_v14 = vld [vmem:[%s1071_s26 + $0xe0] sm:$0xff]  ;;  %297 = vst [vmem:[%s1076_s27 + $0x60] sm:$0xff] %v296_v12  ;;  %299 = vst [vmem:[%s1076_s27 + $0x68] sm:$0xff] %v298_v13  ;;  %v302_v15 = vld [vmem:[%s1071_s26 + $0xf0] sm:$0xff] }
  0x19   : > { %301 = vst [vmem:[%s1076_s27 + $0x70] sm:$0xff] %v300_v14  ;;  %v304_v16 = vld [vmem:[%s1071_s26 + $0x100] sm:$0xff]  ;;  %v306_v17 = vld [vmem:[%s1071_s26 + $0x110] sm:$0xff]  ;;  %303 = vst [vmem:[%s1076_s27 + $0x78] sm:$0xff] %v302_v15 }
  0x1a   : > { %305 = vst [vmem:[%s1076_s27 + $0x80] sm:$0xff] %v304_v16  ;;  %307 = vst [vmem:[%s1076_s27 + $0x88] sm:$0xff] %v306_v17  ;;  %v308_v18 = vld [vmem:[%s1071_s26 + $0x120] sm:$0xff]  ;;  %v310_v19 = vld [vmem:[%s1071_s26 + $0x130] sm:$0xff] }
  0x1b   : > { %v312_v20 = vld [vmem:[%s1071_s26 + $0x140] sm:$0xff]  ;;  %309 = vst [vmem:[%s1076_s27 + $0x90] sm:$0xff] %v308_v18  ;;  %311 = vst [vmem:[%s1076_s27 + $0x98] sm:$0xff] %v310_v19  ;;  %v314_v21 = vld [vmem:[%s1071_s26 + $0x150] sm:$0xff] }
  0x1c   : > { %313 = vst [vmem:[%s1076_s27 + $0xa0] sm:$0xff] %v312_v20  ;;  %v316_v22 = vld [vmem:[%s1071_s26 + $0x160] sm:$0xff]  ;;  %v318_v23 = vld [vmem:[%s1071_s26 + $0x170] sm:$0xff]  ;;  %315 = vst [vmem:[%s1076_s27 + $0xa8] sm:$0xff] %v314_v21 }
  0x1d   : > { %317 = vst [vmem:[%s1076_s27 + $0xb0] sm:$0xff] %v316_v22  ;;  %319 = vst [vmem:[%s1076_s27 + $0xb8] sm:$0xff] %v318_v23  ;;  %v320_v24 = vld [vmem:[%s1071_s26 + $0x180] sm:$0xff]  ;;  %v322_v25 = vld [vmem:[%s1071_s26 + $0x190] sm:$0xff] }
  0x1e   : > { %v324_v26 = vld [vmem:[%s1071_s26 + $0x1a0] sm:$0xff]  ;;  %321 = vst [vmem:[%s1076_s27 + $0xc0] sm:$0xff] %v320_v24  ;;  %323 = vst [vmem:[%s1076_s27 + $0xc8] sm:$0xff] %v322_v25  ;;  %v326_v27 = vld [vmem:[%s1071_s26 + $0x1b0] sm:$0xff] }
  0x1f   : > { %325 = vst [vmem:[%s1076_s27 + $0xd0] sm:$0xff] %v324_v26  ;;  %v328_v28 = vld [vmem:[%s1071_s26 + $0x1c0] sm:$0xff]  ;;  %v330_v29 = vld [vmem:[%s1071_s26 + $0x1d0] sm:$0xff]  ;;  %327 = vst [vmem:[%s1076_s27 + $0xd8] sm:$0xff] %v326_v27 }
  0x20   : > { %329 = vst [vmem:[%s1076_s27 + $0xe0] sm:$0xff] %v328_v28  ;;  %331 = vst [vmem:[%s1076_s27 + $0xe8] sm:$0xff] %v330_v29  ;;  %v332_v30 = vld [vmem:[%s1071_s26 + $0x1e0] sm:$0xff]  ;;  %v334_v31 = vld [vmem:[%s1071_s26 + $0x1f0] sm:$0xff] }
  0x21   : > { %333 = vst [vmem:[%s1076_s27 + $0xf0] sm:$0xff] %v332_v30  ;;  %335 = vst [vmem:[%s1076_s27 + $0xf8] sm:$0xff] %v334_v31 }
  0x22 PF: > { %p834_p6 = scmp.ge.s32.totalorder %s1006_s16, 1  ;;  %p348_p7 = scmp.lt.s32.totalorder %s1006_s16, 3 }
  0x24   : > { %p349_p8 = pnand %p834_p6, %p348_p7 }
  0x25   : > { %s355_s28 = sand.u32 (!%p349_p8), 1, %s990_s12   ;;  %v1145_v32 = vld [vmem:[%s1207_s0] sm:$0xff] (!%p349_p8)  ;;  %s836_s6 = sshll.u32 (!%p349_p8), %s998_s14, 1  ;;  %v682_v3 = vlaneseq (!%p349_p8) }
  0x26   : > { %352 = sbr.rel (%p349_p8) target bundleno = 323 (0x143), region = 66  ;;  %s835_s4 = sshll.u32 (!%p349_p8), %s355_s28, 8  ;;  %v840_v33 = vcombine.high (!%p349_p8), %v1145_v32, %v1145_v32  ;;  %v839_v2 = vcombine.low (!%p349_p8), %v1145_v32, %v1145_v32 }
  0x27   : > { %s1149_s5 = scalar_lea.vmem (!%p349_p8), [#allocation3], %s835_s4  ;;  %p408_p9 = scmp.lt.s32.totalorder (!%p349_p8), %s836_s6, 3  ;;  %v683_v4 = vshrl.u32 (!%p349_p8), %v682_v3, 7 }
  0x28   : > { %v918_v34 = vld [vmem:[%s1149_s5 + $0x4] ss:$8 sps:$4 sm:$0xff] (!%p349_p8)   ;;  %662 = vmatprep.mubr.bf16.mxu0 (!%p349_p8), %v840_v33  ;;  %v920_v35 = vld [vmem:[%s1149_s5] ss:$8 sps:$4 sm:$0xff] (!%p349_p8)   ;;  %v921_v36 = vld [vmem:[%s1149_s5 + $0x14] ss:$8 sps:$4 sm:$0xff] (!%p349_p8)  }
  0x29   : > { %630 = vmatprep.subr.bf16.mxu0 (!%p349_p8), %v918_v34  ;;  %v923_v37 = vld [vmem:[%s1149_s5 + $0x10] ss:$8 sps:$4 sm:$0xff] (!%p349_p8)   ;;  %v924_v38 = vld [vmem:[%s1149_s5 + $0x24] ss:$8 sps:$4 sm:$0xff] (!%p349_p8)   ;;  %v926_v39 = vld [vmem:[%s1149_s5 + $0x20] ss:$8 sps:$4 sm:$0xff] (!%p349_p8)  }
  0x2a   : > { %631 = vmatpush1.bf16.msra.mxu0 (!%p349_p8), %v920_v35  ;;  %v927_v40 = vld [vmem:[%s1149_s5 + $0x34] ss:$8 sps:$4 sm:$0xff] (!%p349_p8)   ;;  %v929_v41 = vld [vmem:[%s1149_s5 + $0x30] ss:$8 sps:$4 sm:$0xff] (!%p349_p8)   ;;  %v930_v42 = vld [vmem:[%s1149_s5 + $0x44] ss:$8 sps:$4 sm:$0xff] (!%p349_p8)  }
  0x2b   : > { %632 = vmatprep.subr.bf16.mxu0 (!%p349_p8), %v921_v36  ;;  %v932_v43 = vld [vmem:[%s1149_s5 + $0x40] ss:$8 sps:$4 sm:$0xff] (!%p349_p8)   ;;  %v933_v44 = vld [vmem:[%s1149_s5 + $0x54] ss:$8 sps:$4 sm:$0xff] (!%p349_p8)   ;;  %v935_v45 = vld [vmem:[%s1149_s5 + $0x50] ss:$8 sps:$4 sm:$0xff] (!%p349_p8)  }
  0x2c   : > { %v936_v46 = vld [vmem:[%s1149_s5 + $0x64] ss:$8 sps:$4 sm:$0xff] (!%p349_p8)   ;;  %v938_v47 = vld [vmem:[%s1149_s5 + $0x60] ss:$8 sps:$4 sm:$0xff] (!%p349_p8)   ;;  %v939_v48 = vld [vmem:[%s1149_s5 + $0x74] ss:$8 sps:$4 sm:$0xff] (!%p349_p8)  }
  0x2d   : > { %v941_v49 = vld [vmem:[%s1149_s5 + $0x70] ss:$8 sps:$4 sm:$0xff]   ;;  %v942_v50 = vld [vmem:[%s1149_s5 + $0x84] ss:$8 sps:$4 sm:$0xff]   ;;  %v944_v51 = vld [vmem:[%s1149_s5 + $0x80] ss:$8 sps:$4 sm:$0xff]  }
  0x2e   : > { %633 = vmatpush1.bf16.msra.mxu0 %v923_v37  ;;  %v945_v52 = vld [vmem:[%s1149_s5 + $0x94] ss:$8 sps:$4 sm:$0xff]   ;;  %v947_v53 = vld [vmem:[%s1149_s5 + $0x90] ss:$8 sps:$4 sm:$0xff]   ;;  %v948_v54 = vld [vmem:[%s1149_s5 + $0xa4] ss:$8 sps:$4 sm:$0xff]  }
  0x2f   : > { %634 = vmatprep.subr.bf16.mxu0 %v924_v38  ;;  %v950_v55 = vld [vmem:[%s1149_s5 + $0xa0] ss:$8 sps:$4 sm:$0xff]   ;;  %v951_v56 = vld [vmem:[%s1149_s5 + $0xb4] ss:$8 sps:$4 sm:$0xff]   ;;  %v953_v57 = vld [vmem:[%s1149_s5 + $0xb0] ss:$8 sps:$4 sm:$0xff]  }
  0x30   : > { %v954_v58 = vld [vmem:[%s1149_s5 + $0xc4] ss:$8 sps:$4 sm:$0xff]   ;;  %v956_v59 = vld [vmem:[%s1149_s5 + $0xc0] ss:$8 sps:$4 sm:$0xff]   ;;  %v957_v60 = vld [vmem:[%s1149_s5 + $0xd4] ss:$8 sps:$4 sm:$0xff]  }
  0x31   : > { %v959_v61 = vld [vmem:[%s1149_s5 + $0xd0] ss:$8 sps:$4 sm:$0xff]   ;;  %v960_v62 = vld [vmem:[%s1149_s5 + $0xe4] ss:$8 sps:$4 sm:$0xff]   ;;  %v962_v63 = vld [vmem:[%s1149_s5 + $0xe0] ss:$8 sps:$4 sm:$0xff]  }
  0x32   : > { %635 = vmatpush1.bf16.msra.mxu0 %v926_v39  ;;  %v963_v0 = vld [vmem:[%s1149_s5 + $0xf4] ss:$8 sps:$4 sm:$0xff]   ;;  %v965_v1 = vld [vmem:[%s1149_s5 + $0xf0] ss:$8 sps:$4 sm:$0xff]   ;;  %s1218_s6 = smov (!%p408_p9, %s836_s6), 3  ;;  %v684_v5 = vsub.s32 0, %v683_v4 }
  0x33   : > { %636 = vmatprep.subr.bf16.mxu0 %v927_v40  ;;  %s410_s9 = scalar_lea.vmem %s1209_s2, %s1218_s6  ;;  %v688_v7 = vsub.s32 1, %v683_v4  ;;  %s838_s10 = sshll.u32 %s1218_s6, 2 }
  0x34   : > { %v680_v6 = vld [vmem:[%s410_s9] sm:$0x3]  ;;  %s420_s14 = scalar_lea.vmem %s1210_s3, %s838_s10 }
  0x35   : > { %v685_v8 = vrot.slane %v680_v6, %v684_v5  ;;  %v689_v9 = vrot.slane %v680_v6, %v688_v7 }
  0x36   : > { %637 = vmatpush1.bf16.msra.mxu0 %v929_v41 }
  0x37   : > { %638 = vmatprep.subr.bf16.mxu0 %v930_v42 }
  0x3a   : > { %639 = vmatpush1.bf16.msra.mxu0 %v932_v43 }
  0x3b   : > { %640 = vmatprep.subr.bf16.mxu0 %v933_v44 }
  0x3e   : > { %641 = vmatpush1.bf16.msra.mxu0 %v935_v45 }
  0x3f   : > { %642 = vmatprep.subr.bf16.mxu0 %v936_v46 }
  0x42   : > { %643 = vmatpush1.bf16.msra.mxu0 %v938_v47 }
  0x43   : > { %644 = vmatprep.subr.bf16.mxu0 %v939_v48 }
  0x46   : > { %645 = vmatpush1.bf16.msra.mxu0 %v941_v49 }
  0x47   : > { %646 = vmatprep.subr.bf16.mxu0 %v942_v50 }
  0x4a   : > { %647 = vmatpush1.bf16.msra.mxu0 %v944_v51 }
  0x4b   : > { %648 = vmatprep.subr.bf16.mxu0 %v945_v52 }
  0x4e   : > { %649 = vmatpush1.bf16.msra.mxu0 %v947_v53 }
  0x4f   : > { %650 = vmatprep.subr.bf16.mxu0 %v948_v54 }
  0x52   : > { %651 = vmatpush1.bf16.msra.mxu0 %v950_v55 }
  0x53   : > { %652 = vmatprep.subr.bf16.mxu0 %v951_v56 }
  0x56   : > { %653 = vmatpush1.bf16.msra.mxu0 %v953_v57 }
  0x57   : > { %654 = vmatprep.subr.bf16.mxu0 %v954_v58 }
  0x5a   : > { %655 = vmatpush1.bf16.msra.mxu0 %v956_v59 }
  0x5b   : > { %656 = vmatprep.subr.bf16.mxu0 %v957_v60 }
  0x5e   : > { %657 = vmatpush1.bf16.msra.mxu0 %v959_v61 }
  0x5f   : > { %658 = vmatprep.subr.bf16.mxu0 %v960_v62 }
  0x62   : > { %659 = vmatpush1.bf16.msra.mxu0 %v962_v63 }
  0x63   : > { %660 = vmatprep.subr.bf16.mxu0 %v963_v0 }
  0x66   : > { %661 = vmatpush1.bf16.msra.mxu0 %v965_v1 }
  0x69   : > { %663 = vmatmul.mubr.bf16.vlgmr.msra.gmra.mrb[0].mxu0 %v839_v2 }
 0x13c   : > { %v664_v10 = vpop.f32.mrb[0].mxu0 }
 0x13d   : > { %v692_v11 = vadd.f32 %v685_v8, %v664_v10  ;;  %v666_v12 = vpop.f32.mrb[1].mxu0 }
 0x13e   : > { %v693_v13 = vadd.f32 %v689_v9, %v666_v12  ;;  %v668_v14 = vpop.f32.mrb[2].mxu0 }
 0x13f   : > { %v669_v15 = vpop.f32.mrb[3].mxu0 }
 0x140   : > { %v877_v16 = vpack.c.bf16 %v693_v13, %v692_v11 }
 0x142   : > { %702 = vst [vmem:[%s420_s14] sm:$0xff] %v877_v16 }
 0x143 PF: > { %s13_s16 = sadd.s32 1, %s1006_s16   ;;  %s1211_s12 = smov %s994_s13 }
 0x144   : > { %p10_p10 = scmp.ge.s32.totalorder %s13_s16, 4   ;;  %s1212_s13 = smov %s1063_s20 }
 0x145   : > { %s1213_s14 = smov %s1002_s15  ;;  %s1214_s15 = smov %s1216_s17 }
 0x146   :  { %12 = sbr.rel (!%p10_p10) target bundleno = 3 (0x3), region = 119 }

// kernel: _lambda_.69
= control target key start
LH: loop header
LB: loop body
LE: loop exit
PB: predicated region body
PF: predicated region fallthrough
CT: control target
= control target key end

     0   :  { %s2067_s15 = smov 0   ;;  %s2069_s16 = smov 0   ;;  %s2487_s0 = inlined_call_operand.vmem [shape: bf16[8,4608], index: 0, kind: input, shape index: {}]   ;;  %s2488_s1 = inlined_call_operand.vmem [shape: bf16[4608,512], index: 1, kind: input, shape index: {}]   ;;  %s2489_s2 = inlined_call_operand.vmem [shape: f32[1,512], index: 2, kind: input, shape index: {}]   ;;  %s2490_s3 = inlined_call_operand.vmem [shape: bf16[8,512], index: 3, kind: input, shape index: {}]   ;;  %s2491_s4 = inlined_call_operand.vmem [shape: bf16[8,512], index: 4, kind: output, shape index: {}]  }
   0x1   :  { %s2071_s17 = smov 0   ;;  %s2073_s18 = smov 0  }
   0x2   :  { %s2075_s19 = smov 0   ;;  %s2077_s20 = smov 0  }
   0x3   :  { %s2079_s21 = smov 0  }
   0x4 LB: > { %s26_s22 = sadd.s32 1, %s2031_s19  ;;  %s29_s23 = sadd.s32 1, %s2035_s20  ;;  %s2039_s21 = sphi %s2079_s21, %s14_s21   ;;  %s2035_s20 = sphi %s2077_s20, %s2497_s20   ;;  %s2031_s19 = sphi %s2075_s19, %s2496_s19   ;;  %s2027_s18 = sphi %s2073_s18, %s2495_s18   ;;  %s2023_s17 = sphi %s2071_s17, %s2494_s17   ;;  %s2019_s16 = sphi %s2069_s16, %s2493_s16   ;;  %s2015_s15 = sphi %s2067_s15, %s2492_s15  }
   0x5   : > { %p27_p0 = scmp.ge.s32.totalorder %s26_s22, 6  ;;  %p77_p1 = scmp.ne.s32.totalorder %s2019_s16, %s2015_s15 }
   0x6   : > { %p78_p2 = scmp.eq.s32.totalorder %s2039_s21, 0  ;;  %s70_s27 = sadd.s32 1, %s2019_s16 }
   0x7   : > { %s2499_s22 = smov (%p27_p0, %s26_s22), 0  ;;  %s2501_s23 = smov (!%p27_p0, %s29_s23), %s2035_s20 }
   0x8   : > { %p79_p3 = por %p78_p2, %p77_p1  ;;  %p31_p4 = scmp.ge.s32.totalorder %s2501_s23, 2 }
   0x9   : > { %s65_s24 = ssub.s32 %s2031_s19, %s2499_s22  ;;  %p1656_p6 = scmp.ge.s32.totalorder %s2039_s21, 12 }
   0xa   : > { %s2503_s23 = smov (%p31_p4, %s2501_s23), 0 }
   0xb   : > { %s66_s25 = ssub.s32 %s2035_s20, %s2503_s23  ;;  %185 = sbr.rel (%p1656_p6) target bundleno = 74 (0x4a), region = 16 }
   0xc   : > { %s67_s26 = sor.u32 %s66_s25, %s65_s24 }
   0xd   : > { %p68_p5 = scmp.eq.s32.totalorder %s67_s26, 0 }
   0xf   : > { %s2118_s28 = scalar_select %p68_p5, %s2019_s16, %s70_s27  }
  0x12   : > { %201 = sbr.rel (!%p79_p3) target bundleno = 74 (0x4a), region = 24  ;;  %s203_s29 = sand.u32 (%p79_p3), 1, %s2019_s16  }
  0x13   : > { %s1776_s30 = smul.u32 (%p79_p3), 768, %s203_s29  ;;  %s1657_s5 = sshll.u32 (%p79_p3), %s2035_s20, 1 }
  0x14   : > { %s1774_s6 = smul.u32 (%p79_p3), 384, %s2031_s19 }
  0x15   : > { %s2132_s12 = scalar_lea.vmem (%p79_p3), [#allocation3], %s1776_s30 }
  0x16   : > { %s209_s7 = sadd.s32 (%p79_p3), %s1774_s6, %s1657_s5 }
  0x17   : > { %s1659_s8 = sshll.u32 (%p79_p3), %s209_s7, 2 }
  0x18   : > { %s2127_s11 = scalar_lea.vmem (%p79_p3), %s2488_s1, %s1659_s8 }
  0x19   : > { %v429_v0 = vld [vmem:[%s2127_s11] sm:$0xff]  ;;  %v431_v1 = vld [vmem:[%s2127_s11 + $0x10] sm:$0xff] }
  0x1a   : > { %v433_v2 = vld [vmem:[%s2127_s11 + $0x20] sm:$0xff]  ;;  %430 = vst [vmem:[%s2132_s12] sm:$0xff] %v429_v0  ;;  %432 = vst [vmem:[%s2132_s12 + $0x8] sm:$0xff] %v431_v1  ;;  %v435_v3 = vld [vmem:[%s2127_s11 + $0x30] sm:$0xff] }
  0x1b   : > { %434 = vst [vmem:[%s2132_s12 + $0x10] sm:$0xff] %v433_v2  ;;  %v437_v4 = vld [vmem:[%s2127_s11 + $0x40] sm:$0xff]  ;;  %v439_v5 = vld [vmem:[%s2127_s11 + $0x50] sm:$0xff]  ;;  %436 = vst [vmem:[%s2132_s12 + $0x18] sm:$0xff] %v435_v3 }
  0x1c   : > { %438 = vst [vmem:[%s2132_s12 + $0x20] sm:$0xff] %v437_v4  ;;  %440 = vst [vmem:[%s2132_s12 + $0x28] sm:$0xff] %v439_v5  ;;  %v441_v6 = vld [vmem:[%s2127_s11 + $0x60] sm:$0xff]  ;;  %v443_v7 = vld [vmem:[%s2127_s11 + $0x70] sm:$0xff] }
  0x1d   : > { %v445_v8 = vld [vmem:[%s2127_s11 + $0x80] sm:$0xff]  ;;  %442 = vst [vmem:[%s2132_s12 + $0x30] sm:$0xff] %v441_v6  ;;  %444 = vst [vmem:[%s2132_s12 + $0x38] sm:$0xff] %v443_v7  ;;  %v447_v9 = vld [vmem:[%s2127_s11 + $0x90] sm:$0xff] }
  0x1e   : > { %446 = vst [vmem:[%s2132_s12 + $0x40] sm:$0xff] %v445_v8  ;;  %v449_v10 = vld [vmem:[%s2127_s11 + $0xa0] sm:$0xff]  ;;  %v451_v11 = vld [vmem:[%s2127_s11 + $0xb0] sm:$0xff]  ;;  %448 = vst [vmem:[%s2132_s12 + $0x48] sm:$0xff] %v447_v9 }
  0x1f   : > { %450 = vst [vmem:[%s2132_s12 + $0x50] sm:$0xff] %v449_v10  ;;  %452 = vst [vmem:[%s2132_s12 + $0x58] sm:$0xff] %v451_v11  ;;  %v453_v12 = vld [vmem:[%s2127_s11 + $0xc0] sm:$0xff]  ;;  %v455_v13 = vld [vmem:[%s2127_s11 + $0xd0] sm:$0xff] }
  0x20   : > { %v457_v14 = vld [vmem:[%s2127_s11 + $0xe0] sm:$0xff]  ;;  %454 = vst [vmem:[%s2132_s12 + $0x60] sm:$0xff] %v453_v12  ;;  %456 = vst [vmem:[%s2132_s12 + $0x68] sm:$0xff] %v455_v13  ;;  %v459_v15 = vld [vmem:[%s2127_s11 + $0xf0] sm:$0xff] }
  0x21   : > { %458 = vst [vmem:[%s2132_s12 + $0x70] sm:$0xff] %v457_v14  ;;  %v461_v16 = vld [vmem:[%s2127_s11 + $0x100] sm:$0xff]  ;;  %v463_v17 = vld [vmem:[%s2127_s11 + $0x110] sm:$0xff]  ;;  %460 = vst [vmem:[%s2132_s12 + $0x78] sm:$0xff] %v459_v15 }
  0x22   : > { %462 = vst [vmem:[%s2132_s12 + $0x80] sm:$0xff] %v461_v16  ;;  %464 = vst [vmem:[%s2132_s12 + $0x88] sm:$0xff] %v463_v17  ;;  %v465_v18 = vld [vmem:[%s2127_s11 + $0x120] sm:$0xff]  ;;  %v467_v19 = vld [vmem:[%s2127_s11 + $0x130] sm:$0xff] }
  0x23   : > { %v469_v20 = vld [vmem:[%s2127_s11 + $0x140] sm:$0xff]  ;;  %466 = vst [vmem:[%s2132_s12 + $0x90] sm:$0xff] %v465_v18  ;;  %468 = vst [vmem:[%s2132_s12 + $0x98] sm:$0xff] %v467_v19  ;;  %v471_v21 = vld [vmem:[%s2127_s11 + $0x150] sm:$0xff] }
  0x24   : > { %470 = vst [vmem:[%s2132_s12 + $0xa0] sm:$0xff] %v469_v20  ;;  %v473_v22 = vld [vmem:[%s2127_s11 + $0x160] sm:$0xff]  ;;  %v475_v23 = vld [vmem:[%s2127_s11 + $0x170] sm:$0xff]  ;;  %472 = vst [vmem:[%s2132_s12 + $0xa8] sm:$0xff] %v471_v21 }
  0x25   : > { %474 = vst [vmem:[%s2132_s12 + $0xb0] sm:$0xff] %v473_v22  ;;  %476 = vst [vmem:[%s2132_s12 + $0xb8] sm:$0xff] %v475_v23  ;;  %v477_v24 = vld [vmem:[%s2127_s11 + $0x180] sm:$0xff]  ;;  %v479_v25 = vld [vmem:[%s2127_s11 + $0x190] sm:$0xff] }
  0x26   : > { %v481_v26 = vld [vmem:[%s2127_s11 + $0x1a0] sm:$0xff]  ;;  %478 = vst [vmem:[%s2132_s12 + $0xc0] sm:$0xff] %v477_v24  ;;  %480 = vst [vmem:[%s2132_s12 + $0xc8] sm:$0xff] %v479_v25  ;;  %v483_v27 = vld [vmem:[%s2127_s11 + $0x1b0] sm:$0xff] }
  0x27   : > { %482 = vst [vmem:[%s2132_s12 + $0xd0] sm:$0xff] %v481_v26  ;;  %v485_v28 = vld [vmem:[%s2127_s11 + $0x1c0] sm:$0xff]  ;;  %v487_v29 = vld [vmem:[%s2127_s11 + $0x1d0] sm:$0xff]  ;;  %484 = vst [vmem:[%s2132_s12 + $0xd8] sm:$0xff] %v483_v27 }
  0x28   : > { %486 = vst [vmem:[%s2132_s12 + $0xe0] sm:$0xff] %v485_v28  ;;  %488 = vst [vmem:[%s2132_s12 + $0xe8] sm:$0xff] %v487_v29  ;;  %v489_v30 = vld [vmem:[%s2127_s11 + $0x1e0] sm:$0xff]  ;;  %v491_v31 = vld [vmem:[%s2127_s11 + $0x1f0] sm:$0xff] }
  0x29   : > { %v493_v32 = vld [vmem:[%s2127_s11 + $0x200] sm:$0xff]  ;;  %490 = vst [vmem:[%s2132_s12 + $0xf0] sm:$0xff] %v489_v30  ;;  %492 = vst [vmem:[%s2132_s12 + $0xf8] sm:$0xff] %v491_v31  ;;  %v495_v33 = vld [vmem:[%s2127_s11 + $0x210] sm:$0xff] }
  0x2a   : > { %494 = vst [vmem:[%s2132_s12 + $0x100] sm:$0xff] %v493_v32  ;;  %v497_v34 = vld [vmem:[%s2127_s11 + $0x220] sm:$0xff]  ;;  %v499_v35 = vld [vmem:[%s2127_s11 + $0x230] sm:$0xff]  ;;  %496 = vst [vmem:[%s2132_s12 + $0x108] sm:$0xff] %v495_v33 }
  0x2b   : > { %498 = vst [vmem:[%s2132_s12 + $0x110] sm:$0xff] %v497_v34  ;;  %500 = vst [vmem:[%s2132_s12 + $0x118] sm:$0xff] %v499_v35  ;;  %v501_v36 = vld [vmem:[%s2127_s11 + $0x240] sm:$0xff]  ;;  %v503_v37 = vld [vmem:[%s2127_s11 + $0x250] sm:$0xff] }
  0x2c   : > { %v505_v38 = vld [vmem:[%s2127_s11 + $0x260] sm:$0xff]  ;;  %502 = vst [vmem:[%s2132_s12 + $0x120] sm:$0xff] %v501_v36  ;;  %504 = vst [vmem:[%s2132_s12 + $0x128] sm:$0xff] %v503_v37  ;;  %v507_v39 = vld [vmem:[%s2127_s11 + $0x270] sm:$0xff] }
  0x2d   : > { %506 = vst [vmem:[%s2132_s12 + $0x130] sm:$0xff] %v505_v38  ;;  %v509_v40 = vld [vmem:[%s2127_s11 + $0x280] sm:$0xff]  ;;  %v511_v41 = vld [vmem:[%s2127_s11 + $0x290] sm:$0xff]  ;;  %508 = vst [vmem:[%s2132_s12 + $0x138] sm:$0xff] %v507_v39 }
  0x2e   : > { %510 = vst [vmem:[%s2132_s12 + $0x140] sm:$0xff] %v509_v40  ;;  %512 = vst [vmem:[%s2132_s12 + $0x148] sm:$0xff] %v511_v41  ;;  %v513_v42 = vld [vmem:[%s2127_s11 + $0x2a0] sm:$0xff]  ;;  %v515_v43 = vld [vmem:[%s2127_s11 + $0x2b0] sm:$0xff] }
  0x2f   : > { %v517_v44 = vld [vmem:[%s2127_s11 + $0x2c0] sm:$0xff]  ;;  %514 = vst [vmem:[%s2132_s12 + $0x150] sm:$0xff] %v513_v42  ;;  %516 = vst [vmem:[%s2132_s12 + $0x158] sm:$0xff] %v515_v43  ;;  %v519_v45 = vld [vmem:[%s2127_s11 + $0x2d0] sm:$0xff] }
  0x30   : > { %518 = vst [vmem:[%s2132_s12 + $0x160] sm:$0xff] %v517_v44  ;;  %v521_v46 = vld [vmem:[%s2127_s11 + $0x2e0] sm:$0xff]  ;;  %v523_v47 = vld [vmem:[%s2127_s11 + $0x2f0] sm:$0xff]  ;;  %520 = vst [vmem:[%s2132_s12 + $0x168] sm:$0xff] %v519_v45 }
  0x31   : > { %522 = vst [vmem:[%s2132_s12 + $0x170] sm:$0xff] %v521_v46  ;;  %524 = vst [vmem:[%s2132_s12 + $0x178] sm:$0xff] %v523_v47  ;;  %v525_v48 = vld [vmem:[%s2127_s11 + $0x300] sm:$0xff]  ;;  %v527_v49 = vld [vmem:[%s2127_s11 + $0x310] sm:$0xff] }
  0x32   : > { %v529_v50 = vld [vmem:[%s2127_s11 + $0x320] sm:$0xff]  ;;  %526 = vst [vmem:[%s2132_s12 + $0x180] sm:$0xff] %v525_v48  ;;  %528 = vst [vmem:[%s2132_s12 + $0x188] sm:$0xff] %v527_v49  ;;  %v531_v51 = vld [vmem:[%s2127_s11 + $0x330] sm:$0xff] }
  0x33   : > { %530 = vst [vmem:[%s2132_s12 + $0x190] sm:$0xff] %v529_v50  ;;  %v533_v52 = vld [vmem:[%s2127_s11 + $0x340] sm:$0xff]  ;;  %v535_v53 = vld [vmem:[%s2127_s11 + $0x350] sm:$0xff]  ;;  %532 = vst [vmem:[%s2132_s12 + $0x198] sm:$0xff] %v531_v51 }
  0x34   : > { %534 = vst [vmem:[%s2132_s12 + $0x1a0] sm:$0xff] %v533_v52  ;;  %536 = vst [vmem:[%s2132_s12 + $0x1a8] sm:$0xff] %v535_v53  ;;  %v537_v54 = vld [vmem:[%s2127_s11 + $0x360] sm:$0xff]  ;;  %v539_v55 = vld [vmem:[%s2127_s11 + $0x370] sm:$0xff] }
  0x35   : > { %v541_v56 = vld [vmem:[%s2127_s11 + $0x380] sm:$0xff]  ;;  %538 = vst [vmem:[%s2132_s12 + $0x1b0] sm:$0xff] %v537_v54  ;;  %540 = vst [vmem:[%s2132_s12 + $0x1b8] sm:$0xff] %v539_v55  ;;  %v543_v57 = vld [vmem:[%s2127_s11 + $0x390] sm:$0xff] }
  0x36   : > { %542 = vst [vmem:[%s2132_s12 + $0x1c0] sm:$0xff] %v541_v56  ;;  %v545_v58 = vld [vmem:[%s2127_s11 + $0x3a0] sm:$0xff]  ;;  %v547_v59 = vld [vmem:[%s2127_s11 + $0x3b0] sm:$0xff]  ;;  %544 = vst [vmem:[%s2132_s12 + $0x1c8] sm:$0xff] %v543_v57 }
  0x37   : > { %546 = vst [vmem:[%s2132_s12 + $0x1d0] sm:$0xff] %v545_v58  ;;  %548 = vst [vmem:[%s2132_s12 + $0x1d8] sm:$0xff] %v547_v59  ;;  %v549_v60 = vld [vmem:[%s2127_s11 + $0x3c0] sm:$0xff]  ;;  %v551_v61 = vld [vmem:[%s2127_s11 + $0x3d0] sm:$0xff] }
  0x38   : > { %v553_v62 = vld [vmem:[%s2127_s11 + $0x3e0] sm:$0xff]  ;;  %550 = vst [vmem:[%s2132_s12 + $0x1e0] sm:$0xff] %v549_v60  ;;  %552 = vst [vmem:[%s2132_s12 + $0x1e8] sm:$0xff] %v551_v61  ;;  %v555_v63 = vld [vmem:[%s2127_s11 + $0x3f0] sm:$0xff] }
  0x39   : > { %554 = vst [vmem:[%s2132_s12 + $0x1f0] sm:$0xff] %v553_v62  ;;  %v557_v0 = vld [vmem:[%s2127_s11 + $0x400] sm:$0xff]  ;;  %v559_v1 = vld [vmem:[%s2127_s11 + $0x410] sm:$0xff]  ;;  %556 = vst [vmem:[%s2132_s12 + $0x1f8] sm:$0xff] %v555_v63 }
  0x3a   : > { %558 = vst [vmem:[%s2132_s12 + $0x200] sm:$0xff] %v557_v0  ;;  %560 = vst [vmem:[%s2132_s12 + $0x208] sm:$0xff] %v559_v1  ;;  %v561_v2 = vld [vmem:[%s2127_s11 + $0x420] sm:$0xff]  ;;  %v563_v3 = vld [vmem:[%s2127_s11 + $0x430] sm:$0xff] }
  0x3b   : > { %v565_v4 = vld [vmem:[%s2127_s11 + $0x440] sm:$0xff]  ;;  %562 = vst [vmem:[%s2132_s12 + $0x210] sm:$0xff] %v561_v2  ;;  %564 = vst [vmem:[%s2132_s12 + $0x218] sm:$0xff] %v563_v3  ;;  %v567_v5 = vld [vmem:[%s2127_s11 + $0x450] sm:$0xff] }
  0x3c   : > { %566 = vst [vmem:[%s2132_s12 + $0x220] sm:$0xff] %v565_v4  ;;  %v569_v6 = vld [vmem:[%s2127_s11 + $0x460] sm:$0xff]  ;;  %v571_v7 = vld [vmem:[%s2127_s11 + $0x470] sm:$0xff]  ;;  %568 = vst [vmem:[%s2132_s12 + $0x228] sm:$0xff] %v567_v5 }
  0x3d   : > { %570 = vst [vmem:[%s2132_s12 + $0x230] sm:$0xff] %v569_v6  ;;  %572 = vst [vmem:[%s2132_s12 + $0x238] sm:$0xff] %v571_v7  ;;  %v573_v8 = vld [vmem:[%s2127_s11 + $0x480] sm:$0xff]  ;;  %v575_v9 = vld [vmem:[%s2127_s11 + $0x490] sm:$0xff] }
  0x3e   : > { %v577_v10 = vld [vmem:[%s2127_s11 + $0x4a0] sm:$0xff]  ;;  %574 = vst [vmem:[%s2132_s12 + $0x240] sm:$0xff] %v573_v8  ;;  %576 = vst [vmem:[%s2132_s12 + $0x248] sm:$0xff] %v575_v9  ;;  %v579_v11 = vld [vmem:[%s2127_s11 + $0x4b0] sm:$0xff] }
  0x3f   : > { %578 = vst [vmem:[%s2132_s12 + $0x250] sm:$0xff] %v577_v10  ;;  %v581_v12 = vld [vmem:[%s2127_s11 + $0x4c0] sm:$0xff]  ;;  %v583_v13 = vld [vmem:[%s2127_s11 + $0x4d0] sm:$0xff]  ;;  %580 = vst [vmem:[%s2132_s12 + $0x258] sm:$0xff] %v579_v11 }
  0x40   : > { %582 = vst [vmem:[%s2132_s12 + $0x260] sm:$0xff] %v581_v12  ;;  %584 = vst [vmem:[%s2132_s12 + $0x268] sm:$0xff] %v583_v13  ;;  %v585_v14 = vld [vmem:[%s2127_s11 + $0x4e0] sm:$0xff]  ;;  %v587_v15 = vld [vmem:[%s2127_s11 + $0x4f0] sm:$0xff] }
  0x41   : > { %v589_v16 = vld [vmem:[%s2127_s11 + $0x500] sm:$0xff]  ;;  %586 = vst [vmem:[%s2132_s12 + $0x270] sm:$0xff] %v585_v14  ;;  %588 = vst [vmem:[%s2132_s12 + $0x278] sm:$0xff] %v587_v15  ;;  %v591_v17 = vld [vmem:[%s2127_s11 + $0x510] sm:$0xff] }
  0x42   : > { %590 = vst [vmem:[%s2132_s12 + $0x280] sm:$0xff] %v589_v16  ;;  %v593_v18 = vld [vmem:[%s2127_s11 + $0x520] sm:$0xff]  ;;  %v595_v19 = vld [vmem:[%s2127_s11 + $0x530] sm:$0xff]  ;;  %592 = vst [vmem:[%s2132_s12 + $0x288] sm:$0xff] %v591_v17 }
  0x43   : > { %594 = vst [vmem:[%s2132_s12 + $0x290] sm:$0xff] %v593_v18  ;;  %596 = vst [vmem:[%s2132_s12 + $0x298] sm:$0xff] %v595_v19  ;;  %v597_v20 = vld [vmem:[%s2127_s11 + $0x540] sm:$0xff]  ;;  %v599_v21 = vld [vmem:[%s2127_s11 + $0x550] sm:$0xff] }
  0x44   : > { %v601_v22 = vld [vmem:[%s2127_s11 + $0x560] sm:$0xff]  ;;  %598 = vst [vmem:[%s2132_s12 + $0x2a0] sm:$0xff] %v597_v20  ;;  %600 = vst [vmem:[%s2132_s12 + $0x2a8] sm:$0xff] %v599_v21  ;;  %v603_v23 = vld [vmem:[%s2127_s11 + $0x570] sm:$0xff] }
  0x45   : > { %602 = vst [vmem:[%s2132_s12 + $0x2b0] sm:$0xff] %v601_v22  ;;  %v605_v24 = vld [vmem:[%s2127_s11 + $0x580] sm:$0xff]  ;;  %v607_v25 = vld [vmem:[%s2127_s11 + $0x590] sm:$0xff]  ;;  %604 = vst [vmem:[%s2132_s12 + $0x2b8] sm:$0xff] %v603_v23 }
  0x46   : > { %606 = vst [vmem:[%s2132_s12 + $0x2c0] sm:$0xff] %v605_v24  ;;  %608 = vst [vmem:[%s2132_s12 + $0x2c8] sm:$0xff] %v607_v25  ;;  %v609_v26 = vld [vmem:[%s2127_s11 + $0x5a0] sm:$0xff]  ;;  %v611_v27 = vld [vmem:[%s2127_s11 + $0x5b0] sm:$0xff] }
  0x47   : > { %v613_v28 = vld [vmem:[%s2127_s11 + $0x5c0] sm:$0xff]  ;;  %610 = vst [vmem:[%s2132_s12 + $0x2d0] sm:$0xff] %v609_v26  ;;  %612 = vst [vmem:[%s2132_s12 + $0x2d8] sm:$0xff] %v611_v27  ;;  %v615_v29 = vld [vmem:[%s2127_s11 + $0x5d0] sm:$0xff] }
  0x48   : > { %614 = vst [vmem:[%s2132_s12 + $0x2e0] sm:$0xff] %v613_v28  ;;  %v617_v30 = vld [vmem:[%s2127_s11 + $0x5e0] sm:$0xff]  ;;  %v619_v31 = vld [vmem:[%s2127_s11 + $0x5f0] sm:$0xff]  ;;  %616 = vst [vmem:[%s2132_s12 + $0x2e8] sm:$0xff] %v615_v29 }
  0x49   : > { %618 = vst [vmem:[%s2132_s12 + $0x2f0] sm:$0xff] %v617_v30  ;;  %620 = vst [vmem:[%s2132_s12 + $0x2f8] sm:$0xff] %v619_v31 }
  0x4a PF: > { %p1660_p7 = scmp.ge.s32.totalorder %s2039_s21, 1  ;;  %p646_p8 = scmp.lt.s32.totalorder %s2039_s21, 13 }
  0x4c   : > { %p647_p9 = pnand %p1660_p7, %p646_p8 }
  0x4d   : > { %s653_s13 = sand.u32 (!%p647_p9), 1, %s2015_s15   ;;  %s704_s14 = smul.u32 (!%p647_p9), 6, %s2023_s17 }
  0x4e   : > { %650 = sbr.rel (%p647_p9) target bundleno = 459 (0x1cb), region = 70  ;;  %s1662_s25 = sshll.u32 (!%p647_p9), %s2027_s18, 1 }
  0x4f   : > { %s1777_s24 = smul.u32 (!%p647_p9), 768, %s653_s13  ;;  %p707_p10 = scmp.lt.s32.totalorder (!%p647_p9), %s704_s14, 35 }
  0x50   : > { %p717_p11 = scmp.lt.s32.totalorder (!%p647_p9), %s1662_s25, 3  ;;  %p1667_p12 = scmp.ne.s32.totalorder (!%p647_p9), %s2023_s17, 0 }
  0x51   : > { %s2350_s13 = scalar_lea.vmem (!%p647_p9), [#allocation3], %s1777_s24 }
  0x55   : > { %s2505_s14 = smov (!%p707_p10, %s704_s14), 35  ;;  %s2507_s25 = smov (!%p717_p11, %s1662_s25), 3 }
  0x56   : > { %s1661_s26 = sshll.u32 %s2505_s14, 2  ;;  %s719_s15 = scalar_lea.vmem %s2489_s2, %s2507_s25  ;;  %v2041_v32 = vmov (!%p1667_p12), 0.0  }
  0x57   : > { %s2333_s30 = scalar_lea.vmem %s2487_s0, %s1661_s26  ;;  %s1664_s7 = sshll.u32 %s2507_s25, 2  ;;  %745 = vst [vmem:[#allocation2] sm:$0xff] (!%p1667_p12), %v2041_v32  ;;  %746 = vst [vmem:[#allocation2 + $0x8] sm:$0xff] (!%p1667_p12), %v2041_v32 }
  0x58   : > { %s2343_s9 = scalar_lea.vmem %s2490_s3, %s1664_s7  ;;  %s2348_s12 = scalar_lea.vmem %s2491_s4, %s1664_s7 }
  0x59   : > { %744 = sbr.rel (%p1667_p12) target bundleno = 96 (0x60), region = 78 }
  0x60 PF: > { %v1835_v33 = vld [vmem:[%s2350_s13 + $0x4] ss:$8 sps:$4 sm:$0xff]   ;;  %v1839_v35 = vld [vmem:[%s2350_s13] ss:$8 sps:$4 sm:$0xff]   ;;  %v1841_v37 = vld [vmem:[%s2350_s13 + $0x14] ss:$8 sps:$4 sm:$0xff]  }
  0x61   : > { %v1837_v34 = vld [vmem:[%s2350_s13 + $0x104] ss:$8 sps:$4 sm:$0xff]   ;;  %1349 = vmatprep.subr.bf16.mxu0 %v1835_v33  ;;  %v1840_v36 = vld [vmem:[%s2350_s13 + $0x100] ss:$8 sps:$4 sm:$0xff]   ;;  %v1843_v38 = vld [vmem:[%s2350_s13 + $0x114] ss:$8 sps:$4 sm:$0xff]  }
  0x62   : > { %1390 = vmatprep.subr.bf16.mxu1 %v1837_v34  ;;  %1350 = vmatpush1.bf16.msra.mxu0 %v1839_v35  ;;  %v1845_v39 = vld [vmem:[%s2350_s13 + $0x10] ss:$8 sps:$4 sm:$0xff]   ;;  %v1847_v41 = vld [vmem:[%s2350_s13 + $0x24] ss:$8 sps:$4 sm:$0xff]   ;;  %v1851_v43 = vld [vmem:[%s2350_s13 + $0x20] ss:$8 sps:$4 sm:$0xff]  }
  0x63   : > { %1391 = vmatpush1.bf16.msra.mxu1 %v1840_v36  ;;  %1351 = vmatprep.subr.bf16.mxu0 %v1841_v37  ;;  %v1846_v40 = vld [vmem:[%s2350_s13 + $0x110] ss:$8 sps:$4 sm:$0xff]   ;;  %v1849_v42 = vld [vmem:[%s2350_s13 + $0x124] ss:$8 sps:$4 sm:$0xff]   ;;  %v1852_v44 = vld [vmem:[%s2350_s13 + $0x120] ss:$8 sps:$4 sm:$0xff]  }
  0x64   : > { %1392 = vmatprep.subr.bf16.mxu1 %v1843_v38  ;;  %v1853_v45 = vld [vmem:[%s2350_s13 + $0x34] ss:$8 sps:$4 sm:$0xff]   ;;  %v1857_v47 = vld [vmem:[%s2350_s13 + $0x30] ss:$8 sps:$4 sm:$0xff]   ;;  %v1859_v49 = vld [vmem:[%s2350_s13 + $0x44] ss:$8 sps:$4 sm:$0xff]  }
  0x65   : > { %v1855_v46 = vld [vmem:[%s2350_s13 + $0x134] ss:$8 sps:$4 sm:$0xff]   ;;  %v1858_v48 = vld [vmem:[%s2350_s13 + $0x130] ss:$8 sps:$4 sm:$0xff]   ;;  %v1861_v50 = vld [vmem:[%s2350_s13 + $0x144] ss:$8 sps:$4 sm:$0xff]  }
  0x66   : > { %1352 = vmatpush1.bf16.msra.mxu0 %v1845_v39  ;;  %v1863_v51 = vld [vmem:[%s2350_s13 + $0x40] ss:$8 sps:$4 sm:$0xff]   ;;  %v1865_v53 = vld [vmem:[%s2350_s13 + $0x54] ss:$8 sps:$4 sm:$0xff]   ;;  %v1869_v55 = vld [vmem:[%s2350_s13 + $0x50] ss:$8 sps:$4 sm:$0xff]  }
  0x67   : > { %1393 = vmatpush1.bf16.msra.mxu1 %v1846_v40  ;;  %1353 = vmatprep.subr.bf16.mxu0 %v1847_v41  ;;  %v1864_v52 = vld [vmem:[%s2350_s13 + $0x140] ss:$8 sps:$4 sm:$0xff]   ;;  %v1867_v54 = vld [vmem:[%s2350_s13 + $0x154] ss:$8 sps:$4 sm:$0xff]   ;;  %v1870_v56 = vld [vmem:[%s2350_s13 + $0x150] ss:$8 sps:$4 sm:$0xff]  }
  0x68   : > { %1394 = vmatprep.subr.bf16.mxu1 %v1849_v42  ;;  %v1871_v57 = vld [vmem:[%s2350_s13 + $0x64] ss:$8 sps:$4 sm:$0xff]   ;;  %v1875_v59 = vld [vmem:[%s2350_s13 + $0x60] ss:$8 sps:$4 sm:$0xff]   ;;  %v1877_v61 = vld [vmem:[%s2350_s13 + $0x74] ss:$8 sps:$4 sm:$0xff]  }
  0x69   : > { %v1873_v58 = vld [vmem:[%s2350_s13 + $0x164] ss:$8 sps:$4 sm:$0xff]   ;;  %v1876_v60 = vld [vmem:[%s2350_s13 + $0x160] ss:$8 sps:$4 sm:$0xff]   ;;  %v1879_v62 = vld [vmem:[%s2350_s13 + $0x174] ss:$8 sps:$4 sm:$0xff]  }
  0x6a   : > { %1354 = vmatpush1.bf16.msra.mxu0 %v1851_v43  ;;  %v1881_v63 = vld [vmem:[%s2350_s13 + $0x70] ss:$8 sps:$4 sm:$0xff]   ;;  %v1883_v1 = vld [vmem:[%s2350_s13 + $0x84] ss:$8 sps:$4 sm:$0xff]   ;;  %v1887_v3 = vld [vmem:[%s2350_s13 + $0x80] ss:$8 sps:$4 sm:$0xff]  }
  0x6b   : > { %1395 = vmatpush1.bf16.msra.mxu1 %v1852_v44  ;;  %1355 = vmatprep.subr.bf16.mxu0 %v1853_v45  ;;  %v1882_v0 = vld [vmem:[%s2350_s13 + $0x170] ss:$8 sps:$4 sm:$0xff]   ;;  %v1885_v2 = vld [vmem:[%s2350_s13 + $0x184] ss:$8 sps:$4 sm:$0xff]   ;;  %v1888_v4 = vld [vmem:[%s2350_s13 + $0x180] ss:$8 sps:$4 sm:$0xff]  }
  0x6c   : > { %1396 = vmatprep.subr.bf16.mxu1 %v1855_v46  ;;  %v1889_v5 = vld [vmem:[%s2350_s13 + $0x94] ss:$8 sps:$4 sm:$0xff]   ;;  %v1893_v7 = vld [vmem:[%s2350_s13 + $0x90] ss:$8 sps:$4 sm:$0xff]   ;;  %v1895_v9 = vld [vmem:[%s2350_s13 + $0xa4] ss:$8 sps:$4 sm:$0xff]  }
  0x6d   : > { %v1891_v6 = vld [vmem:[%s2350_s13 + $0x194] ss:$8 sps:$4 sm:$0xff]   ;;  %v1894_v8 = vld [vmem:[%s2350_s13 + $0x190] ss:$8 sps:$4 sm:$0xff]   ;;  %v1897_v10 = vld [vmem:[%s2350_s13 + $0x1a4] ss:$8 sps:$4 sm:$0xff]  }
  0x6e   : > { %1356 = vmatpush1.bf16.msra.mxu0 %v1857_v47  ;;  %v1899_v11 = vld [vmem:[%s2350_s13 + $0xa0] ss:$8 sps:$4 sm:$0xff]   ;;  %v1901_v13 = vld [vmem:[%s2350_s13 + $0xb4] ss:$8 sps:$4 sm:$0xff]   ;;  %v1905_v18 = vld [vmem:[%s2350_s13 + $0xb0] ss:$8 sps:$4 sm:$0xff]  }
  0x6f   : > { %1397 = vmatpush1.bf16.msra.mxu1 %v1858_v48  ;;  %1357 = vmatprep.subr.bf16.mxu0 %v1859_v49  ;;  %v1900_v12 = vld [vmem:[%s2350_s13 + $0x1a0] ss:$8 sps:$4 sm:$0xff]   ;;  %v1903_v14 = vld [vmem:[%s2350_s13 + $0x1b4] ss:$8 sps:$4 sm:$0xff]   ;;  %v1906_v19 = vld [vmem:[%s2350_s13 + $0x1b0] ss:$8 sps:$4 sm:$0xff]  }
  0x70   : > { %1398 = vmatprep.subr.bf16.mxu1 %v1861_v50  ;;  %v749_v15 = vld [vmem:[%s2333_s30] sm:$0xff]  ;;  %v750_v17 = vld [vmem:[%s2333_s30 + $0x8] sm:$0xff]  ;;  %v2422_v41 = vld [vmem:[%s2333_s30 + $0x10] sm:$0xff]  ;;  %p1770_p13 = scmp.ne.s32.totalorder %s2023_s17, 5 }
  0x71   : > { %v1669_v16 = vcombine.high %v749_v15, %v749_v15  ;;  %v1671_v20 = vcombine.high %v750_v17, %v750_v17  ;;  %v1907_v21 = vld [vmem:[%s2350_s13 + $0xc4] ss:$8 sps:$4 sm:$0xff]   ;;  %v1911_v23 = vld [vmem:[%s2350_s13 + $0xc0] ss:$8 sps:$4 sm:$0xff]   ;;  %v1913_v25 = vld [vmem:[%s2350_s13 + $0xd4] ss:$8 sps:$4 sm:$0xff]   ;;  %v1668_v38 = vcombine.low %v749_v15, %v749_v15  ;;  %v1670_v39 = vcombine.low %v750_v17, %v750_v17 }
  0x72   : > { %1358 = vmatpush1.bf16.msra.mxu0 %v1863_v51  ;;  %v1909_v22 = vld [vmem:[%s2350_s13 + $0x1c4] ss:$8 sps:$4 sm:$0xff]   ;;  %v1912_v24 = vld [vmem:[%s2350_s13 + $0x1c0] ss:$8 sps:$4 sm:$0xff]   ;;  %v1915_v26 = vld [vmem:[%s2350_s13 + $0x1d4] ss:$8 sps:$4 sm:$0xff]   ;;  %v1673_v43 = vcombine.high %v2422_v41, %v2422_v41 }
  0x73   : > { %1399 = vmatpush1.bf16.msra.mxu1 %v1864_v52  ;;  %1359 = vmatprep.subr.bf16.mxu0 %v1865_v53  ;;  %v1917_v27 = vld [vmem:[%s2350_s13 + $0xd0] ss:$8 sps:$4 sm:$0xff]   ;;  %v1919_v29 = vld [vmem:[%s2350_s13 + $0xe4] ss:$8 sps:$4 sm:$0xff]   ;;  %v1923_v31 = vld [vmem:[%s2350_s13 + $0xe0] ss:$8 sps:$4 sm:$0xff]  }
  0x74   : > { %1400 = vmatprep.subr.bf16.mxu1 %v1867_v54  ;;  %1381 = vmatprep.mubr.bf16.mxu0 %v1669_v16  ;;  %v1918_v28 = vld [vmem:[%s2350_s13 + $0x1d0] ss:$8 sps:$4 sm:$0xff]   ;;  %v1921_v30 = vld [vmem:[%s2350_s13 + $0x1e4] ss:$8 sps:$4 sm:$0xff]   ;;  %v1924_v32 = vld [vmem:[%s2350_s13 + $0x1e0] ss:$8 sps:$4 sm:$0xff]  }
  0x75   : > { %1422 = vmatprep.mubr.bf16.mxu1 %v1671_v20  ;;  %v1925_v33 = vld [vmem:[%s2350_s13 + $0xf4] ss:$8 sps:$4 sm:$0xff]   ;;  %v1929_v35 = vld [vmem:[%s2350_s13 + $0xf0] ss:$8 sps:$4 sm:$0xff]   ;;  %v1937_v37 = vld [vmem:[%s2350_s13 + $0x204] ss:$8 sps:$4 sm:$0xff]  }
  0x76   : > { %1360 = vmatpush1.bf16.msra.mxu0 %v1869_v55  ;;  %v1927_v34 = vld [vmem:[%s2350_s13 + $0x1f4] ss:$8 sps:$4 sm:$0xff]   ;;  %v1930_v36 = vld [vmem:[%s2350_s13 + $0x1f0] ss:$8 sps:$4 sm:$0xff]   ;;  %v1935_v40 = vld [vmem:[%s2350_s13 + $0x200] ss:$8 sps:$4 sm:$0xff]  }
  0x77   : > { %1401 = vmatpush1.bf16.msra.mxu1 %v1870_v56  ;;  %1361 = vmatprep.subr.bf16.mxu0 %v1871_v57  ;;  %v1940_v42 = vld [vmem:[%s2350_s13 + $0x214] ss:$8 sps:$4 sm:$0xff]   ;;  %v1938_v44 = vld [vmem:[%s2350_s13 + $0x210] ss:$8 sps:$4 sm:$0xff]   ;;  %v1943_v45 = vld [vmem:[%s2350_s13 + $0x224] ss:$8 sps:$4 sm:$0xff]  }
  0x78   : > { %1402 = vmatprep.subr.bf16.mxu1 %v1873_v58  ;;  %v1941_v46 = vld [vmem:[%s2350_s13 + $0x220] ss:$8 sps:$4 sm:$0xff]   ;;  %v1946_v47 = vld [vmem:[%s2350_s13 + $0x234] ss:$8 sps:$4 sm:$0xff]   ;;  %v1944_v48 = vld [vmem:[%s2350_s13 + $0x230] ss:$8 sps:$4 sm:$0xff]  }
  0x79   : > { %v1949_v49 = vld [vmem:[%s2350_s13 + $0x244] ss:$8 sps:$4 sm:$0xff]   ;;  %v1947_v50 = vld [vmem:[%s2350_s13 + $0x240] ss:$8 sps:$4 sm:$0xff]   ;;  %v1952_v51 = vld [vmem:[%s2350_s13 + $0x254] ss:$8 sps:$4 sm:$0xff]  }
  0x7a   : > { %1362 = vmatpush1.bf16.msra.mxu0 %v1875_v59  ;;  %v1950_v52 = vld [vmem:[%s2350_s13 + $0x250] ss:$8 sps:$4 sm:$0xff]   ;;  %v1955_v53 = vld [vmem:[%s2350_s13 + $0x264] ss:$8 sps:$4 sm:$0xff]   ;;  %v1953_v54 = vld [vmem:[%s2350_s13 + $0x260] ss:$8 sps:$4 sm:$0xff]  }
  0x7b   : > { %1403 = vmatpush1.bf16.msra.mxu1 %v1876_v60  ;;  %1363 = vmatprep.subr.bf16.mxu0 %v1877_v61  ;;  %v1958_v55 = vld [vmem:[%s2350_s13 + $0x274] ss:$8 sps:$4 sm:$0xff]   ;;  %v1956_v56 = vld [vmem:[%s2350_s13 + $0x270] ss:$8 sps:$4 sm:$0xff]   ;;  %v1961_v57 = vld [vmem:[%s2350_s13 + $0x284] ss:$8 sps:$4 sm:$0xff]  }
  0x7c   : > { %1404 = vmatprep.subr.bf16.mxu1 %v1879_v62  ;;  %v1959_v58 = vld [vmem:[%s2350_s13 + $0x280] ss:$8 sps:$4 sm:$0xff]   ;;  %v1964_v59 = vld [vmem:[%s2350_s13 + $0x294] ss:$8 sps:$4 sm:$0xff]   ;;  %v1962_v60 = vld [vmem:[%s2350_s13 + $0x290] ss:$8 sps:$4 sm:$0xff]  }
  0x7d   : > { %v1967_v61 = vld [vmem:[%s2350_s13 + $0x2a4] ss:$8 sps:$4 sm:$0xff]   ;;  %v1965_v62 = vld [vmem:[%s2350_s13 + $0x2a0] ss:$8 sps:$4 sm:$0xff]   ;;  %v747_v20 = vld [vmem:[#allocation2] sm:$0xff] }
  0x7e   : > { %1364 = vmatpush1.bf16.msra.mxu0 %v1881_v63  ;;  %v1970_v63 = vld [vmem:[%s2350_s13 + $0x2b4] ss:$8 sps:$4 sm:$0xff]  }
  0x7f   : > { %1405 = vmatpush1.bf16.msra.mxu1 %v1882_v0  ;;  %1365 = vmatprep.subr.bf16.mxu0 %v1883_v1  ;;  %v1968_v0 = vld [vmem:[%s2350_s13 + $0x2b0] ss:$8 sps:$4 sm:$0xff]   ;;  %v1973_v1 = vld [vmem:[%s2350_s13 + $0x2c4] ss:$8 sps:$4 sm:$0xff]  }
  0x80   : > { %1406 = vmatprep.subr.bf16.mxu1 %v1885_v2  ;;  %v1971_v2 = vld [vmem:[%s2350_s13 + $0x2c0] ss:$8 sps:$4 sm:$0xff]  }
  0x82   : > { %1366 = vmatpush1.bf16.msra.mxu0 %v1887_v3  ;;  %v1976_v3 = vld [vmem:[%s2350_s13 + $0x2d4] ss:$8 sps:$4 sm:$0xff]  }
  0x83   : > { %1407 = vmatpush1.bf16.msra.mxu1 %v1888_v4  ;;  %1367 = vmatprep.subr.bf16.mxu0 %v1889_v5  ;;  %v1974_v4 = vld [vmem:[%s2350_s13 + $0x2d0] ss:$8 sps:$4 sm:$0xff]   ;;  %v1979_v5 = vld [vmem:[%s2350_s13 + $0x2e4] ss:$8 sps:$4 sm:$0xff]  }
  0x84   : > { %1408 = vmatprep.subr.bf16.mxu1 %v1891_v6  ;;  %v1977_v6 = vld [vmem:[%s2350_s13 + $0x2e0] ss:$8 sps:$4 sm:$0xff]  }
  0x86   : > { %1368 = vmatpush1.bf16.msra.mxu0 %v1893_v7  ;;  %v1982_v7 = vld [vmem:[%s2350_s13 + $0x2f4] ss:$8 sps:$4 sm:$0xff]  }
  0x87   : > { %1409 = vmatpush1.bf16.msra.mxu1 %v1894_v8  ;;  %1369 = vmatprep.subr.bf16.mxu0 %v1895_v9  ;;  %v1980_v8 = vld [vmem:[%s2350_s13 + $0x2f0] ss:$8 sps:$4 sm:$0xff]   ;;  %v1672_v9 = vcombine.low %v2422_v41, %v2422_v41 }
  0x88   : > { %1410 = vmatprep.subr.bf16.mxu1 %v1897_v10 }
  0x8a   : > { %1370 = vmatpush1.bf16.msra.mxu0 %v1899_v11 }
  0x8b   : > { %1411 = vmatpush1.bf16.msra.mxu1 %v1900_v12  ;;  %1371 = vmatprep.subr.bf16.mxu0 %v1901_v13 }
  0x8c   : > { %1412 = vmatprep.subr.bf16.mxu1 %v1903_v14 }
  0x8e   : > { %1372 = vmatpush1.bf16.msra.mxu0 %v1905_v18 }
  0x8f   : > { %1413 = vmatpush1.bf16.msra.mxu1 %v1906_v19  ;;  %1373 = vmatprep.subr.bf16.mxu0 %v1907_v21 }
  0x90   : > { %1414 = vmatprep.subr.bf16.mxu1 %v1909_v22 }
  0x92   : > { %1374 = vmatpush1.bf16.msra.mxu0 %v1911_v23  ;;  %v748_v23 = vld [vmem:[#allocation2 + $0x8] sm:$0xff] }
  0x93   : > { %1415 = vmatpush1.bf16.msra.mxu1 %v1912_v24  ;;  %1375 = vmatprep.subr.bf16.mxu0 %v1913_v25 }
  0x94   : > { %1416 = vmatprep.subr.bf16.mxu1 %v1915_v26 }
  0x96   : > { %1376 = vmatpush1.bf16.msra.mxu0 %v1917_v27 }
  0x97   : > { %1417 = vmatpush1.bf16.msra.mxu1 %v1918_v28  ;;  %1377 = vmatprep.subr.bf16.mxu0 %v1919_v29 }
  0x98   : > { %1418 = vmatprep.subr.bf16.mxu1 %v1921_v30  ;;  %v1484_v30 = vlaneseq (!%p1770_p13) }
  0x9a   : > { %1378 = vmatpush1.bf16.msra.mxu0 %v1923_v31  ;;  %v1485_v31 = vshrl.u32 (!%p1770_p13), %v1484_v30, 7 }
  0x9b   : > { %1419 = vmatpush1.bf16.msra.mxu1 %v1924_v32  ;;  %1379 = vmatprep.subr.bf16.mxu0 %v1925_v33  ;;  %v1482_v32 = vld [vmem:[%s719_s15] sm:$0x3] (!%p1770_p13) }
  0x9c   : > { %1420 = vmatprep.subr.bf16.mxu1 %v1927_v34  ;;  %v1496_v33 = vld [vmem:[%s2343_s9] sm:$0xff] (!%p1770_p13)  ;;  %v1486_v34 = vsub.s32 (!%p1770_p13), 0, %v1485_v31 }
  0x9d   : > { %v1498_v41 = vunpack.c.h.bf16 (!%p1770_p13), %v1496_v33 }
  0x9e   : > { %1380 = vmatpush1.bf16.msra.mxu0 %v1929_v35  ;;  %v1490_v35 = vsub.s32 (!%p1770_p13), 1, %v1485_v31 }
  0x9f   : > { %1421 = vmatpush1.bf16.msra.mxu1 %v1930_v36  ;;  %1431 = vmatprep.subr.bf16.mxu0 %v1937_v37 }
  0xa1   : > { %1382 = vmatmul.mubr.bf16.vlgmr.msra.gmra.mrb[0].mxu0 %v1668_v38  ;;  %v1487_v38 = vrot.slane (!%p1770_p13), %v1482_v32, %v1486_v34 }
  0xa2   : > { %1423 = vmatmul.mubr.bf16.vlgmr.msra.gmra.mrb[0].mxu1 %v1670_v39  ;;  %1432 = vmatpush1.bf16.msra.mxu0 %v1935_v40  ;;  %v1491_v39 = vrot.slane (!%p1770_p13), %v1482_v32, %v1490_v35  ;;  %v1497_v40 = vunpack.c.l.bf16 (!%p1770_p13), %v1496_v33 }
  0xa3   : > { %1463 = vmatprep.mubr.bf16.mxu0 %v1673_v43  ;;  %1433 = vmatprep.subr.bf16.mxu0 %v1940_v42 }
  0xa6   : > { %1434 = vmatpush1.bf16.msra.mxu0 %v1938_v44 }
  0xa7   : > { %1435 = vmatprep.subr.bf16.mxu0 %v1943_v45 }
  0xaa   : > { %1436 = vmatpush1.bf16.msra.mxu0 %v1941_v46 }
  0xab   : > { %1437 = vmatprep.subr.bf16.mxu0 %v1946_v47 }
  0xae   : > { %1438 = vmatpush1.bf16.msra.mxu0 %v1944_v48 }
  0xaf   : > { %1439 = vmatprep.subr.bf16.mxu0 %v1949_v49 }
  0xb2   : > { %1440 = vmatpush1.bf16.msra.mxu0 %v1947_v50 }
  0xb3   : > { %1441 = vmatprep.subr.bf16.mxu0 %v1952_v51 }
  0xb6   : > { %1442 = vmatpush1.bf16.msra.mxu0 %v1950_v52 }
  0xb7   : > { %1443 = vmatprep.subr.bf16.mxu0 %v1955_v53 }
  0xba   : > { %1444 = vmatpush1.bf16.msra.mxu0 %v1953_v54 }
  0xbb   : > { %1445 = vmatprep.subr.bf16.mxu0 %v1958_v55 }
  0xbe   : > { %1446 = vmatpush1.bf16.msra.mxu0 %v1956_v56 }
  0xbf   : > { %1447 = vmatprep.subr.bf16.mxu0 %v1961_v57 }
  0xc2   : > { %1448 = vmatpush1.bf16.msra.mxu0 %v1959_v58 }
  0xc3   : > { %1449 = vmatprep.subr.bf16.mxu0 %v1964_v59 }
  0xc6   : > { %1450 = vmatpush1.bf16.msra.mxu0 %v1962_v60 }
  0xc7   : > { %1451 = vmatprep.subr.bf16.mxu0 %v1967_v61 }
  0xca   : > { %1452 = vmatpush1.bf16.msra.mxu0 %v1965_v62 }
  0xcb   : > { %1453 = vmatprep.subr.bf16.mxu0 %v1970_v63 }
  0xce   : > { %1454 = vmatpush1.bf16.msra.mxu0 %v1968_v0 }
  0xcf   : > { %1455 = vmatprep.subr.bf16.mxu0 %v1973_v1 }
  0xd2   : > { %1456 = vmatpush1.bf16.msra.mxu0 %v1971_v2 }
  0xd3   : > { %1457 = vmatprep.subr.bf16.mxu0 %v1976_v3 }
  0xd6   : > { %1458 = vmatpush1.bf16.msra.mxu0 %v1974_v4 }
  0xd7   : > { %1459 = vmatprep.subr.bf16.mxu0 %v1979_v5 }
  0xda   : > { %1460 = vmatpush1.bf16.msra.mxu0 %v1977_v6 }
  0xdb   : > { %1461 = vmatprep.subr.bf16.mxu0 %v1982_v7 }
  0xde   : > { %1462 = vmatpush1.bf16.msra.mxu0 %v1980_v8 }
  0xe1   : > { %1464 = vmatmul.mubr.bf16.vlgmr.msra.gmra.mrb[4].mxu0 %v1672_v9 }
 0x174   : > { %v1383_v10 = vpop.f32.mrb[0].mxu0 }
 0x175   : > { %v1424_v11 = vpop.f32.mrb[0].mxu1  ;;  %v1385_v13 = vpop.f32.mrb[1].mxu0 }
 0x176   : > { %v1425_v12 = vadd.f32 %v1424_v11, %v1383_v10  ;;  %v1426_v14 = vpop.f32.mrb[1].mxu1  ;;  %v1387_v16 = vpop.f32.mrb[2].mxu0 }
 0x177   : > { %v1427_v15 = vadd.f32 %v1426_v14, %v1385_v13  ;;  %v1428_v17 = vpop.f32.mrb[2].mxu1  ;;  %v1388_v18 = vpop.f32.mrb[3].mxu0 }
 0x178   : > { %v1429_v19 = vpop.f32.mrb[3].mxu1 }
 0x1b4   : > { %v1465_v21 = vpop.f32.mrb[4].mxu0  ;;  %1479 = sbr.rel (%p1770_p13) target bundleno = 459 (0x1cb), region = 82 }
 0x1b5   : > { %v1466_v22 = vadd.f32 %v1465_v21, %v1425_v12  ;;  %v1467_v24 = vpop.f32.mrb[5].mxu0 }
 0x1b6   : > { %v1468_v25 = vadd.f32 %v1467_v24, %v1427_v15  ;;  %v1469_v26 = vpop.f32.mrb[6].mxu0 }
 0x1b7   : > { %v1472_v27 = vadd.f32 %v1466_v22, %v747_v20  ;;  %v1470_v28 = vpop.f32.mrb[7].mxu0 }
 0x1b8   : > { %v1473_v29 = vadd.f32 %v1468_v25, %v748_v23 }
 0x1b9   : > { %1474 = vst [vmem:[#allocation2] sm:$0xff] %v1472_v27 }
 0x1ba   : > { %1475 = vst [vmem:[#allocation2 + $0x8] sm:$0xff] %v1473_v29 }
 0x1c0   : > { %v1480_v36 = vld [vmem:[#allocation2] sm:$0xff] }
 0x1c1   : > { %v1481_v37 = vld [vmem:[#allocation2 + $0x8] sm:$0xff]  ;;  %v1494_v42 = vadd.f32 %v1487_v38, %v1480_v36 }
 0x1c2   : > { %v1495_v43 = vadd.f32 %v1491_v39, %v1481_v37 }
 0x1c3   : > { %v1499_v44 = vadd.f32 %v1497_v40, %v1494_v42 }
 0x1c4   : > { %v1500_v45 = vadd.f32 %v1498_v41, %v1495_v43 }
 0x1c5   : > { %v1501_v46 = vmax.f32 %v1499_v44, 0.0 }
 0x1c6   : > { %v1502_v47 = vmax.f32 %v1500_v45, 0.0 }
 0x1c8   : > { %v1775_v48 = vpack.c.bf16 %v1502_v47, %v1501_v46 }
 0x1ca   : > { %1511 = vst [vmem:[%s2348_s12] sm:$0xff] %v1775_v48 }
 0x1cb PF: > { %s14_s21 = sadd.s32 1, %s2039_s21   ;;  %s2492_s15 = smov %s2019_s16 }
 0x1cc   : > { %p11_p0 = scmp.ge.s32.totalorder %s14_s21, 14   ;;  %s2493_s16 = smov %s2118_s28 }
 0x1cd   : > { %s2494_s17 = smov %s2031_s19  ;;  %s2495_s18 = smov %s2035_s20 }
 0x1ce   : > { %s2496_s19 = smov %s2499_s22  ;;  %s2497_s20 = smov %s2503_s23 }
 0x1cf   :  { %13 = sbr.rel (!%p11_p0) target bundleno = 4 (0x4), region = 126 }

// kernel: _lambda_.70
= control target key start
LH: loop header
LB: loop body
LE: loop exit
PB: predicated region body
PF: predicated region fallthrough
CT: control target
= control target key end

     0   :  { %s1974_s12 = smov 0   ;;  %s1976_s13 = smov 0   ;;  %s2388_s0 = inlined_call_operand.vmem [shape: bf16[8,4608], index: 0, kind: input, shape index: {}]   ;;  %s2389_s1 = inlined_call_operand.vmem [shape: bf16[4608,512], index: 1, kind: input, shape index: {}]   ;;  %s2390_s2 = inlined_call_operand.vmem [shape: f32[1,512], index: 2, kind: input, shape index: {}]   ;;  %s2391_s3 = inlined_call_operand.vmem [shape: bf16[8,512], index: 3, kind: output, shape index: {}]  }
   0x1   :  { %s1978_s14 = smov 0   ;;  %s1980_s15 = smov 0  }
   0x2   :  { %s1982_s16 = smov 0   ;;  %s1984_s17 = smov 0  }
   0x3   :  { %s1986_s18 = smov 0  }
   0x4 LB: > { %s25_s19 = sadd.s32 1, %s1943_s16  ;;  %s28_s20 = sadd.s32 1, %s1947_s17  ;;  %s1951_s18 = sphi %s1986_s18, %s13_s18   ;;  %s1947_s17 = sphi %s1984_s17, %s2397_s17   ;;  %s1943_s16 = sphi %s1982_s16, %s2396_s16   ;;  %s1939_s15 = sphi %s1980_s15, %s2395_s15   ;;  %s1935_s14 = sphi %s1978_s14, %s2394_s14   ;;  %s1931_s13 = sphi %s1976_s13, %s2393_s13   ;;  %s1927_s12 = sphi %s1974_s12, %s2392_s12  }
   0x5   : > { %p26_p0 = scmp.ge.s32.totalorder %s25_s19, 6  ;;  %p76_p1 = scmp.ne.s32.totalorder %s1931_s13, %s1927_s12 }
   0x6   : > { %p77_p2 = scmp.eq.s32.totalorder %s1951_s18, 0  ;;  %s69_s24 = sadd.s32 1, %s1931_s13 }
   0x7   : > { %s2399_s19 = smov (%p26_p0, %s25_s19), 0  ;;  %s2401_s20 = smov (!%p26_p0, %s28_s20), %s1947_s17 }
   0x8   : > { %p78_p3 = por %p77_p2, %p76_p1  ;;  %p30_p4 = scmp.ge.s32.totalorder %s2401_s20, 2 }
   0x9   : > { %s64_s21 = ssub.s32 %s1943_s16, %s2399_s19  ;;  %p1570_p6 = scmp.ge.s32.totalorder %s1951_s18, 12 }
   0xa   : > { %s2403_s20 = smov (%p30_p4, %s2401_s20), 0 }
   0xb   : > { %s65_s22 = ssub.s32 %s1947_s17, %s2403_s20  ;;  %156 = sbr.rel (%p1570_p6) target bundleno = 74 (0x4a), region = 16 }
   0xc   : > { %s66_s23 = sor.u32 %s65_s22, %s64_s21 }
   0xd   : > { %p67_p5 = scmp.eq.s32.totalorder %s66_s23, 0 }
   0xf   : > { %s2025_s25 = scalar_select %p67_p5, %s1931_s13, %s69_s24  }
  0x12   : > { %172 = sbr.rel (!%p78_p3) target bundleno = 74 (0x4a), region = 24  ;;  %s174_s26 = sand.u32 (%p78_p3), 1, %s1931_s13  }
  0x13   : > { %s1688_s27 = smul.u32 (%p78_p3), 768, %s174_s26  ;;  %s1571_s28 = sshll.u32 (%p78_p3), %s1947_s17, 1 }
  0x14   : > { %s1686_s29 = smul.u32 (%p78_p3), 384, %s1943_s16 }
  0x15   : > { %s2039_s8 = scalar_lea.vmem (%p78_p3), [#allocation3], %s1688_s27 }
  0x16   : > { %s180_s30 = sadd.s32 (%p78_p3), %s1686_s29, %s1571_s28 }
  0x17   : > { %s1573_s4 = sshll.u32 (%p78_p3), %s180_s30, 2 }
  0x18   : > { %s2034_s7 = scalar_lea.vmem (%p78_p3), %s2389_s1, %s1573_s4 }
  0x19   : > { %v400_v0 = vld [vmem:[%s2034_s7] sm:$0xff]  ;;  %v402_v1 = vld [vmem:[%s2034_s7 + $0x10] sm:$0xff] }
  0x1a   : > { %v404_v2 = vld [vmem:[%s2034_s7 + $0x20] sm:$0xff]  ;;  %401 = vst [vmem:[%s2039_s8] sm:$0xff] %v400_v0  ;;  %403 = vst [vmem:[%s2039_s8 + $0x8] sm:$0xff] %v402_v1  ;;  %v406_v3 = vld [vmem:[%s2034_s7 + $0x30] sm:$0xff] }
  0x1b   : > { %405 = vst [vmem:[%s2039_s8 + $0x10] sm:$0xff] %v404_v2  ;;  %v408_v4 = vld [vmem:[%s2034_s7 + $0x40] sm:$0xff]  ;;  %v410_v5 = vld [vmem:[%s2034_s7 + $0x50] sm:$0xff]  ;;  %407 = vst [vmem:[%s2039_s8 + $0x18] sm:$0xff] %v406_v3 }
  0x1c   : > { %409 = vst [vmem:[%s2039_s8 + $0x20] sm:$0xff] %v408_v4  ;;  %411 = vst [vmem:[%s2039_s8 + $0x28] sm:$0xff] %v410_v5  ;;  %v412_v6 = vld [vmem:[%s2034_s7 + $0x60] sm:$0xff]  ;;  %v414_v7 = vld [vmem:[%s2034_s7 + $0x70] sm:$0xff] }
  0x1d   : > { %v416_v8 = vld [vmem:[%s2034_s7 + $0x80] sm:$0xff]  ;;  %413 = vst [vmem:[%s2039_s8 + $0x30] sm:$0xff] %v412_v6  ;;  %415 = vst [vmem:[%s2039_s8 + $0x38] sm:$0xff] %v414_v7  ;;  %v418_v9 = vld [vmem:[%s2034_s7 + $0x90] sm:$0xff] }
  0x1e   : > { %417 = vst [vmem:[%s2039_s8 + $0x40] sm:$0xff] %v416_v8  ;;  %v420_v10 = vld [vmem:[%s2034_s7 + $0xa0] sm:$0xff]  ;;  %v422_v11 = vld [vmem:[%s2034_s7 + $0xb0] sm:$0xff]  ;;  %419 = vst [vmem:[%s2039_s8 + $0x48] sm:$0xff] %v418_v9 }
  0x1f   : > { %421 = vst [vmem:[%s2039_s8 + $0x50] sm:$0xff] %v420_v10  ;;  %423 = vst [vmem:[%s2039_s8 + $0x58] sm:$0xff] %v422_v11  ;;  %v424_v12 = vld [vmem:[%s2034_s7 + $0xc0] sm:$0xff]  ;;  %v426_v13 = vld [vmem:[%s2034_s7 + $0xd0] sm:$0xff] }
  0x20   : > { %v428_v14 = vld [vmem:[%s2034_s7 + $0xe0] sm:$0xff]  ;;  %425 = vst [vmem:[%s2039_s8 + $0x60] sm:$0xff] %v424_v12  ;;  %427 = vst [vmem:[%s2039_s8 + $0x68] sm:$0xff] %v426_v13  ;;  %v430_v15 = vld [vmem:[%s2034_s7 + $0xf0] sm:$0xff] }
  0x21   : > { %429 = vst [vmem:[%s2039_s8 + $0x70] sm:$0xff] %v428_v14  ;;  %v432_v16 = vld [vmem:[%s2034_s7 + $0x100] sm:$0xff]  ;;  %v434_v17 = vld [vmem:[%s2034_s7 + $0x110] sm:$0xff]  ;;  %431 = vst [vmem:[%s2039_s8 + $0x78] sm:$0xff] %v430_v15 }
  0x22   : > { %433 = vst [vmem:[%s2039_s8 + $0x80] sm:$0xff] %v432_v16  ;;  %435 = vst [vmem:[%s2039_s8 + $0x88] sm:$0xff] %v434_v17  ;;  %v436_v18 = vld [vmem:[%s2034_s7 + $0x120] sm:$0xff]  ;;  %v438_v19 = vld [vmem:[%s2034_s7 + $0x130] sm:$0xff] }
  0x23   : > { %v440_v20 = vld [vmem:[%s2034_s7 + $0x140] sm:$0xff]  ;;  %437 = vst [vmem:[%s2039_s8 + $0x90] sm:$0xff] %v436_v18  ;;  %439 = vst [vmem:[%s2039_s8 + $0x98] sm:$0xff] %v438_v19  ;;  %v442_v21 = vld [vmem:[%s2034_s7 + $0x150] sm:$0xff] }
  0x24   : > { %441 = vst [vmem:[%s2039_s8 + $0xa0] sm:$0xff] %v440_v20  ;;  %v444_v22 = vld [vmem:[%s2034_s7 + $0x160] sm:$0xff]  ;;  %v446_v23 = vld [vmem:[%s2034_s7 + $0x170] sm:$0xff]  ;;  %443 = vst [vmem:[%s2039_s8 + $0xa8] sm:$0xff] %v442_v21 }
  0x25   : > { %445 = vst [vmem:[%s2039_s8 + $0xb0] sm:$0xff] %v444_v22  ;;  %447 = vst [vmem:[%s2039_s8 + $0xb8] sm:$0xff] %v446_v23  ;;  %v448_v24 = vld [vmem:[%s2034_s7 + $0x180] sm:$0xff]  ;;  %v450_v25 = vld [vmem:[%s2034_s7 + $0x190] sm:$0xff] }
  0x26   : > { %v452_v26 = vld [vmem:[%s2034_s7 + $0x1a0] sm:$0xff]  ;;  %449 = vst [vmem:[%s2039_s8 + $0xc0] sm:$0xff] %v448_v24  ;;  %451 = vst [vmem:[%s2039_s8 + $0xc8] sm:$0xff] %v450_v25  ;;  %v454_v27 = vld [vmem:[%s2034_s7 + $0x1b0] sm:$0xff] }
  0x27   : > { %453 = vst [vmem:[%s2039_s8 + $0xd0] sm:$0xff] %v452_v26  ;;  %v456_v28 = vld [vmem:[%s2034_s7 + $0x1c0] sm:$0xff]  ;;  %v458_v29 = vld [vmem:[%s2034_s7 + $0x1d0] sm:$0xff]  ;;  %455 = vst [vmem:[%s2039_s8 + $0xd8] sm:$0xff] %v454_v27 }
  0x28   : > { %457 = vst [vmem:[%s2039_s8 + $0xe0] sm:$0xff] %v456_v28  ;;  %459 = vst [vmem:[%s2039_s8 + $0xe8] sm:$0xff] %v458_v29  ;;  %v460_v30 = vld [vmem:[%s2034_s7 + $0x1e0] sm:$0xff]  ;;  %v462_v31 = vld [vmem:[%s2034_s7 + $0x1f0] sm:$0xff] }
  0x29   : > { %v464_v32 = vld [vmem:[%s2034_s7 + $0x200] sm:$0xff]  ;;  %461 = vst [vmem:[%s2039_s8 + $0xf0] sm:$0xff] %v460_v30  ;;  %463 = vst [vmem:[%s2039_s8 + $0xf8] sm:$0xff] %v462_v31  ;;  %v466_v33 = vld [vmem:[%s2034_s7 + $0x210] sm:$0xff] }
  0x2a   : > { %465 = vst [vmem:[%s2039_s8 + $0x100] sm:$0xff] %v464_v32  ;;  %v468_v34 = vld [vmem:[%s2034_s7 + $0x220] sm:$0xff]  ;;  %v470_v35 = vld [vmem:[%s2034_s7 + $0x230] sm:$0xff]  ;;  %467 = vst [vmem:[%s2039_s8 + $0x108] sm:$0xff] %v466_v33 }
  0x2b   : > { %469 = vst [vmem:[%s2039_s8 + $0x110] sm:$0xff] %v468_v34  ;;  %471 = vst [vmem:[%s2039_s8 + $0x118] sm:$0xff] %v470_v35  ;;  %v472_v36 = vld [vmem:[%s2034_s7 + $0x240] sm:$0xff]  ;;  %v474_v37 = vld [vmem:[%s2034_s7 + $0x250] sm:$0xff] }
  0x2c   : > { %v476_v38 = vld [vmem:[%s2034_s7 + $0x260] sm:$0xff]  ;;  %473 = vst [vmem:[%s2039_s8 + $0x120] sm:$0xff] %v472_v36  ;;  %475 = vst [vmem:[%s2039_s8 + $0x128] sm:$0xff] %v474_v37  ;;  %v478_v39 = vld [vmem:[%s2034_s7 + $0x270] sm:$0xff] }
  0x2d   : > { %477 = vst [vmem:[%s2039_s8 + $0x130] sm:$0xff] %v476_v38  ;;  %v480_v40 = vld [vmem:[%s2034_s7 + $0x280] sm:$0xff]  ;;  %v482_v41 = vld [vmem:[%s2034_s7 + $0x290] sm:$0xff]  ;;  %479 = vst [vmem:[%s2039_s8 + $0x138] sm:$0xff] %v478_v39 }
  0x2e   : > { %481 = vst [vmem:[%s2039_s8 + $0x140] sm:$0xff] %v480_v40  ;;  %483 = vst [vmem:[%s2039_s8 + $0x148] sm:$0xff] %v482_v41  ;;  %v484_v42 = vld [vmem:[%s2034_s7 + $0x2a0] sm:$0xff]  ;;  %v486_v43 = vld [vmem:[%s2034_s7 + $0x2b0] sm:$0xff] }
  0x2f   : > { %v488_v44 = vld [vmem:[%s2034_s7 + $0x2c0] sm:$0xff]  ;;  %485 = vst [vmem:[%s2039_s8 + $0x150] sm:$0xff] %v484_v42  ;;  %487 = vst [vmem:[%s2039_s8 + $0x158] sm:$0xff] %v486_v43  ;;  %v490_v45 = vld [vmem:[%s2034_s7 + $0x2d0] sm:$0xff] }
  0x30   : > { %489 = vst [vmem:[%s2039_s8 + $0x160] sm:$0xff] %v488_v44  ;;  %v492_v46 = vld [vmem:[%s2034_s7 + $0x2e0] sm:$0xff]  ;;  %v494_v47 = vld [vmem:[%s2034_s7 + $0x2f0] sm:$0xff]  ;;  %491 = vst [vmem:[%s2039_s8 + $0x168] sm:$0xff] %v490_v45 }
  0x31   : > { %493 = vst [vmem:[%s2039_s8 + $0x170] sm:$0xff] %v492_v46  ;;  %495 = vst [vmem:[%s2039_s8 + $0x178] sm:$0xff] %v494_v47  ;;  %v496_v48 = vld [vmem:[%s2034_s7 + $0x300] sm:$0xff]  ;;  %v498_v49 = vld [vmem:[%s2034_s7 + $0x310] sm:$0xff] }
  0x32   : > { %v500_v50 = vld [vmem:[%s2034_s7 + $0x320] sm:$0xff]  ;;  %497 = vst [vmem:[%s2039_s8 + $0x180] sm:$0xff] %v496_v48  ;;  %499 = vst [vmem:[%s2039_s8 + $0x188] sm:$0xff] %v498_v49  ;;  %v502_v51 = vld [vmem:[%s2034_s7 + $0x330] sm:$0xff] }
  0x33   : > { %501 = vst [vmem:[%s2039_s8 + $0x190] sm:$0xff] %v500_v50  ;;  %v504_v52 = vld [vmem:[%s2034_s7 + $0x340] sm:$0xff]  ;;  %v506_v53 = vld [vmem:[%s2034_s7 + $0x350] sm:$0xff]  ;;  %503 = vst [vmem:[%s2039_s8 + $0x198] sm:$0xff] %v502_v51 }
  0x34   : > { %505 = vst [vmem:[%s2039_s8 + $0x1a0] sm:$0xff] %v504_v52  ;;  %507 = vst [vmem:[%s2039_s8 + $0x1a8] sm:$0xff] %v506_v53  ;;  %v508_v54 = vld [vmem:[%s2034_s7 + $0x360] sm:$0xff]  ;;  %v510_v55 = vld [vmem:[%s2034_s7 + $0x370] sm:$0xff] }
  0x35   : > { %v512_v56 = vld [vmem:[%s2034_s7 + $0x380] sm:$0xff]  ;;  %509 = vst [vmem:[%s2039_s8 + $0x1b0] sm:$0xff] %v508_v54  ;;  %511 = vst [vmem:[%s2039_s8 + $0x1b8] sm:$0xff] %v510_v55  ;;  %v514_v57 = vld [vmem:[%s2034_s7 + $0x390] sm:$0xff] }
  0x36   : > { %513 = vst [vmem:[%s2039_s8 + $0x1c0] sm:$0xff] %v512_v56  ;;  %v516_v58 = vld [vmem:[%s2034_s7 + $0x3a0] sm:$0xff]  ;;  %v518_v59 = vld [vmem:[%s2034_s7 + $0x3b0] sm:$0xff]  ;;  %515 = vst [vmem:[%s2039_s8 + $0x1c8] sm:$0xff] %v514_v57 }
  0x37   : > { %517 = vst [vmem:[%s2039_s8 + $0x1d0] sm:$0xff] %v516_v58  ;;  %519 = vst [vmem:[%s2039_s8 + $0x1d8] sm:$0xff] %v518_v59  ;;  %v520_v60 = vld [vmem:[%s2034_s7 + $0x3c0] sm:$0xff]  ;;  %v522_v61 = vld [vmem:[%s2034_s7 + $0x3d0] sm:$0xff] }
  0x38   : > { %v524_v62 = vld [vmem:[%s2034_s7 + $0x3e0] sm:$0xff]  ;;  %521 = vst [vmem:[%s2039_s8 + $0x1e0] sm:$0xff] %v520_v60  ;;  %523 = vst [vmem:[%s2039_s8 + $0x1e8] sm:$0xff] %v522_v61  ;;  %v526_v63 = vld [vmem:[%s2034_s7 + $0x3f0] sm:$0xff] }
  0x39   : > { %525 = vst [vmem:[%s2039_s8 + $0x1f0] sm:$0xff] %v524_v62  ;;  %v528_v0 = vld [vmem:[%s2034_s7 + $0x400] sm:$0xff]  ;;  %v530_v1 = vld [vmem:[%s2034_s7 + $0x410] sm:$0xff]  ;;  %527 = vst [vmem:[%s2039_s8 + $0x1f8] sm:$0xff] %v526_v63 }
  0x3a   : > { %529 = vst [vmem:[%s2039_s8 + $0x200] sm:$0xff] %v528_v0  ;;  %531 = vst [vmem:[%s2039_s8 + $0x208] sm:$0xff] %v530_v1  ;;  %v532_v2 = vld [vmem:[%s2034_s7 + $0x420] sm:$0xff]  ;;  %v534_v3 = vld [vmem:[%s2034_s7 + $0x430] sm:$0xff] }
  0x3b   : > { %v536_v4 = vld [vmem:[%s2034_s7 + $0x440] sm:$0xff]  ;;  %533 = vst [vmem:[%s2039_s8 + $0x210] sm:$0xff] %v532_v2  ;;  %535 = vst [vmem:[%s2039_s8 + $0x218] sm:$0xff] %v534_v3  ;;  %v538_v5 = vld [vmem:[%s2034_s7 + $0x450] sm:$0xff] }
  0x3c   : > { %537 = vst [vmem:[%s2039_s8 + $0x220] sm:$0xff] %v536_v4  ;;  %v540_v6 = vld [vmem:[%s2034_s7 + $0x460] sm:$0xff]  ;;  %v542_v7 = vld [vmem:[%s2034_s7 + $0x470] sm:$0xff]  ;;  %539 = vst [vmem:[%s2039_s8 + $0x228] sm:$0xff] %v538_v5 }
  0x3d   : > { %541 = vst [vmem:[%s2039_s8 + $0x230] sm:$0xff] %v540_v6  ;;  %543 = vst [vmem:[%s2039_s8 + $0x238] sm:$0xff] %v542_v7  ;;  %v544_v8 = vld [vmem:[%s2034_s7 + $0x480] sm:$0xff]  ;;  %v546_v9 = vld [vmem:[%s2034_s7 + $0x490] sm:$0xff] }
  0x3e   : > { %v548_v10 = vld [vmem:[%s2034_s7 + $0x4a0] sm:$0xff]  ;;  %545 = vst [vmem:[%s2039_s8 + $0x240] sm:$0xff] %v544_v8  ;;  %547 = vst [vmem:[%s2039_s8 + $0x248] sm:$0xff] %v546_v9  ;;  %v550_v11 = vld [vmem:[%s2034_s7 + $0x4b0] sm:$0xff] }
  0x3f   : > { %549 = vst [vmem:[%s2039_s8 + $0x250] sm:$0xff] %v548_v10  ;;  %v552_v12 = vld [vmem:[%s2034_s7 + $0x4c0] sm:$0xff]  ;;  %v554_v13 = vld [vmem:[%s2034_s7 + $0x4d0] sm:$0xff]  ;;  %551 = vst [vmem:[%s2039_s8 + $0x258] sm:$0xff] %v550_v11 }
  0x40   : > { %553 = vst [vmem:[%s2039_s8 + $0x260] sm:$0xff] %v552_v12  ;;  %555 = vst [vmem:[%s2039_s8 + $0x268] sm:$0xff] %v554_v13  ;;  %v556_v14 = vld [vmem:[%s2034_s7 + $0x4e0] sm:$0xff]  ;;  %v558_v15 = vld [vmem:[%s2034_s7 + $0x4f0] sm:$0xff] }
  0x41   : > { %v560_v16 = vld [vmem:[%s2034_s7 + $0x500] sm:$0xff]  ;;  %557 = vst [vmem:[%s2039_s8 + $0x270] sm:$0xff] %v556_v14  ;;  %559 = vst [vmem:[%s2039_s8 + $0x278] sm:$0xff] %v558_v15  ;;  %v562_v17 = vld [vmem:[%s2034_s7 + $0x510] sm:$0xff] }
  0x42   : > { %561 = vst [vmem:[%s2039_s8 + $0x280] sm:$0xff] %v560_v16  ;;  %v564_v18 = vld [vmem:[%s2034_s7 + $0x520] sm:$0xff]  ;;  %v566_v19 = vld [vmem:[%s2034_s7 + $0x530] sm:$0xff]  ;;  %563 = vst [vmem:[%s2039_s8 + $0x288] sm:$0xff] %v562_v17 }
  0x43   : > { %565 = vst [vmem:[%s2039_s8 + $0x290] sm:$0xff] %v564_v18  ;;  %567 = vst [vmem:[%s2039_s8 + $0x298] sm:$0xff] %v566_v19  ;;  %v568_v20 = vld [vmem:[%s2034_s7 + $0x540] sm:$0xff]  ;;  %v570_v21 = vld [vmem:[%s2034_s7 + $0x550] sm:$0xff] }
  0x44   : > { %v572_v22 = vld [vmem:[%s2034_s7 + $0x560] sm:$0xff]  ;;  %569 = vst [vmem:[%s2039_s8 + $0x2a0] sm:$0xff] %v568_v20  ;;  %571 = vst [vmem:[%s2039_s8 + $0x2a8] sm:$0xff] %v570_v21  ;;  %v574_v23 = vld [vmem:[%s2034_s7 + $0x570] sm:$0xff] }
  0x45   : > { %573 = vst [vmem:[%s2039_s8 + $0x2b0] sm:$0xff] %v572_v22  ;;  %v576_v24 = vld [vmem:[%s2034_s7 + $0x580] sm:$0xff]  ;;  %v578_v25 = vld [vmem:[%s2034_s7 + $0x590] sm:$0xff]  ;;  %575 = vst [vmem:[%s2039_s8 + $0x2b8] sm:$0xff] %v574_v23 }
  0x46   : > { %577 = vst [vmem:[%s2039_s8 + $0x2c0] sm:$0xff] %v576_v24  ;;  %579 = vst [vmem:[%s2039_s8 + $0x2c8] sm:$0xff] %v578_v25  ;;  %v580_v26 = vld [vmem:[%s2034_s7 + $0x5a0] sm:$0xff]  ;;  %v582_v27 = vld [vmem:[%s2034_s7 + $0x5b0] sm:$0xff] }
  0x47   : > { %v584_v28 = vld [vmem:[%s2034_s7 + $0x5c0] sm:$0xff]  ;;  %581 = vst [vmem:[%s2039_s8 + $0x2d0] sm:$0xff] %v580_v26  ;;  %583 = vst [vmem:[%s2039_s8 + $0x2d8] sm:$0xff] %v582_v27  ;;  %v586_v29 = vld [vmem:[%s2034_s7 + $0x5d0] sm:$0xff] }
  0x48   : > { %585 = vst [vmem:[%s2039_s8 + $0x2e0] sm:$0xff] %v584_v28  ;;  %v588_v30 = vld [vmem:[%s2034_s7 + $0x5e0] sm:$0xff]  ;;  %v590_v31 = vld [vmem:[%s2034_s7 + $0x5f0] sm:$0xff]  ;;  %587 = vst [vmem:[%s2039_s8 + $0x2e8] sm:$0xff] %v586_v29 }
  0x49   : > { %589 = vst [vmem:[%s2039_s8 + $0x2f0] sm:$0xff] %v588_v30  ;;  %591 = vst [vmem:[%s2039_s8 + $0x2f8] sm:$0xff] %v590_v31 }
  0x4a PF: > { %p1574_p7 = scmp.ge.s32.totalorder %s1951_s18, 1  ;;  %p604_p8 = scmp.lt.s32.totalorder %s1951_s18, 13 }
  0x4c   : > { %p605_p9 = pnand %p1574_p7, %p604_p8 }
  0x4d   : > { %s611_s9 = sand.u32 (!%p605_p9), 1, %s1927_s12   ;;  %s651_s10 = smul.u32 (!%p605_p9), 6, %s1935_s14 }
  0x4e   : > { %608 = sbr.rel (%p605_p9) target bundleno = 456 (0x1c8), region = 66  ;;  %s1576_s21 = sshll.u32 (!%p605_p9), %s1939_s15, 1 }
  0x4f   : > { %s1689_s11 = smul.u32 (!%p605_p9), 768, %s611_s9  ;;  %p654_p10 = scmp.lt.s32.totalorder (!%p605_p9), %s651_s10, 35 }
  0x50   : > { %p664_p11 = scmp.lt.s32.totalorder (!%p605_p9), %s1576_s21, 3  ;;  %p1579_p12 = scmp.ne.s32.totalorder (!%p605_p9), %s1935_s14, 0 }
  0x51   : > { %s2252_s5 = scalar_lea.vmem (!%p605_p9), [#allocation3], %s1689_s11 }
  0x55   : > { %s2405_s10 = smov (!%p654_p10, %s651_s10), 35  ;;  %s2407_s21 = smov (!%p664_p11, %s1576_s21), 3 }
  0x56   : > { %s1575_s22 = sshll.u32 %s2405_s10, 2  ;;  %s666_s12 = scalar_lea.vmem %s2390_s2, %s2407_s21  ;;  %v1953_v32 = vmov (!%p1579_p12), 0.0  }
  0x57   : > { %s2240_s26 = scalar_lea.vmem %s2388_s0, %s1575_s22  ;;  %s1578_s29 = sshll.u32 %s2407_s21, 2  ;;  %682 = vst [vmem:[#allocation2] sm:$0xff] (!%p1579_p12), %v1953_v32  ;;  %683 = vst [vmem:[#allocation2 + $0x8] sm:$0xff] (!%p1579_p12), %v1953_v32 }
  0x58   : > { %s2250_s4 = scalar_lea.vmem %s2391_s3, %s1578_s29  ;;  %681 = sbr.rel (%p1579_p12) target bundleno = 95 (0x5f), region = 74 }
  0x5f PF: > { %v1747_v33 = vld [vmem:[%s2252_s5 + $0x4] ss:$8 sps:$4 sm:$0xff]   ;;  %v1751_v35 = vld [vmem:[%s2252_s5] ss:$8 sps:$4 sm:$0xff]   ;;  %v1753_v37 = vld [vmem:[%s2252_s5 + $0x14] ss:$8 sps:$4 sm:$0xff]  }
  0x60   : > { %v1749_v34 = vld [vmem:[%s2252_s5 + $0x104] ss:$8 sps:$4 sm:$0xff]   ;;  %1286 = vmatprep.subr.bf16.mxu0 %v1747_v33  ;;  %v1752_v36 = vld [vmem:[%s2252_s5 + $0x100] ss:$8 sps:$4 sm:$0xff]   ;;  %v1755_v38 = vld [vmem:[%s2252_s5 + $0x114] ss:$8 sps:$4 sm:$0xff]  }
  0x61   : > { %1327 = vmatprep.subr.bf16.mxu1 %v1749_v34  ;;  %1287 = vmatpush1.bf16.msra.mxu0 %v1751_v35  ;;  %v1757_v39 = vld [vmem:[%s2252_s5 + $0x10] ss:$8 sps:$4 sm:$0xff]   ;;  %v1759_v41 = vld [vmem:[%s2252_s5 + $0x24] ss:$8 sps:$4 sm:$0xff]   ;;  %v1763_v43 = vld [vmem:[%s2252_s5 + $0x20] ss:$8 sps:$4 sm:$0xff]  }
  0x62   : > { %1328 = vmatpush1.bf16.msra.mxu1 %v1752_v36  ;;  %1288 = vmatprep.subr.bf16.mxu0 %v1753_v37  ;;  %v1758_v40 = vld [vmem:[%s2252_s5 + $0x110] ss:$8 sps:$4 sm:$0xff]   ;;  %v1761_v42 = vld [vmem:[%s2252_s5 + $0x124] ss:$8 sps:$4 sm:$0xff]   ;;  %v1764_v44 = vld [vmem:[%s2252_s5 + $0x120] ss:$8 sps:$4 sm:$0xff]  }
  0x63   : > { %1329 = vmatprep.subr.bf16.mxu1 %v1755_v38  ;;  %v1765_v45 = vld [vmem:[%s2252_s5 + $0x34] ss:$8 sps:$4 sm:$0xff]   ;;  %v1769_v47 = vld [vmem:[%s2252_s5 + $0x30] ss:$8 sps:$4 sm:$0xff]   ;;  %v1771_v49 = vld [vmem:[%s2252_s5 + $0x44] ss:$8 sps:$4 sm:$0xff]  }
  0x64   : > { %v1767_v46 = vld [vmem:[%s2252_s5 + $0x134] ss:$8 sps:$4 sm:$0xff]   ;;  %v1770_v48 = vld [vmem:[%s2252_s5 + $0x130] ss:$8 sps:$4 sm:$0xff]   ;;  %v1773_v50 = vld [vmem:[%s2252_s5 + $0x144] ss:$8 sps:$4 sm:$0xff]  }
  0x65   : > { %1289 = vmatpush1.bf16.msra.mxu0 %v1757_v39  ;;  %v1775_v51 = vld [vmem:[%s2252_s5 + $0x40] ss:$8 sps:$4 sm:$0xff]   ;;  %v1777_v53 = vld [vmem:[%s2252_s5 + $0x54] ss:$8 sps:$4 sm:$0xff]   ;;  %v1781_v55 = vld [vmem:[%s2252_s5 + $0x50] ss:$8 sps:$4 sm:$0xff]  }
  0x66   : > { %1330 = vmatpush1.bf16.msra.mxu1 %v1758_v40  ;;  %1290 = vmatprep.subr.bf16.mxu0 %v1759_v41  ;;  %v1776_v52 = vld [vmem:[%s2252_s5 + $0x140] ss:$8 sps:$4 sm:$0xff]   ;;  %v1779_v54 = vld [vmem:[%s2252_s5 + $0x154] ss:$8 sps:$4 sm:$0xff]   ;;  %v1782_v56 = vld [vmem:[%s2252_s5 + $0x150] ss:$8 sps:$4 sm:$0xff]  }
  0x67   : > { %1331 = vmatprep.subr.bf16.mxu1 %v1761_v42  ;;  %v1783_v57 = vld [vmem:[%s2252_s5 + $0x64] ss:$8 sps:$4 sm:$0xff]   ;;  %v1787_v59 = vld [vmem:[%s2252_s5 + $0x60] ss:$8 sps:$4 sm:$0xff]   ;;  %v1789_v61 = vld [vmem:[%s2252_s5 + $0x74] ss:$8 sps:$4 sm:$0xff]  }
  0x68   : > { %v1785_v58 = vld [vmem:[%s2252_s5 + $0x164] ss:$8 sps:$4 sm:$0xff]   ;;  %v1788_v60 = vld [vmem:[%s2252_s5 + $0x160] ss:$8 sps:$4 sm:$0xff]   ;;  %v1791_v62 = vld [vmem:[%s2252_s5 + $0x174] ss:$8 sps:$4 sm:$0xff]  }
  0x69   : > { %1291 = vmatpush1.bf16.msra.mxu0 %v1763_v43  ;;  %v1793_v63 = vld [vmem:[%s2252_s5 + $0x70] ss:$8 sps:$4 sm:$0xff]   ;;  %v1795_v1 = vld [vmem:[%s2252_s5 + $0x84] ss:$8 sps:$4 sm:$0xff]   ;;  %v1799_v3 = vld [vmem:[%s2252_s5 + $0x80] ss:$8 sps:$4 sm:$0xff]  }
  0x6a   : > { %1332 = vmatpush1.bf16.msra.mxu1 %v1764_v44  ;;  %1292 = vmatprep.subr.bf16.mxu0 %v1765_v45  ;;  %v1794_v0 = vld [vmem:[%s2252_s5 + $0x170] ss:$8 sps:$4 sm:$0xff]   ;;  %v1797_v2 = vld [vmem:[%s2252_s5 + $0x184] ss:$8 sps:$4 sm:$0xff]   ;;  %v1800_v4 = vld [vmem:[%s2252_s5 + $0x180] ss:$8 sps:$4 sm:$0xff]  }
  0x6b   : > { %1333 = vmatprep.subr.bf16.mxu1 %v1767_v46  ;;  %v1801_v5 = vld [vmem:[%s2252_s5 + $0x94] ss:$8 sps:$4 sm:$0xff]   ;;  %v1805_v7 = vld [vmem:[%s2252_s5 + $0x90] ss:$8 sps:$4 sm:$0xff]   ;;  %v1807_v9 = vld [vmem:[%s2252_s5 + $0xa4] ss:$8 sps:$4 sm:$0xff]  }
  0x6c   : > { %v1803_v6 = vld [vmem:[%s2252_s5 + $0x194] ss:$8 sps:$4 sm:$0xff]   ;;  %v1806_v8 = vld [vmem:[%s2252_s5 + $0x190] ss:$8 sps:$4 sm:$0xff]   ;;  %v1809_v10 = vld [vmem:[%s2252_s5 + $0x1a4] ss:$8 sps:$4 sm:$0xff]  }
  0x6d   : > { %1293 = vmatpush1.bf16.msra.mxu0 %v1769_v47  ;;  %v1811_v11 = vld [vmem:[%s2252_s5 + $0xa0] ss:$8 sps:$4 sm:$0xff]   ;;  %v1813_v13 = vld [vmem:[%s2252_s5 + $0xb4] ss:$8 sps:$4 sm:$0xff]   ;;  %v1817_v18 = vld [vmem:[%s2252_s5 + $0xb0] ss:$8 sps:$4 sm:$0xff]  }
  0x6e   : > { %1334 = vmatpush1.bf16.msra.mxu1 %v1770_v48  ;;  %1294 = vmatprep.subr.bf16.mxu0 %v1771_v49  ;;  %v1812_v12 = vld [vmem:[%s2252_s5 + $0x1a0] ss:$8 sps:$4 sm:$0xff]   ;;  %v1815_v14 = vld [vmem:[%s2252_s5 + $0x1b4] ss:$8 sps:$4 sm:$0xff]   ;;  %v1818_v19 = vld [vmem:[%s2252_s5 + $0x1b0] ss:$8 sps:$4 sm:$0xff]  }
  0x6f   : > { %1335 = vmatprep.subr.bf16.mxu1 %v1773_v50  ;;  %v686_v15 = vld [vmem:[%s2240_s26] sm:$0xff]  ;;  %v687_v17 = vld [vmem:[%s2240_s26 + $0x8] sm:$0xff]  ;;  %v2324_v41 = vld [vmem:[%s2240_s26 + $0x10] sm:$0xff]  ;;  %p1682_p13 = scmp.ne.s32.totalorder %s1935_s14, 5 }
  0x70   : > { %v1581_v16 = vcombine.high %v686_v15, %v686_v15  ;;  %v1583_v20 = vcombine.high %v687_v17, %v687_v17  ;;  %v1819_v21 = vld [vmem:[%s2252_s5 + $0xc4] ss:$8 sps:$4 sm:$0xff]   ;;  %v1823_v23 = vld [vmem:[%s2252_s5 + $0xc0] ss:$8 sps:$4 sm:$0xff]   ;;  %v1825_v25 = vld [vmem:[%s2252_s5 + $0xd4] ss:$8 sps:$4 sm:$0xff]   ;;  %v1580_v38 = vcombine.low %v686_v15, %v686_v15  ;;  %v1582_v39 = vcombine.low %v687_v17, %v687_v17 }
  0x71   : > { %1295 = vmatpush1.bf16.msra.mxu0 %v1775_v51  ;;  %v1821_v22 = vld [vmem:[%s2252_s5 + $0x1c4] ss:$8 sps:$4 sm:$0xff]   ;;  %v1824_v24 = vld [vmem:[%s2252_s5 + $0x1c0] ss:$8 sps:$4 sm:$0xff]   ;;  %v1827_v26 = vld [vmem:[%s2252_s5 + $0x1d4] ss:$8 sps:$4 sm:$0xff]   ;;  %v1585_v43 = vcombine.high %v2324_v41, %v2324_v41 }
  0x72   : > { %1336 = vmatpush1.bf16.msra.mxu1 %v1776_v52  ;;  %1296 = vmatprep.subr.bf16.mxu0 %v1777_v53  ;;  %v1829_v27 = vld [vmem:[%s2252_s5 + $0xd0] ss:$8 sps:$4 sm:$0xff]   ;;  %v1831_v29 = vld [vmem:[%s2252_s5 + $0xe4] ss:$8 sps:$4 sm:$0xff]   ;;  %v1835_v31 = vld [vmem:[%s2252_s5 + $0xe0] ss:$8 sps:$4 sm:$0xff]  }
  0x73   : > { %1337 = vmatprep.subr.bf16.mxu1 %v1779_v54  ;;  %1318 = vmatprep.mubr.bf16.mxu0 %v1581_v16  ;;  %v1830_v28 = vld [vmem:[%s2252_s5 + $0x1d0] ss:$8 sps:$4 sm:$0xff]   ;;  %v1833_v30 = vld [vmem:[%s2252_s5 + $0x1e4] ss:$8 sps:$4 sm:$0xff]   ;;  %v1836_v32 = vld [vmem:[%s2252_s5 + $0x1e0] ss:$8 sps:$4 sm:$0xff]  }
  0x74   : > { %1359 = vmatprep.mubr.bf16.mxu1 %v1583_v20  ;;  %v1837_v33 = vld [vmem:[%s2252_s5 + $0xf4] ss:$8 sps:$4 sm:$0xff]   ;;  %v1841_v35 = vld [vmem:[%s2252_s5 + $0xf0] ss:$8 sps:$4 sm:$0xff]   ;;  %v1849_v37 = vld [vmem:[%s2252_s5 + $0x204] ss:$8 sps:$4 sm:$0xff]  }
  0x75   : > { %1297 = vmatpush1.bf16.msra.mxu0 %v1781_v55  ;;  %v1839_v34 = vld [vmem:[%s2252_s5 + $0x1f4] ss:$8 sps:$4 sm:$0xff]   ;;  %v1842_v36 = vld [vmem:[%s2252_s5 + $0x1f0] ss:$8 sps:$4 sm:$0xff]   ;;  %v1847_v40 = vld [vmem:[%s2252_s5 + $0x200] ss:$8 sps:$4 sm:$0xff]  }
  0x76   : > { %1338 = vmatpush1.bf16.msra.mxu1 %v1782_v56  ;;  %1298 = vmatprep.subr.bf16.mxu0 %v1783_v57  ;;  %v1852_v42 = vld [vmem:[%s2252_s5 + $0x214] ss:$8 sps:$4 sm:$0xff]   ;;  %v1850_v44 = vld [vmem:[%s2252_s5 + $0x210] ss:$8 sps:$4 sm:$0xff]   ;;  %v1855_v45 = vld [vmem:[%s2252_s5 + $0x224] ss:$8 sps:$4 sm:$0xff]  }
  0x77   : > { %1339 = vmatprep.subr.bf16.mxu1 %v1785_v58  ;;  %v1853_v46 = vld [vmem:[%s2252_s5 + $0x220] ss:$8 sps:$4 sm:$0xff]   ;;  %v1858_v47 = vld [vmem:[%s2252_s5 + $0x234] ss:$8 sps:$4 sm:$0xff]   ;;  %v1856_v48 = vld [vmem:[%s2252_s5 + $0x230] ss:$8 sps:$4 sm:$0xff]  }
  0x78   : > { %v1861_v49 = vld [vmem:[%s2252_s5 + $0x244] ss:$8 sps:$4 sm:$0xff]   ;;  %v1859_v50 = vld [vmem:[%s2252_s5 + $0x240] ss:$8 sps:$4 sm:$0xff]   ;;  %v1864_v51 = vld [vmem:[%s2252_s5 + $0x254] ss:$8 sps:$4 sm:$0xff]  }
  0x79   : > { %1299 = vmatpush1.bf16.msra.mxu0 %v1787_v59  ;;  %v1862_v52 = vld [vmem:[%s2252_s5 + $0x250] ss:$8 sps:$4 sm:$0xff]   ;;  %v1867_v53 = vld [vmem:[%s2252_s5 + $0x264] ss:$8 sps:$4 sm:$0xff]   ;;  %v1865_v54 = vld [vmem:[%s2252_s5 + $0x260] ss:$8 sps:$4 sm:$0xff]  }
  0x7a   : > { %1340 = vmatpush1.bf16.msra.mxu1 %v1788_v60  ;;  %1300 = vmatprep.subr.bf16.mxu0 %v1789_v61  ;;  %v1870_v55 = vld [vmem:[%s2252_s5 + $0x274] ss:$8 sps:$4 sm:$0xff]   ;;  %v1868_v56 = vld [vmem:[%s2252_s5 + $0x270] ss:$8 sps:$4 sm:$0xff]   ;;  %v1873_v57 = vld [vmem:[%s2252_s5 + $0x284] ss:$8 sps:$4 sm:$0xff]  }
  0x7b   : > { %1341 = vmatprep.subr.bf16.mxu1 %v1791_v62  ;;  %v1871_v58 = vld [vmem:[%s2252_s5 + $0x280] ss:$8 sps:$4 sm:$0xff]   ;;  %v1876_v59 = vld [vmem:[%s2252_s5 + $0x294] ss:$8 sps:$4 sm:$0xff]   ;;  %v1874_v60 = vld [vmem:[%s2252_s5 + $0x290] ss:$8 sps:$4 sm:$0xff]  }
  0x7c   : > { %v1879_v61 = vld [vmem:[%s2252_s5 + $0x2a4] ss:$8 sps:$4 sm:$0xff]   ;;  %v1877_v62 = vld [vmem:[%s2252_s5 + $0x2a0] ss:$8 sps:$4 sm:$0xff]   ;;  %v684_v20 = vld [vmem:[#allocation2] sm:$0xff] }
  0x7d   : > { %1301 = vmatpush1.bf16.msra.mxu0 %v1793_v63  ;;  %v1882_v63 = vld [vmem:[%s2252_s5 + $0x2b4] ss:$8 sps:$4 sm:$0xff]  }
  0x7e   : > { %1342 = vmatpush1.bf16.msra.mxu1 %v1794_v0  ;;  %1302 = vmatprep.subr.bf16.mxu0 %v1795_v1  ;;  %v1880_v0 = vld [vmem:[%s2252_s5 + $0x2b0] ss:$8 sps:$4 sm:$0xff]   ;;  %v1885_v1 = vld [vmem:[%s2252_s5 + $0x2c4] ss:$8 sps:$4 sm:$0xff]  }
  0x7f   : > { %1343 = vmatprep.subr.bf16.mxu1 %v1797_v2  ;;  %v1883_v2 = vld [vmem:[%s2252_s5 + $0x2c0] ss:$8 sps:$4 sm:$0xff]  }
  0x81   : > { %1303 = vmatpush1.bf16.msra.mxu0 %v1799_v3  ;;  %v1888_v3 = vld [vmem:[%s2252_s5 + $0x2d4] ss:$8 sps:$4 sm:$0xff]  }
  0x82   : > { %1344 = vmatpush1.bf16.msra.mxu1 %v1800_v4  ;;  %1304 = vmatprep.subr.bf16.mxu0 %v1801_v5  ;;  %v1886_v4 = vld [vmem:[%s2252_s5 + $0x2d0] ss:$8 sps:$4 sm:$0xff]   ;;  %v1891_v5 = vld [vmem:[%s2252_s5 + $0x2e4] ss:$8 sps:$4 sm:$0xff]  }
  0x83   : > { %1345 = vmatprep.subr.bf16.mxu1 %v1803_v6  ;;  %v1889_v6 = vld [vmem:[%s2252_s5 + $0x2e0] ss:$8 sps:$4 sm:$0xff]  }
  0x85   : > { %1305 = vmatpush1.bf16.msra.mxu0 %v1805_v7  ;;  %v1894_v7 = vld [vmem:[%s2252_s5 + $0x2f4] ss:$8 sps:$4 sm:$0xff]  }
  0x86   : > { %1346 = vmatpush1.bf16.msra.mxu1 %v1806_v8  ;;  %1306 = vmatprep.subr.bf16.mxu0 %v1807_v9  ;;  %v1892_v8 = vld [vmem:[%s2252_s5 + $0x2f0] ss:$8 sps:$4 sm:$0xff]   ;;  %v1584_v9 = vcombine.low %v2324_v41, %v2324_v41 }
  0x87   : > { %1347 = vmatprep.subr.bf16.mxu1 %v1809_v10 }
  0x89   : > { %1307 = vmatpush1.bf16.msra.mxu0 %v1811_v11 }
  0x8a   : > { %1348 = vmatpush1.bf16.msra.mxu1 %v1812_v12  ;;  %1308 = vmatprep.subr.bf16.mxu0 %v1813_v13 }
  0x8b   : > { %1349 = vmatprep.subr.bf16.mxu1 %v1815_v14 }
  0x8d   : > { %1309 = vmatpush1.bf16.msra.mxu0 %v1817_v18 }
  0x8e   : > { %1350 = vmatpush1.bf16.msra.mxu1 %v1818_v19  ;;  %1310 = vmatprep.subr.bf16.mxu0 %v1819_v21 }
  0x8f   : > { %1351 = vmatprep.subr.bf16.mxu1 %v1821_v22 }
  0x91   : > { %1311 = vmatpush1.bf16.msra.mxu0 %v1823_v23  ;;  %v685_v23 = vld [vmem:[#allocation2 + $0x8] sm:$0xff] }
  0x92   : > { %1352 = vmatpush1.bf16.msra.mxu1 %v1824_v24  ;;  %1312 = vmatprep.subr.bf16.mxu0 %v1825_v25 }
  0x93   : > { %1353 = vmatprep.subr.bf16.mxu1 %v1827_v26 }
  0x95   : > { %1313 = vmatpush1.bf16.msra.mxu0 %v1829_v27 }
  0x96   : > { %1354 = vmatpush1.bf16.msra.mxu1 %v1830_v28  ;;  %1314 = vmatprep.subr.bf16.mxu0 %v1831_v29 }
  0x97   : > { %1355 = vmatprep.subr.bf16.mxu1 %v1833_v30  ;;  %v1421_v30 = vlaneseq (!%p1682_p13) }
  0x99   : > { %1315 = vmatpush1.bf16.msra.mxu0 %v1835_v31  ;;  %v1422_v31 = vshrl.u32 (!%p1682_p13), %v1421_v30, 7 }
  0x9a   : > { %1356 = vmatpush1.bf16.msra.mxu1 %v1836_v32  ;;  %1316 = vmatprep.subr.bf16.mxu0 %v1837_v33  ;;  %v1419_v32 = vld [vmem:[%s666_s12] sm:$0x3] (!%p1682_p13) }
  0x9b   : > { %1357 = vmatprep.subr.bf16.mxu1 %v1839_v34  ;;  %v1423_v33 = vsub.s32 (!%p1682_p13), 0, %v1422_v31  ;;  %v1427_v34 = vsub.s32 (!%p1682_p13), 1, %v1422_v31 }
  0x9d   : > { %1317 = vmatpush1.bf16.msra.mxu0 %v1841_v35 }
  0x9e   : > { %1358 = vmatpush1.bf16.msra.mxu1 %v1842_v36  ;;  %1368 = vmatprep.subr.bf16.mxu0 %v1849_v37  ;;  %v1424_v37 = vrot.slane (!%p1682_p13), %v1419_v32, %v1423_v33 }
  0xa0   : > { %1319 = vmatmul.mubr.bf16.vlgmr.msra.gmra.mrb[0].mxu0 %v1580_v38  ;;  %v1428_v38 = vrot.slane (!%p1682_p13), %v1419_v32, %v1427_v34 }
  0xa1   : > { %1360 = vmatmul.mubr.bf16.vlgmr.msra.gmra.mrb[0].mxu1 %v1582_v39  ;;  %1369 = vmatpush1.bf16.msra.mxu0 %v1847_v40 }
  0xa2   : > { %1400 = vmatprep.mubr.bf16.mxu0 %v1585_v43  ;;  %1370 = vmatprep.subr.bf16.mxu0 %v1852_v42 }
  0xa5   : > { %1371 = vmatpush1.bf16.msra.mxu0 %v1850_v44 }
  0xa6   : > { %1372 = vmatprep.subr.bf16.mxu0 %v1855_v45 }
  0xa9   : > { %1373 = vmatpush1.bf16.msra.mxu0 %v1853_v46 }
  0xaa   : > { %1374 = vmatprep.subr.bf16.mxu0 %v1858_v47 }
  0xad   : > { %1375 = vmatpush1.bf16.msra.mxu0 %v1856_v48 }
  0xae   : > { %1376 = vmatprep.subr.bf16.mxu0 %v1861_v49 }
  0xb1   : > { %1377 = vmatpush1.bf16.msra.mxu0 %v1859_v50 }
  0xb2   : > { %1378 = vmatprep.subr.bf16.mxu0 %v1864_v51 }
  0xb5   : > { %1379 = vmatpush1.bf16.msra.mxu0 %v1862_v52 }
  0xb6   : > { %1380 = vmatprep.subr.bf16.mxu0 %v1867_v53 }
  0xb9   : > { %1381 = vmatpush1.bf16.msra.mxu0 %v1865_v54 }
  0xba   : > { %1382 = vmatprep.subr.bf16.mxu0 %v1870_v55 }
  0xbd   : > { %1383 = vmatpush1.bf16.msra.mxu0 %v1868_v56 }
  0xbe   : > { %1384 = vmatprep.subr.bf16.mxu0 %v1873_v57 }
  0xc1   : > { %1385 = vmatpush1.bf16.msra.mxu0 %v1871_v58 }
  0xc2   : > { %1386 = vmatprep.subr.bf16.mxu0 %v1876_v59 }
  0xc5   : > { %1387 = vmatpush1.bf16.msra.mxu0 %v1874_v60 }
  0xc6   : > { %1388 = vmatprep.subr.bf16.mxu0 %v1879_v61 }
  0xc9   : > { %1389 = vmatpush1.bf16.msra.mxu0 %v1877_v62 }
  0xca   : > { %1390 = vmatprep.subr.bf16.mxu0 %v1882_v63 }
  0xcd   : > { %1391 = vmatpush1.bf16.msra.mxu0 %v1880_v0 }
  0xce   : > { %1392 = vmatprep.subr.bf16.mxu0 %v1885_v1 }
  0xd1   : > { %1393 = vmatpush1.bf16.msra.mxu0 %v1883_v2 }
  0xd2   : > { %1394 = vmatprep.subr.bf16.mxu0 %v1888_v3 }
  0xd5   : > { %1395 = vmatpush1.bf16.msra.mxu0 %v1886_v4 }
  0xd6   : > { %1396 = vmatprep.subr.bf16.mxu0 %v1891_v5 }
  0xd9   : > { %1397 = vmatpush1.bf16.msra.mxu0 %v1889_v6 }
  0xda   : > { %1398 = vmatprep.subr.bf16.mxu0 %v1894_v7 }
  0xdd   : > { %1399 = vmatpush1.bf16.msra.mxu0 %v1892_v8 }
  0xe0   : > { %1401 = vmatmul.mubr.bf16.vlgmr.msra.gmra.mrb[4].mxu0 %v1584_v9 }
 0x173   : > { %v1320_v10 = vpop.f32.mrb[0].mxu0 }
 0x174   : > { %v1361_v11 = vpop.f32.mrb[0].mxu1  ;;  %v1322_v13 = vpop.f32.mrb[1].mxu0 }
 0x175   : > { %v1362_v12 = vadd.f32 %v1361_v11, %v1320_v10  ;;  %v1363_v14 = vpop.f32.mrb[1].mxu1  ;;  %v1324_v16 = vpop.f32.mrb[2].mxu0 }
 0x176   : > { %v1364_v15 = vadd.f32 %v1363_v14, %v1322_v13  ;;  %v1365_v17 = vpop.f32.mrb[2].mxu1  ;;  %v1325_v18 = vpop.f32.mrb[3].mxu0 }
 0x177   : > { %v1366_v19 = vpop.f32.mrb[3].mxu1 }
 0x1b3   : > { %v1402_v21 = vpop.f32.mrb[4].mxu0  ;;  %1416 = sbr.rel (%p1682_p13) target bundleno = 456 (0x1c8), region = 78 }
 0x1b4   : > { %v1403_v22 = vadd.f32 %v1402_v21, %v1362_v12  ;;  %v1404_v24 = vpop.f32.mrb[5].mxu0 }
 0x1b5   : > { %v1405_v25 = vadd.f32 %v1404_v24, %v1364_v15  ;;  %v1406_v26 = vpop.f32.mrb[6].mxu0 }
 0x1b6   : > { %v1409_v27 = vadd.f32 %v1403_v22, %v684_v20  ;;  %v1407_v28 = vpop.f32.mrb[7].mxu0 }
 0x1b7   : > { %v1410_v29 = vadd.f32 %v1405_v25, %v685_v23 }
 0x1b8   : > { %1411 = vst [vmem:[#allocation2] sm:$0xff] %v1409_v27 }
 0x1b9   : > { %1412 = vst [vmem:[#allocation2 + $0x8] sm:$0xff] %v1410_v29 }
 0x1bf   : > { %v1417_v35 = vld [vmem:[#allocation2] sm:$0xff] }
 0x1c0   : > { %v1418_v36 = vld [vmem:[#allocation2 + $0x8] sm:$0xff]  ;;  %v1431_v39 = vadd.f32 %v1424_v37, %v1417_v35 }
 0x1c1   : > { %v1432_v40 = vadd.f32 %v1428_v38, %v1418_v36 }
 0x1c2   : > { %v1433_v41 = vmax.f32 %v1431_v39, 0.0 }
 0x1c3   : > { %v1434_v42 = vmax.f32 %v1432_v40, 0.0 }
 0x1c5   : > { %v1687_v43 = vpack.c.bf16 %v1434_v42, %v1433_v41 }
 0x1c7   : > { %1443 = vst [vmem:[%s2250_s4] sm:$0xff] %v1687_v43 }
 0x1c8 PF: > { %s13_s18 = sadd.s32 1, %s1951_s18   ;;  %s2392_s12 = smov %s1931_s13 }
 0x1c9   : > { %p10_p0 = scmp.ge.s32.totalorder %s13_s18, 14   ;;  %s2393_s13 = smov %s2025_s25 }
 0x1ca   : > { %s2394_s14 = smov %s1943_s16  ;;  %s2395_s15 = smov %s1947_s17 }
 0x1cb   : > { %s2396_s16 = smov %s2399_s19  ;;  %s2397_s17 = smov %s2403_s20 }
 0x1cc   :  { %12 = sbr.rel (!%p10_p0) target bundleno = 4 (0x4), region = 119 }

// kernel: _lambda_.74
= control target key start
LH: loop header
LB: loop body
LE: loop exit
PB: predicated region body
PF: predicated region fallthrough
CT: control target
= control target key end

     0   :  { %vm21_vm0 = vcmask 1041409   ;;  %vm23_vm1 = vcmask 1043459   ;;  %vm25_vm2 = vcmask 1045509   ;;  %vm27_vm3 = vcmask 1047559   ;;  %s55_s0 = inlined_call_operand.vmem [shape: bf16[2,1,512], index: 0, kind: input, shape index: {}]   ;;  %s56_s1 = inlined_call_operand.vmem [shape: f32[2,512], index: 1, kind: output, shape index: {}]  }
   0x1   :  { %v36_v0 = vld [vmem:[%s55_s0] sm:$0xff]  }
   0x2   :  { %v37_v1 = vunpack.c.l.bf16 %v36_v0  ;;  %v38_v2 = vunpack.c.h.bf16 %v36_v0 }
   0x4   :  { %v20_v3 = vrot.slane %v38_v2, 7 }
   0x6   :  { %v22_v4 = vsel %vm21_vm0, %v20_v3, %v37_v1 }
   0x7   :  { %v24_v5 = vsel %vm23_vm1, %v20_v3, %v22_v4 }
   0x8   :  { %v26_v6 = vsel %vm25_vm2, %v20_v3, %v24_v5 }
   0x9   :  { %v28_v7 = vsel %vm27_vm3, %v20_v3, %v26_v6 }
   0xa   :  { %30 = vst [vmem:[%s56_s1] sm:$0xff] %v28_v7 }

// kernel: _lambda_.75
= control target key start
LH: loop header
LB: loop body
LE: loop exit
PB: predicated region body
PF: predicated region fallthrough
CT: control target
= control target key end

     0   :  { %s637_s1 = inlined_call_operand.vmem [shape: bf16[512,128], index: 1, kind: input, shape index: {}]   ;;  %s638_s0 = inlined_call_operand.vmem [shape: bf16[8,512], index: 0, kind: input, shape index: {}]   ;;  %s639_s2 = inlined_call_operand.vmem [shape: f32[1,128], index: 2, kind: input, shape index: {}]   ;;  %s640_s3 = inlined_call_operand.vmem [shape: f32[8,128], index: 3, kind: output, shape index: {}]  }
   0x1   :  { %v473_v0 = vld [vmem:[%s637_s1 + $0x40] sm:$0xff]   ;;  %v477_v4 = vld [vmem:[%s637_s1 + $0x48] sm:$0xff]   ;;  %v481_v8 = vld [vmem:[%s637_s1 + $0x50] sm:$0xff]  }
   0x2   :  { %v474_v1 = vld [vmem:[%s637_s1 + $0xc0] sm:$0xff]   ;;  %429 = vmatprep.subr.bf16.mxu0 %v473_v0  ;;  %v478_v5 = vld [vmem:[%s637_s1 + $0xc8] sm:$0xff]   ;;  %v482_v9 = vld [vmem:[%s637_s1 + $0xd0] sm:$0xff]  }
   0x3   :  { %v475_v2 = vld [vmem:[%s637_s1] sm:$0xff]   ;;  %451 = vmatprep.subr.bf16.mxu1 %v474_v1  ;;  %v479_v6 = vld [vmem:[%s637_s1 + $0x8] sm:$0xff]   ;;  %v483_v10 = vld [vmem:[%s637_s1 + $0x10] sm:$0xff]  }
   0x4   :  { %v476_v3 = vld [vmem:[%s637_s1 + $0x80] sm:$0xff]   ;;  %430 = vmatpush3.bf16.msra.mxu0 %v475_v2  ;;  %v480_v7 = vld [vmem:[%s637_s1 + $0x88] sm:$0xff]   ;;  %v484_v11 = vld [vmem:[%s637_s1 + $0x90] sm:$0xff]  }
   0x5   :  { %452 = vmatpush3.bf16.msra.mxu1 %v476_v3  ;;  %431 = vmatprep.subr.bf16.mxu0 %v477_v4  ;;  %v485_v12 = vld [vmem:[%s637_s1 + $0x58] sm:$0xff]   ;;  %v489_v16 = vld [vmem:[%s637_s1 + $0x60] sm:$0xff]   ;;  %v493_v20 = vld [vmem:[%s637_s1 + $0x68] sm:$0xff]  }
   0x6   :  { %453 = vmatprep.subr.bf16.mxu1 %v478_v5  ;;  %v486_v13 = vld [vmem:[%s637_s1 + $0xd8] sm:$0xff]   ;;  %v490_v17 = vld [vmem:[%s637_s1 + $0xe0] sm:$0xff]   ;;  %v494_v21 = vld [vmem:[%s637_s1 + $0xe8] sm:$0xff]  }
   0x7   :  { %v487_v14 = vld [vmem:[%s637_s1 + $0x18] sm:$0xff]   ;;  %v491_v18 = vld [vmem:[%s637_s1 + $0x20] sm:$0xff]   ;;  %v495_v22 = vld [vmem:[%s637_s1 + $0x28] sm:$0xff]  }
   0x8   :  { %432 = vmatpush3.bf16.msra.mxu0 %v479_v6  ;;  %v488_v15 = vld [vmem:[%s637_s1 + $0x98] sm:$0xff]   ;;  %v492_v19 = vld [vmem:[%s637_s1 + $0xa0] sm:$0xff]   ;;  %v496_v23 = vld [vmem:[%s637_s1 + $0xa8] sm:$0xff]  }
   0x9   :  { %454 = vmatpush3.bf16.msra.mxu1 %v480_v7  ;;  %433 = vmatprep.subr.bf16.mxu0 %v481_v8  ;;  %v497_v24 = vld [vmem:[%s637_s1 + $0x70] sm:$0xff]   ;;  %v501_v28 = vld [vmem:[%s637_s1 + $0x78] sm:$0xff]   ;;  %v21_v32 = vld [vmem:[%s638_s0] sm:$0xff] }
   0xa   :  { %455 = vmatprep.subr.bf16.mxu1 %v482_v9  ;;  %v498_v25 = vld [vmem:[%s637_s1 + $0xf0] sm:$0xff]   ;;  %v502_v29 = vld [vmem:[%s637_s1 + $0xf8] sm:$0xff]   ;;  %v22_v33 = vld [vmem:[%s638_s0 + $0x8] sm:$0xff]  ;;  %v392_v34 = vcombine.low %v21_v32, %v21_v32  ;;  %v393_v35 = vcombine.high %v21_v32, %v21_v32 }
   0xb   :  { %v499_v26 = vld [vmem:[%s637_s1 + $0x30] sm:$0xff]   ;;  %v503_v30 = vld [vmem:[%s637_s1 + $0x38] sm:$0xff]   ;;  %v394_v36 = vcombine.low %v22_v33, %v22_v33  ;;  %v395_v37 = vcombine.high %v22_v33, %v22_v33  ;;  %v428_v46 = vld [vmem:[%s639_s2] ss:$0 sm:$0xff] }
   0xc   :  { %434 = vmatpush3.bf16.msra.mxu0 %v483_v10  ;;  %v500_v27 = vld [vmem:[%s637_s1 + $0xb0] sm:$0xff]   ;;  %v504_v31 = vld [vmem:[%s637_s1 + $0xb8] sm:$0xff]   ;;  %325 = vmatprep.mubr.bf16.mxu0 %v393_v35 }
   0xd   :  { %456 = vmatpush3.bf16.msra.mxu1 %v484_v11  ;;  %435 = vmatprep.subr.bf16.mxu0 %v485_v12 }
   0xe   :  { %457 = vmatprep.subr.bf16.mxu1 %v486_v13  ;;  %365 = vmatprep.mubr.bf16.mxu1 %v395_v37 }
  0x10   :  { %436 = vmatpush3.bf16.msra.mxu0 %v487_v14 }
  0x11   :  { %458 = vmatpush3.bf16.msra.mxu1 %v488_v15  ;;  %437 = vmatprep.subr.bf16.mxu0 %v489_v16 }
  0x12   :  { %459 = vmatprep.subr.bf16.mxu1 %v490_v17 }
  0x14   :  { %438 = vmatpush3.bf16.msra.mxu0 %v491_v18 }
  0x15   :  { %460 = vmatpush3.bf16.msra.mxu1 %v492_v19  ;;  %439 = vmatprep.subr.bf16.mxu0 %v493_v20 }
  0x16   :  { %461 = vmatprep.subr.bf16.mxu1 %v494_v21 }
  0x18   :  { %440 = vmatpush3.bf16.msra.mxu0 %v495_v22 }
  0x19   :  { %462 = vmatpush3.bf16.msra.mxu1 %v496_v23  ;;  %441 = vmatprep.subr.bf16.mxu0 %v497_v24 }
  0x1a   :  { %463 = vmatprep.subr.bf16.mxu1 %v498_v25 }
  0x1c   :  { %442 = vmatpush3.bf16.msra.mxu0 %v499_v26 }
  0x1d   :  { %464 = vmatpush3.bf16.msra.mxu1 %v500_v27  ;;  %443 = vmatprep.subr.bf16.mxu0 %v501_v28 }
  0x1e   :  { %465 = vmatprep.subr.bf16.mxu1 %v502_v29 }
  0x20   :  { %444 = vmatpush3.bf16.msra.mxu0 %v503_v30 }
  0x21   :  { %466 = vmatpush3.bf16.msra.mxu1 %v504_v31 }
  0x23   :  { %326 = vmatmul.mubr.bf16.vlgmr.msra.gmra.mrb[0].mxu0 %v392_v34 }
  0x24   :  { %366 = vmatmul.mubr.bf16.vlgmr.msra.gmra.mrb[0].mxu1 %v394_v36 }
  0xf6   :  { %v445_v38 = vpop.f32.mrb[0].mxu0 }
  0xf7   :  { %v467_v39 = vpop.f32.mrb[0].mxu1  ;;  %v446_v40 = vpop.f32.mrb[1].mxu0 }
  0xf8   :  { %v468_v41 = vpop.f32.mrb[1].mxu1  ;;  %v447_v42 = vadd.f32 %v446_v40, %v445_v38  ;;  %v448_v44 = vpop.f32.mrb[2].mxu0 }
  0xf9   :  { %v469_v43 = vadd.f32 %v468_v41, %v467_v39  ;;  %v470_v45 = vpop.f32.mrb[2].mxu1  ;;  %v449_v47 = vpop.f32.mrb[3].mxu0 }
  0xfa   :  { %v471_v48 = vpop.f32.mrb[3].mxu1 }
  0xfb   :  { %v368_v49 = vadd.f32 %v469_v43, %v447_v42 }
  0xfd   :  { %v386_v50 = vadd.f32 %v428_v46, %v368_v49 }
  0xff   :  { %387 = vst [vmem:[%s640_s3] sm:$0xff] %v386_v50 }

</bundles_post_ra>
